<compile_context>
chip_gen: v5e
topology: v5e:2x2
jax: 0.10.0
libtpu: 0.0.40
codegen_flags: <defaults>
</compile_context>

<pallas_src>
import functools

import jax
import jax.numpy as jnp
from jax.experimental import pallas as pl
from jax.experimental.pallas import tpu as pltpu

EPS = 1e-5   # PyTorch LayerNorm default


# ----------------------------- fused layer kernel -----------------------------
def _layer_kernel(a_ref, b_ref, t_ref, pe_ref,
                  gam_ref, bet_ref, attw_ref, attb_ref,
                  f1w_ref, f1b_ref, f2w_ref, f2b_ref,
                  ao_ref, bo_ref, to_ref, *, heads):
    f32 = jnp.float32
    a = a_ref[0].astype(f32)     # (N,  D)
    b = b_ref[0].astype(f32)     # (N,  D)
    t = t_ref[0].astype(f32)     # (Nt, D)
    pe = pe_ref[0].astype(f32)   # (N,  D)

    D = a.shape[-1]
    dh = D // heads
    scale = 1.0 / float(dh) ** 0.5

    def layernorm(x, idx):
        g = gam_ref[idx].astype(f32)     # (1, D)
        bb = bet_ref[idx].astype(f32)    # (1, D)
        mu = jnp.mean(x, axis=-1, keepdims=True)
        var = jnp.mean((x - mu) ** 2, axis=-1, keepdims=True)
        return (x - mu) * jax.lax.rsqrt(var + EPS) * g + bb

    def attention(ai, q_in, k_in, v_in):
        wq = attw_ref[ai, 0].astype(f32); bq = attb_ref[ai, 0].astype(f32)
        wk = attw_ref[ai, 1].astype(f32); bk = attb_ref[ai, 1].astype(f32)
        wv = attw_ref[ai, 2].astype(f32); bv = attb_ref[ai, 2].astype(f32)
        wo = attw_ref[ai, 3].astype(f32); bo = attb_ref[ai, 3].astype(f32)
        Nq, Nk = q_in.shape[0], k_in.shape[0]

        # 1/sqrt(dh) folded into Q once (single VPU multiply instead of per-head).
        Q = (jnp.dot(q_in, wq, preferred_element_type=f32) + bq) * scale
        K = jnp.dot(k_in, wk, preferred_element_type=f32) + bk
        V = jnp.dot(v_in, wv, preferred_element_type=f32) + bv

        # Head-batched attention: (heads, N, dh) layout + batched NT einsums.
        Qh = jnp.swapaxes(Q.reshape(Nq, heads, dh), 0, 1)   # (H, Nq, dh)
        Kh = jnp.swapaxes(K.reshape(Nk, heads, dh), 0, 1)   # (H, Nk, dh)
        Vh = jnp.swapaxes(V.reshape(Nk, heads, dh), 0, 1)   # (H, Nk, dh)

        s = jnp.einsum('hqd,hkd->hqk', Qh, Kh,
                       preferred_element_type=f32)           # (H, Nq, Nk)
        # TODO(synk): attention mask not implemented (forward is exercised with mask=None).
        s = s - jnp.max(s, axis=-1, keepdims=True)
        p = jnp.exp(s)
        p = p * pl.reciprocal(jnp.sum(p, axis=-1, keepdims=True), approx=True)
        o = jnp.einsum('hqk,hkd->hqd', p, Vh,
                       preferred_element_type=f32)           # (H, Nq, dh)
        o = jnp.swapaxes(o, 0, 1).reshape(Nq, D)             # (Nq, D)
        # TODO(synk): dropout (p=0.1) is a training-time op; inference -> identity.
        return jnp.dot(o, wo, preferred_element_type=f32) + bo

    def ffn(fi, x):
        w1 = f1w_ref[fi].astype(f32); b1 = f1b_ref[fi].astype(f32)
        w2 = f2w_ref[fi].astype(f32); b2 = f2b_ref[fi].astype(f32)
        h = jnp.maximum(jnp.dot(x, w1, preferred_element_type=f32) + b1, 0.0)
        return jnp.dot(h, w2, preferred_element_type=f32) + b2

    da = layernorm(a, 0)
    db = layernorm(b, 1)
    dt = layernorm(t, 2)
    da_pe = da + pe            # ka == qa in the reference forward
    db_pe = db + pe            # kb == qb

    at = attention(0, dt, da_pe, da)      # att1(q=dt, k=ka, v=da)
    bt = attention(1, dt, db_pe, db)      # att2(q=dt, k=kb, v=db)
    t_new = t + at + bt

    dt2 = layernorm(t_new, 3)
    a_new = a + attention(2, da_pe, dt2, dt2)   # att3(qa, dt) -> k=v=dt
    b_new = b + attention(3, db_pe, dt2, dt2)   # att4(qb, dt)

    a_out = a_new + ffn(0, layernorm(a_new, 4))
    b_out = b_new + ffn(1, layernorm(b_new, 5))

    ao_ref[0] = a_out.astype(ao_ref.dtype)
    bo_ref[0] = b_out.astype(bo_ref.dtype)
    to_ref[0] = t_new.astype(to_ref.dtype)


# ------------------------------- wrapper ---------------------------------------
def bottleneck_transformer_layer(params, a, b, t, pe=None, mask=None, *, heads):
    if mask is not None:
        raise NotImplementedError("TODO(synk): attention mask not implemented")
    B, N, D = a.shape
    _, Nt, _ = t.shape
    Hd = params['ffn1']['w1'].shape[1]
    if pe is None:
        pe = jnp.zeros((1, N, D), a.dtype)

    # --- pack parameters into a few stacked, VMEM-resident blocks -------------
    gammas = jnp.stack([params[f'norm{i}'][0] for i in range(1, 7)])   # (6,1,D)
    betas = jnp.stack([params[f'norm{i}'][1] for i in range(1, 7)])    # (6,1,D)
    att_w = jnp.stack([jnp.stack([params[f'att{i}'][f'w{n}'] for n in 'qkvo'])
                       for i in range(1, 5)])                          # (4,4,D,D)
    att_b = jnp.stack([jnp.stack([params[f'att{i}'][f'b{n}'] for n in 'qkvo'])
                       for i in range(1, 5)])                          # (4,4,1,D)
    f1w = jnp.stack([params['ffn1']['w1'], params['ffn2']['w1']])      # (2,D,Hd)
    f1b = jnp.stack([params['ffn1']['b1'], params['ffn2']['b1']])      # (2,1,Hd)
    f2w = jnp.stack([params['ffn1']['w2'], params['ffn2']['w2']])      # (2,Hd,D)
    f2b = jnp.stack([params['ffn1']['b2'], params['ffn2']['b2']])      # (2,1,D)

    def _full(shape):
        return pl.BlockSpec(shape, lambda i, _n=len(shape): (0,) * _n)

    kernel = functools.partial(_layer_kernel, heads=heads)
    return pl.pallas_call(
        kernel,
        out_shape=(jax.ShapeDtypeStruct((B, N, D), a.dtype),
                   jax.ShapeDtypeStruct((B, N, D), b.dtype),
                   jax.ShapeDtypeStruct((B, Nt, D), t.dtype)),
        grid=(B,),
        in_specs=[
            pl.BlockSpec((1, N, D), lambda i: (i, 0, 0)),
            pl.BlockSpec((1, N, D), lambda i: (i, 0, 0)),
            pl.BlockSpec((1, Nt, D), lambda i: (i, 0, 0)),
            pl.BlockSpec((1, N, D), lambda i: (0, 0, 0)),
            _full((6, 1, D)), _full((6, 1, D)),
            _full((4, 4, D, D)), _full((4, 4, 1, D)),
            _full((2, D, Hd)), _full((2, 1, Hd)),
            _full((2, Hd, D)), _full((2, 1, D)),
        ],
        out_specs=(
            pl.BlockSpec((1, N, D), lambda i: (i, 0, 0)),
            pl.BlockSpec((1, N, D), lambda i: (i, 0, 0)),
            pl.BlockSpec((1, Nt, D), lambda i: (i, 0, 0)),
        ),
        compiler_params=pltpu.CompilerParams(dimension_semantics=("parallel",)),
    )(a, b, t, pe, gammas, betas, att_w, att_b, f1w, f1b, f2w, f2b)


# ----------------------------- parameter init ----------------------------------
def init_params(key, dims, heads, ratio):
    hidden = dims * ratio
    keys = iter(jax.random.split(key, 64))

    def linear(din, dout):
        bound = 1.0 / (din ** 0.5)
        w = jax.random.uniform(next(keys), (din, dout), jnp.float32, -bound, bound)
        bb = jax.random.uniform(next(keys), (1, dout), jnp.float32, -bound, bound)
        return w, bb

    def attn_p():
        p = {}
        for name in ('q', 'k', 'v', 'o'):
            w, bb = linear(dims, dims)
            p['w' + name] = w
            p['b' + name] = bb
        return p

    def ffn_p():
        w1, b1 = linear(dims, hidden)
        w2, b2 = linear(hidden, dims)
        return dict(w1=w1, b1=b1, w2=w2, b2=b2)

    def norm_p():
        return (jnp.ones((1, dims), jnp.float32), jnp.zeros((1, dims), jnp.float32))

    params = {
        'att1': attn_p(), 'att2': attn_p(), 'att3': attn_p(), 'att4': attn_p(),
        'ffn1': ffn_p(), 'ffn2': ffn_p(),
    }
    for i in range(1, 7):
        params[f'norm{i}'] = norm_p()
    return params


if __name__ == "__main__":
    B, N, Nt, D, H, R = 2, 16, 8, 32, 8, 4   # batch, seq(a/b), seq(t), dims, heads, ratio
    key = jax.random.PRNGKey(0)
    kp, ka, kb, kt, kpe = jax.random.split(key, 5)
    params = init_params(kp, D, H, R)

    a = jax.random.normal(ka, (B, N, D), jnp.float32)
    b = jax.random.normal(kb, (B, N, D), jnp.float32)
    t = jax.random.normal(kt, (B, Nt, D), jnp.float32)
    pe = 0.1 * jax.random.normal(kpe, (1, N, D), jnp.float32)

    fwd = jax.jit(functools.partial(bottleneck_transformer_layer, heads=H))
    a_out, b_out, t_out = fwd(params, a, b, t, pe)
    jax.block_until_ready((a_out, b_out, t_out))

    assert a_out.shape == (B, N, D)
    assert b_out.shape == (B, N, D)
    assert t_out.shape == (B, Nt, D)
    assert jnp.all(jnp.isfinite(a_out)) and jnp.all(jnp.isfinite(b_out)) and jnp.all(jnp.isfinite(t_out))
    print("KERNEL_OK")
</pallas_src>

<mosaic_0001>
module attributes {stable_mosaic.version = 11 : i64} {
  func.func @_layer_kernel(%arg0: i32, %arg1: memref<1x16x32xf32, #tpu.memory_space<vmem>>, %arg2: memref<1x16x32xf32, #tpu.memory_space<vmem>>, %arg3: memref<1x8x32xf32, #tpu.memory_space<vmem>>, %arg4: memref<1x16x32xf32, #tpu.memory_space<vmem>>, %arg5: memref<6x1x32xf32, #tpu.memory_space<vmem>>, %arg6: memref<6x1x32xf32, #tpu.memory_space<vmem>>, %arg7: memref<4x4x32x32xf32, #tpu.memory_space<vmem>>, %arg8: memref<4x4x1x32xf32, #tpu.memory_space<vmem>>, %arg9: memref<2x32x128xf32, #tpu.memory_space<vmem>>, %arg10: memref<2x1x128xf32, #tpu.memory_space<vmem>>, %arg11: memref<2x128x32xf32, #tpu.memory_space<vmem>>, %arg12: memref<2x1x32xf32, #tpu.memory_space<vmem>>, %arg13: memref<1x16x32xf32, #tpu.memory_space<vmem>>, %arg14: memref<1x16x32xf32, #tpu.memory_space<vmem>>, %arg15: memref<1x8x32xf32, #tpu.memory_space<vmem>>) attributes {dimension_semantics = [#tpu.dimension_semantics<parallel>], iteration_bounds = array<i64: 2>, scalar_prefetch = 0 : i64, scratch_operands = 0 : i64, tpu.core_type = #tpu.core_type<tc>, window_params = [{transform_indices = @transform_0, window_bounds = array<i64: 1, 16, 32>}, {transform_indices = @transform_1, window_bounds = array<i64: 1, 16, 32>}, {transform_indices = @transform_2, window_bounds = array<i64: 1, 8, 32>}, {pipeline_mode = #tpu.pipeline_mode<synchronous>, transform_indices = @transform_3, window_bounds = array<i64: 1, 16, 32>}, {pipeline_mode = #tpu.pipeline_mode<synchronous>, transform_indices = @transform_4, window_bounds = array<i64: 6, 1, 32>}, {pipeline_mode = #tpu.pipeline_mode<synchronous>, transform_indices = @transform_5, window_bounds = array<i64: 6, 1, 32>}, {pipeline_mode = #tpu.pipeline_mode<synchronous>, transform_indices = @transform_6, window_bounds = array<i64: 4, 4, 32, 32>}, {pipeline_mode = #tpu.pipeline_mode<synchronous>, transform_indices = @transform_7, window_bounds = array<i64: 4, 4, 1, 32>}, {pipeline_mode = #tpu.pipeline_mode<synchronous>, transform_indices = @transform_8, window_bounds = array<i64: 2, 32, 128>}, {pipeline_mode = #tpu.pipeline_mode<synchronous>, transform_indices = @transform_9, window_bounds = array<i64: 2, 1, 128>}, {pipeline_mode = #tpu.pipeline_mode<synchronous>, transform_indices = @transform_10, window_bounds = array<i64: 2, 128, 32>}, {pipeline_mode = #tpu.pipeline_mode<synchronous>, transform_indices = @transform_11, window_bounds = array<i64: 2, 1, 32>}, {transform_indices = @transform_12, window_bounds = array<i64: 1, 16, 32>}, {transform_indices = @transform_13, window_bounds = array<i64: 1, 16, 32>}, {transform_indices = @transform_14, window_bounds = array<i64: 1, 8, 32>}]} {
    %c0 = arith.constant 0 : index
    %c0_0 = arith.constant 0 : index
    %c0_1 = arith.constant 0 : index
    %0 = vector.load %arg1[%c0, %c0_0, %c0_1] : memref<1x16x32xf32, #tpu.memory_space<vmem>>, vector<1x16x32xf32>
    %1 = vector.shape_cast %0 : vector<1x16x32xf32> to vector<16x32xf32>
    %c0_2 = arith.constant 0 : index
    %c0_3 = arith.constant 0 : index
    %c0_4 = arith.constant 0 : index
    %2 = vector.load %arg2[%c0_2, %c0_3, %c0_4] : memref<1x16x32xf32, #tpu.memory_space<vmem>>, vector<1x16x32xf32>
    %3 = vector.shape_cast %2 : vector<1x16x32xf32> to vector<16x32xf32>
    %c0_5 = arith.constant 0 : index
    %c0_6 = arith.constant 0 : index
    %c0_7 = arith.constant 0 : index
    %4 = vector.load %arg3[%c0_5, %c0_6, %c0_7] : memref<1x8x32xf32, #tpu.memory_space<vmem>>, vector<1x8x32xf32>
    %5 = vector.shape_cast %4 : vector<1x8x32xf32> to vector<8x32xf32>
    %c0_8 = arith.constant 0 : index
    %c0_9 = arith.constant 0 : index
    %c0_10 = arith.constant 0 : index
    %6 = vector.load %arg4[%c0_8, %c0_9, %c0_10] : memref<1x16x32xf32, #tpu.memory_space<vmem>>, vector<1x16x32xf32>
    %7 = vector.shape_cast %6 : vector<1x16x32xf32> to vector<16x32xf32>
    %c0_11 = arith.constant 0 : index
    %c0_12 = arith.constant 0 : index
    %c0_13 = arith.constant 0 : index
    %8 = vector.load %arg5[%c0_11, %c0_12, %c0_13] : memref<6x1x32xf32, #tpu.memory_space<vmem>>, vector<1x1x32xf32>
    %9 = vector.shape_cast %8 : vector<1x1x32xf32> to vector<1x32xf32>
    %c0_14 = arith.constant 0 : index
    %c0_15 = arith.constant 0 : index
    %c0_16 = arith.constant 0 : index
    %10 = vector.load %arg6[%c0_14, %c0_15, %c0_16] : memref<6x1x32xf32, #tpu.memory_space<vmem>>, vector<1x1x32xf32>
    %11 = vector.shape_cast %10 : vector<1x1x32xf32> to vector<1x32xf32>
    %cst = arith.constant dense<0.000000e+00> : vector<16xf32>
    %12 = vector.multi_reduction <add>, %1, %cst [1] : vector<16x32xf32> to vector<16xf32>
    %13 = vector.shape_cast %12 : vector<16xf32> to vector<16x1xf32>
    %cst_17 = arith.constant 3.200000e+01 : f32
    %14 = vector.broadcast %cst_17 : f32 to vector<16x1xf32>
    %15 = arith.divf %13, %14 : vector<16x1xf32>
    %16 = vector.broadcast %15 : vector<16x1xf32> to vector<16x32xf32>
    %17 = arith.subf %1, %16 : vector<16x32xf32>
    %18 = arith.mulf %17, %17 : vector<16x32xf32>
    %cst_18 = arith.constant dense<0.000000e+00> : vector<16xf32>
    %19 = vector.multi_reduction <add>, %18, %cst_18 [1] : vector<16x32xf32> to vector<16xf32>
    %20 = vector.shape_cast %19 : vector<16xf32> to vector<16x1xf32>
    %cst_19 = arith.constant 3.200000e+01 : f32
    %21 = vector.broadcast %cst_19 : f32 to vector<16x1xf32>
    %22 = arith.divf %20, %21 : vector<16x1xf32>
    %23 = vector.broadcast %15 : vector<16x1xf32> to vector<16x32xf32>
    %24 = arith.subf %1, %23 : vector<16x32xf32>
    %cst_20 = arith.constant 9.99999974E-6 : f32
    %25 = vector.broadcast %cst_20 : f32 to vector<16x1xf32>
    %26 = arith.addf %22, %25 : vector<16x1xf32>
    %27 = math.rsqrt %26 : vector<16x1xf32>
    %28 = vector.broadcast %27 : vector<16x1xf32> to vector<16x32xf32>
    %29 = arith.mulf %24, %28 : vector<16x32xf32>
    %30 = vector.broadcast %9 : vector<1x32xf32> to vector<16x32xf32>
    %31 = arith.mulf %29, %30 : vector<16x32xf32>
    %32 = vector.broadcast %11 : vector<1x32xf32> to vector<16x32xf32>
    %33 = arith.addf %31, %32 : vector<16x32xf32>
    %c1 = arith.constant 1 : index
    %c0_21 = arith.constant 0 : index
    %c0_22 = arith.constant 0 : index
    %34 = vector.load %arg5[%c1, %c0_21, %c0_22] : memref<6x1x32xf32, #tpu.memory_space<vmem>>, vector<1x1x32xf32>
    %35 = vector.shape_cast %34 : vector<1x1x32xf32> to vector<1x32xf32>
    %c1_23 = arith.constant 1 : index
    %c0_24 = arith.constant 0 : index
    %c0_25 = arith.constant 0 : index
    %36 = vector.load %arg6[%c1_23, %c0_24, %c0_25] : memref<6x1x32xf32, #tpu.memory_space<vmem>>, vector<1x1x32xf32>
    %37 = vector.shape_cast %36 : vector<1x1x32xf32> to vector<1x32xf32>
    %cst_26 = arith.constant dense<0.000000e+00> : vector<16xf32>
    %38 = vector.multi_reduction <add>, %3, %cst_26 [1] : vector<16x32xf32> to vector<16xf32>
    %39 = vector.shape_cast %38 : vector<16xf32> to vector<16x1xf32>
    %cst_27 = arith.constant 3.200000e+01 : f32
    %40 = vector.broadcast %cst_27 : f32 to vector<16x1xf32>
    %41 = arith.divf %39, %40 : vector<16x1xf32>
    %42 = vector.broadcast %41 : vector<16x1xf32> to vector<16x32xf32>
    %43 = arith.subf %3, %42 : vector<16x32xf32>
    %44 = arith.mulf %43, %43 : vector<16x32xf32>
    %cst_28 = arith.constant dense<0.000000e+00> : vector<16xf32>
    %45 = vector.multi_reduction <add>, %44, %cst_28 [1] : vector<16x32xf32> to vector<16xf32>
    %46 = vector.shape_cast %45 : vector<16xf32> to vector<16x1xf32>
    %cst_29 = arith.constant 3.200000e+01 : f32
    %47 = vector.broadcast %cst_29 : f32 to vector<16x1xf32>
    %48 = arith.divf %46, %47 : vector<16x1xf32>
    %49 = vector.broadcast %41 : vector<16x1xf32> to vector<16x32xf32>
    %50 = arith.subf %3, %49 : vector<16x32xf32>
    %cst_30 = arith.constant 9.99999974E-6 : f32
    %51 = vector.broadcast %cst_30 : f32 to vector<16x1xf32>
    %52 = arith.addf %48, %51 : vector<16x1xf32>
    %53 = math.rsqrt %52 : vector<16x1xf32>
    %54 = vector.broadcast %53 : vector<16x1xf32> to vector<16x32xf32>
    %55 = arith.mulf %50, %54 : vector<16x32xf32>
    %56 = vector.broadcast %35 : vector<1x32xf32> to vector<16x32xf32>
    %57 = arith.mulf %55, %56 : vector<16x32xf32>
    %58 = vector.broadcast %37 : vector<1x32xf32> to vector<16x32xf32>
    %59 = arith.addf %57, %58 : vector<16x32xf32>
    %c2 = arith.constant 2 : index
    %c0_31 = arith.constant 0 : index
    %c0_32 = arith.constant 0 : index
    %60 = vector.load %arg5[%c2, %c0_31, %c0_32] : memref<6x1x32xf32, #tpu.memory_space<vmem>>, vector<1x1x32xf32>
    %61 = vector.shape_cast %60 : vector<1x1x32xf32> to vector<1x32xf32>
    %c2_33 = arith.constant 2 : index
    %c0_34 = arith.constant 0 : index
    %c0_35 = arith.constant 0 : index
    %62 = vector.load %arg6[%c2_33, %c0_34, %c0_35] : memref<6x1x32xf32, #tpu.memory_space<vmem>>, vector<1x1x32xf32>
    %63 = vector.shape_cast %62 : vector<1x1x32xf32> to vector<1x32xf32>
    %cst_36 = arith.constant dense<0.000000e+00> : vector<8xf32>
    %64 = vector.multi_reduction <add>, %5, %cst_36 [1] : vector<8x32xf32> to vector<8xf32>
    %65 = vector.shape_cast %64 : vector<8xf32> to vector<8x1xf32>
    %cst_37 = arith.constant 3.200000e+01 : f32
    %66 = vector.broadcast %cst_37 : f32 to vector<8x1xf32>
    %67 = arith.divf %65, %66 : vector<8x1xf32>
    %68 = vector.broadcast %67 : vector<8x1xf32> to vector<8x32xf32>
    %69 = arith.subf %5, %68 : vector<8x32xf32>
    %70 = arith.mulf %69, %69 : vector<8x32xf32>
    %cst_38 = arith.constant dense<0.000000e+00> : vector<8xf32>
    %71 = vector.multi_reduction <add>, %70, %cst_38 [1] : vector<8x32xf32> to vector<8xf32>
    %72 = vector.shape_cast %71 : vector<8xf32> to vector<8x1xf32>
    %cst_39 = arith.constant 3.200000e+01 : f32
    %73 = vector.broadcast %cst_39 : f32 to vector<8x1xf32>
    %74 = arith.divf %72, %73 : vector<8x1xf32>
    %75 = vector.broadcast %67 : vector<8x1xf32> to vector<8x32xf32>
    %76 = arith.subf %5, %75 : vector<8x32xf32>
    %cst_40 = arith.constant 9.99999974E-6 : f32
    %77 = vector.broadcast %cst_40 : f32 to vector<8x1xf32>
    %78 = arith.addf %74, %77 : vector<8x1xf32>
    %79 = math.rsqrt %78 : vector<8x1xf32>
    %80 = vector.broadcast %79 : vector<8x1xf32> to vector<8x32xf32>
    %81 = arith.mulf %76, %80 : vector<8x32xf32>
    %82 = vector.broadcast %61 : vector<1x32xf32> to vector<8x32xf32>
    %83 = arith.mulf %81, %82 : vector<8x32xf32>
    %84 = vector.broadcast %63 : vector<1x32xf32> to vector<8x32xf32>
    %85 = arith.addf %83, %84 : vector<8x32xf32>
    %86 = arith.addf %33, %7 : vector<16x32xf32>
    %87 = arith.addf %59, %7 : vector<16x32xf32>
    %c0_41 = arith.constant 0 : index
    %c0_42 = arith.constant 0 : index
    %c0_43 = arith.constant 0 : index
    %c0_44 = arith.constant 0 : index
    %88 = vector.load %arg7[%c0_41, %c0_42, %c0_43, %c0_44] : memref<4x4x32x32xf32, #tpu.memory_space<vmem>>, vector<1x1x32x32xf32>
    %89 = vector.shape_cast %88 : vector<1x1x32x32xf32> to vector<32x32xf32>
    %c0_45 = arith.constant 0 : index
    %c0_46 = arith.constant 0 : index
    %c0_47 = arith.constant 0 : index
    %c0_48 = arith.constant 0 : index
    %90 = vector.load %arg8[%c0_45, %c0_46, %c0_47, %c0_48] : memref<4x4x1x32xf32, #tpu.memory_space<vmem>>, vector<1x1x1x32xf32>
    %91 = vector.shape_cast %90 : vector<1x1x1x32xf32> to vector<1x32xf32>
    %c0_49 = arith.constant 0 : index
    %c1_50 = arith.constant 1 : index
    %c0_51 = arith.constant 0 : index
    %c0_52 = arith.constant 0 : index
    %92 = vector.load %arg7[%c0_49, %c1_50, %c0_51, %c0_52] : memref<4x4x32x32xf32, #tpu.memory_space<vmem>>, vector<1x1x32x32xf32>
    %93 = vector.shape_cast %92 : vector<1x1x32x32xf32> to vector<32x32xf32>
    %c0_53 = arith.constant 0 : index
    %c1_54 = arith.constant 1 : index
    %c0_55 = arith.constant 0 : index
    %c0_56 = arith.constant 0 : index
    %94 = vector.load %arg8[%c0_53, %c1_54, %c0_55, %c0_56] : memref<4x4x1x32xf32, #tpu.memory_space<vmem>>, vector<1x1x1x32xf32>
    %95 = vector.shape_cast %94 : vector<1x1x1x32xf32> to vector<1x32xf32>
    %c0_57 = arith.constant 0 : index
    %c2_58 = arith.constant 2 : index
    %c0_59 = arith.constant 0 : index
    %c0_60 = arith.constant 0 : index
    %96 = vector.load %arg7[%c0_57, %c2_58, %c0_59, %c0_60] : memref<4x4x32x32xf32, #tpu.memory_space<vmem>>, vector<1x1x32x32xf32>
    %97 = vector.shape_cast %96 : vector<1x1x32x32xf32> to vector<32x32xf32>
    %c0_61 = arith.constant 0 : index
    %c2_62 = arith.constant 2 : index
    %c0_63 = arith.constant 0 : index
    %c0_64 = arith.constant 0 : index
    %98 = vector.load %arg8[%c0_61, %c2_62, %c0_63, %c0_64] : memref<4x4x1x32xf32, #tpu.memory_space<vmem>>, vector<1x1x1x32xf32>
    %99 = vector.shape_cast %98 : vector<1x1x1x32xf32> to vector<1x32xf32>
    %c0_65 = arith.constant 0 : index
    %c3 = arith.constant 3 : index
    %c0_66 = arith.constant 0 : index
    %c0_67 = arith.constant 0 : index
    %100 = vector.load %arg7[%c0_65, %c3, %c0_66, %c0_67] : memref<4x4x32x32xf32, #tpu.memory_space<vmem>>, vector<1x1x32x32xf32>
    %101 = vector.shape_cast %100 : vector<1x1x32x32xf32> to vector<32x32xf32>
    %c0_68 = arith.constant 0 : index
    %c3_69 = arith.constant 3 : index
    %c0_70 = arith.constant 0 : index
    %c0_71 = arith.constant 0 : index
    %102 = vector.load %arg8[%c0_68, %c3_69, %c0_70, %c0_71] : memref<4x4x1x32xf32, #tpu.memory_space<vmem>>, vector<1x1x1x32xf32>
    %103 = vector.shape_cast %102 : vector<1x1x1x32xf32> to vector<1x32xf32>
    %cst_72 = arith.constant dense<0.000000e+00> : vector<8x32xf32>
    %104 = tpu.matmul %85, %89, %cst_72 {dimension_numbers = #tpu.dot_dimension_numbers<[1], [0], [0], [1], [0, 0, 1, 1], [], []>} : vector<8x32xf32>, vector<32x32xf32>, vector<8x32xf32> -> vector<8x32xf32>
    %105 = vector.broadcast %91 : vector<1x32xf32> to vector<8x32xf32>
    %106 = arith.addf %104, %105 : vector<8x32xf32>
    %cst_73 = arith.constant 5.000000e-01 : f32
    %107 = vector.broadcast %cst_73 : f32 to vector<8x32xf32>
    %108 = arith.mulf %106, %107 : vector<8x32xf32>
    %cst_74 = arith.constant dense<0.000000e+00> : vector<16x32xf32>
    %109 = tpu.matmul %86, %93, %cst_74 {dimension_numbers = #tpu.dot_dimension_numbers<[1], [0], [0], [1], [0, 0, 1, 1], [], []>} : vector<16x32xf32>, vector<32x32xf32>, vector<16x32xf32> -> vector<16x32xf32>
    %110 = vector.broadcast %95 : vector<1x32xf32> to vector<16x32xf32>
    %111 = arith.addf %109, %110 : vector<16x32xf32>
    %cst_75 = arith.constant dense<0.000000e+00> : vector<16x32xf32>
    %112 = tpu.matmul %33, %97, %cst_75 {dimension_numbers = #tpu.dot_dimension_numbers<[1], [0], [0], [1], [0, 0, 1, 1], [], []>} : vector<16x32xf32>, vector<32x32xf32>, vector<16x32xf32> -> vector<16x32xf32>
    %113 = vector.broadcast %99 : vector<1x32xf32> to vector<16x32xf32>
    %114 = arith.addf %112, %113 : vector<16x32xf32>
    %115 = vector.shape_cast %108 : vector<8x32xf32> to vector<8x8x4xf32>
    %116 = tpu.transpose %115, [1, 0, 2] : vector<8x8x4xf32> -> vector<8x8x4xf32>
    %117 = vector.shape_cast %111 : vector<16x32xf32> to vector<16x8x4xf32>
    %118 = tpu.transpose %117, [1, 0, 2] : vector<16x8x4xf32> -> vector<8x16x4xf32>
    %119 = vector.shape_cast %114 : vector<16x32xf32> to vector<16x8x4xf32>
    %120 = tpu.transpose %119, [1, 0, 2] : vector<16x8x4xf32> -> vector<8x16x4xf32>
    "tpu.trace_start"() <{level = 10 : i32, message = "hqd,hkd->hqk"}> : () -> ()
    %cst_76 = arith.constant dense<0.000000e+00> : vector<8x8x16xf32>
    %121 = tpu.matmul %116, %118, %cst_76 {dimension_numbers = #tpu.dot_dimension_numbers<[2], [2], [1], [1], [0, 0, 0, 1, 1, 1], [0], [0]>} : vector<8x8x4xf32>, vector<8x16x4xf32>, vector<8x8x16xf32> -> vector<8x8x16xf32>
    "tpu.trace_stop"() : () -> ()
    %cst_77 = arith.constant dense<0xFF800000> : vector<8x8xf32>
    %122 = vector.multi_reduction <maximumf>, %121, %cst_77 [2] : vector<8x8x16xf32> to vector<8x8xf32>
    %123 = vector.shape_cast %122 : vector<8x8xf32> to vector<8x8x1xf32>
    %124 = vector.broadcast %123 : vector<8x8x1xf32> to vector<8x8x16xf32>
    %125 = arith.subf %121, %124 : vector<8x8x16xf32>
    %126 = math.exp %125 : vector<8x8x16xf32>
    %cst_78 = arith.constant dense<0.000000e+00> : vector<8x8xf32>
    %127 = vector.multi_reduction <add>, %126, %cst_78 [2] : vector<8x8x16xf32> to vector<8x8xf32>
    %128 = vector.shape_cast %127 : vector<8x8xf32> to vector<8x8x1xf32>
    %129 = tpu.reciprocal %128 {approx = true} : vector<8x8x1xf32> -> vector<8x8x1xf32>
    %130 = vector.broadcast %129 : vector<8x8x1xf32> to vector<8x8x16xf32>
    %131 = arith.mulf %126, %130 : vector<8x8x16xf32>
    "tpu.trace_start"() <{level = 10 : i32, message = "hqk,hkd->hqd"}> : () -> ()
    %cst_79 = arith.constant dense<0.000000e+00> : vector<8x8x4xf32>
    %132 = tpu.matmul %131, %120, %cst_79 {dimension_numbers = #tpu.dot_dimension_numbers<[2], [1], [1], [2], [0, 0, 0, 1, 1, 2], [0], [0]>} : vector<8x8x16xf32>, vector<8x16x4xf32>, vector<8x8x4xf32> -> vector<8x8x4xf32>
    "tpu.trace_stop"() : () -> ()
    %133 = tpu.transpose %132, [1, 0, 2] : vector<8x8x4xf32> -> vector<8x8x4xf32>
    %134 = vector.shape_cast %133 : vector<8x8x4xf32> to vector<8x32xf32>
    %cst_80 = arith.constant dense<0.000000e+00> : vector<8x32xf32>
    %135 = tpu.matmul %134, %101, %cst_80 {dimension_numbers = #tpu.dot_dimension_numbers<[1], [0], [0], [1], [0, 0, 1, 1], [], []>} : vector<8x32xf32>, vector<32x32xf32>, vector<8x32xf32> -> vector<8x32xf32>
    %136 = vector.broadcast %103 : vector<1x32xf32> to vector<8x32xf32>
    %137 = arith.addf %135, %136 : vector<8x32xf32>
    %c1_81 = arith.constant 1 : index
    %c0_82 = arith.constant 0 : index
    %c0_83 = arith.constant 0 : index
    %c0_84 = arith.constant 0 : index
    %138 = vector.load %arg7[%c1_81, %c0_82, %c0_83, %c0_84] : memref<4x4x32x32xf32, #tpu.memory_space<vmem>>, vector<1x1x32x32xf32>
    %139 = vector.shape_cast %138 : vector<1x1x32x32xf32> to vector<32x32xf32>
    %c1_85 = arith.constant 1 : index
    %c0_86 = arith.constant 0 : index
    %c0_87 = arith.constant 0 : index
    %c0_88 = arith.constant 0 : index
    %140 = vector.load %arg8[%c1_85, %c0_86, %c0_87, %c0_88] : memref<4x4x1x32xf32, #tpu.memory_space<vmem>>, vector<1x1x1x32xf32>
    %141 = vector.shape_cast %140 : vector<1x1x1x32xf32> to vector<1x32xf32>
    %c1_89 = arith.constant 1 : index
    %c1_90 = arith.constant 1 : index
    %c0_91 = arith.constant 0 : index
    %c0_92 = arith.constant 0 : index
    %142 = vector.load %arg7[%c1_89, %c1_90, %c0_91, %c0_92] : memref<4x4x32x32xf32, #tpu.memory_space<vmem>>, vector<1x1x32x32xf32>
    %143 = vector.shape_cast %142 : vector<1x1x32x32xf32> to vector<32x32xf32>
    %c1_93 = arith.constant 1 : index
    %c1_94 = arith.constant 1 : index
    %c0_95 = arith.constant 0 : index
    %c0_96 = arith.constant 0 : index
    %144 = vector.load %arg8[%c1_93, %c1_94, %c0_95, %c0_96] : memref<4x4x1x32xf32, #tpu.memory_space<vmem>>, vector<1x1x1x32xf32>
    %145 = vector.shape_cast %144 : vector<1x1x1x32xf32> to vector<1x32xf32>
    %c1_97 = arith.constant 1 : index
    %c2_98 = arith.constant 2 : index
    %c0_99 = arith.constant 0 : index
    %c0_100 = arith.constant 0 : index
    %146 = vector.load %arg7[%c1_97, %c2_98, %c0_99, %c0_100] : memref<4x4x32x32xf32, #tpu.memory_space<vmem>>, vector<1x1x32x32xf32>
    %147 = vector.shape_cast %146 : vector<1x1x32x32xf32> to vector<32x32xf32>
    %c1_101 = arith.constant 1 : index
    %c2_102 = arith.constant 2 : index
    %c0_103 = arith.constant 0 : index
    %c0_104 = arith.constant 0 : index
    %148 = vector.load %arg8[%c1_101, %c2_102, %c0_103, %c0_104] : memref<4x4x1x32xf32, #tpu.memory_space<vmem>>, vector<1x1x1x32xf32>
    %149 = vector.shape_cast %148 : vector<1x1x1x32xf32> to vector<1x32xf32>
    %c1_105 = arith.constant 1 : index
    %c3_106 = arith.constant 3 : index
    %c0_107 = arith.constant 0 : index
    %c0_108 = arith.constant 0 : index
    %150 = vector.load %arg7[%c1_105, %c3_106, %c0_107, %c0_108] : memref<4x4x32x32xf32, #tpu.memory_space<vmem>>, vector<1x1x32x32xf32>
    %151 = vector.shape_cast %150 : vector<1x1x32x32xf32> to vector<32x32xf32>
    %c1_109 = arith.constant 1 : index
    %c3_110 = arith.constant 3 : index
    %c0_111 = arith.constant 0 : index
    %c0_112 = arith.constant 0 : index
    %152 = vector.load %arg8[%c1_109, %c3_110, %c0_111, %c0_112] : memref<4x4x1x32xf32, #tpu.memory_space<vmem>>, vector<1x1x1x32xf32>
    %153 = vector.shape_cast %152 : vector<1x1x1x32xf32> to vector<1x32xf32>
    %cst_113 = arith.constant dense<0.000000e+00> : vector<8x32xf32>
    %154 = tpu.matmul %85, %139, %cst_113 {dimension_numbers = #tpu.dot_dimension_numbers<[1], [0], [0], [1], [0, 0, 1, 1], [], []>} : vector<8x32xf32>, vector<32x32xf32>, vector<8x32xf32> -> vector<8x32xf32>
    %155 = vector.broadcast %141 : vector<1x32xf32> to vector<8x32xf32>
    %156 = arith.addf %154, %155 : vector<8x32xf32>
    %cst_114 = arith.constant 5.000000e-01 : f32
    %157 = vector.broadcast %cst_114 : f32 to vector<8x32xf32>
    %158 = arith.mulf %156, %157 : vector<8x32xf32>
    %cst_115 = arith.constant dense<0.000000e+00> : vector<16x32xf32>
    %159 = tpu.matmul %87, %143, %cst_115 {dimension_numbers = #tpu.dot_dimension_numbers<[1], [0], [0], [1], [0, 0, 1, 1], [], []>} : vector<16x32xf32>, vector<32x32xf32>, vector<16x32xf32> -> vector<16x32xf32>
    %160 = vector.broadcast %145 : vector<1x32xf32> to vector<16x32xf32>
    %161 = arith.addf %159, %160 : vector<16x32xf32>
    %cst_116 = arith.constant dense<0.000000e+00> : vector<16x32xf32>
    %162 = tpu.matmul %59, %147, %cst_116 {dimension_numbers = #tpu.dot_dimension_numbers<[1], [0], [0], [1], [0, 0, 1, 1], [], []>} : vector<16x32xf32>, vector<32x32xf32>, vector<16x32xf32> -> vector<16x32xf32>
    %163 = vector.broadcast %149 : vector<1x32xf32> to vector<16x32xf32>
    %164 = arith.addf %162, %163 : vector<16x32xf32>
    %165 = vector.shape_cast %158 : vector<8x32xf32> to vector<8x8x4xf32>
    %166 = tpu.transpose %165, [1, 0, 2] : vector<8x8x4xf32> -> vector<8x8x4xf32>
    %167 = vector.shape_cast %161 : vector<16x32xf32> to vector<16x8x4xf32>
    %168 = tpu.transpose %167, [1, 0, 2] : vector<16x8x4xf32> -> vector<8x16x4xf32>
    %169 = vector.shape_cast %164 : vector<16x32xf32> to vector<16x8x4xf32>
    %170 = tpu.transpose %169, [1, 0, 2] : vector<16x8x4xf32> -> vector<8x16x4xf32>
    "tpu.trace_start"() <{level = 10 : i32, message = "hqd,hkd->hqk"}> : () -> ()
    %cst_117 = arith.constant dense<0.000000e+00> : vector<8x8x16xf32>
    %171 = tpu.matmul %166, %168, %cst_117 {dimension_numbers = #tpu.dot_dimension_numbers<[2], [2], [1], [1], [0, 0, 0, 1, 1, 1], [0], [0]>} : vector<8x8x4xf32>, vector<8x16x4xf32>, vector<8x8x16xf32> -> vector<8x8x16xf32>
    "tpu.trace_stop"() : () -> ()
    %cst_118 = arith.constant dense<0xFF800000> : vector<8x8xf32>
    %172 = vector.multi_reduction <maximumf>, %171, %cst_118 [2] : vector<8x8x16xf32> to vector<8x8xf32>
    %173 = vector.shape_cast %172 : vector<8x8xf32> to vector<8x8x1xf32>
    %174 = vector.broadcast %173 : vector<8x8x1xf32> to vector<8x8x16xf32>
    %175 = arith.subf %171, %174 : vector<8x8x16xf32>
    %176 = math.exp %175 : vector<8x8x16xf32>
    %cst_119 = arith.constant dense<0.000000e+00> : vector<8x8xf32>
    %177 = vector.multi_reduction <add>, %176, %cst_119 [2] : vector<8x8x16xf32> to vector<8x8xf32>
    %178 = vector.shape_cast %177 : vector<8x8xf32> to vector<8x8x1xf32>
    %179 = tpu.reciprocal %178 {approx = true} : vector<8x8x1xf32> -> vector<8x8x1xf32>
    %180 = vector.broadcast %179 : vector<8x8x1xf32> to vector<8x8x16xf32>
    %181 = arith.mulf %176, %180 : vector<8x8x16xf32>
    "tpu.trace_start"() <{level = 10 : i32, message = "hqk,hkd->hqd"}> : () -> ()
    %cst_120 = arith.constant dense<0.000000e+00> : vector<8x8x4xf32>
    %182 = tpu.matmul %181, %170, %cst_120 {dimension_numbers = #tpu.dot_dimension_numbers<[2], [1], [1], [2], [0, 0, 0, 1, 1, 2], [0], [0]>} : vector<8x8x16xf32>, vector<8x16x4xf32>, vector<8x8x4xf32> -> vector<8x8x4xf32>
    "tpu.trace_stop"() : () -> ()
    %183 = tpu.transpose %182, [1, 0, 2] : vector<8x8x4xf32> -> vector<8x8x4xf32>
    %184 = vector.shape_cast %183 : vector<8x8x4xf32> to vector<8x32xf32>
    %cst_121 = arith.constant dense<0.000000e+00> : vector<8x32xf32>
    %185 = tpu.matmul %184, %151, %cst_121 {dimension_numbers = #tpu.dot_dimension_numbers<[1], [0], [0], [1], [0, 0, 1, 1], [], []>} : vector<8x32xf32>, vector<32x32xf32>, vector<8x32xf32> -> vector<8x32xf32>
    %186 = vector.broadcast %153 : vector<1x32xf32> to vector<8x32xf32>
    %187 = arith.addf %185, %186 : vector<8x32xf32>
    %188 = arith.addf %5, %137 : vector<8x32xf32>
    %189 = arith.addf %188, %187 : vector<8x32xf32>
    %c3_122 = arith.constant 3 : index
    %c0_123 = arith.constant 0 : index
    %c0_124 = arith.constant 0 : index
    %190 = vector.load %arg5[%c3_122, %c0_123, %c0_124] : memref<6x1x32xf32, #tpu.memory_space<vmem>>, vector<1x1x32xf32>
    %191 = vector.shape_cast %190 : vector<1x1x32xf32> to vector<1x32xf32>
    %c3_125 = arith.constant 3 : index
    %c0_126 = arith.constant 0 : index
    %c0_127 = arith.constant 0 : index
    %192 = vector.load %arg6[%c3_125, %c0_126, %c0_127] : memref<6x1x32xf32, #tpu.memory_space<vmem>>, vector<1x1x32xf32>
    %193 = vector.shape_cast %192 : vector<1x1x32xf32> to vector<1x32xf32>
    %cst_128 = arith.constant dense<0.000000e+00> : vector<8xf32>
    %194 = vector.multi_reduction <add>, %189, %cst_128 [1] : vector<8x32xf32> to vector<8xf32>
    %195 = vector.shape_cast %194 : vector<8xf32> to vector<8x1xf32>
    %cst_129 = arith.constant 3.200000e+01 : f32
    %196 = vector.broadcast %cst_129 : f32 to vector<8x1xf32>
    %197 = arith.divf %195, %196 : vector<8x1xf32>
    %198 = vector.broadcast %197 : vector<8x1xf32> to vector<8x32xf32>
    %199 = arith.subf %189, %198 : vector<8x32xf32>
    %200 = arith.mulf %199, %199 : vector<8x32xf32>
    %cst_130 = arith.constant dense<0.000000e+00> : vector<8xf32>
    %201 = vector.multi_reduction <add>, %200, %cst_130 [1] : vector<8x32xf32> to vector<8xf32>
    %202 = vector.shape_cast %201 : vector<8xf32> to vector<8x1xf32>
    %cst_131 = arith.constant 3.200000e+01 : f32
    %203 = vector.broadcast %cst_131 : f32 to vector<8x1xf32>
    %204 = arith.divf %202, %203 : vector<8x1xf32>
    %205 = vector.broadcast %197 : vector<8x1xf32> to vector<8x32xf32>
    %206 = arith.subf %189, %205 : vector<8x32xf32>
    %cst_132 = arith.constant 9.99999974E-6 : f32
    %207 = vector.broadcast %cst_132 : f32 to vector<8x1xf32>
    %208 = arith.addf %204, %207 : vector<8x1xf32>
    %209 = math.rsqrt %208 : vector<8x1xf32>
    %210 = vector.broadcast %209 : vector<8x1xf32> to vector<8x32xf32>
    %211 = arith.mulf %206, %210 : vector<8x32xf32>
    %212 = vector.broadcast %191 : vector<1x32xf32> to vector<8x32xf32>
    %213 = arith.mulf %211, %212 : vector<8x32xf32>
    %214 = vector.broadcast %193 : vector<1x32xf32> to vector<8x32xf32>
    %215 = arith.addf %213, %214 : vector<8x32xf32>
    %c2_133 = arith.constant 2 : index
    %c0_134 = arith.constant 0 : index
    %c0_135 = arith.constant 0 : index
    %c0_136 = arith.constant 0 : index
    %216 = vector.load %arg7[%c2_133, %c0_134, %c0_135, %c0_136] : memref<4x4x32x32xf32, #tpu.memory_space<vmem>>, vector<1x1x32x32xf32>
    %217 = vector.shape_cast %216 : vector<1x1x32x32xf32> to vector<32x32xf32>
    %c2_137 = arith.constant 2 : index
    %c0_138 = arith.constant 0 : index
    %c0_139 = arith.constant 0 : index
    %c0_140 = arith.constant 0 : index
    %218 = vector.load %arg8[%c2_137, %c0_138, %c0_139, %c0_140] : memref<4x4x1x32xf32, #tpu.memory_space<vmem>>, vector<1x1x1x32xf32>
    %219 = vector.shape_cast %218 : vector<1x1x1x32xf32> to vector<1x32xf32>
    %c2_141 = arith.constant 2 : index
    %c1_142 = arith.constant 1 : index
    %c0_143 = arith.constant 0 : index
    %c0_144 = arith.constant 0 : index
    %220 = vector.load %arg7[%c2_141, %c1_142, %c0_143, %c0_144] : memref<4x4x32x32xf32, #tpu.memory_space<vmem>>, vector<1x1x32x32xf32>
    %221 = vector.shape_cast %220 : vector<1x1x32x32xf32> to vector<32x32xf32>
    %c2_145 = arith.constant 2 : index
    %c1_146 = arith.constant 1 : index
    %c0_147 = arith.constant 0 : index
    %c0_148 = arith.constant 0 : index
    %222 = vector.load %arg8[%c2_145, %c1_146, %c0_147, %c0_148] : memref<4x4x1x32xf32, #tpu.memory_space<vmem>>, vector<1x1x1x32xf32>
    %223 = vector.shape_cast %222 : vector<1x1x1x32xf32> to vector<1x32xf32>
    %c2_149 = arith.constant 2 : index
    %c2_150 = arith.constant 2 : index
    %c0_151 = arith.constant 0 : index
    %c0_152 = arith.constant 0 : index
    %224 = vector.load %arg7[%c2_149, %c2_150, %c0_151, %c0_152] : memref<4x4x32x32xf32, #tpu.memory_space<vmem>>, vector<1x1x32x32xf32>
    %225 = vector.shape_cast %224 : vector<1x1x32x32xf32> to vector<32x32xf32>
    %c2_153 = arith.constant 2 : index
    %c2_154 = arith.constant 2 : index
    %c0_155 = arith.constant 0 : index
    %c0_156 = arith.constant 0 : index
    %226 = vector.load %arg8[%c2_153, %c2_154, %c0_155, %c0_156] : memref<4x4x1x32xf32, #tpu.memory_space<vmem>>, vector<1x1x1x32xf32>
    %227 = vector.shape_cast %226 : vector<1x1x1x32xf32> to vector<1x32xf32>
    %c2_157 = arith.constant 2 : index
    %c3_158 = arith.constant 3 : index
    %c0_159 = arith.constant 0 : index
    %c0_160 = arith.constant 0 : index
    %228 = vector.load %arg7[%c2_157, %c3_158, %c0_159, %c0_160] : memref<4x4x32x32xf32, #tpu.memory_space<vmem>>, vector<1x1x32x32xf32>
    %229 = vector.shape_cast %228 : vector<1x1x32x32xf32> to vector<32x32xf32>
    %c2_161 = arith.constant 2 : index
    %c3_162 = arith.constant 3 : index
    %c0_163 = arith.constant 0 : index
    %c0_164 = arith.constant 0 : index
    %230 = vector.load %arg8[%c2_161, %c3_162, %c0_163, %c0_164] : memref<4x4x1x32xf32, #tpu.memory_space<vmem>>, vector<1x1x1x32xf32>
    %231 = vector.shape_cast %230 : vector<1x1x1x32xf32> to vector<1x32xf32>
    %cst_165 = arith.constant dense<0.000000e+00> : vector<16x32xf32>
    %232 = tpu.matmul %86, %217, %cst_165 {dimension_numbers = #tpu.dot_dimension_numbers<[1], [0], [0], [1], [0, 0, 1, 1], [], []>} : vector<16x32xf32>, vector<32x32xf32>, vector<16x32xf32> -> vector<16x32xf32>
    %233 = vector.broadcast %219 : vector<1x32xf32> to vector<16x32xf32>
    %234 = arith.addf %232, %233 : vector<16x32xf32>
    %cst_166 = arith.constant 5.000000e-01 : f32
    %235 = vector.broadcast %cst_166 : f32 to vector<16x32xf32>
    %236 = arith.mulf %234, %235 : vector<16x32xf32>
    %cst_167 = arith.constant dense<0.000000e+00> : vector<8x32xf32>
    %237 = tpu.matmul %215, %221, %cst_167 {dimension_numbers = #tpu.dot_dimension_numbers<[1], [0], [0], [1], [0, 0, 1, 1], [], []>} : vector<8x32xf32>, vector<32x32xf32>, vector<8x32xf32> -> vector<8x32xf32>
    %238 = vector.broadcast %223 : vector<1x32xf32> to vector<8x32xf32>
    %239 = arith.addf %237, %238 : vector<8x32xf32>
    %cst_168 = arith.constant dense<0.000000e+00> : vector<8x32xf32>
    %240 = tpu.matmul %215, %225, %cst_168 {dimension_numbers = #tpu.dot_dimension_numbers<[1], [0], [0], [1], [0, 0, 1, 1], [], []>} : vector<8x32xf32>, vector<32x32xf32>, vector<8x32xf32> -> vector<8x32xf32>
    %241 = vector.broadcast %227 : vector<1x32xf32> to vector<8x32xf32>
    %242 = arith.addf %240, %241 : vector<8x32xf32>
    %243 = vector.shape_cast %236 : vector<16x32xf32> to vector<16x8x4xf32>
    %244 = tpu.transpose %243, [1, 0, 2] : vector<16x8x4xf32> -> vector<8x16x4xf32>
    %245 = vector.shape_cast %239 : vector<8x32xf32> to vector<8x8x4xf32>
    %246 = tpu.transpose %245, [1, 0, 2] : vector<8x8x4xf32> -> vector<8x8x4xf32>
    %247 = vector.shape_cast %242 : vector<8x32xf32> to vector<8x8x4xf32>
    %248 = tpu.transpose %247, [1, 0, 2] : vector<8x8x4xf32> -> vector<8x8x4xf32>
    "tpu.trace_start"() <{level = 10 : i32, message = "hqd,hkd->hqk"}> : () -> ()
    %cst_169 = arith.constant dense<0.000000e+00> : vector<8x16x8xf32>
    %249 = tpu.matmul %244, %246, %cst_169 {dimension_numbers = #tpu.dot_dimension_numbers<[2], [2], [1], [1], [0, 0, 0, 1, 1, 1], [0], [0]>} : vector<8x16x4xf32>, vector<8x8x4xf32>, vector<8x16x8xf32> -> vector<8x16x8xf32>
    "tpu.trace_stop"() : () -> ()
    %cst_170 = arith.constant dense<0xFF800000> : vector<8x16xf32>
    %250 = vector.multi_reduction <maximumf>, %249, %cst_170 [2] : vector<8x16x8xf32> to vector<8x16xf32>
    %251 = vector.shape_cast %250 : vector<8x16xf32> to vector<8x16x1xf32>
    %252 = vector.broadcast %251 : vector<8x16x1xf32> to vector<8x16x8xf32>
    %253 = arith.subf %249, %252 : vector<8x16x8xf32>
    %254 = math.exp %253 : vector<8x16x8xf32>
    %cst_171 = arith.constant dense<0.000000e+00> : vector<8x16xf32>
    %255 = vector.multi_reduction <add>, %254, %cst_171 [2] : vector<8x16x8xf32> to vector<8x16xf32>
    %256 = vector.shape_cast %255 : vector<8x16xf32> to vector<8x16x1xf32>
    %257 = tpu.reciprocal %256 {approx = true} : vector<8x16x1xf32> -> vector<8x16x1xf32>
    %258 = vector.broadcast %257 : vector<8x16x1xf32> to vector<8x16x8xf32>
    %259 = arith.mulf %254, %258 : vector<8x16x8xf32>
    "tpu.trace_start"() <{level = 10 : i32, message = "hqk,hkd->hqd"}> : () -> ()
    %cst_172 = arith.constant dense<0.000000e+00> : vector<8x16x4xf32>
    %260 = tpu.matmul %259, %248, %cst_172 {dimension_numbers = #tpu.dot_dimension_numbers<[2], [1], [1], [2], [0, 0, 0, 1, 1, 2], [0], [0]>} : vector<8x16x8xf32>, vector<8x8x4xf32>, vector<8x16x4xf32> -> vector<8x16x4xf32>
    "tpu.trace_stop"() : () -> ()
    %261 = tpu.transpose %260, [1, 0, 2] : vector<8x16x4xf32> -> vector<16x8x4xf32>
    %262 = vector.shape_cast %261 : vector<16x8x4xf32> to vector<16x32xf32>
    %cst_173 = arith.constant dense<0.000000e+00> : vector<16x32xf32>
    %263 = tpu.matmul %262, %229, %cst_173 {dimension_numbers = #tpu.dot_dimension_numbers<[1], [0], [0], [1], [0, 0, 1, 1], [], []>} : vector<16x32xf32>, vector<32x32xf32>, vector<16x32xf32> -> vector<16x32xf32>
    %264 = vector.broadcast %231 : vector<1x32xf32> to vector<16x32xf32>
    %265 = arith.addf %263, %264 : vector<16x32xf32>
    %266 = arith.addf %1, %265 : vector<16x32xf32>
    %c3_174 = arith.constant 3 : index
    %c0_175 = arith.constant 0 : index
    %c0_176 = arith.constant 0 : index
    %c0_177 = arith.constant 0 : index
    %267 = vector.load %arg7[%c3_174, %c0_175, %c0_176, %c0_177] : memref<4x4x32x32xf32, #tpu.memory_space<vmem>>, vector<1x1x32x32xf32>
    %268 = vector.shape_cast %267 : vector<1x1x32x32xf32> to vector<32x32xf32>
    %c3_178 = arith.constant 3 : index
    %c0_179 = arith.constant 0 : index
    %c0_180 = arith.constant 0 : index
    %c0_181 = arith.constant 0 : index
    %269 = vector.load %arg8[%c3_178, %c0_179, %c0_180, %c0_181] : memref<4x4x1x32xf32, #tpu.memory_space<vmem>>, vector<1x1x1x32xf32>
    %270 = vector.shape_cast %269 : vector<1x1x1x32xf32> to vector<1x32xf32>
    %c3_182 = arith.constant 3 : index
    %c1_183 = arith.constant 1 : index
    %c0_184 = arith.constant 0 : index
    %c0_185 = arith.constant 0 : index
    %271 = vector.load %arg7[%c3_182, %c1_183, %c0_184, %c0_185] : memref<4x4x32x32xf32, #tpu.memory_space<vmem>>, vector<1x1x32x32xf32>
    %272 = vector.shape_cast %271 : vector<1x1x32x32xf32> to vector<32x32xf32>
    %c3_186 = arith.constant 3 : index
    %c1_187 = arith.constant 1 : index
    %c0_188 = arith.constant 0 : index
    %c0_189 = arith.constant 0 : index
    %273 = vector.load %arg8[%c3_186, %c1_187, %c0_188, %c0_189] : memref<4x4x1x32xf32, #tpu.memory_space<vmem>>, vector<1x1x1x32xf32>
    %274 = vector.shape_cast %273 : vector<1x1x1x32xf32> to vector<1x32xf32>
    %c3_190 = arith.constant 3 : index
    %c2_191 = arith.constant 2 : index
    %c0_192 = arith.constant 0 : index
    %c0_193 = arith.constant 0 : index
    %275 = vector.load %arg7[%c3_190, %c2_191, %c0_192, %c0_193] : memref<4x4x32x32xf32, #tpu.memory_space<vmem>>, vector<1x1x32x32xf32>
    %276 = vector.shape_cast %275 : vector<1x1x32x32xf32> to vector<32x32xf32>
    %c3_194 = arith.constant 3 : index
    %c2_195 = arith.constant 2 : index
    %c0_196 = arith.constant 0 : index
    %c0_197 = arith.constant 0 : index
    %277 = vector.load %arg8[%c3_194, %c2_195, %c0_196, %c0_197] : memref<4x4x1x32xf32, #tpu.memory_space<vmem>>, vector<1x1x1x32xf32>
    %278 = vector.shape_cast %277 : vector<1x1x1x32xf32> to vector<1x32xf32>
    %c3_198 = arith.constant 3 : index
    %c3_199 = arith.constant 3 : index
    %c0_200 = arith.constant 0 : index
    %c0_201 = arith.constant 0 : index
    %279 = vector.load %arg7[%c3_198, %c3_199, %c0_200, %c0_201] : memref<4x4x32x32xf32, #tpu.memory_space<vmem>>, vector<1x1x32x32xf32>
    %280 = vector.shape_cast %279 : vector<1x1x32x32xf32> to vector<32x32xf32>
    %c3_202 = arith.constant 3 : index
    %c3_203 = arith.constant 3 : index
    %c0_204 = arith.constant 0 : index
    %c0_205 = arith.constant 0 : index
    %281 = vector.load %arg8[%c3_202, %c3_203, %c0_204, %c0_205] : memref<4x4x1x32xf32, #tpu.memory_space<vmem>>, vector<1x1x1x32xf32>
    %282 = vector.shape_cast %281 : vector<1x1x1x32xf32> to vector<1x32xf32>
    %cst_206 = arith.constant dense<0.000000e+00> : vector<16x32xf32>
    %283 = tpu.matmul %87, %268, %cst_206 {dimension_numbers = #tpu.dot_dimension_numbers<[1], [0], [0], [1], [0, 0, 1, 1], [], []>} : vector<16x32xf32>, vector<32x32xf32>, vector<16x32xf32> -> vector<16x32xf32>
    %284 = vector.broadcast %270 : vector<1x32xf32> to vector<16x32xf32>
    %285 = arith.addf %283, %284 : vector<16x32xf32>
    %cst_207 = arith.constant 5.000000e-01 : f32
    %286 = vector.broadcast %cst_207 : f32 to vector<16x32xf32>
    %287 = arith.mulf %285, %286 : vector<16x32xf32>
    %cst_208 = arith.constant dense<0.000000e+00> : vector<8x32xf32>
    %288 = tpu.matmul %215, %272, %cst_208 {dimension_numbers = #tpu.dot_dimension_numbers<[1], [0], [0], [1], [0, 0, 1, 1], [], []>} : vector<8x32xf32>, vector<32x32xf32>, vector<8x32xf32> -> vector<8x32xf32>
    %289 = vector.broadcast %274 : vector<1x32xf32> to vector<8x32xf32>
    %290 = arith.addf %288, %289 : vector<8x32xf32>
    %cst_209 = arith.constant dense<0.000000e+00> : vector<8x32xf32>
    %291 = tpu.matmul %215, %276, %cst_209 {dimension_numbers = #tpu.dot_dimension_numbers<[1], [0], [0], [1], [0, 0, 1, 1], [], []>} : vector<8x32xf32>, vector<32x32xf32>, vector<8x32xf32> -> vector<8x32xf32>
    %292 = vector.broadcast %278 : vector<1x32xf32> to vector<8x32xf32>
    %293 = arith.addf %291, %292 : vector<8x32xf32>
    %294 = vector.shape_cast %287 : vector<16x32xf32> to vector<16x8x4xf32>
    %295 = tpu.transpose %294, [1, 0, 2] : vector<16x8x4xf32> -> vector<8x16x4xf32>
    %296 = vector.shape_cast %290 : vector<8x32xf32> to vector<8x8x4xf32>
    %297 = tpu.transpose %296, [1, 0, 2] : vector<8x8x4xf32> -> vector<8x8x4xf32>
    %298 = vector.shape_cast %293 : vector<8x32xf32> to vector<8x8x4xf32>
    %299 = tpu.transpose %298, [1, 0, 2] : vector<8x8x4xf32> -> vector<8x8x4xf32>
    "tpu.trace_start"() <{level = 10 : i32, message = "hqd,hkd->hqk"}> : () -> ()
    %cst_210 = arith.constant dense<0.000000e+00> : vector<8x16x8xf32>
    %300 = tpu.matmul %295, %297, %cst_210 {dimension_numbers = #tpu.dot_dimension_numbers<[2], [2], [1], [1], [0, 0, 0, 1, 1, 1], [0], [0]>} : vector<8x16x4xf32>, vector<8x8x4xf32>, vector<8x16x8xf32> -> vector<8x16x8xf32>
    "tpu.trace_stop"() : () -> ()
    %cst_211 = arith.constant dense<0xFF800000> : vector<8x16xf32>
    %301 = vector.multi_reduction <maximumf>, %300, %cst_211 [2] : vector<8x16x8xf32> to vector<8x16xf32>
    %302 = vector.shape_cast %301 : vector<8x16xf32> to vector<8x16x1xf32>
    %303 = vector.broadcast %302 : vector<8x16x1xf32> to vector<8x16x8xf32>
    %304 = arith.subf %300, %303 : vector<8x16x8xf32>
    %305 = math.exp %304 : vector<8x16x8xf32>
    %cst_212 = arith.constant dense<0.000000e+00> : vector<8x16xf32>
    %306 = vector.multi_reduction <add>, %305, %cst_212 [2] : vector<8x16x8xf32> to vector<8x16xf32>
    %307 = vector.shape_cast %306 : vector<8x16xf32> to vector<8x16x1xf32>
    %308 = tpu.reciprocal %307 {approx = true} : vector<8x16x1xf32> -> vector<8x16x1xf32>
    %309 = vector.broadcast %308 : vector<8x16x1xf32> to vector<8x16x8xf32>
    %310 = arith.mulf %305, %309 : vector<8x16x8xf32>
    "tpu.trace_start"() <{level = 10 : i32, message = "hqk,hkd->hqd"}> : () -> ()
    %cst_213 = arith.constant dense<0.000000e+00> : vector<8x16x4xf32>
    %311 = tpu.matmul %310, %299, %cst_213 {dimension_numbers = #tpu.dot_dimension_numbers<[2], [1], [1], [2], [0, 0, 0, 1, 1, 2], [0], [0]>} : vector<8x16x8xf32>, vector<8x8x4xf32>, vector<8x16x4xf32> -> vector<8x16x4xf32>
    "tpu.trace_stop"() : () -> ()
    %312 = tpu.transpose %311, [1, 0, 2] : vector<8x16x4xf32> -> vector<16x8x4xf32>
    %313 = vector.shape_cast %312 : vector<16x8x4xf32> to vector<16x32xf32>
    %cst_214 = arith.constant dense<0.000000e+00> : vector<16x32xf32>
    %314 = tpu.matmul %313, %280, %cst_214 {dimension_numbers = #tpu.dot_dimension_numbers<[1], [0], [0], [1], [0, 0, 1, 1], [], []>} : vector<16x32xf32>, vector<32x32xf32>, vector<16x32xf32> -> vector<16x32xf32>
    %315 = vector.broadcast %282 : vector<1x32xf32> to vector<16x32xf32>
    %316 = arith.addf %314, %315 : vector<16x32xf32>
    %317 = arith.addf %3, %316 : vector<16x32xf32>
    %c4 = arith.constant 4 : index
    %c0_215 = arith.constant 0 : index
    %c0_216 = arith.constant 0 : index
    %318 = vector.load %arg5[%c4, %c0_215, %c0_216] : memref<6x1x32xf32, #tpu.memory_space<vmem>>, vector<1x1x32xf32>
    %319 = vector.shape_cast %318 : vector<1x1x32xf32> to vector<1x32xf32>
    %c4_217 = arith.constant 4 : index
    %c0_218 = arith.constant 0 : index
    %c0_219 = arith.constant 0 : index
    %320 = vector.load %arg6[%c4_217, %c0_218, %c0_219] : memref<6x1x32xf32, #tpu.memory_space<vmem>>, vector<1x1x32xf32>
    %321 = vector.shape_cast %320 : vector<1x1x32xf32> to vector<1x32xf32>
    %cst_220 = arith.constant dense<0.000000e+00> : vector<16xf32>
    %322 = vector.multi_reduction <add>, %266, %cst_220 [1] : vector<16x32xf32> to vector<16xf32>
    %323 = vector.shape_cast %322 : vector<16xf32> to vector<16x1xf32>
    %cst_221 = arith.constant 3.200000e+01 : f32
    %324 = vector.broadcast %cst_221 : f32 to vector<16x1xf32>
    %325 = arith.divf %323, %324 : vector<16x1xf32>
    %326 = vector.broadcast %325 : vector<16x1xf32> to vector<16x32xf32>
    %327 = arith.subf %266, %326 : vector<16x32xf32>
    %328 = arith.mulf %327, %327 : vector<16x32xf32>
    %cst_222 = arith.constant dense<0.000000e+00> : vector<16xf32>
    %329 = vector.multi_reduction <add>, %328, %cst_222 [1] : vector<16x32xf32> to vector<16xf32>
    %330 = vector.shape_cast %329 : vector<16xf32> to vector<16x1xf32>
    %cst_223 = arith.constant 3.200000e+01 : f32
    %331 = vector.broadcast %cst_223 : f32 to vector<16x1xf32>
    %332 = arith.divf %330, %331 : vector<16x1xf32>
    %333 = vector.broadcast %325 : vector<16x1xf32> to vector<16x32xf32>
    %334 = arith.subf %266, %333 : vector<16x32xf32>
    %cst_224 = arith.constant 9.99999974E-6 : f32
    %335 = vector.broadcast %cst_224 : f32 to vector<16x1xf32>
    %336 = arith.addf %332, %335 : vector<16x1xf32>
    %337 = math.rsqrt %336 : vector<16x1xf32>
    %338 = vector.broadcast %337 : vector<16x1xf32> to vector<16x32xf32>
    %339 = arith.mulf %334, %338 : vector<16x32xf32>
    %340 = vector.broadcast %319 : vector<1x32xf32> to vector<16x32xf32>
    %341 = arith.mulf %339, %340 : vector<16x32xf32>
    %342 = vector.broadcast %321 : vector<1x32xf32> to vector<16x32xf32>
    %343 = arith.addf %341, %342 : vector<16x32xf32>
    %c0_225 = arith.constant 0 : index
    %c0_226 = arith.constant 0 : index
    %c0_227 = arith.constant 0 : index
    %344 = vector.load %arg9[%c0_225, %c0_226, %c0_227] : memref<2x32x128xf32, #tpu.memory_space<vmem>>, vector<1x32x128xf32>
    %345 = vector.shape_cast %344 : vector<1x32x128xf32> to vector<32x128xf32>
    %c0_228 = arith.constant 0 : index
    %c0_229 = arith.constant 0 : index
    %c0_230 = arith.constant 0 : index
    %346 = vector.load %arg10[%c0_228, %c0_229, %c0_230] : memref<2x1x128xf32, #tpu.memory_space<vmem>>, vector<1x1x128xf32>
    %347 = vector.shape_cast %346 : vector<1x1x128xf32> to vector<1x128xf32>
    %c0_231 = arith.constant 0 : index
    %c0_232 = arith.constant 0 : index
    %c0_233 = arith.constant 0 : index
    %348 = vector.load %arg11[%c0_231, %c0_232, %c0_233] : memref<2x128x32xf32, #tpu.memory_space<vmem>>, vector<1x128x32xf32>
    %349 = vector.shape_cast %348 : vector<1x128x32xf32> to vector<128x32xf32>
    %c0_234 = arith.constant 0 : index
    %c0_235 = arith.constant 0 : index
    %c0_236 = arith.constant 0 : index
    %350 = vector.load %arg12[%c0_234, %c0_235, %c0_236] : memref<2x1x32xf32, #tpu.memory_space<vmem>>, vector<1x1x32xf32>
    %351 = vector.shape_cast %350 : vector<1x1x32xf32> to vector<1x32xf32>
    %cst_237 = arith.constant dense<0.000000e+00> : vector<16x128xf32>
    %352 = tpu.matmul %343, %345, %cst_237 {dimension_numbers = #tpu.dot_dimension_numbers<[1], [0], [0], [1], [0, 0, 1, 1], [], []>} : vector<16x32xf32>, vector<32x128xf32>, vector<16x128xf32> -> vector<16x128xf32>
    %353 = vector.broadcast %347 : vector<1x128xf32> to vector<16x128xf32>
    %354 = arith.addf %352, %353 : vector<16x128xf32>
    %cst_238 = arith.constant 0.000000e+00 : f32
    %355 = vector.broadcast %cst_238 : f32 to vector<16x128xf32>
    %356 = arith.maximumf %354, %355 : vector<16x128xf32>
    %cst_239 = arith.constant dense<0.000000e+00> : vector<16x32xf32>
    %357 = tpu.matmul %356, %349, %cst_239 {dimension_numbers = #tpu.dot_dimension_numbers<[1], [0], [0], [1], [0, 0, 1, 1], [], []>} : vector<16x128xf32>, vector<128x32xf32>, vector<16x32xf32> -> vector<16x32xf32>
    %358 = vector.broadcast %351 : vector<1x32xf32> to vector<16x32xf32>
    %359 = arith.addf %357, %358 : vector<16x32xf32>
    %360 = arith.addf %266, %359 : vector<16x32xf32>
    %c5 = arith.constant 5 : index
    %c0_240 = arith.constant 0 : index
    %c0_241 = arith.constant 0 : index
    %361 = vector.load %arg5[%c5, %c0_240, %c0_241] : memref<6x1x32xf32, #tpu.memory_space<vmem>>, vector<1x1x32xf32>
    %362 = vector.shape_cast %361 : vector<1x1x32xf32> to vector<1x32xf32>
    %c5_242 = arith.constant 5 : index
    %c0_243 = arith.constant 0 : index
    %c0_244 = arith.constant 0 : index
    %363 = vector.load %arg6[%c5_242, %c0_243, %c0_244] : memref<6x1x32xf32, #tpu.memory_space<vmem>>, vector<1x1x32xf32>
    %364 = vector.shape_cast %363 : vector<1x1x32xf32> to vector<1x32xf32>
    %cst_245 = arith.constant dense<0.000000e+00> : vector<16xf32>
    %365 = vector.multi_reduction <add>, %317, %cst_245 [1] : vector<16x32xf32> to vector<16xf32>
    %366 = vector.shape_cast %365 : vector<16xf32> to vector<16x1xf32>
    %cst_246 = arith.constant 3.200000e+01 : f32
    %367 = vector.broadcast %cst_246 : f32 to vector<16x1xf32>
    %368 = arith.divf %366, %367 : vector<16x1xf32>
    %369 = vector.broadcast %368 : vector<16x1xf32> to vector<16x32xf32>
    %370 = arith.subf %317, %369 : vector<16x32xf32>
    %371 = arith.mulf %370, %370 : vector<16x32xf32>
    %cst_247 = arith.constant dense<0.000000e+00> : vector<16xf32>
    %372 = vector.multi_reduction <add>, %371, %cst_247 [1] : vector<16x32xf32> to vector<16xf32>
    %373 = vector.shape_cast %372 : vector<16xf32> to vector<16x1xf32>
    %cst_248 = arith.constant 3.200000e+01 : f32
    %374 = vector.broadcast %cst_248 : f32 to vector<16x1xf32>
    %375 = arith.divf %373, %374 : vector<16x1xf32>
    %376 = vector.broadcast %368 : vector<16x1xf32> to vector<16x32xf32>
    %377 = arith.subf %317, %376 : vector<16x32xf32>
    %cst_249 = arith.constant 9.99999974E-6 : f32
    %378 = vector.broadcast %cst_249 : f32 to vector<16x1xf32>
    %379 = arith.addf %375, %378 : vector<16x1xf32>
    %380 = math.rsqrt %379 : vector<16x1xf32>
    %381 = vector.broadcast %380 : vector<16x1xf32> to vector<16x32xf32>
    %382 = arith.mulf %377, %381 : vector<16x32xf32>
    %383 = vector.broadcast %362 : vector<1x32xf32> to vector<16x32xf32>
    %384 = arith.mulf %382, %383 : vector<16x32xf32>
    %385 = vector.broadcast %364 : vector<1x32xf32> to vector<16x32xf32>
    %386 = arith.addf %384, %385 : vector<16x32xf32>
    %c1_250 = arith.constant 1 : index
    %c0_251 = arith.constant 0 : index
    %c0_252 = arith.constant 0 : index
    %387 = vector.load %arg9[%c1_250, %c0_251, %c0_252] : memref<2x32x128xf32, #tpu.memory_space<vmem>>, vector<1x32x128xf32>
    %388 = vector.shape_cast %387 : vector<1x32x128xf32> to vector<32x128xf32>
    %c1_253 = arith.constant 1 : index
    %c0_254 = arith.constant 0 : index
    %c0_255 = arith.constant 0 : index
    %389 = vector.load %arg10[%c1_253, %c0_254, %c0_255] : memref<2x1x128xf32, #tpu.memory_space<vmem>>, vector<1x1x128xf32>
    %390 = vector.shape_cast %389 : vector<1x1x128xf32> to vector<1x128xf32>
    %c1_256 = arith.constant 1 : index
    %c0_257 = arith.constant 0 : index
    %c0_258 = arith.constant 0 : index
    %391 = vector.load %arg11[%c1_256, %c0_257, %c0_258] : memref<2x128x32xf32, #tpu.memory_space<vmem>>, vector<1x128x32xf32>
    %392 = vector.shape_cast %391 : vector<1x128x32xf32> to vector<128x32xf32>
    %c1_259 = arith.constant 1 : index
    %c0_260 = arith.constant 0 : index
    %c0_261 = arith.constant 0 : index
    %393 = vector.load %arg12[%c1_259, %c0_260, %c0_261] : memref<2x1x32xf32, #tpu.memory_space<vmem>>, vector<1x1x32xf32>
    %394 = vector.shape_cast %393 : vector<1x1x32xf32> to vector<1x32xf32>
    %cst_262 = arith.constant dense<0.000000e+00> : vector<16x128xf32>
    %395 = tpu.matmul %386, %388, %cst_262 {dimension_numbers = #tpu.dot_dimension_numbers<[1], [0], [0], [1], [0, 0, 1, 1], [], []>} : vector<16x32xf32>, vector<32x128xf32>, vector<16x128xf32> -> vector<16x128xf32>
    %396 = vector.broadcast %390 : vector<1x128xf32> to vector<16x128xf32>
    %397 = arith.addf %395, %396 : vector<16x128xf32>
    %cst_263 = arith.constant 0.000000e+00 : f32
    %398 = vector.broadcast %cst_263 : f32 to vector<16x128xf32>
    %399 = arith.maximumf %397, %398 : vector<16x128xf32>
    %cst_264 = arith.constant dense<0.000000e+00> : vector<16x32xf32>
    %400 = tpu.matmul %399, %392, %cst_264 {dimension_numbers = #tpu.dot_dimension_numbers<[1], [0], [0], [1], [0, 0, 1, 1], [], []>} : vector<16x128xf32>, vector<128x32xf32>, vector<16x32xf32> -> vector<16x32xf32>
    %401 = vector.broadcast %394 : vector<1x32xf32> to vector<16x32xf32>
    %402 = arith.addf %400, %401 : vector<16x32xf32>
    %403 = arith.addf %317, %402 : vector<16x32xf32>
    %c0_265 = arith.constant 0 : index
    %c0_266 = arith.constant 0 : index
    %c0_267 = arith.constant 0 : index
    %404 = vector.load %arg13[%c0_265, %c0_266, %c0_267] : memref<1x16x32xf32, #tpu.memory_space<vmem>>, vector<1x16x32xf32>
    %405 = vector.shape_cast %404 : vector<1x16x32xf32> to vector<16x32xf32>
    %406 = vector.shape_cast %360 : vector<16x32xf32> to vector<1x16x32xf32>
    tpu.vector_store %arg13[%c0_265, %c0_266, %c0_267], %406 {strides = array<i32>} : memref<1x16x32xf32, #tpu.memory_space<vmem>>, vector<1x16x32xf32>,
    %c0_268 = arith.constant 0 : index
    %c0_269 = arith.constant 0 : index
    %c0_270 = arith.constant 0 : index
    %407 = vector.load %arg14[%c0_268, %c0_269, %c0_270] : memref<1x16x32xf32, #tpu.memory_space<vmem>>, vector<1x16x32xf32>
    %408 = vector.shape_cast %407 : vector<1x16x32xf32> to vector<16x32xf32>
    %409 = vector.shape_cast %403 : vector<16x32xf32> to vector<1x16x32xf32>
    tpu.vector_store %arg14[%c0_268, %c0_269, %c0_270], %409 {strides = array<i32>} : memref<1x16x32xf32, #tpu.memory_space<vmem>>, vector<1x16x32xf32>,
    %c0_271 = arith.constant 0 : index
    %c0_272 = arith.constant 0 : index
    %c0_273 = arith.constant 0 : index
    %410 = vector.load %arg15[%c0_271, %c0_272, %c0_273] : memref<1x8x32xf32, #tpu.memory_space<vmem>>, vector<1x8x32xf32>
    %411 = vector.shape_cast %410 : vector<1x8x32xf32> to vector<8x32xf32>
    %412 = vector.shape_cast %189 : vector<8x32xf32> to vector<1x8x32xf32>
    tpu.vector_store %arg15[%c0_271, %c0_272, %c0_273], %412 {strides = array<i32>} : memref<1x8x32xf32, #tpu.memory_space<vmem>>, vector<1x8x32xf32>,
    return
  }
  func.func @transform_0(%arg0: i32) -> (i32, i32, i32) {
    %c0_i32 = arith.constant 0 : i32
    %c0_i32_0 = arith.constant 0 : i32
    %c0_i32_1 = arith.constant 0 : i32
    return %arg0, %c0_i32, %c0_i32_0 : i32, i32, i32
  }
  func.func @transform_1(%arg0: i32) -> (i32, i32, i32) {
    %c0_i32 = arith.constant 0 : i32
    %c0_i32_0 = arith.constant 0 : i32
    %c0_i32_1 = arith.constant 0 : i32
    return %arg0, %c0_i32, %c0_i32_0 : i32, i32, i32
  }
  func.func @transform_2(%arg0: i32) -> (i32, i32, i32) {
    %c0_i32 = arith.constant 0 : i32
    %c0_i32_0 = arith.constant 0 : i32
    %c0_i32_1 = arith.constant 0 : i32
    return %arg0, %c0_i32, %c0_i32_0 : i32, i32, i32
  }
  func.func @transform_3(%arg0: i32) -> (i32, i32, i32) {
    %c0_i32 = arith.constant 0 : i32
    %c0_i32_0 = arith.constant 0 : i32
    %c0_i32_1 = arith.constant 0 : i32
    %c0_i32_2 = arith.constant 0 : i32
    return %c0_i32, %c0_i32_0, %c0_i32_1 : i32, i32, i32
  }
  func.func @transform_4(%arg0: i32) -> (i32, i32, i32) {
    %c0_i32 = arith.constant 0 : i32
    %c0_i32_0 = arith.constant 0 : i32
    %c0_i32_1 = arith.constant 0 : i32
    %c0_i32_2 = arith.constant 0 : i32
    return %c0_i32, %c0_i32_0, %c0_i32_1 : i32, i32, i32
  }
  func.func @transform_5(%arg0: i32) -> (i32, i32, i32) {
    %c0_i32 = arith.constant 0 : i32
    %c0_i32_0 = arith.constant 0 : i32
    %c0_i32_1 = arith.constant 0 : i32
    %c0_i32_2 = arith.constant 0 : i32
    return %c0_i32, %c0_i32_0, %c0_i32_1 : i32, i32, i32
  }
  func.func @transform_6(%arg0: i32) -> (i32, i32, i32, i32) {
    %c0_i32 = arith.constant 0 : i32
    %c0_i32_0 = arith.constant 0 : i32
    %c0_i32_1 = arith.constant 0 : i32
    %c0_i32_2 = arith.constant 0 : i32
    %c0_i32_3 = arith.constant 0 : i32
    return %c0_i32, %c0_i32_0, %c0_i32_1, %c0_i32_2 : i32, i32, i32, i32
  }
  func.func @transform_7(%arg0: i32) -> (i32, i32, i32, i32) {
    %c0_i32 = arith.constant 0 : i32
    %c0_i32_0 = arith.constant 0 : i32
    %c0_i32_1 = arith.constant 0 : i32
    %c0_i32_2 = arith.constant 0 : i32
    %c0_i32_3 = arith.constant 0 : i32
    return %c0_i32, %c0_i32_0, %c0_i32_1, %c0_i32_2 : i32, i32, i32, i32
  }
  func.func @transform_8(%arg0: i32) -> (i32, i32, i32) {
    %c0_i32 = arith.constant 0 : i32
    %c0_i32_0 = arith.constant 0 : i32
    %c0_i32_1 = arith.constant 0 : i32
    %c0_i32_2 = arith.constant 0 : i32
    return %c0_i32, %c0_i32_0, %c0_i32_1 : i32, i32, i32
  }
  func.func @transform_9(%arg0: i32) -> (i32, i32, i32) {
    %c0_i32 = arith.constant 0 : i32
    %c0_i32_0 = arith.constant 0 : i32
    %c0_i32_1 = arith.constant 0 : i32
    %c0_i32_2 = arith.constant 0 : i32
    return %c0_i32, %c0_i32_0, %c0_i32_1 : i32, i32, i32
  }
  func.func @transform_10(%arg0: i32) -> (i32, i32, i32) {
    %c0_i32 = arith.constant 0 : i32
    %c0_i32_0 = arith.constant 0 : i32
    %c0_i32_1 = arith.constant 0 : i32
    %c0_i32_2 = arith.constant 0 : i32
    return %c0_i32, %c0_i32_0, %c0_i32_1 : i32, i32, i32
  }
  func.func @transform_11(%arg0: i32) -> (i32, i32, i32) {
    %c0_i32 = arith.constant 0 : i32
    %c0_i32_0 = arith.constant 0 : i32
    %c0_i32_1 = arith.constant 0 : i32
    %c0_i32_2 = arith.constant 0 : i32
    return %c0_i32, %c0_i32_0, %c0_i32_1 : i32, i32, i32
  }
  func.func @transform_12(%arg0: i32) -> (i32, i32, i32) {
    %c0_i32 = arith.constant 0 : i32
    %c0_i32_0 = arith.constant 0 : i32
    %c0_i32_1 = arith.constant 0 : i32
    return %arg0, %c0_i32, %c0_i32_0 : i32, i32, i32
  }
  func.func @transform_13(%arg0: i32) -> (i32, i32, i32) {
    %c0_i32 = arith.constant 0 : i32
    %c0_i32_0 = arith.constant 0 : i32
    %c0_i32_1 = arith.constant 0 : i32
    return %arg0, %c0_i32, %c0_i32_0 : i32, i32, i32
  }
  func.func @transform_14(%arg0: i32) -> (i32, i32, i32) {
    %c0_i32 = arith.constant 0 : i32
    %c0_i32_0 = arith.constant 0 : i32
    %c0_i32_1 = arith.constant 0 : i32
    return %arg0, %c0_i32, %c0_i32_0 : i32, i32, i32
  }
}

</mosaic_0001>

<bundles_post_ra>
// kernel: bottleneck_transformer_layer.1
= control target key start
LH: loop header
LB: loop body
LE: loop exit
PB: predicated region body
PF: predicated region fallthrough
CT: control target
= control target key end

     0   :  { %s15983_s0 = inlined_call_operand.vmem [shape: f32[2,16,32], index: 0, kind: input, shape index: {}]   ;;  %s15984_s1 = inlined_call_operand.vmem [shape: f32[2,16,32], index: 1, kind: input, shape index: {}]   ;;  %s15985_s2 = inlined_call_operand.vmem [shape: f32[2,8,32], index: 2, kind: input, shape index: {}]   ;;  %s15986_s3 = inlined_call_operand.vmem [shape: f32[1,16,32], index: 3, kind: input, shape index: {}]   ;;  %s15987_s4 = inlined_call_operand.vmem [shape: f32[6,1,32], index: 4, kind: input, shape index: {}]   ;;  %s15988_s5 = inlined_call_operand.vmem [shape: f32[6,1,32], index: 5, kind: input, shape index: {}]   ;;  %s15989_s6 = inlined_call_operand.vmem [shape: f32[4,4,32,32], index: 6, kind: input, shape index: {}]   ;;  %s15990_s7 = inlined_call_operand.vmem [shape: f32[4,4,1,32], index: 7, kind: input, shape index: {}]   ;;  %s15991_s8 = inlined_call_operand.vmem [shape: f32[2,32,128], index: 8, kind: input, shape index: {}]   ;;  %s15992_s9 = inlined_call_operand.vmem [shape: f32[2,1,128], index: 9, kind: input, shape index: {}]   ;;  %s15993_s10 = inlined_call_operand.vmem [shape: f32[2,128,32], index: 10, kind: input, shape index: {}]   ;;  %s15994_s11 = inlined_call_operand.vmem [shape: f32[2,1,32], index: 11, kind: input, shape index: {}]   ;;  %s15995_s12 = inlined_call_operand.hbm [shape: f32[2,16,32], index: 12, kind: output, shape index: {0}]   ;;  %s15996_s13 = inlined_call_operand.hbm [shape: f32[2,16,32], index: 13, kind: output, shape index: {1}]   ;;  %s15997_s14 = inlined_call_operand.hbm [shape: f32[2,8,32], index: 14, kind: output, shape index: {2}]  }
   0x1   :  { %16049 = sst [smem:[#allocation20_spill]] %s15983_s0 }
   0x2   :  { %16050 = sst [smem:[#allocation21_spill]] %s15984_s1 }
   0x3   :  { %16051 = sst [smem:[#allocation22_spill]] %s15985_s2 }
   0x4   :  { %16052 = sst [smem:[#allocation23_spill]] %s15986_s3 }
   0x5   :  { %16053 = sst [smem:[#allocation24_spill]] %s15992_s9 }
   0x6   :  { %16054 = sst [smem:[#allocation25_spill]] %s15993_s10 }
   0x7   :  { %16055 = sst [smem:[#allocation26_spill]] %s15994_s11 }
   0x8   :  { %16056 = sst [smem:[#allocation27_spill]] %s15995_s12 }
   0x9   :  { %16057 = sst [smem:[#allocation28_spill]] %s15996_s13 }
   0xa   :  { %16058 = sst [smem:[#allocation29_spill]] %s15997_s14 }
   0xb   :  { %20 = vsyncpa [#allocation3], 0 }
   0xc   :  { %22 = vsyncpa [#allocation3 + $0x1], 0 }
   0xd   :  { %23 = vsyncpa [#allocation5], 0 }
   0xe   :  { %25 = vsyncpa [#allocation5 + $0x1], 0  ;;  %s11023_s29 = smov 0   ;;  %s11025_s30 = smov 0  }
   0xf   :  { %s11027_s15 = smov 0   ;;  %s11029_s16 = smov 0  }
  0x10 LB: > { %16059 = sst [smem:[#allocation9_spill]] %s10916_s29  ;;  %s11044_s17 = sadd.s32 4294967295, %s10928_s16   ;;  %s10928_s16 = sphi %s11029_s16, %s16113_s16   ;;  %s10924_s15 = sphi %s11027_s15, %s16116_s15   ;;  %s10920_s30 = sphi %s11025_s30, %s16115_s30   ;;  %s10916_s29 = sphi %s11023_s29, %s16114_s29  }
  0x11   : > { %16060 = sst [smem:[#allocation10_spill]] %s10920_s30  ;;  %s15998_s18 = sadd.s32 4294967294, %s10928_s16  }
  0x12   : > { %16061 = sst [smem:[#allocation11_spill]] %s10924_s15  ;;  %s11048_s19 = sadd.s32 1, %s10928_s16  }
  0x13   : > { %16062 = sst [smem:[#allocation12_spill]] %s10928_s16  ;;  %s305_s20 = sadd.s32 1, %s10924_s15 }
  0x14   : > { %16063 = sst [smem:[#allocation13_spill]] %s11044_s17  ;;  %s302_s21 = ssub.s32 %s10928_s16, %s11048_s19 }
  0x15   : > { %16064 = sst [smem:[#allocation14_spill]] %s11048_s19  ;;  %p315_p0 = scmp.ne.s32.totalorder %s10924_s15, %s10920_s30 }
  0x16   : > { %p303_p1 = scmp.eq.s32.totalorder %s302_s21, 0  ;;  %p316_p2 = scmp.eq.s32.totalorder %s11044_s17, 1 }
  0x17   : > { %p321_p3 = scmp.ne.s32.totalorder %s10920_s30, %s10916_s29  ;;  %p322_p4 = scmp.eq.s32.totalorder %s15998_s18, 1 }
  0x18   : > { %s11061_s22 = scalar_select %p303_p1, %s10924_s15, %s305_s20  }
  0x19   : > { %p11063_p5 = por %p316_p2, %p315_p0  ;;  %p11067_p6 = por %p322_p4, %p321_p3 }
  0x1a   : > { %16065 = sst [smem:[#allocation15_spill]] %s11061_s22  ;;  %p10112_p7 = scmp.ge.s32.totalorder %s10928_s16, 1 }
  0x1b   : > { %s16066_s23 = scalar_select %p11063_p5, 1, 0 }
  0x1c   : > { %s16068_s24 = scalar_select %p11067_p6, 1, 0 }
  0x1d   : > { %16067 = sst [smem:[#allocation16_spill]] %s16066_s23  ;;  %p442_p8 = scmp.lt.s32.totalorder %s10928_s16, 3 }
  0x1e   : > { %16069 = sst [smem:[#allocation17_spill]] %s16068_s24 }
  0x1f   : > { %p443_p9 = pnand %p10112_p7, %p442_p8 }
  0x21   : > { %446 = sbr.rel (%p443_p9) target bundleno = 5044 (0x13b4), region = 68 }
  0x26   : > { %p507_p10 = scmp.lt.s32.totalorder %s11044_s17, 1  ;;  %vm530_vm0 = vcmask 261120   ;;  %s16070_s2 = sld [smem:[#allocation22_spill]]  ;;  %v10930_v6 = vmov 32.0   ;;  %v691_v28 = vld [vmem:[%s15989_s6 + $0x18] sm:$0xff]  ;;  %v690_v29 = vld [vmem:[%s15989_s6 + $0x10] sm:$0xff] }
  0x27   : > { %s16071_s0 = sld [smem:[#allocation20_spill]]  ;;  %10583 = vrcp.f32 %v10930_v6  ;;  %732 = vmatpush.msra.mxu1 %v691_v28  ;;  %v689_v30 = vld [vmem:[%s15989_s6 + $0x8] sm:$0xff]  ;;  %v688_v31 = vld [vmem:[%s15989_s6] sm:$0xff]  ;;  %v10133_v32 = vld [vmem:[%s15989_s6 + $0x58] sm:$0xff]  ;;  %s16012_s20 = smov 112   ;;  %vm828_vm11 = vcmask 1047556  }
  0x28   : > { %s11075_s25 = scalar_select %p507_p10, %s11044_s17, 1  ;;  %794 = vmatpush.msra.mxu3 %v10133_v32  ;;  %v10128_v33 = vld [vmem:[%s15989_s6 + $0x38] sm:$0xff]  ;;  %v10132_v34 = vld [vmem:[%s15989_s6 + $0x50] sm:$0xff]  ;;  %v10131_v38 = vld [vmem:[%s15989_s6 + $0x48] sm:$0xff]  ;;  %vm2036_vm12 = vcmask 31744   ;;  %vm2269_vm13 = vcmask 130048  }
  0x29   : > { %733 = vmatpush.msra.mxu1 %v690_v29  ;;  %v10127_v37 = vld [vmem:[%s15989_s6 + $0x30] sm:$0xff]  ;;  %v10126_v40 = vld [vmem:[%s15989_s6 + $0x28] sm:$0xff]  ;;  %v10130_v41 = vld [vmem:[%s15989_s6 + $0x40] sm:$0xff]  ;;  %s16072_s3 = sld [smem:[#allocation23_spill]]  ;;  %s16014_s18 = smov 124  }
  0x2a   : > { %s10120_s26 = sshll.u32 %s11075_s25, 3  ;;  %s16000_s27 = sshll.u32 %s11075_s25, 4  ;;  %795 = vmatpush.msra.mxu3 %v10132_v34  ;;  %v10125_v42 = vld [vmem:[%s15989_s6 + $0x20] sm:$0xff] }
  0x2b   : > { %734 = vmatpush.msra.mxu1 %v689_v30  ;;  %v10551_v57 = vld [vmem:[%s15987_s4 + $0x2] ss:$0 sm:$0xff]  ;;  %v10556_v28 = vld [vmem:[%s15990_s7 + $0x1] ss:$0 sm:$0xff]  ;;  %s16010_s28 = smov 108   ;;  %s16008_s19 = smov 100  }
  0x2c   : > { %s11082_s21 = scalar_lea.vmem %s16070_s2, %s10120_s26  ;;  %796 = vmatpush.msra.mxu3 %v10131_v38  ;;  %v10552_v61 = vld [vmem:[%s15988_s5 + $0x2] ss:$0 sm:$0xff]  ;;  %s16004_s2 = smov 116  }
  0x2d   : > { %s11089_s15 = scalar_lea.vmem %s16071_s0, %s16000_s27  ;;  %v525_v0 = vld [vmem:[%s11082_s21] sm:$0xff]  ;;  %v10584_v7 = vpop.eup %10583  ;;  %735 = vmatpush.msra.mxu1 %v688_v31  ;;  %s16006_s27 = smov 120  }
  0x2e   : > { %v522_v1 = vld [vmem:[%s11089_s15 + $0x8] sm:$0xff]  ;;  %v654_v2 = vsel %vm530_vm0, %v525_v0, 0.0  ;;  %v521_v3 = vld [vmem:[%s11089_s15] sm:$0xff]  ;;  %v538_v8 = vmul.f32 32.0, %v10584_v7  ;;  %vm542_vm1 = vweird.f32 %v10584_v7  ;;  %797 = vmatpush.msra.mxu3 %v10130_v41  ;;  %s16016_s0 = smov 104   ;;  %s16073_s24 = sshll.u32 %s11075_s25, 4 }
  0x2f   : > { %v534_v4 = vsel %vm530_vm0, %v522_v1, 0.0  ;;  %655 = vadd.xlane.f32.xlu0 %v654_v2  ;;  %v531_v5 = vsel %vm530_vm0, %v521_v3, 0.0  ;;  %762 = vmatpush.msrb.mxu1 %v10128_v33  ;;  %s16074_s1 = sld [smem:[#allocation21_spill]]  ;;  %s16078_s25 = smov 100  }
  0x30   : > { %535 = vadd.xlane.f32.xlu1 %v534_v4  ;;  %v539_v9 = vsub.f32 1.0, %v538_v8  ;;  %s16084_s26 = smov 108   ;;  %s16020_s22 = smov 12  }
  0x31   : > { %763 = vmatpush.msrb.mxu1 %v10127_v37  ;;  %s16087_s29 = smov 4   ;;  %s16091_s16 = smov 24  }
  0x32   : > { %v540_v10 = vmul.f32 %v10584_v7, %v539_v9  ;;  %v10554_v9 = vld [vmem:[%s15988_s5] ss:$0 sm:$0xff]  ;;  %s16092_s14 = smov 28   ;;  %s16093_s13 = smov 20  }
  0x33   : > { %764 = vmatpush.msrb.mxu1 %v10126_v40  ;;  %s13465_s11 = sand.u32 1, %s10920_s30   ;;  %s16106_s10 = sld [smem:[#allocation28_spill]] }
  0x34   : > { %v541_v11 = vadd.f32 %v10584_v7, %v540_v10  ;;  %16094 = sst [smem:[#allocation18_spill]] %s13465_s11  ;;  %s10115_s23 = sshll.u32 %s13465_s11, 3 }
  0x35   : > { %765 = vmatpush.msrb.mxu1 %v10125_v42 }
  0x36   : > { %v11097_v12 = vsel %vm542_vm1, %v10584_v7, %v541_v11 }
  0x37   : > { %532 = vadd.xlane.f32.xlu0 %v531_v5  ;;  %v10553_v5 = vld [vmem:[%s15987_s4] ss:$0 sm:$0xff] }
  0xa2   : > { %v656_v13 = vpop.xlane.xlu0 %655 }
  0xa3   : > { %v657_v14 = vmul.f32 %v656_v13, %v11097_v12  ;;  %v536_v17 = vpop.xlane.xlu1 %535 }
  0xa4   : > { %v545_v21 = vmul.f32 %v11097_v12, %v536_v17 }
  0xa5   : > { %v11100_v15 = vsub.f32 %v525_v0, %v657_v14  ;;  %v526_v14 = vld [vmem:[%s16072_s3] sm:$0xff] }
  0xa6   : > { %v11109_v23 = vsub.f32 %v522_v1, %v545_v21  ;;  %v527_v21 = vld [vmem:[%s16072_s3 + $0x8] sm:$0xff] }
  0xa7   : > { %v659_v16 = vmul.f32 %v11100_v15, %v11100_v15 }
  0xa8   : > { %v549_v26 = vmul.f32 %v11109_v23, %v11109_v23 }
  0xa9   : > { %v660_v18 = vsel %vm530_vm0, %v659_v16, 0.0 }
  0xaa   : > { %661 = vadd.xlane.f32.xlu1 %v660_v18  ;;  %v533_v19 = vpop.xlane.xlu0 %532  ;;  %v553_v27 = vsel %vm530_vm0, %v549_v26, 0.0 }
  0xab   : > { %v544_v20 = vmul.f32 %v11097_v12, %v533_v19 }
  0xad   : > { %v11107_v22 = vsub.f32 %v521_v3, %v544_v20 }
  0xaf   : > { %v548_v24 = vmul.f32 %v11107_v22, %v11107_v22 }
  0xb1   : > { %v550_v25 = vsel %vm530_vm0, %v548_v24, 0.0 }
  0xb2   : > { %551 = vadd.xlane.f32.xlu2 %v550_v25  ;;  %v10555_v25 = vld [vmem:[%s15990_s7] ss:$0 sm:$0xff] }
  0xba   : > { %554 = vadd.xlane.f32.xlu2 %v553_v27 }
 0x11d   : > { %v662_v35 = vpop.xlane.xlu1 %661 }
 0x11e   : > { %v663_v36 = vmul.f32 %v662_v35, %v11097_v12 }
 0x120   : > { %v664_v39 = vadd.f32 1e-05, %v663_v36 }
 0x122   : > { %10585 = vrsqrt.f32 %v664_v39  ;;  %vm671_vm3 = vweird.f32 %v664_v39 }
 0x125   : > { %v552_v43 = vpop.xlane.xlu2 %551 }
 0x126   : > { %v556_v44 = vmul.f32 %v552_v43, %v11097_v12 }
 0x128   : > { %v10586_v45 = vpop.eup %10585  ;;  %v558_v46 = vadd.f32 1e-05, %v556_v44 }
 0x129   : > { %v666_v47 = vmul.f32 %v10586_v45, %v664_v39  ;;  %vm672_vm2 = vweird.f32 %v10586_v45  ;;  %v10557_v39 = vld [vmem:[%s15990_s7 + $0x2] ss:$0 sm:$0xff] }
 0x12a   : > { %10587 = vrsqrt.f32 %v558_v46  ;;  %vm673_vm4 = vmor %vm671_vm3, %vm672_vm2  ;;  %vm566_vm6 = vweird.f32 %v558_v46 }
 0x12b   : > { %v667_v48 = vmul.f32 %v10586_v45, %v666_v47  ;;  %v10938_v47 = vmov 1983009808  }
 0x12d   : > { %v668_v49 = vmul.f32 0.5, %v667_v48  ;;  %v555_v50 = vpop.xlane.xlu2 %554  ;;  %v833_v48 = vunpack.c.l.s4 %v10938_v47 }
 0x12e   : > { %v557_v51 = vmul.f32 %v555_v50, %v11097_v12 }
 0x12f   : > { %v669_v52 = vsub.f32 1.5, %v668_v49 }
 0x130   : > { %v10588_v53 = vpop.eup %10587  ;;  %v559_v54 = vadd.f32 1e-05, %v557_v51  ;;  %v11262_v51 = vunpack.c.0.s8 %v833_v48 }
 0x131   : > { %v670_v55 = vmul.f32 %v10586_v45, %v669_v52  ;;  %v561_v56 = vmul.f32 %v10588_v53, %v558_v46  ;;  %vm567_vm5 = vweird.f32 %v10588_v53 }
 0x132   : > { %10589 = vrsqrt.f32 %v559_v54  ;;  %vm568_vm7 = vmor %vm566_vm6, %vm567_vm5  ;;  %vm576_vm8 = vweird.f32 %v559_v54  ;;  %vm2795_vm5 = vcmask 64512   ;;  %vm2797_vm6 = vcmask 97280  }
 0x133   : > { %v562_v58 = vmul.f32 %v10588_v53, %v561_v56  ;;  %v674_v59 = vsel %vm673_vm4, %v10586_v45, %v670_v55 }
 0x134   : > { %v675_v60 = vmul.f32 %v674_v59, %v11100_v15 }
 0x135   : > { %v563_v62 = vmul.f32 0.5, %v562_v58 }
 0x136   : > { %v679_v63 = vmul.f32 %v10551_v57, %v675_v60 }
 0x137   : > { %v564_v0 = vsub.f32 1.5, %v563_v62 }
 0x138   : > { %v10590_v1 = vpop.eup %10589  ;;  %v11163_v2 = vadd.f32 %v10552_v61, %v679_v63  ;;  %v10939_v63 = vmov 1934713408  }
 0x139   : > { %v565_v3 = vmul.f32 %v10588_v53, %v564_v0  ;;  %v571_v4 = vmul.f32 %v10590_v1, %v559_v54  ;;  %vm577_vm9 = vweird.f32 %v10590_v1  ;;  %v881_v0 = vunpack.c.l.s4 %v10939_v63 }
 0x13a   : > { %10140 = vmatmul.msk.f32.vlgmr.msra.gmra.mxu1 %vm530_vm0, %v11163_v2  ;;  %vm578_vm10 = vmor %vm576_vm8, %vm577_vm9  ;;  %vm2802_vm8 = vcmask 195584   ;;  %vm2804_vm9 = vcmask 228352  }
 0x13b   : > { %v572_v6 = vmul.f32 %v10590_v1, %v571_v4  ;;  %v569_v7 = vsel %vm568_vm7, %v10588_v53, %v565_v3  ;;  %vm2800_vm7 = vcmask 162816  }
 0x13c   : > { %v580_v8 = vmul.f32 %v569_v7, %v11107_v22 }
 0x13d   : > { %v573_v10 = vmul.f32 0.5, %v572_v6 }
 0x13e   : > { %v585_v11 = vmul.f32 %v10553_v5, %v580_v8 }
 0x13f   : > { %v574_v13 = vsub.f32 1.5, %v573_v10 }
 0x140   : > { %v590_v15 = vadd.f32 %v10554_v9, %v585_v11  ;;  %v11278_v11 = vunpack.c.0.s8 %v881_v0 }
 0x141   : > { %v575_v16 = vmul.f32 %v10590_v1, %v574_v13 }
 0x142   : > { %v11177_v17 = vadd.f32 %v590_v15, %v526_v14  ;;  %10143 = vmatmul.msk.f32.vlgmr.msra.gmra.mxu3 %vm530_vm0, %v590_v15 }
 0x143   : > { %v579_v18 = vsel %vm578_vm10, %v10590_v1, %v575_v16 }
 0x144   : > { %10141 = vmatmul.msk.f32.vlgmr.msrb.gmra.mxu1 %vm530_vm0, %v11177_v17  ;;  %v581_v19 = vmul.f32 %v579_v18, %v11109_v23 }
 0x146   : > { %v586_v20 = vmul.f32 %v10553_v5, %v581_v19 }
 0x148   : > { %v591_v22 = vadd.f32 %v10554_v9, %v586_v20 }
 0x14a   : > { %10144 = vmatmul.msk.f32.gmra.mxu3 %vm530_vm0, %v591_v22  ;;  %v11187_v24 = vadd.f32 %v591_v22, %v527_v21 }
 0x14c   : > { %10142 = vmatmul.msk.f32.gmra.mxu1 %vm530_vm0, %v11187_v24 }
 0x1b7   : > { %v737_v26 = vpop.f32.mrf.mxu1 }
 0x1b8   : > { %v738_v27 = vadd.f32 %v10555_v25, %v737_v26 }
 0x1ba   : > { %v11194_v23 = vmul.f32 0.5, %v738_v27 }
 0x1bc   : > { %809 = vrot.lane.b32.xlu1 %v11194_v23, %s16006_s27  ;;  %815 = vrot.lane.b32.xlu0 %v11194_v23, %s16012_s20  ;;  %v830_v4 = vrot.slane %v11194_v23, 4 }
 0x1bd   : > { %806 = vrot.lane.b32.xlu2 %v11194_v23, %s16014_s18 }
 0x1c1   : > { %v767_v29 = vpop.f32.mrf.mxu1 }
 0x1c2   : > { %v768_v30 = vadd.f32 %v10556_v28, %v767_v29 }
 0x1c4   : > { %1072 = vrot.lane.b32.xlu1 %v768_v30, %s16012_s20  ;;  %1054 = vrot.lane.b32.xlu0 %v768_v30, %s16014_s18  ;;  %v1098_v50 = vrot.slane %v768_v30, 4 }
 0x1c5   : > { %1060 = vrot.lane.b32.xlu2 %v768_v30, %s16006_s27  ;;  %v799_v36 = vpop.f32.mrf.mxu3 }
 0x1c6   : > { %v11252_v42 = vadd.f32 %v10557_v39, %v799_v36 }
 0x1c9   : > { %v770_v31 = vpop.f32.mrf.mxu1 }
 0x1ca   : > { %v11211_v32 = vadd.f32 %v10556_v28, %v770_v31 }
 0x1cc   : > { %1078 = vrot.lane.b32.xlu1 %v768_v30, %s16010_s28  ;;  %1084 = vrot.lane.b32.xlu0 %v768_v30, %s16016_s0  ;;  %v1210_v16 = vrot.slane %v11211_v32, 4 }
 0x1cd   : > { %1066 = vrot.lane.b32.xlu2 %v768_v30, %s16004_s2  ;;  %v802_v38 = vpop.f32.mrf.mxu3 }
 0x1ce   : > { %v11250_v41 = vadd.f32 %v10557_v39, %v802_v38 }
 0x1d0   : > { %v11256_v43 = vpack.i.bf16 %v11252_v42, %v11250_v41 }
 0x1d4   : > { %1062 = vrot.lane.b32.xlu1 %v11211_v32, %s16006_s27  ;;  %1056 = vrot.lane.b32.xlu0 %v11211_v32, %s16014_s18  ;;  %s16079_s27 = smov 120  }
 0x1d5   : > { %1090 = vrot.lane.b32.xlu2 %v768_v30, %s16008_s19 }
 0x1dc   : > { %1086 = vrot.lane.b32.xlu1 %v11211_v32, %s16016_s0  ;;  %1068 = vrot.lane.b32.xlu0 %v11211_v32, %s16004_s2 }
 0x1dd   : > { %1074 = vrot.lane.b32.xlu2 %v11211_v32, %s16012_s20 }
 0x1e4   : > { %812 = vrot.lane.b32.xlu1 %v11194_v23, %s16004_s2  ;;  %1092 = vrot.lane.b32.xlu0 %v11211_v32, %s16008_s19  ;;  %s11241_s2 = scalar_lea.vmem %s16074_s1, %s16073_s24  ;;  %s16018_s24 = smov 16  }
 0x1e5   : > { %1080 = vrot.lane.b32.xlu2 %v11211_v32, %s16010_s28  ;;  %v524_v33 = vld [vmem:[%s11241_s2 + $0x8] sm:$0xff]  ;;  %s16030_s1 = smov 4  }
 0x1e6   : > { %v599_v34 = vsel %vm530_vm0, %v524_v33, 0.0 }
 0x1ec   : > { %824 = vrot.lane.b32.xlu1 %v11194_v23, %s16008_s19  ;;  %818 = vrot.lane.b32.xlu0 %v11194_v23, %s16010_s28  ;;  %s16080_s19 = smov 116  }
 0x1ed   : > { %821 = vrot.lane.b32.xlu2 %v11194_v23, %s16016_s0 }
 0x216   : > { %600 = vadd.xlane.f32.xlu1 %v599_v34 }
 0x217   : > { %v11245_v35 = vpop.permute.xlu2 %806 }
 0x218   : > { %v842_v18 = vrot.slane %v11245_v35, 4 }
 0x21f   : > { %v1061_v37 = vpop.permute.xlu2 %1060 }
 0x220   : > { %v1096_v49 = vrot.slane %v1061_v37, 4  ;;  %v1099_v53 = vsel %vm828_vm11, %v1061_v37, %v1098_v50 }
 0x221   : > { %v1107_v61 = vperm.slane %v1099_v53, %v11262_v51 }
 0x222   : > { %v1097_v52 = vsel %vm828_vm11, %v1096_v49, %v768_v30 }
 0x223   : > { %v1103_v57 = vperm.slane %v1097_v52, %v11262_v51  ;;  %v1158_v8 = vrot.slane %v1107_v61, 4 }
 0x225   : > { %v1146_v7 = vrot.slane %v1103_v57, 4 }
 0x227   : > { %v1067_v40 = vpop.permute.xlu2 %1066 }
 0x228   : > { %v1108_v54 = vrot.slane %v1067_v40, 4 }
 0x22e   : > { %v810_v44 = vpop.permute.xlu1 %809  ;;  %v11258_v45 = vpop.permute.xlu0 %815 }
 0x22f   : > { %v1091_v46 = vpop.permute.xlu2 %1090  ;;  %10482 = vrot.lane.b32.xlu1 %v11256_v43, %s16012_s20  ;;  %v827_v62 = vrot.slane %v810_v44, 4  ;;  %v831_v10 = vsel %vm828_vm11, %v810_v44, %v830_v4  ;;  %v854_v19 = vrot.slane %v11258_v45, 4  ;;  %s16081_s20 = smov 104  }
 0x230   : > { %v1132_v13 = vrot.slane %v1091_v46, 4  ;;  %v11290_v27 = vperm.slane %v831_v10, %v11262_v51 }
 0x231   : > { %v829_v9 = vsel %vm828_vm11, %v827_v62, %v11194_v23 }
 0x232   : > { %v11287_v26 = vperm.slane %v829_v9, %v11262_v51  ;;  %v890_v50 = vrot.slane %v11290_v27, 4 }
 0x234   : > { %v878_v49 = vrot.slane %v11287_v26, 4 }
 0x236   : > { %v1073_v55 = vpop.permute.xlu1 %1072  ;;  %v1055_v56 = vpop.permute.xlu0 %1054 }
 0x237   : > { %v11267_v58 = vpop.permute.xlu2 %1074  ;;  %v1109_v59 = vsel %vm828_vm11, %v1108_v54, %v1055_v56  ;;  %v1110_v60 = vrot.slane %v1055_v56, 4  ;;  %v1122_v23 = vrot.slane %v1073_v55, 4 }
 0x238   : > { %v1115_v1 = vperm.slane %v1109_v59, %v11262_v51  ;;  %v1234_v54 = vrot.slane %v11267_v58, 4 }
 0x239   : > { %v1111_v3 = vsel %vm828_vm11, %v1067_v40, %v1110_v60 }
 0x23a   : > { %v1119_v5 = vperm.slane %v1111_v3, %v11262_v51  ;;  %v1144_v6 = vrot.slane %v1115_v1, 4  ;;  %v1147_v14 = vsel %vm828_vm11, %v1115_v1, %v1146_v7 }
 0x23b   : > { %v11296_v30 = vperm.slane %v1147_v14, %v11278_v11 }
 0x23c   : > { %v1156_v15 = vrot.slane %v1119_v5, 4  ;;  %v1145_v20 = vsel %vm828_vm11, %v1144_v6, %v1103_v57  ;;  %v1159_v21 = vsel %vm828_vm11, %v1119_v5, %v1158_v8 }
 0x23d   : > { %v1151_v36 = vperm.slane %v1145_v20, %v11278_v11  ;;  %v1167_v38 = vperm.slane %v1159_v21, %v11278_v11  ;;  %v1198_v57 = vrot.slane %v11296_v30, 4 }
 0x23e   : > { %v1079_v22 = vpop.permute.xlu1 %1078  ;;  %v1085_v25 = vpop.permute.xlu0 %1084  ;;  %v1157_v37 = vsel %vm828_vm11, %v1156_v15, %v1107_v61 }
 0x23f   : > { %v1133_v28 = vsel %vm828_vm11, %v1132_v13, %v1079_v22  ;;  %v11293_v29 = vpop.permute.xlu2 %1080  ;;  %v1134_v31 = vrot.slane %v1079_v22, 4  ;;  %v1120_v34 = vrot.slane %v1085_v25, 4  ;;  %v1123_v39 = vsel %vm828_vm11, %v1085_v25, %v1122_v23 }
 0x240   : > { %v1139_v33 = vperm.slane %v1133_v28, %v11262_v51  ;;  %v1131_v48 = vperm.slane %v1123_v39, %v11262_v51  ;;  %v1163_v56 = vperm.slane %v1157_v37, %v11278_v11  ;;  %v1194_v59 = vrot.slane %v1151_v36, 4 }
 0x241   : > { %v1135_v40 = vsel %vm828_vm11, %v1091_v46, %v1134_v31  ;;  %v1121_v47 = vsel %vm828_vm11, %v1120_v34, %v1073_v55  ;;  %v1206_v62 = vrot.slane %v1167_v38, 4  ;;  %v1246_v63 = vrot.slane %v11293_v29, 4 }
 0x242   : > { %v1168_v44 = vrot.slane %v1139_v33, 4  ;;  %v1143_v52 = vperm.slane %v1135_v40, %v11262_v51  ;;  %v1127_v53 = vperm.slane %v1121_v47, %v11262_v51  ;;  %v1182_v46 = vrot.slane %v1131_v48, 4 }
 0x243   : > { %v1202_v9 = vrot.slane %v1163_v56, 4 }
 0x244   : > { %v1180_v60 = vrot.slane %v1143_v52, 4  ;;  %v1169_v55 = vsel %vm828_vm11, %v1168_v44, %v1127_v53  ;;  %v1170_v61 = vrot.slane %v1127_v53, 4  ;;  %v1183_v1 = vsel %vm828_vm11, %v1143_v52, %v1182_v46 }
 0x245   : > { %v1175_v0 = vperm.slane %v1169_v55, %v11278_v11  ;;  %v1191_v7 = vperm.slane %v1183_v1, %v11278_v11 }
 0x246   : > { %v1063_v3 = vpop.permute.xlu1 %1062  ;;  %v1057_v4 = vpop.permute.xlu0 %1056  ;;  %v1171_v5 = vsel %vm828_vm11, %v1139_v33, %v1170_v61  ;;  %v1181_v6 = vsel %vm828_vm11, %v1180_v60, %v1131_v48 }
 0x247   : > { %v1208_v8 = vrot.slane %v1063_v3, 4  ;;  %v1179_v10 = vperm.slane %v1171_v5, %v11278_v11  ;;  %v1187_v13 = vperm.slane %v1181_v6, %v11278_v11  ;;  %v1211_v14 = vsel %vm828_vm11, %v1063_v3, %v1210_v16  ;;  %v822_v25 = vpop.permute.xlu2 %821 }
 0x248   : > { %v1204_v15 = vrot.slane %v1191_v7, 4  ;;  %v11324_v20 = vsel %vm828_vm11, %v1191_v7, %v1206_v62  ;;  %v1219_v22 = vperm.slane %v1211_v14, %v11262_v51  ;;  %v1192_v23 = vrot.slane %v1175_v0, 4 }
 0x249   : > { %v1209_v21 = vsel %vm828_vm11, %v1208_v8, %v11211_v32  ;;  %v1196_v28 = vrot.slane %v1179_v10, 4  ;;  %v1200_v31 = vrot.slane %v1187_v13, 4  ;;  %v11330_v33 = vsel %vm828_vm11, %v1187_v13, %v1202_v9 }
 0x24a   : > { %v11333_v34 = vsel %vm828_vm11, %v1204_v15, %v1167_v38  ;;  %v1356_v16 = vrot.slane %v11324_v20, 4  ;;  %v1215_v39 = vperm.slane %v1209_v21, %v11262_v51  ;;  %v1270_v40 = vrot.slane %v1219_v22, 4 }
 0x24b   : > { %v11339_v32 = vsel %vm828_vm11, %v1200_v31, %v1163_v56  ;;  %v852_v44 = vrot.slane %v822_v25, 4  ;;  %v855_v47 = vsel %vm828_vm11, %v822_v25, %v854_v19  ;;  %v1222_v53 = vrot.slane %v1057_v4, 4 }
 0x24c   : > { %v1258_v52 = vrot.slane %v1215_v39, 4  ;;  %v11346_v38 = vperm.slane %v855_v47, %v11262_v51  ;;  %v11351_v56 = vsel %vm828_vm11, %v1192_v23, %v1151_v36  ;;  %v11354_v61 = vsel %vm828_vm11, %v1175_v0, %v1194_v59 }
 0x24d   : > { %v853_v46 = vsel %vm828_vm11, %v852_v44, %v11258_v45  ;;  %v11358_v19 = vsel %vm828_vm11, %v1196_v28, %v11296_v30  ;;  %v11365_v45 = vsel %vm828_vm11, %v1179_v10, %v1198_v57  ;;  %v1322_v10 = vrot.slane %v11351_v56, 4 }
 0x24e   : > { %v1087_v60 = vpop.permute.xlu1 %1086  ;;  %v1069_v55 = vpop.permute.xlu0 %1068  ;;  %v11361_v62 = vperm.slane %v853_v46, %v11262_v51  ;;  %v1320_v0 = vrot.slane %v11358_v19, 4  ;;  %v914_v6 = vrot.slane %v11346_v38, 4  ;;  %v1334_v47 = vrot.slane %v11354_v61, 4 }
 0x24f   : > { %v1232_v1 = vrot.slane %v1087_v60, 4  ;;  %v1235_v3 = vsel %vm828_vm11, %v1087_v60, %v1234_v54  ;;  %v1220_v36 = vrot.slane %v1069_v55, 4  ;;  %v1223_v59 = vsel %vm828_vm11, %v1069_v55, %v1222_v53 }
 0x250   : > { %v11368_v5 = vperm.slane %v1235_v3, %v11262_v51  ;;  %v902_v30 = vrot.slane %v11361_v62, 4  ;;  %v1231_v54 = vperm.slane %v1223_v59, %v11262_v51  ;;  %v1321_v9 = vsel %vm828_vm11, %v1320_v0, %v11351_v56 }
 0x251   : > { %v1233_v7 = vsel %vm828_vm11, %v1232_v1, %v11267_v58  ;;  %v1221_v8 = vsel %vm828_vm11, %v1220_v36, %v1057_v4  ;;  %v11389_v23 = vperm.slane %v1321_v9, %v11262_v51  ;;  %v1332_v4 = vrot.slane %v11365_v45, 4 }
 0x252   : > { %v1239_v57 = vperm.slane %v1233_v7, %v11262_v51  ;;  %v1294_v13 = vrot.slane %v11368_v5, 4  ;;  %v1227_v14 = vperm.slane %v1221_v8, %v11262_v51  ;;  %v1268_v15 = vrot.slane %v1231_v54, 4 }
 0x253   : > { %v1271_v21 = vsel %vm828_vm11, %v1231_v54, %v1270_v40  ;;  %v1333_v55 = vsel %vm828_vm11, %v1332_v4, %v11354_v61  ;;  %v1344_v1 = vrot.slane %v11333_v34, 4  ;;  %v1335_v56 = vsel %vm828_vm11, %v11365_v45, %v1334_v47 }
 0x254   : > { %v1282_v25 = vrot.slane %v1239_v57, 4  ;;  %v11386_v58 = vperm.slane %v1271_v21, %v11278_v11  ;;  %v1256_v28 = vrot.slane %v1227_v14, 4  ;;  %v1259_v31 = vsel %vm828_vm11, %v1227_v14, %v1258_v52 }
 0x255   : > { %v1269_v44 = vsel %vm828_vm11, %v1268_v15, %v1219_v22  ;;  %v11396_v53 = vperm.slane %v1259_v31, %v11278_v11  ;;  %v11425_v4 = vperm.slane %v1333_v55, %v11262_v51  ;;  %v16076_v45 = vrot.slane %v11330_v33, 4 }
 0x256   : > { %v11399_v40 = vperm.slane %v1269_v44, %v11278_v11  ;;  %v813_v46 = vpop.permute.xlu1 %812  ;;  %v1093_v60 = vpop.permute.xlu0 %1092  ;;  %v1257_v3 = vsel %vm828_vm11, %v1256_v28, %v1215_v39  ;;  %v1318_v7 = vrot.slane %v11386_v58, 4 }
 0x257   : > { %v840_v52 = vrot.slane %v813_v46, 4  ;;  %v843_v22 = vsel %vm828_vm11, %v813_v46, %v842_v18  ;;  %v1244_v36 = vrot.slane %v1093_v60, 4  ;;  %v1263_v59 = vperm.slane %v1257_v3, %v11278_v11 }
 0x258   : > { %v1310_v0 = vrot.slane %v11396_v53, 4  ;;  %v851_v54 = vperm.slane %v843_v22, %v11262_v51  ;;  %v1314_v8 = vrot.slane %v11399_v40, 4  ;;  %v1247_v18 = vsel %vm828_vm11, %v1093_v60, %v1246_v63 }
 0x259   : > { %v841_v9 = vsel %vm828_vm11, %v840_v52, %v11245_v35  ;;  %v1245_v39 = vsel %vm828_vm11, %v1244_v36, %v11293_v29  ;;  %v1306_v28 = vrot.slane %v1263_v59, 4  ;;  %v1255_v29 = vperm.slane %v1247_v18, %v11262_v51 }
 0x25a   : > { %v847_v14 = vperm.slane %v841_v9, %v11262_v51  ;;  %v888_v15 = vrot.slane %v851_v54, 4  ;;  %v891_v21 = vsel %vm828_vm11, %v851_v54, %v890_v50  ;;  %v1251_v31 = vperm.slane %v1245_v39, %v11262_v51 }
 0x25b   : > { %v11428_v35 = vperm.slane %v891_v21, %v11278_v11  ;;  %v11439_v50 = vsel %vm828_vm11, %v1344_v1, %v11339_v32  ;;  %v1292_v36 = vrot.slane %v1255_v29, 4  ;;  %v1359_v47 = vsel %vm828_vm11, %v11324_v20, %v16076_v45 }
 0x25c   : > { %v876_v44 = vrot.slane %v847_v14, 4  ;;  %v879_v63 = vsel %vm828_vm11, %v847_v14, %v878_v49  ;;  %v889_v46 = vsel %vm828_vm11, %v888_v15, %v11290_v27  ;;  %v1280_v52 = vrot.slane %v1251_v31, 4 }
 0x25d   : > { %v11442_v60 = vperm.slane %v879_v63, %v11278_v11  ;;  %v11445_v55 = vperm.slane %v889_v46, %v11278_v11  ;;  %v938_v3 = vrot.slane %v11428_v35, 4  ;;  %v1283_v49 = vsel %vm828_vm11, %v1251_v31, %v1282_v25 }
 0x25e   : > { %v877_v22 = vsel %vm828_vm11, %v876_v44, %v11287_v26  ;;  %v1295_v27 = vsel %vm828_vm11, %v1255_v29, %v1294_v13  ;;  %v825_v54 = vpop.permute.xlu1 %824  ;;  %v819_v1 = vpop.permute.xlu0 %818  ;;  %v1281_v14 = vsel %vm828_vm11, %v1280_v52, %v1239_v57  ;;  %v1291_v26 = vperm.slane %v1283_v49, %v11278_v11 }
 0x25f   : > { %v11453_v9 = vperm.slane %v877_v22, %v11278_v11  ;;  %v930_v39 = vrot.slane %v11442_v60, 4  ;;  %v1287_v15 = vperm.slane %v1281_v14, %v11278_v11  ;;  %v1293_v25 = vsel %vm828_vm11, %v1292_v36, %v11368_v5 }
 0x260   : > { %v1303_v13 = vperm.slane %v1295_v27, %v11278_v11  ;;  %v1299_v31 = vperm.slane %v1293_v25, %v11278_v11  ;;  %v864_v29 = vrot.slane %v825_v54, 4  ;;  %v866_v44 = vrot.slane %v819_v1, 4 }
 0x261   : > { %v926_v21 = vrot.slane %v11453_v9, 4  ;;  %v1304_v63 = vrot.slane %v1287_v15, 4  ;;  %v1308_v46 = vrot.slane %v1291_v26, 4  ;;  %v1311_v22 = vsel %vm828_vm11, %v1291_v26, %v1310_v0 }
 0x262   : > { %v1316_v57 = vrot.slane %v1303_v13, 4  ;;  %v1312_v52 = vrot.slane %v1299_v31, 4  ;;  %v1315_v14 = vsel %vm828_vm11, %v1299_v31, %v1314_v8  ;;  %v1319_v49 = vsel %vm828_vm11, %v1303_v13, %v1318_v7 }
 0x263   : > { %v865_v5 = vsel %vm828_vm11, %v864_v29, %v819_v1  ;;  %v1468_v27 = vrot.slane %v1319_v49, 4  ;;  %v1470_v18 = vrot.slane %v1315_v14, 4  ;;  %v867_v25 = vsel %vm828_vm11, %v825_v54, %v866_v44 }
 0x264   : > { %v1317_v36 = vsel %vm828_vm11, %v1316_v57, %v11386_v58  ;;  %v871_v48 = vperm.slane %v865_v5, %v11262_v51  ;;  %v875_v0 = vperm.slane %v867_v25, %v11262_v51  ;;  %v1305_v26 = vsel %vm828_vm11, %v1304_v63, %v1263_v59 }
 0x265   : > { %v1456_v37 = vrot.slane %v1317_v36, 4  ;;  %v1471_v8 = vsel %vm828_vm11, %v1319_v49, %v1470_v18  ;;  %v1307_v7 = vsel %vm828_vm11, %v1287_v15, %v1306_v28  ;;  %v1309_v1 = vsel %vm828_vm11, %v1308_v46, %v11396_v53 }
 0x266   : > { %v1313_v58 = vsel %vm828_vm11, %v1312_v52, %v11399_v40  ;;  %v11482_v13 = vperm.slane %v1471_v8, %v11262_v51  ;;  %v900_v54 = vrot.slane %v871_v48, 4  ;;  %v903_v31 = vsel %vm828_vm11, %v871_v48, %v902_v30 }
 0x267   : > { %v912_v29 = vrot.slane %v875_v0, 4  ;;  %v911_v59 = vperm.slane %v903_v31, %v11278_v11  ;;  %v915_v28 = vsel %vm828_vm11, %v875_v0, %v914_v6  ;;  %v1432_v18 = vrot.slane %v1309_v1, 4 }
 0x268   : > { %v1434_v53 = vrot.slane %v1305_v26, 4  ;;  %v901_v40 = vsel %vm828_vm11, %v900_v54, %v11361_v62  ;;  %v923_v44 = vperm.slane %v915_v28, %v11278_v11  ;;  %v1444_v63 = vrot.slane %v1311_v22, 4 }
 0x269   : > { %v913_v15 = vsel %vm828_vm11, %v912_v29, %v11346_v38  ;;  %v11497_v48 = vperm.slane %v901_v40, %v11278_v11  ;;  %v928_v46 = vrot.slane %v911_v59, 4  ;;  %v11503_v6 = vsel %vm828_vm11, %v911_v59, %v930_v39 }
 0x26a   : > { %v11500_v30 = vperm.slane %v913_v15, %v11278_v11  ;;  %v936_v57 = vrot.slane %v923_v44, 4  ;;  %v11506_v52 = vsel %vm828_vm11, %v923_v44, %v938_v3  ;;  %v952_v62 = vrot.slane %v11503_v6, 4 }
 0x26b   : > { %v1433_v38 = vsel %vm828_vm11, %v1432_v18, %v1305_v26  ;;  %v924_v49 = vrot.slane %v11497_v48, 4  ;;  %v11513_v5 = vsel %vm828_vm11, %v11497_v48, %v926_v21  ;;  %v11517_v25 = vsel %vm828_vm11, %v928_v46, %v11442_v60 }
 0x26c   : > { %v932_v39 = vrot.slane %v11500_v30, 4  ;;  %v11522_v3 = vsel %vm828_vm11, %v936_v57, %v11428_v35  ;;  %v940_v0 = vrot.slane %v11517_v25, 4  ;;  %v954_v26 = vrot.slane %v11513_v5, 4 }
 0x26d   : > { %v976_v8 = vrot.slane %v11506_v52, 4  ;;  %v1439_v54 = vperm.slane %v1433_v38, %v11262_v51  ;;  %v1445_v21 = vsel %vm828_vm11, %v1444_v63, %v1307_v7  ;;  %v1446_v31 = vrot.slane %v1307_v7, 4 }
 0x26e   : > { %v1457_v60 = vsel %vm828_vm11, %v1456_v37, %v1313_v58  ;;  %v11532_v29 = vsel %vm828_vm11, %v11503_v6, %v954_v26  ;;  %v1451_v35 = vperm.slane %v1445_v21, %v11262_v51  ;;  %v1458_v59 = vrot.slane %v1313_v58, 4 }
 0x26f   : > { %v1463_v28 = vperm.slane %v1457_v60, %v11262_v51  ;;  %v1469_v18 = vsel %vm828_vm11, %v1468_v27, %v1315_v14  ;;  %v1482_v40 = vrot.slane %v1439_v54, 4  ;;  %v1435_v15 = vsel %vm828_vm11, %v1309_v1, %v1434_v53 }
 0x270   : > { %v1447_v44 = vsel %vm828_vm11, %v1311_v22, %v1446_v31  ;;  %v1475_v7 = vperm.slane %v1469_v18, %v11262_v51  ;;  %v1480_v37 = vrot.slane %v1451_v35, 4  ;;  %v11541_v46 = vperm.slane %v1435_v15, %v11262_v51 }
 0x271   : > { %v1506_v63 = vrot.slane %v1463_v28, 4  ;;  %v11544_v57 = vperm.slane %v1447_v44, %v11262_v51  ;;  %v1459_v58 = vsel %vm828_vm11, %v1317_v36, %v1458_v59  ;;  %v1516_v14 = vrot.slane %v11482_v13, 4 }
 0x272   : > { %v11550_v27 = vperm.slane %v11439_v50, %v11262_v51  ;;  %v1481_v22 = vsel %vm828_vm11, %v1480_v37, %v1439_v54  ;;  %v1504_v1 = vrot.slane %v1475_v7, 4  ;;  %v11554_v53 = vperm.slane %v1459_v58, %v11262_v51 }
 0x273   : > { %v1357_v38 = vsel %vm828_vm11, %v1356_v16, %v11330_v33  ;;  %v1487_v26 = vperm.slane %v1481_v22, %v11278_v11  ;;  %v1492_v36 = vrot.slane %v11544_v57, 4  ;;  %v1368_v50 = vrot.slane %v11425_v4, 4 }
 0x274   : > { %v1363_v21 = vperm.slane %v1357_v38, %v11262_v51  ;;  %v1505_v31 = vsel %vm828_vm11, %v1504_v1, %v1463_v28  ;;  %v1517_v54 = vsel %vm828_vm11, %v1516_v14, %v11554_v53  ;;  %v1483_v60 = vsel %vm828_vm11, %v1451_v35, %v1482_v40 }
 0x275   : > { %v1507_v59 = vsel %vm828_vm11, %v1475_v7, %v1506_v63  ;;  %v1511_v18 = vperm.slane %v1505_v31, %v11278_v11  ;;  %v1530_v16 = vrot.slane %v1487_v26, 4  ;;  %v1493_v15 = vsel %vm828_vm11, %v1492_v36, %v11541_v46 }
 0x276   : > { %v1523_v44 = vperm.slane %v1517_v54, %v11278_v11  ;;  %v1499_v37 = vperm.slane %v1493_v15, %v11278_v11  ;;  %v1369_v28 = vsel %vm828_vm11, %v1368_v50, %v11389_v23  ;;  %v1392_v58 = vrot.slane %v1363_v21, 4 }
 0x277   : > { %v1491_v14 = vperm.slane %v1483_v60, %v11278_v11  ;;  %v1528_v22 = vrot.slane %v1511_v18, 4  ;;  %v1531_v35 = vsel %vm828_vm11, %v1511_v18, %v1530_v16  ;;  %v1375_v7 = vperm.slane %v1369_v28, %v11278_v11 }
 0x278   : > { %v1536_v40 = vrot.slane %v1523_v44, 4  ;;  %10148 = vmatpush.xpose.msk.msra.mxu0 %vm2036_vm12, %v1531_v35  ;;  %v1393_v63 = vsel %vm828_vm11, %v1392_v58, %v11550_v27  ;;  %v1538_v1 = vrot.slane %v1499_v37, 4  ;;  %v1515_v38 = vperm.slane %v1507_v59, %v11278_v11 }
 0x279   : > { %v1323_v36 = vsel %vm828_vm11, %v11358_v19, %v1322_v10  ;;  %v1529_v50 = vsel %vm828_vm11, %v1528_v22, %v1487_v26  ;;  %v1399_v54 = vperm.slane %v1393_v63, %v11278_v11  ;;  %v1418_v60 = vrot.slane %v1375_v7, 4 }
 0x27a   : > { %v1537_v31 = vsel %vm828_vm11, %v1536_v40, %v1499_v37  ;;  %10145 = vmatpush.xpose.msk.msrb.mxu3 %vm2036_vm12, %v1529_v50  ;;  %v1539_v18 = vsel %vm828_vm11, %v1523_v44, %v1538_v1  ;;  %v1532_v16 = vrot.slane %v1515_v38, 4  ;;  %v11594_v59 = vperm.slane %v1323_v36, %v11262_v51 }
 0x27b   : > { %10157 = vmatpush.xpose.msk.msra.mxu1 %vm2036_vm12, %v1537_v31  ;;  %v1416_v19 = vrot.slane %v1399_v54, 4  ;;  %10160 = vmatpush.xpose.msk.msra.mxu2 %vm2036_vm12, %v1539_v18  ;;  %v1419_v10 = vsel %vm828_vm11, %v1399_v54, %v1418_v60  ;;  %v11603_v26 = vperm.slane %v1335_v56, %v11262_v51  ;;  %v16075_v15 = vrot.slane %v11339_v32, 4 }
 0x27c   : > { %v1533_v37 = vsel %vm828_vm11, %v1532_v16, %v1491_v14  ;;  %10149 = vmatpush.xpose.msk.msra.mxu0 %vm2036_vm12, %v1419_v10  ;;  %v1534_v28 = vrot.slane %v1491_v14, 4  ;;  %v11620_v32 = vperm.slane %v1359_v47, %v11262_v51  ;;  %v1370_v22 = vrot.slane %v11389_v23, 4 }
 0x27d   : > { %v1347_v44 = vsel %vm828_vm11, %v11333_v34, %v16075_v15  ;;  %v1417_v58 = vsel %vm828_vm11, %v1416_v19, %v1375_v7  ;;  %v1380_v34 = vrot.slane %v11603_v26, 4  ;;  %v1394_v40 = vrot.slane %v11550_v27, 4 }
 0x27e   : > { %v11612_v61 = vperm.slane %v1347_v44, %v11262_v51  ;;  %10146 = vmatpush.xpose.msk.msrb.mxu3 %vm2036_vm12, %v1417_v58  ;;  %v1535_v35 = vsel %vm828_vm11, %v1515_v38, %v1534_v28  ;;  %v925_v20 = vsel %vm828_vm11, %v924_v49, %v11453_v9  ;;  %v933_v33 = vsel %vm828_vm11, %v932_v39, %v11445_v55 }
 0x27f   : > { %v1381_v23 = vsel %vm828_vm11, %v1380_v34, %v11594_v59  ;;  %v1404_v14 = vrot.slane %v11620_v32, 4  ;;  %v1371_v27 = vsel %vm828_vm11, %v11425_v4, %v1370_v22  ;;  %v16077_v48 = vrot.slane %v11445_v55, 4 }
 0x280   : > { %10154 = vmatpush.xpose.msk.msrb.mxu0 %vm2036_vm12, %v1535_v35  ;;  %v1387_v49 = vperm.slane %v1381_v23, %v11278_v11  ;;  %v1379_v39 = vperm.slane %v1371_v27, %v11278_v11  ;;  %v1395_v7 = vsel %vm828_vm11, %v1363_v21, %v1394_v40  ;;  %v941_v63 = vsel %vm828_vm11, %v940_v0, %v925_v20 }
 0x281   : > { %v935_v9 = vsel %vm828_vm11, %v11500_v30, %v16077_v48  ;;  %v1405_v1 = vsel %vm828_vm11, %v1404_v14, %v11612_v61  ;;  %v1403_v4 = vperm.slane %v1395_v7, %v11278_v11  ;;  %v942_v38 = vrot.slane %v925_v20, 4 }
 0x282   : > { %10151 = vmatpush.xpose.msk.msra.mxu3 %vm2036_vm12, %v1533_v37  ;;  %v947_v55 = vperm.slane %v941_v63, %v11262_v51  ;;  %v1411_v30 = vperm.slane %v1405_v1, %v11278_v11  ;;  %v1426_v36 = vrot.slane %v1387_v49, 4  ;;  %v953_v21 = vsel %vm828_vm11, %v952_v62, %v11513_v5 }
 0x283   : > { %v964_v50 = vrot.slane %v11522_v3, 4  ;;  %v1420_v31 = vrot.slane %v1403_v4, 4  ;;  %v959_v0 = vperm.slane %v953_v21, %v11262_v51  ;;  %v966_v54 = vrot.slane %v933_v33, 4 }
 0x284   : > { %v977_v60 = vsel %vm828_vm11, %v976_v8, %v935_v9  ;;  %v1424_v18 = vrot.slane %v1411_v30, 4  ;;  %v1427_v16 = vsel %vm828_vm11, %v1411_v30, %v1426_v36  ;;  %v978_v19 = vrot.slane %v935_v9, 4 }
 0x285   : > { %v965_v56 = vsel %vm828_vm11, %v964_v50, %v933_v33  ;;  %10161 = vmatpush.xpose.msk.msra.mxu2 %vm2036_vm12, %v1427_v16  ;;  %v1421_v6 = vsel %vm828_vm11, %v1420_v31, %v1379_v39  ;;  %v983_v5 = vperm.slane %v977_v60, %v11262_v51  ;;  %v988_v10 = vrot.slane %v959_v0, 4 }
 0x286   : > { %v971_v62 = vperm.slane %v965_v56, %v11262_v51  ;;  %v1425_v15 = vsel %vm828_vm11, %v1424_v18, %v1387_v49  ;;  %10152 = vmatpush.xpose.msk.msra.mxu3 %vm2036_vm12, %v1421_v6  ;;  %v990_v8 = vrot.slane %v947_v55, 4  ;;  %v1494_v44 = vrot.slane %v11541_v46, 4 }
 0x287   : > { %v1518_v37 = vrot.slane %v11554_v53, 4  ;;  %10158 = vmatpush.xpose.msk.msra.mxu1 %vm2036_vm12, %v1425_v15  ;;  %v989_v45 = vsel %vm828_vm11, %v988_v10, %v947_v55  ;;  %v1012_v47 = vrot.slane %v983_v5, 4  ;;  %v1422_v58 = vrot.slane %v1379_v39, 4 }
 0x288   : > { %v1014_v28 = vrot.slane %v971_v62, 4  ;;  %v995_v34 = vperm.slane %v989_v45, %v11278_v11  ;;  %v1495_v22 = vsel %vm828_vm11, %v11544_v57, %v1494_v44  ;;  %v943_v46 = vsel %vm828_vm11, %v11517_v25, %v942_v38 }
 0x289   : > { %v1519_v35 = vsel %vm828_vm11, %v11482_v13, %v1518_v37  ;;  %v1013_v53 = vsel %vm828_vm11, %v1012_v47, %v971_v62  ;;  %v1503_v40 = vperm.slane %v1495_v22, %v11278_v11  ;;  %v1423_v33 = vsel %vm828_vm11, %v1403_v4, %v1422_v58 }
 0x28a   : > { %v1527_v20 = vperm.slane %v1519_v35, %v11278_v11  ;;  %v1019_v23 = vperm.slane %v1013_v53, %v11278_v11  ;;  %v1038_v14 = vrot.slane %v995_v34, 4  ;;  %10155 = vmatpush.xpose.msk.msrb.mxu0 %vm2036_vm12, %v1423_v33  ;;  %v951_v57 = vperm.slane %v943_v46, %v11262_v51 }
 0x28b   : > { %v963_v13 = vperm.slane %v11532_v29, %v11262_v51  ;;  %v967_v25 = vsel %vm828_vm11, %v11522_v3, %v966_v54  ;;  %v979_v48 = vsel %vm828_vm11, %v11506_v52, %v978_v19  ;;  %v1542_v9 = vrot.slane %v1503_v40, 4 }
 0x28c   : > { %v1540_v27 = vrot.slane %v1527_v20, 4  ;;  %v1036_v49 = vrot.slane %v1019_v23, 4  ;;  %v1039_v39 = vsel %vm828_vm11, %v1019_v23, %v1038_v14  ;;  %v975_v7 = vperm.slane %v967_v25, %v11262_v51 }
 0x28d   : > { %v987_v63 = vperm.slane %v979_v48, %v11262_v51  ;;  %10150 = vmatmul.msk.f32.vlgmr.msra.gmra.mxu0 %vm2036_vm12, %v1039_v39  ;;  %v1000_v29 = vrot.slane %v963_v13, 4  ;;  %v1543_v4 = vsel %vm828_vm11, %v1527_v20, %v1542_v9  ;;  %v1382_v3 = vrot.slane %v11594_v59, 4 }
 0x28e   : > { %v1541_v1 = vsel %vm828_vm11, %v1540_v27, %v1503_v40  ;;  %v1037_v38 = vsel %vm828_vm11, %v1036_v49, %v995_v34  ;;  %10166 = vmatpush.xpose.msk.msra.mxu0 %vm2036_vm12, %v1543_v4  ;;  %v1406_v55 = vrot.slane %v11612_v61, 4  ;;  %v991_v30 = vsel %vm828_vm11, %v959_v0, %v990_v8 }
 0x28f   : > { %v1024_v52 = vrot.slane %v987_v63, 4  ;;  %10147 = vmatmul.msk.f32.vlgmr.msrb.gmra.mxu3 %vm2036_vm12, %v1037_v38  ;;  %v1001_v36 = vsel %vm828_vm11, %v1000_v29, %v951_v57  ;;  %v1383_v21 = vsel %vm828_vm11, %v11603_v26, %v1382_v3  ;;  %v999_v50 = vperm.slane %v991_v30, %v11278_v11 }
 0x290   : > { %v1015_v59 = vsel %vm828_vm11, %v983_v5, %v1014_v28  ;;  %10163 = vmatpush.xpose.msk.msrb.mxu3 %vm2036_vm12, %v1541_v1  ;;  %v1007_v31 = vperm.slane %v1001_v36, %v11278_v11  ;;  %v1391_v0 = vperm.slane %v1383_v21, %v11278_v11  ;;  %v1407_v54 = vsel %vm828_vm11, %v11620_v32, %v1406_v55  ;;  %v523_v5 = vld [vmem:[%s11241_s2] sm:$0xff]  ;;  %v601_v21 = vpop.xlane.xlu1 %600 }
 0x291   : > { %v1025_v61 = vsel %vm828_vm11, %v1024_v52, %v975_v7  ;;  %v1415_v26 = vperm.slane %v1407_v54, %v11278_v11  ;;  %v1023_v18 = vperm.slane %v1015_v59, %v11278_v11  ;;  %v1042_v16 = vrot.slane %v999_v50, 4 }
 0x292   : > { %v1031_v60 = vperm.slane %v1025_v61, %v11278_v11  ;;  %v1046_v56 = vrot.slane %v1007_v31, 4  ;;  %v1430_v19 = vrot.slane %v1391_v0, 4  ;;  %v1002_v6 = vrot.slane %v951_v57, 4 }
 0x293   : > { %v1026_v62 = vrot.slane %v975_v7, 4  ;;  %v1428_v15 = vrot.slane %v1415_v26, 4  ;;  %v1040_v8 = vrot.slane %v1023_v18, 4  ;;  %v1043_v58 = vsel %vm828_vm11, %v1023_v18, %v1042_v16 }
 0x294   : > { %v1044_v10 = vrot.slane %v1031_v60, 4  ;;  %v1047_v44 = vsel %vm828_vm11, %v1031_v60, %v1046_v56  ;;  %v1431_v37 = vsel %vm828_vm11, %v1415_v26, %v1430_v19  ;;  %v1003_v32 = vsel %vm828_vm11, %v963_v13, %v1002_v6 }
 0x295   : > { %v1027_v45 = vsel %vm828_vm11, %v987_v63, %v1026_v62  ;;  %10162 = vmatmul.msk.f32.vlgmr.msra.gmra.mxu2 %vm2036_vm12, %v1047_v44  ;;  %v1429_v28 = vsel %vm828_vm11, %v1428_v15, %v1391_v0  ;;  %10167 = vmatpush.xpose.msk.msra.mxu0 %vm2036_vm12, %v1431_v37  ;;  %v596_v34 = vsel %vm530_vm0, %v523_v5, 0.0  ;;  %v1041_v22 = vsel %vm828_vm11, %v1040_v8, %v999_v50 }
 0x296   : > { %v1045_v47 = vsel %vm828_vm11, %v1044_v10, %v1007_v31  ;;  %10164 = vmatpush.xpose.msk.msrb.mxu3 %vm2036_vm12, %v1429_v28  ;;  %v1011_v35 = vperm.slane %v1003_v32, %v11278_v11  ;;  %v1035_v46 = vperm.slane %v1027_v45, %v11278_v11  ;;  %10156 = vmatmul.msk.f32.vlgmr.msrb.gmra.mxu0 %vm2036_vm12, %v1043_v58  ;;  %v10797_v32 = vld [vmem:[%s11241_s2 + $0x8] sm:$0xff] }
 0x297   : > { %10159 = vmatmul.msk.f32.vlgmr.msra.gmra.mxu1 %vm2036_vm12, %v1045_v47  ;;  %10153 = vmatmul.msk.f32.vlgmr.msra.gmra.mxu3 %vm2036_vm12, %v1041_v22  ;;  %v603_v62 = vmul.f32 %v601_v21, %v11097_v12  ;;  %v1590_v21 = vrot.slane %v11252_v42, 4 }
 0x298   : > { %597 = vadd.xlane.f32.xlu0 %v596_v34  ;;  %v1048_v53 = vrot.slane %v1035_v46, 4  ;;  %v1050_v40 = vrot.slane %v1011_v35, 4 }
 0x299   : > { %v11794_v45 = vsub.f32 %v10797_v32, %v603_v62 }
 0x29a   : > { %v1049_v20 = vsel %vm828_vm11, %v1048_v53, %v1011_v35  ;;  %v1051_v33 = vsel %vm828_vm11, %v1035_v46, %v1050_v40 }
 0x29b   : > { %v607_v40 = vmul.f32 %v11794_v45, %v11794_v45 }
 0x29e   : > { %10168 = vmatmul.msk.f32.vlgmr.msra.gmra.mxu0 %vm2036_vm12, %v1051_v33 }
 0x29f   : > { %10165 = vmatmul.msk.f32.vlgmr.msrb.gmra.mxu3 %vm2036_vm12, %v1049_v20 }
 0x2a1   : > { %v10483_v61 = vpop.permute.xlu1 %10482 }
 0x2a2   : > { %v10485_v22 = vunpack.i.h.bf16 %v10483_v61  ;;  %v10484_v53 = vunpack.i.l.bf16 %v10483_v61 }
 0x30a   : > { %v11746_v23 = vpop.f32.mrf.mxu0 }
 0x30b   : > { %v2273_v14 = vsel %vm2269_vm13, %v11746_v23, -inf  ;;  %v598_v1 = vpop.xlane.xlu0 %597 }
 0x30c   : > { %2274 = vmax.xlane.f32.xlu2 %v2273_v14  ;;  %v602_v4 = vmul.f32 %v598_v1, %v11097_v12 }
 0x30e   : > { %v11775_v38 = vsub.f32 %v523_v5, %v602_v4 }
 0x310   : > { %v606_v30 = vmul.f32 %v11775_v38, %v11775_v38 }
 0x312   : > { %v11750_v57 = vpop.f32.mrf.mxu3 }
 0x313   : > { %v2270_v13 = vsel %vm2269_vm13, %v11750_v57, -inf  ;;  %v2150_v27 = vpop.f32.mrf.mxu0 }
 0x314   : > { %2271 = vmax.xlane.f32.xlu0 %v2270_v13  ;;  %v2279_v25 = vsel %vm2269_vm13, %v2150_v27, -inf  ;;  %v11770_v29 = vpop.f32.mrf.mxu1 }
 0x315   : > { %2280 = vmax.xlane.f32.xlu2 %v2279_v25  ;;  %v2282_v3 = vsel %vm2269_vm13, %v11770_v29, -inf }
 0x318   : > { %v2208_v48 = vpop.f32.mrf.mxu2 }
 0x319   : > { %v2285_v9 = vsel %vm2269_vm13, %v2208_v48, -inf }
 0x31a   : > { %2286 = vmax.xlane.f32.xlu1 %v2285_v9  ;;  %v2121_v49 = vpop.f32.mrf.mxu3  ;;  %v611_v9 = vsel %vm530_vm0, %v607_v40, 0.0 }
 0x31b   : > { %v2276_v39 = vsel %vm2269_vm13, %v2121_v49, -inf  ;;  %v11777_v52 = vpop.f32.mrf.mxu0 }
 0x31c   : > { %v2291_v55 = vsel %vm2269_vm13, %v11777_v52, -inf }
 0x31d   : > { %2277 = vmax.xlane.f32.xlu2 %v2276_v39 }
 0x322   : > { %v2237_v7 = vpop.f32.mrf.mxu3 }
 0x323   : > { %v2288_v63 = vsel %vm2269_vm13, %v2237_v7, -inf }
 0x324   : > { %2289 = vmax.xlane.f32.xlu0 %v2288_v63 }
 0x333   : > { %10497 = vrot.lane.b32.xlu1 %v11256_v43, %s16014_s18  ;;  %s16022_s18 = smov 8  }
 0x335   : > { %10492 = vrot.lane.b32.xlu2 %v11256_v43, %s16016_s0  ;;  %s16083_s0 = smov 112  }
 0x338   : > { %10487 = vrot.lane.b32.xlu0 %v11256_v43, %s16010_s28  ;;  %s16082_s28 = smov 124  }
 0x33b   : > { %10507 = vrot.lane.b32.xlu1 %v11256_v43, %s16078_s25 }
 0x33d   : > { %10502 = vrot.lane.b32.xlu2 %v11256_v43, %s16079_s27 }
 0x343   : > { %10512 = vrot.lane.b32.xlu1 %v11256_v43, %s16080_s19  ;;  %v608_v43 = vsel %vm530_vm0, %v606_v30, 0.0 }
 0x362   : > { %2283 = vmax.xlane.f32.xlu0 %v2282_v3 }
 0x366   : > { %2292 = vmax.xlane.f32.xlu2 %v2291_v55 }
 0x36d   : > { %609 = vadd.xlane.f32.xlu1 %v608_v43 }
 0x37f   : > { %v2275_v36 = vpop.xlane.xlu2 %2274 }
 0x380   : > { %v2295_v15 = vsub.f32 %v11746_v23, %v2275_v36  ;;  %v1614_v23 = vrot.slane %v10485_v22, 4 }
 0x382   : > { %v2304_v58 = vmul.f32 1.442695, %v2295_v15 }
 0x387   : > { %v2272_v0 = vpop.xlane.xlu0 %2271 }
 0x388   : > { %v2281_v50 = vpop.xlane.xlu2 %2280  ;;  %v2294_v44 = vsub.f32 %v11750_v57, %v2272_v0 }
 0x389   : > { %v2297_v59 = vsub.f32 %v2150_v27, %v2281_v50  ;;  %v1726_v27 = vrot.slane %v10484_v53, 4 }
 0x38a   : > { %v2302_v35 = vmul.f32 1.442695, %v2294_v44 }
 0x38b   : > { %v2308_v31 = vmul.f32 1.442695, %v2297_v59  ;;  %v1702_v59 = vrot.slane %v11250_v41, 4 }
 0x38d   : > { %10591 = vpow2.f32 %v2308_v31  ;;  %v2287_v56 = vpop.xlane.xlu1 %2286 }
 0x38e   : > { %v2299_v5 = vsub.f32 %v2208_v48, %v2287_v56 }
 0x390   : > { %v2278_v54 = vpop.xlane.xlu2 %2277  ;;  %v2312_v47 = vmul.f32 1.442695, %v2299_v5 }
 0x391   : > { %v2296_v60 = vsub.f32 %v2121_v49, %v2278_v54 }
 0x393   : > { %v11784_v26 = vpop.eup %10591  ;;  %v2306_v18 = vmul.f32 1.442695, %v2296_v60 }
 0x394   : > { %v2327_v16 = vsel %vm2269_vm13, %v11784_v26, 0.0 }
 0x395   : > { %10593 = vpow2.f32 %v2306_v18  ;;  %2328 = vadd.xlane.f32.xlu1 %v2327_v16 }
 0x397   : > { %v2290_v19 = vpop.xlane.xlu0 %2289 }
 0x398   : > { %v2300_v6 = vsub.f32 %v2237_v7, %v2290_v19  ;;  %v10493_v10 = vpop.permute.xlu2 %10492 }
 0x399   : > { %v10495_v34 = vunpack.i.h.bf16 %v10493_v10  ;;  %v10494_v46 = vunpack.i.l.bf16 %v10493_v10 }
 0x39a   : > { %v2314_v8 = vmul.f32 1.442695, %v2300_v6 }
 0x39b   : > { %v11791_v37 = vpop.eup %10593  ;;  %v1612_v33 = vrot.slane %v10495_v34, 4  ;;  %v1724_v14 = vrot.slane %v10494_v46, 4  ;;  %v1615_v25 = vsel %vm828_vm11, %v10495_v34, %v1614_v23  ;;  %v1727_v39 = vsel %vm828_vm11, %v10494_v46, %v1726_v27 }
 0x39c   : > { %10595 = vpow2.f32 %v2314_v8  ;;  %v2324_v28 = vsel %vm2269_vm13, %v11791_v37, 0.0  ;;  %v1623_v55 = vperm.slane %v1615_v25, %v11262_v51  ;;  %v11820_v36 = vperm.slane %v1727_v39, %v11262_v51 }
 0x39d   : > { %2325 = vadd.xlane.f32.xlu0 %v2324_v28  ;;  %10597 = vpow2.f32 %v2312_v47  ;;  %v1613_v49 = vsel %vm828_vm11, %v1612_v33, %v10485_v22  ;;  %v1725_v1 = vsel %vm828_vm11, %v1724_v14, %v10484_v53 }
 0x39e   : > { %10599 = vpow2.f32 %v2304_v58  ;;  %v1619_v43 = vperm.slane %v1613_v49, %v11262_v51  ;;  %v1731_v50 = vperm.slane %v1725_v1, %v11262_v51  ;;  %v1674_v56 = vrot.slane %v1623_v55, 4 }
 0x39f   : > { %10601 = vpow2.f32 %v2302_v35  ;;  %v1786_v10 = vrot.slane %v11820_v36, 4 }
 0x3a0   : > { %v10503_v57 = vpop.permute.xlu2 %10502  ;;  %v1662_v5 = vrot.slane %v1619_v43, 4  ;;  %v1774_v34 = vrot.slane %v1731_v50, 4 }
 0x3a1   : > { %v10505_v7 = vunpack.i.h.bf16 %v10503_v57  ;;  %v10504_v4 = vunpack.i.l.bf16 %v10503_v57 }
 0x3a2   : > { %v11800_v20 = vpop.eup %10595 }
 0x3a3   : > { %v2336_v13 = vsel %vm2269_vm13, %v11800_v20, 0.0  ;;  %v11810_v63 = vpop.eup %10597  ;;  %v1588_v31 = vrot.slane %v10505_v7, 4  ;;  %v1591_v54 = vsel %vm828_vm11, %v10505_v7, %v1590_v21  ;;  %v1700_v60 = vrot.slane %v10504_v4, 4 }
 0x3a4   : > { %2337 = vadd.xlane.f32.xlu2 %v2336_v13  ;;  %v11813_v3 = vpop.eup %10599  ;;  %v2333_v0 = vsel %vm2269_vm13, %v11810_v63, 0.0  ;;  %v1703_v19 = vsel %vm828_vm11, %v10504_v4, %v1702_v59  ;;  %v11837_v47 = vperm.slane %v1591_v54, %v11262_v51 }
 0x3a5   : > { %v11805_v48 = vpop.permute.xlu1 %10497  ;;  %612 = vadd.xlane.f32.xlu0 %v611_v9  ;;  %v11816_v30 = vpop.eup %10601  ;;  %v2321_v6 = vsel %vm2269_vm13, %v11813_v3, 0.0  ;;  %v1589_v32 = vsel %vm828_vm11, %v1588_v31, %v11252_v42  ;;  %v1701_v35 = vsel %vm828_vm11, %v1700_v60, %v11250_v41  ;;  %v11843_v46 = vperm.slane %v1703_v19, %v11262_v51 }
 0x3a6   : > { %v2318_v62 = vsel %vm2269_vm13, %v11816_v30, 0.0  ;;  %v10500_v22 = vunpack.i.h.bf16 %v11805_v48  ;;  %v10499_v23 = vunpack.i.l.bf16 %v11805_v48  ;;  %v11849_v14 = vperm.slane %v1589_v32, %v11262_v51 }
 0x3a7   : > { %v1650_v41 = vrot.slane %v11837_v47, 4  ;;  %v11855_v27 = vperm.slane %v1701_v35, %v11262_v51  ;;  %v1762_v4 = vrot.slane %v11843_v46, 4 }
 0x3a8   : > { %v1602_v1 = vrot.slane %v10500_v22, 4 }
 0x3aa   : > { %v10488_v61 = vpop.permute.xlu0 %10487 }
 0x3ab   : > { %v10490_v18 = vunpack.i.h.bf16 %v10488_v61  ;;  %v10489_v16 = vunpack.i.l.bf16 %v10488_v61 }
 0x3ac   : > { %2334 = vadd.xlane.f32.xlu2 %v2333_v0 }
 0x3ad   : > { %v10508_v15 = vpop.permute.xlu1 %10507  ;;  %v1626_v8 = vrot.slane %v10490_v18, 4  ;;  %v1738_v44 = vrot.slane %v10489_v16, 4  ;;  %2322 = vadd.xlane.f32.xlu0 %v2321_v6 }
 0x3ae   : > { %v10510_v28 = vunpack.i.h.bf16 %v10508_v15  ;;  %v10509_v58 = vunpack.i.l.bf16 %v10508_v15 }
 0x3b0   : > { %v1624_v53 = vrot.slane %v10510_v28, 4  ;;  %v1736_v40 = vrot.slane %v10509_v58, 4  ;;  %v1627_v33 = vsel %vm828_vm11, %v10510_v28, %v1626_v8  ;;  %v1739_v42 = vsel %vm828_vm11, %v10509_v58, %v1738_v44 }
 0x3b1   : > { %v1635_v57 = vperm.slane %v1627_v33, %v11262_v51  ;;  %v1747_v13 = vperm.slane %v1739_v42, %v11262_v51  ;;  %v1714_v8 = vrot.slane %v10499_v23, 4  ;;  %v1638_v44 = vrot.slane %v11849_v14, 4 }
 0x3b2   : > { %v1625_v25 = vsel %vm828_vm11, %v1624_v53, %v10490_v18  ;;  %v1737_v9 = vsel %vm828_vm11, %v1736_v40, %v10489_v16 }
 0x3b3   : > { %v1631_v49 = vperm.slane %v1625_v25, %v11262_v51  ;;  %v1672_v39 = vrot.slane %v1635_v57, 4  ;;  %v1675_v48 = vsel %vm828_vm11, %v1635_v57, %v1674_v56  ;;  %v1743_v7 = vperm.slane %v1737_v9, %v11262_v51 }
 0x3b4   : > { %v11864_v21 = vperm.slane %v1675_v48, %v11278_v11  ;;  %v1784_v59 = vrot.slane %v1747_v13, 4  ;;  %v1787_v56 = vsel %vm828_vm11, %v1747_v13, %v1786_v10 }
 0x3b5   : > { %v1660_v31 = vrot.slane %v1631_v49, 4  ;;  %v1663_v61 = vsel %vm828_vm11, %v1631_v49, %v1662_v5  ;;  %v1673_v0 = vsel %vm828_vm11, %v1672_v39, %v1623_v55  ;;  %v1772_v54 = vrot.slane %v1743_v7, 4  ;;  %v10513_v19 = vpop.permute.xlu1 %10512  ;;  %2319 = vadd.xlane.f32.xlu0 %v2318_v62 }
 0x3b6   : > { %v11869_v60 = vperm.slane %v1663_v61, %v11278_v11  ;;  %v11872_v18 = vperm.slane %v1673_v0, %v11278_v11  ;;  %v1775_v16 = vsel %vm828_vm11, %v1743_v7, %v1774_v34  ;;  %v1785_v55 = vsel %vm828_vm11, %v1784_v59, %v11820_v36 }
 0x3b7   : > { %v1661_v6 = vsel %vm828_vm11, %v1660_v31, %v1619_v43  ;;  %v1773_v15 = vsel %vm828_vm11, %v1772_v54, %v1731_v50  ;;  %v11879_v5 = vperm.slane %v1775_v16, %v11278_v11  ;;  %v1750_v62 = vrot.slane %v11855_v27, 4 }
 0x3b8   : > { %v11885_v32 = vperm.slane %v1661_v6, %v11278_v11  ;;  %v11888_v10 = vperm.slane %v1773_v15, %v11278_v11  ;;  %v1791_v43 = vperm.slane %v1785_v55, %v11278_v11  ;;  %v1795_v50 = vperm.slane %v1787_v56, %v11278_v11 }
 0x3b9   : > { %v10515_v28 = vunpack.i.h.bf16 %v10513_v19  ;;  %v1688_v58 = vrot.slane %v11869_v60, 4  ;;  %v1692_v36 = vrot.slane %v11872_v18, 4  ;;  %v1696_v34 = vrot.slane %v11864_v21, 4 }
 0x3ba   : > { %v10514_v35 = vunpack.i.l.bf16 %v10513_v19  ;;  %v1684_v53 = vrot.slane %v11885_v32, 4  ;;  %v1800_v40 = vrot.slane %v11879_v5, 4  ;;  %v1796_v57 = vrot.slane %v11888_v10, 4 }
 0x3bb   : > { %v1600_v33 = vrot.slane %v10515_v28, 4  ;;  %v1603_v42 = vsel %vm828_vm11, %v10515_v28, %v1602_v1  ;;  %v1804_v49 = vrot.slane %v1791_v43, 4  ;;  %v1808_v39 = vrot.slane %v1795_v50, 4 }
 0x3bc   : > { %v1611_v13 = vperm.slane %v1603_v42, %v11262_v51  ;;  %v1712_v25 = vrot.slane %v10514_v35, 4  ;;  %v1715_v9 = vsel %vm828_vm11, %v10514_v35, %v1714_v8 }
 0x3bd   : > { %v1601_v48 = vsel %vm828_vm11, %v1600_v33, %v10500_v22  ;;  %v1723_v7 = vperm.slane %v1715_v9, %v11262_v51 }
 0x3be   : > { %v1607_v59 = vperm.slane %v1601_v48, %v11262_v51  ;;  %v1648_v31 = vrot.slane %v1611_v13, 4  ;;  %v1651_v61 = vsel %vm828_vm11, %v1611_v13, %v1650_v41  ;;  %v1713_v1 = vsel %vm828_vm11, %v1712_v25, %v10499_v23 }
 0x3bf   : > { %v11908_v0 = vperm.slane %v1651_v61, %v11278_v11  ;;  %v1719_v54 = vperm.slane %v1713_v1, %v11262_v51  ;;  %v1760_v16 = vrot.slane %v1723_v7, 4  ;;  %v1763_v56 = vsel %vm828_vm11, %v1723_v7, %v1762_v4 }
 0x3c0   : > { %v1636_v19 = vrot.slane %v1607_v59, 4  ;;  %v1639_v22 = vsel %vm828_vm11, %v1607_v59, %v1638_v44  ;;  %v1649_v6 = vsel %vm828_vm11, %v1648_v31, %v11837_v47  ;;  %v1771_v15 = vperm.slane %v1763_v56, %v11278_v11 }
 0x3c1   : > { %v1647_v41 = vperm.slane %v1639_v22, %v11278_v11  ;;  %v1655_v23 = vperm.slane %v1649_v6, %v11278_v11  ;;  %v11920_v55 = vsel %vm828_vm11, %v1696_v34, %v11908_v0  ;;  %v1698_v8 = vrot.slane %v11908_v0, 4 }
 0x3c2   : > { %v1637_v4 = vsel %vm828_vm11, %v1636_v19, %v11849_v14  ;;  %v1748_v28 = vrot.slane %v1719_v54, 4  ;;  %v1751_v44 = vsel %vm828_vm11, %v1719_v54, %v1750_v62  ;;  %v1761_v47 = vsel %vm828_vm11, %v1760_v16, %v11843_v46 }
 0x3c3   : > { %v1643_v35 = vperm.slane %v1637_v4, %v11278_v11  ;;  %v1690_v33 = vrot.slane %v1647_v41, 4  ;;  %v1694_v42 = vrot.slane %v1655_v23, 4  ;;  %v1759_v13 = vperm.slane %v1751_v44, %v11278_v11 }
 0x3c4   : > { %v1749_v34 = vsel %vm828_vm11, %v1748_v28, %v11855_v27  ;;  %v1767_v25 = vperm.slane %v1761_v47, %v11278_v11  ;;  %v11934_v9 = vsel %vm828_vm11, %v1808_v39, %v1771_v15  ;;  %v1810_v14 = vrot.slane %v1771_v15, 4 }
 0x3c5   : > { %v1755_v62 = vperm.slane %v1749_v34, %v11278_v11  ;;  %v11938_v48 = vsel %vm828_vm11, %v1800_v40, %v1759_v13  ;;  %v1802_v46 = vrot.slane %v1759_v13, 4  ;;  %v1836_v7 = vrot.slane %v11920_v55, 4 }
 0x3c6   : > { %v1806_v59 = vrot.slane %v1767_v25, 4  ;;  %v11942_v31 = vsel %vm828_vm11, %v1795_v50, %v1810_v14  ;;  %v1948_v27 = vrot.slane %v11934_v9, 4  ;;  %v11946_v61 = vsel %vm828_vm11, %v1804_v49, %v1767_v25 }
 0x3c7   : > { %v1798_v39 = vrot.slane %v1755_v62, 4  ;;  %v11949_v1 = vsel %vm828_vm11, %v1796_v57, %v1755_v62  ;;  %v11953_v40 = vsel %vm828_vm11, %v11879_v5, %v1802_v46  ;;  %v1924_v0 = vrot.slane %v11938_v48, 4 }
 0x3c8   : > { %v11957_v54 = vsel %vm828_vm11, %v1791_v43, %v1806_v59  ;;  %v1926_v50 = vrot.slane %v11949_v1, 4  ;;  %v1936_v16 = vrot.slane %v11953_v40, 4  ;;  %v1949_v49 = vsel %vm828_vm11, %v1948_v27, %v11946_v61 }
 0x3c9   : > { %v1799_v57 = vsel %vm828_vm11, %v11888_v10, %v1798_v39  ;;  %v1925_v56 = vsel %vm828_vm11, %v1924_v0, %v11949_v1  ;;  %v1950_v5 = vrot.slane %v11946_v61, 4  ;;  %v1955_v19 = vperm.slane %v1949_v49, %v11262_v51 }
 0x3ca   : > { %v1931_v43 = vperm.slane %v1925_v56, %v11262_v51  ;;  %v1937_v22 = vsel %vm828_vm11, %v1936_v16, %v1799_v57  ;;  %v1938_v6 = vrot.slane %v1799_v57, 4  ;;  %v1960_v15 = vrot.slane %v11942_v31, 4 }
 0x3cb   : > { %v1943_v4 = vperm.slane %v1937_v22, %v11262_v51  ;;  %v1962_v28 = vrot.slane %v11957_v54, 4  ;;  %v1998_v44 = vrot.slane %v1955_v19, 4  ;;  %v11977_v10 = vsel %vm828_vm11, %v1684_v53, %v1643_v35 }
 0x3cc   : > { %v1961_v47 = vsel %vm828_vm11, %v1960_v15, %v11957_v54  ;;  %v1974_v13 = vrot.slane %v1931_v43, 4  ;;  %v1686_v34 = vrot.slane %v1643_v35, 4  ;;  %v11984_v25 = vsel %vm828_vm11, %v1688_v58, %v1647_v41 }
 0x3cd   : > { %v1967_v14 = vperm.slane %v1961_v47, %v11262_v51  ;;  %v1972_v62 = vrot.slane %v1943_v4, 4  ;;  %v11989_v46 = vsel %vm828_vm11, %v11869_v60, %v1690_v33  ;;  %v11994_v53 = vsel %vm828_vm11, %v1692_v36, %v1655_v23 }
 0x3ce   : > { %v1975_v59 = vsel %vm828_vm11, %v1943_v4, %v1974_v13  ;;  %v11999_v35 = vsel %vm828_vm11, %v11885_v32, %v1686_v34  ;;  %v12003_v58 = vsel %vm828_vm11, %v11872_v18, %v1694_v42  ;;  %v12007_v41 = vsel %vm828_vm11, %v11864_v21, %v1698_v8 }
 0x3cf   : > { %v1983_v60 = vperm.slane %v1975_v59, %v11278_v11  ;;  %v1999_v33 = vsel %vm828_vm11, %v1967_v14, %v1998_v44  ;;  %v1973_v36 = vsel %vm828_vm11, %v1972_v62, %v1931_v43  ;;  %v1996_v23 = vrot.slane %v1967_v14, 4 }
 0x3d0   : > { %v2007_v27 = vperm.slane %v1999_v33, %v11278_v11  ;;  %v1979_v32 = vperm.slane %v1973_v36, %v11278_v11  ;;  %v1812_v39 = vrot.slane %v11984_v25, 4  ;;  %v1814_v18 = vrot.slane %v11977_v10, 4 }
 0x3d1   : > { %v1997_v42 = vsel %vm828_vm11, %v1996_v23, %v1955_v19  ;;  %v1824_v21 = vrot.slane %v11989_v46, 4  ;;  %v1826_v8 = vrot.slane %v11999_v35, 4  ;;  %v1837_v1 = vsel %vm828_vm11, %v1836_v7, %v11994_v53 }
 0x3d2   : > { %v2024_v0 = vrot.slane %v2007_v27, 4  ;;  %v2003_v54 = vperm.slane %v1997_v42, %v11278_v11  ;;  %v1813_v16 = vsel %vm828_vm11, %v1812_v39, %v11977_v10  ;;  %v1838_v49 = vrot.slane %v11994_v53, 4 }
 0x3d3   : > { %v1819_v57 = vperm.slane %v1813_v16, %v11262_v51  ;;  %v1825_v56 = vsel %vm828_vm11, %v1824_v21, %v11999_v35  ;;  %v1843_v19 = vperm.slane %v1837_v1, %v11262_v51  ;;  %v1848_v43 = vrot.slane %v12007_v41, 4 }
 0x3d4   : > { %v2025_v22 = vsel %vm828_vm11, %v2024_v0, %v1983_v60  ;;  %v2020_v7 = vrot.slane %v2003_v54, 4  ;;  %v1831_v15 = vperm.slane %v1825_v56, %v11262_v51  ;;  %v1850_v4 = vrot.slane %v12003_v58, 4 }
 0x3d5   : > { %2421 = vmatpush.msra.mxu3 %v2025_v22  ;;  %v1849_v44 = vsel %vm828_vm11, %v1848_v43, %v12003_v58  ;;  %v1862_v47 = vrot.slane %v1819_v57, 4  ;;  %v1886_v13 = vrot.slane %v1843_v19, 4  ;;  %v2026_v34 = vrot.slane %v1983_v60, 4 }
 0x3d6   : > { %v2021_v14 = vsel %vm828_vm11, %v2020_v7, %v1979_v32  ;;  %v1855_v62 = vperm.slane %v1849_v44, %v11262_v51  ;;  %v1927_v59 = vsel %vm828_vm11, %v11938_v48, %v1926_v50  ;;  %v1939_v33 = vsel %vm828_vm11, %v11953_v40, %v1938_v6 }
 0x3d7   : > { %2375 = vmatpush.msrb.mxu1 %v2021_v14  ;;  %v1863_v36 = vsel %vm828_vm11, %v1831_v15, %v1862_v47  ;;  %v2027_v23 = vsel %vm828_vm11, %v2007_v27, %v2026_v34  ;;  %v1935_v58 = vperm.slane %v1927_v59, %v11262_v51  ;;  %v1947_v39 = vperm.slane %v1939_v33, %v11262_v51 }
 0x3d8   : > { %v1871_v60 = vperm.slane %v1863_v36, %v11278_v11  ;;  %v1887_v42 = vsel %vm828_vm11, %v1855_v62, %v1886_v13  ;;  %2444 = vmatpush.msrb.mxu0 %v2027_v23  ;;  %v1951_v48 = vsel %vm828_vm11, %v11934_v9, %v1950_v5  ;;  %v1963_v40 = vsel %vm828_vm11, %v11942_v31, %v1962_v28 }
 0x3d9   : > { %v1895_v50 = vperm.slane %v1887_v42, %v11278_v11  ;;  %v1959_v6 = vperm.slane %v1951_v48, %v11262_v51  ;;  %v1971_v27 = vperm.slane %v1963_v40, %v11262_v51  ;;  %v1986_v21 = vrot.slane %v1935_v58, 4 }
 0x3da   : > { %v1860_v1 = vrot.slane %v1831_v15, 4  ;;  %v1884_v0 = vrot.slane %v1855_v62, 4  ;;  %v2022_v16 = vrot.slane %v1979_v32, 4  ;;  %v1914_v56 = vrot.slane %v1871_v60, 4 }
 0x3db   : > { %v1912_v43 = vrot.slane %v1895_v50, 4  ;;  %v1987_v61 = vsel %vm828_vm11, %v1947_v39, %v1986_v21  ;;  %v2010_v22 = vrot.slane %v1959_v6, 4  ;;  %v1984_v7 = vrot.slane %v1947_v39, 4 }
 0x3dc   : > { %v1995_v9 = vperm.slane %v1987_v61, %v11278_v11  ;;  %v1861_v31 = vsel %vm828_vm11, %v1860_v1, %v1819_v57  ;;  %v1885_v5 = vsel %vm828_vm11, %v1884_v0, %v1843_v19  ;;  %v2023_v28 = vsel %vm828_vm11, %v2003_v54, %v2022_v16  ;;  %v2284_v1 = vpop.xlane.xlu0 %2283  ;;  %v2293_v0 = vpop.xlane.xlu2 %2292 }
 0x3dd   : > { %v1913_v44 = vsel %vm828_vm11, %v1912_v43, %v1871_v60  ;;  %v2011_v15 = vsel %vm828_vm11, %v1971_v27, %v2010_v22  ;;  %v1867_v32 = vperm.slane %v1861_v31, %v11278_v11  ;;  %v1891_v47 = vperm.slane %v1885_v5, %v11278_v11  ;;  %2398 = vmatpush.msrb.mxu2 %v2023_v28 }
 0x3de   : > { %2422 = vmatpush.msra.mxu3 %v1913_v44  ;;  %v2019_v13 = vperm.slane %v2011_v15, %v11278_v11  ;;  %v1915_v34 = vsel %vm828_vm11, %v1895_v50, %v1914_v56  ;;  %v1985_v57 = vsel %vm828_vm11, %v1984_v7, %v1935_v58  ;;  %v2008_v14 = vrot.slane %v1971_v27, 4 }
 0x3df   : > { %v1908_v19 = vrot.slane %v1891_v47, 4  ;;  %2445 = vmatpush.msrb.mxu0 %v1915_v34  ;;  %v1991_v54 = vperm.slane %v1985_v57, %v11278_v11  ;;  %v1815_v62 = vsel %vm828_vm11, %v11984_v25, %v1814_v18  ;;  %v1827_v59 = vsel %vm828_vm11, %v11989_v46, %v1826_v8 }
 0x3e0   : > { %v2032_v33 = vrot.slane %v2019_v13, 4  ;;  %v2009_v36 = vsel %vm828_vm11, %v2008_v14, %v1959_v6  ;;  %v1823_v23 = vperm.slane %v1815_v62, %v11262_v51  ;;  %v1835_v58 = vperm.slane %v1827_v59, %v11262_v51 }
 0x3e1   : > { %v1909_v39 = vsel %vm828_vm11, %v1908_v19, %v1867_v32  ;;  %v2015_v60 = vperm.slane %v2009_v36, %v11278_v11  ;;  %v1839_v10 = vsel %vm828_vm11, %v11920_v55, %v1838_v49  ;;  %v1851_v25 = vsel %vm828_vm11, %v12007_v41, %v1850_v4 }
 0x3e2   : > { %v2033_v46 = vsel %vm828_vm11, %v2032_v33, %v1995_v9  ;;  %2376 = vmatpush.msrb.mxu1 %v1909_v39  ;;  %v1847_v35 = vperm.slane %v1839_v10, %v11262_v51  ;;  %v1859_v18 = vperm.slane %v1851_v25, %v11262_v51  ;;  %v1874_v8 = vrot.slane %v1823_v23, 4 }
 0x3e3   : > { %2513 = vmatpush.msrb.mxu3 %v2033_v46  ;;  %v2028_v42 = vrot.slane %v2015_v60, 4  ;;  %v2034_v48 = vrot.slane %v1995_v9, 4  ;;  %v1910_v40 = vrot.slane %v1867_v32, 4  ;;  %v1872_v50 = vrot.slane %v1835_v58, 4 }
 0x3e4   : > { %v1875_v53 = vsel %vm828_vm11, %v1835_v58, %v1874_v8  ;;  %v1898_v6 = vrot.slane %v1847_v35, 4  ;;  %v1896_v55 = vrot.slane %v1859_v18, 4  ;;  %v2030_v49 = vrot.slane %v1991_v54, 4 }
 0x3e5   : > { %v2029_v41 = vsel %vm828_vm11, %v2028_v42, %v1991_v54  ;;  %v1883_v4 = vperm.slane %v1875_v53, %v11278_v11  ;;  %v2035_v27 = vsel %vm828_vm11, %v2019_v13, %v2034_v48  ;;  %v1911_v21 = vsel %vm828_vm11, %v1891_v47, %v1910_v40  ;;  %v10186_v53 = vld [vmem:[%s15989_s6 + $0xb8] sm:$0xff] }
 0x3e6   : > { %2467 = vmatpush.msra.mxu1 %v2029_v41  ;;  %v1899_v16 = vsel %vm828_vm11, %v1859_v18, %v1898_v6  ;;  %2536 = vmatpush.msra.mxu0 %v2035_v27  ;;  %v1873_v56 = vsel %vm828_vm11, %v1872_v50, %v1823_v23  ;;  %v1897_v43 = vsel %vm828_vm11, %v1896_v55, %v1847_v35  ;;  %v10185_v55 = vld [vmem:[%s15989_s6 + $0xb0] sm:$0xff] }
 0x3e7   : > { %v1907_v61 = vperm.slane %v1899_v16, %v11278_v11  ;;  %2399 = vmatpush.msrb.mxu2 %v1911_v21  ;;  %v1879_v22 = vperm.slane %v1873_v56, %v11278_v11  ;;  %v1903_v7 = vperm.slane %v1897_v43, %v11278_v11  ;;  %v2031_v9 = vsel %vm828_vm11, %v2015_v60, %v2030_v49  ;;  %v10183_v21 = vld [vmem:[%s15989_s6 + $0xa0] sm:$0xff] }
 0x3e8   : > { %v1922_v31 = vrot.slane %v1883_v4, 4  ;;  %v2298_v5 = vsub.f32 %v11770_v29, %v2284_v1  ;;  %v2301_v28 = vsub.f32 %v11777_v52, %v2293_v0  ;;  %v610_v52 = vpop.xlane.xlu1 %609 }
 0x3e9   : > { %2490 = vmatpush.msra.mxu2 %v2031_v9  ;;  %v1920_v44 = vrot.slane %v1907_v61, 4  ;;  %v1916_v15 = vrot.slane %v1903_v7, 4  ;;  %v1918_v32 = vrot.slane %v1879_v22, 4  ;;  %v614_v33 = vmul.f32 %v610_v52, %v11097_v12 }
 0x3ea   : > { %v1923_v47 = vsel %vm828_vm11, %v1907_v61, %v1922_v31  ;;  %v2310_v13 = vmul.f32 1.442695, %v2298_v5  ;;  %v2316_v34 = vmul.f32 1.442695, %v2301_v28  ;;  %v10798_v28 = vld [vmem:[%s16072_s3] sm:$0xff] }
 0x3eb   : > { %v1921_v57 = vsel %vm828_vm11, %v1920_v44, %v1883_v4  ;;  %v1917_v14 = vsel %vm828_vm11, %v1916_v15, %v1879_v22  ;;  %2537 = vmatpush.msra.mxu0 %v1923_v47  ;;  %v1919_v19 = vsel %vm828_vm11, %v1903_v7, %v1918_v32  ;;  %v616_v36 = vadd.f32 1e-05, %v614_v33  ;;  %v10184_v4 = vld [vmem:[%s15989_s6 + $0xa8] sm:$0xff]  ;;  %v10181_v15 = vld [vmem:[%s15989_s6 + $0x98] sm:$0xff] }
 0x3ec   : > { %2514 = vmatpush.msrb.mxu3 %v1921_v57  ;;  %2468 = vmatpush.msra.mxu1 %v1917_v14  ;;  %10603 = vpow2.f32 %v2310_v13  ;;  %v10179_v13 = vld [vmem:[%s15989_s6 + $0x88] sm:$0xff]  ;;  %v10178_v14 = vld [vmem:[%s15989_s6 + $0x80] sm:$0xff] }
 0x3ed   : > { %2491 = vmatpush.msra.mxu2 %v1919_v19  ;;  %10605 = vpow2.f32 %v2316_v34  ;;  %vm624_vm14 = vweird.f32 %v616_v36 }
 0x3ee   : > { %10607 = vrsqrt.f32 %v616_v36 }
 0x3f2   : > { %v12109_v29 = vpop.eup %10603 }
 0x3f3   : > { %v12111_v54 = vpop.eup %10605  ;;  %v2330_v62 = vsel %vm2269_vm13, %v12109_v29, 0.0 }
 0x3f4   : > { %2331 = vadd.xlane.f32.xlu2 %v2330_v62  ;;  %v2339_v59 = vsel %vm2269_vm13, %v12111_v54, 0.0  ;;  %v10608_v23 = vpop.eup %10607 }
 0x3f5   : > { %2340 = vadd.xlane.f32.xlu0 %v2339_v59  ;;  %v619_v58 = vmul.f32 %v10608_v23, %v616_v36  ;;  %vm625_vm15 = vweird.f32 %v10608_v23 }
 0x3f6   : > { %vm626_vm1 = vmor %vm624_vm14, %vm625_vm15 }
 0x3f7   : > { %v620_v60 = vmul.f32 %v10608_v23, %v619_v58 }
 0x3f9   : > { %v621_v10 = vmul.f32 0.5, %v620_v60 }
 0x3fb   : > { %v622_v18 = vsub.f32 1.5, %v621_v10 }
 0x3fd   : > { %v623_v8 = vmul.f32 %v10608_v23, %v622_v18 }
 0x408   : > { %v2329_v39 = vpop.xlane.xlu1 %2328 }
 0x409   : > { %10609 = vrcp.f32 %v2329_v39  ;;  %v10188_v39 = vld [vmem:[%s15989_s6 + $0xc0] sm:$0xff] }
 0x40f   : > { %v10610_v25 = vpop.eup %10609 }
 0x410   : > { %v2353_v46 = vmul.f32 %v10610_v25, %v11784_v26  ;;  %v2326_v35 = vpop.xlane.xlu0 %2325  ;;  %v627_v26 = vsel %vm626_vm1, %v10608_v23, %v623_v8  ;;  %v10799_v23 = vld [vmem:[%s16072_s3 + $0x8] sm:$0xff]  ;;  %s16024_s3 = smov 20  }
 0x411   : > { %10611 = vrcp.f32 %v2326_v35  ;;  %v638_v41 = vmul.f32 %v627_v26, %v11775_v38  ;;  %v10559_v38 = vld [vmem:[%s15988_s5 + $0x1] ss:$0 sm:$0xff] }
 0x412   : > { %10172 = vmatmul.msk.f32.vlgmr.msrb.gmra.mxu0 %vm2269_vm13, %v2353_v46 }
 0x417   : > { %v2338_v42 = vpop.xlane.xlu2 %2337  ;;  %v10612_v48 = vpop.eup %10611 }
 0x418   : > { %10613 = vrcp.f32 %v2338_v42  ;;  %v2352_v40 = vmul.f32 %v10612_v48, %v11791_v37  ;;  %v613_v50 = vpop.xlane.xlu0 %612  ;;  %v10558_v37 = vld [vmem:[%s15987_s4 + $0x1] ss:$0 sm:$0xff]  ;;  %v10561_v48 = vld [vmem:[%s15990_s7 + $0x4] ss:$0 sm:$0xff] }
 0x419   : > { %v615_v6 = vmul.f32 %v613_v50, %v11097_v12  ;;  %v643_v1 = vmul.f32 %v10558_v37, %v638_v41 }
 0x41a   : > { %10171 = vmatmul.msk.f32.vlgmr.msra.gmra.mxu3 %vm2269_vm13, %v2352_v40 }
 0x41b   : > { %v617_v49 = vadd.f32 1e-05, %v615_v6  ;;  %2905 = vmatpush.msra.mxu3 %v10186_v53  ;;  %v648_v22 = vadd.f32 %v10559_v38, %v643_v1  ;;  %v10560_v53 = vld [vmem:[%s15990_s7 + $0x5] ss:$0 sm:$0xff] }
 0x41d   : > { %10615 = vrsqrt.f32 %v617_v49  ;;  %2906 = vmatpush.msra.mxu3 %v10185_v55  ;;  %v12148_v44 = vadd.f32 %v10798_v28, %v648_v22  ;;  %vm634_vm3 = vweird.f32 %v617_v49 }
 0x41e   : > { %v10614_v27 = vpop.eup %10613 }
 0x41f   : > { %2907 = vmatpush.msra.mxu3 %v10184_v4  ;;  %v2356_v0 = vmul.f32 %v10614_v27, %v11800_v20  ;;  %v2335_v61 = vpop.xlane.xlu2 %2334 }
 0x420   : > { %v2323_v16 = vpop.xlane.xlu0 %2322 }
 0x421   : > { %10617 = vrcp.f32 %v2323_v16  ;;  %2908 = vmatpush.msra.mxu3 %v10183_v21 }
 0x422   : > { %10175 = vmatmul.msk.f32.vlgmr.msrb.gmra.mxu3 %vm2269_vm13, %v2356_v0  ;;  %10619 = vrcp.f32 %v2335_v61 }
 0x423   : > { %v10616_v56 = vpop.eup %10615 }
 0x424   : > { %v629_v43 = vmul.f32 %v10616_v56, %v617_v49  ;;  %vm635_vm2 = vweird.f32 %v10616_v56 }
 0x425   : > { %vm636_vm4 = vmor %vm634_vm3, %vm635_vm2 }
 0x426   : > { %v630_v7 = vmul.f32 %v10616_v56, %v629_v43 }
 0x427   : > { %v10618_v9 = vpop.eup %10617 }
 0x428   : > { %v631_v31 = vmul.f32 0.5, %v630_v7  ;;  %v2320_v5 = vpop.xlane.xlu0 %2319  ;;  %v2351_v20 = vmul.f32 %v10618_v9, %v11813_v3  ;;  %v10180_v3 = vld [vmem:[%s15989_s6 + $0x90] sm:$0xff]  ;;  %v10620_v34 = vpop.eup %10619 }
 0x429   : > { %10621 = vrcp.f32 %v2320_v5  ;;  %v2355_v62 = vmul.f32 %v10620_v34, %v11810_v63  ;;  %v10190_v63 = vld [vmem:[%s15989_s6 + $0xd0] sm:$0xff] }
 0x42a   : > { %v632_v32 = vsub.f32 1.5, %v631_v31  ;;  %10170 = vmatmul.msk.f32.vlgmr.msrb.gmra.mxu2 %vm2269_vm13, %v2351_v20  ;;  %10199 = vmatmul.msk.f32.vlgmr.msra.gmra.mxu3 %vm530_vm0, %v12148_v44 }
 0x42b   : > { %2875 = vmatpush.msrb.mxu2 %v10181_v15 }
 0x42c   : > { %v633_v47 = vmul.f32 %v10616_v56, %v632_v32 }
 0x42d   : > { %2876 = vmatpush.msrb.mxu2 %v10180_v3 }
 0x42e   : > { %v637_v57 = vsel %vm636_vm4, %v10616_v56, %v633_v47 }
 0x42f   : > { %v10622_v19 = vpop.eup %10621  ;;  %2877 = vmatpush.msrb.mxu2 %v10179_v13  ;;  %v639_v52 = vmul.f32 %v637_v57, %v11794_v45  ;;  %v10191_v45 = vld [vmem:[%s15989_s6 + $0xd8] sm:$0xff] }
 0x430   : > { %v2350_v59 = vmul.f32 %v10622_v19, %v11816_v30  ;;  %2937 = vmatpush.msrb.mxu0 %v10191_v45  ;;  %v10189_v30 = vld [vmem:[%s15989_s6 + $0xc8] sm:$0xff] }
 0x431   : > { %v644_v33 = vmul.f32 %v10558_v37, %v639_v52  ;;  %2878 = vmatpush.msrb.mxu2 %v10178_v14 }
 0x432   : > { %10169 = vmatmul.msk.f32.vlgmr.msrb.gmra.mxu1 %vm2269_vm13, %v2350_v59  ;;  %10174 = vmatmul.msk.f32.vlgmr.msra.gmra.mxu2 %vm2269_vm13, %v2355_v62 }
 0x433   : > { %v649_v36 = vadd.f32 %v10559_v38, %v644_v33  ;;  %2938 = vmatpush.msrb.mxu0 %v10190_v63 }
 0x435   : > { %v12173_v58 = vadd.f32 %v10799_v23, %v649_v36  ;;  %2939 = vmatpush.msrb.mxu0 %v10189_v30 }
 0x437   : > { %10200 = vmatmul.msk.f32.gmra.mxu3 %vm530_vm0, %v12173_v58  ;;  %2940 = vmatpush.msrb.mxu0 %v10188_v39 }
 0x43a   : > { %10198 = vmatmul.msk.f32.vlgmr.msrb.gmra.mxu2 %vm530_vm0, %v11163_v2 }
 0x467   : > { %v2332_v2 = vpop.xlane.xlu2 %2331 }
 0x468   : > { %10623 = vrcp.f32 %v2332_v2  ;;  %v2341_v60 = vpop.xlane.xlu0 %2340 }
 0x469   : > { %10625 = vrcp.f32 %v2341_v60 }
 0x46e   : > { %v10624_v10 = vpop.eup %10623 }
 0x46f   : > { %v10626_v25 = vpop.eup %10625  ;;  %v2354_v46 = vmul.f32 %v10624_v10, %v12109_v29 }
 0x470   : > { %v2357_v35 = vmul.f32 %v10626_v25, %v12111_v54 }
 0x471   : > { %10173 = vmatmul.msk.f32.vlgmr.msra.gmra.mxu1 %vm2269_vm13, %v2354_v46 }
 0x472   : > { %10176 = vmatmul.msk.f32.vlgmr.msra.gmra.mxu0 %vm2269_vm13, %v2357_v35 }
 0x47a   : > { %10201 = vmatmul.msk.f32.vlgmr.msrb.gmra.mxu0 %vm530_vm0, %v648_v22 }
 0x482   : > { %10202 = vmatmul.msk.f32.gmra.mxu0 %vm530_vm0, %v649_v36 }
 0x48f   : > { %v2447_v37 = vpop.f32.mrf.mxu0 }
 0x490   : > { %v2554_v27 = vrot.slane %v2447_v37, 4 }
 0x49d   : > { %v2424_v8 = vpop.f32.mrf.mxu3 }
 0x49e   : > { %v2542_v16 = vrot.slane %v2424_v8, 4 }
 0x4a5   : > { %v2516_v40 = vpop.f32.mrf.mxu3 }
 0x4a6   : > { %v2566_v20 = vrot.slane %v2516_v40, 4 }
 0x4ad   : > { %v2401_v18 = vpop.f32.mrf.mxu2  ;;  %v2910_v26 = vpop.f32.mrf.mxu3 }
 0x4ae   : > { %v12213_v6 = vadd.f32 %v10560_v53, %v2910_v26  ;;  %v2556_v4 = vrot.slane %v2401_v18, 4  ;;  %v2555_v1 = vsel %vm828_vm11, %v2554_v27, %v2401_v18 }
 0x4af   : > { %v2378_v41 = vpop.f32.mrf.mxu1  ;;  %v2561_v56 = vperm.slane %v2555_v1, %v11262_v51 }
 0x4b0   : > { %v2544_v21 = vrot.slane %v2378_v41, 4  ;;  %v2557_v0 = vsel %vm828_vm11, %v2447_v37, %v2556_v4  ;;  %v2543_v61 = vsel %vm828_vm11, %v2542_v16, %v2378_v41 }
 0x4b1   : > { %v2565_v43 = vperm.slane %v2557_v0, %v11262_v51  ;;  %v2590_v7 = vrot.slane %v2561_v56, 4  ;;  %v2549_v9 = vperm.slane %v2543_v61, %v11262_v51 }
 0x4b2   : > { %v2545_v38 = vsel %vm828_vm11, %v2424_v8, %v2544_v21 }
 0x4b3   : > { %v2553_v22 = vperm.slane %v2545_v38, %v11262_v51  ;;  %v2602_v31 = vrot.slane %v2565_v43, 4  ;;  %v2591_v28 = vsel %vm828_vm11, %v2590_v7, %v2549_v9  ;;  %v2592_v15 = vrot.slane %v2549_v9, 4 }
 0x4b4   : > { %v2597_v59 = vperm.slane %v2591_v28, %v11278_v11 }
 0x4b5   : > { %v12197_v42 = vpop.f32.mrf.mxu2  ;;  %v2604_v5 = vrot.slane %v2553_v22, 4  ;;  %v2603_v47 = vsel %vm828_vm11, %v2602_v31, %v2553_v22  ;;  %v2593_v23 = vsel %vm828_vm11, %v2561_v56, %v2592_v15 }
 0x4b6   : > { %v2580_v32 = vrot.slane %v12197_v42, 4  ;;  %v2609_v45 = vperm.slane %v2603_v47, %v11278_v11  ;;  %v2601_v46 = vperm.slane %v2593_v23, %v11278_v11 }
 0x4b7   : > { %v2605_v14 = vsel %vm828_vm11, %v2565_v43, %v2604_v5 }
 0x4b8   : > { %v2613_v39 = vperm.slane %v2605_v14, %v11278_v11  ;;  %v2644_v21 = vrot.slane %v2601_v46, 4 }
 0x4ba   : > { %v2913_v55 = vpop.f32.mrf.mxu3 }
 0x4bb   : > { %v12221_v49 = vadd.f32 %v10560_v53, %v2913_v55  ;;  %v2652_v53 = vrot.slane %v2613_v39, 4 }
 0x4bd   : > { %v2880_v29 = vpop.f32.mrf.mxu2 }
 0x4be   : > { %v2881_v50 = vadd.f32 %v10561_v48, %v2880_v29 }
 0x4c0   : > { %v12202_v54 = vmul.f32 0.5, %v2881_v50  ;;  %v2640_v50 = vrot.slane %v2597_v59, 4 }
 0x4c2   : > { %2964 = vrot.lane.b32.xlu1 %v12202_v54, %s16081_s20  ;;  %2955 = vrot.lane.b32.xlu2 %v12202_v54, %s16080_s19 }
 0x4c3   : > { %2952 = vrot.lane.b32.xlu0 %v12202_v54, %s16079_s27 }
 0x4ca   : > { %3226 = vrot.lane.b32.xlu1 %v12213_v6, %s16081_s20  ;;  %3196 = vrot.lane.b32.xlu2 %v12213_v6, %s16082_s28 }
 0x4cb   : > { %3202 = vrot.lane.b32.xlu0 %v12213_v6, %s16079_s27 }
 0x4d2   : > { %3214 = vrot.lane.b32.xlu1 %v12213_v6, %s16083_s0  ;;  %3210 = vrot.lane.b32.xlu2 %v12221_v49, %s16080_s19 }
 0x4d3   : > { %3208 = vrot.lane.b32.xlu0 %v12213_v6, %s16080_s19 }
 0x4da   : > { %3204 = vrot.lane.b32.xlu1 %v12221_v49, %s16079_s27  ;;  %2949 = vrot.lane.b32.xlu2 %v12202_v54, %s16082_s28 }
 0x4db   : > { %3232 = vrot.lane.b32.xlu0 %v12213_v6, %s16078_s25 }
 0x4e2   : > { %3198 = vrot.lane.b32.xlu1 %v12221_v49, %s16082_s28  ;;  %3216 = vrot.lane.b32.xlu2 %v12221_v49, %s16083_s0 }
 0x4e3   : > { %3228 = vrot.lane.b32.xlu0 %v12221_v49, %s16081_s20 }
 0x4ea   : > { %3234 = vrot.lane.b32.xlu1 %v12221_v49, %s16078_s25  ;;  %3222 = vrot.lane.b32.xlu2 %v12221_v49, %s16084_s26 }
 0x4eb   : > { %3220 = vrot.lane.b32.xlu0 %v12213_v6, %s16084_s26 }
 0x4ee   : > { %v2470_v3 = vpop.f32.mrf.mxu1 }
 0x4ef   : > { %v2567_v13 = vsel %vm828_vm11, %v2566_v20, %v2470_v3  ;;  %v2568_v34 = vrot.slane %v2470_v3, 4  ;;  %v2539_v57 = vpop.f32.mrf.mxu0 }
 0x4f0   : > { %v2573_v19 = vperm.slane %v2567_v13, %v11262_v51  ;;  %v2578_v52 = vrot.slane %v2539_v57, 4  ;;  %v2581_v62 = vsel %vm828_vm11, %v2539_v57, %v2580_v32 }
 0x4f1   : > { %v2569_v33 = vsel %vm828_vm11, %v2516_v40, %v2568_v34  ;;  %v2589_v36 = vperm.slane %v2581_v62, %v11262_v51 }
 0x4f2   : > { %v2577_v63 = vperm.slane %v2569_v33, %v11262_v51  ;;  %v2579_v30 = vsel %vm828_vm11, %v2578_v52, %v12197_v42  ;;  %v2616_v2 = vrot.slane %v2573_v19, 4  ;;  %2958 = vrot.lane.b32.xlu1 %v12202_v54, %s16083_s0  ;;  %2961 = vrot.lane.b32.xlu2 %v12202_v54, %s16084_s26  ;;  %v2648_v42 = vrot.slane %v2609_v45, 4 }
 0x4f3   : > { %v2585_v60 = vperm.slane %v2579_v30, %v11262_v51  ;;  %v2626_v10 = vrot.slane %v2589_v36, 4  ;;  %2967 = vrot.lane.b32.xlu0 %v12202_v54, %s16078_s25 }
 0x4f4   : > { %v2628_v25 = vrot.slane %v2577_v63, 4 }
 0x4f5   : > { %v2614_v35 = vrot.slane %v2585_v60, 4  ;;  %v2617_v18 = vsel %vm828_vm11, %v2585_v60, %v2616_v2  ;;  %v2627_v8 = vsel %vm828_vm11, %v2626_v10, %v2577_v63 }
 0x4f6   : > { %v2625_v48 = vperm.slane %v2617_v18, %v11278_v11  ;;  %v2629_v40 = vsel %vm828_vm11, %v2589_v36, %v2628_v25  ;;  %v2633_v29 = vperm.slane %v2627_v8, %v11278_v11 }
 0x4f7   : > { %v2615_v26 = vsel %vm828_vm11, %v2614_v35, %v2573_v19  ;;  %v2637_v55 = vperm.slane %v2629_v40, %v11278_v11 }
 0x4f8   : > { %v2621_v37 = vperm.slane %v2615_v26, %v11278_v11  ;;  %v2642_v41 = vrot.slane %v2625_v48, 4  ;;  %v2646_v4 = vrot.slane %v2633_v29, 4  ;;  %v2649_v27 = vsel %vm828_vm11, %v2633_v29, %v2648_v42 }
 0x4f9   : > { %v2650_v1 = vrot.slane %v2637_v55, 4  ;;  %v2653_v0 = vsel %vm828_vm11, %v2637_v55, %v2652_v53  ;;  %v2692_v16 = vrot.slane %v2649_v27, 4  ;;  %v2645_v9 = vsel %vm828_vm11, %v2625_v48, %v2644_v21 }
 0x4fa   : > { %v2638_v38 = vrot.slane %v2621_v37, 4  ;;  %v2647_v56 = vsel %vm828_vm11, %v2646_v4, %v2609_v45  ;;  %v2690_v43 = vrot.slane %v2653_v0, 4  ;;  %v2641_v61 = vsel %vm828_vm11, %v2621_v37, %v2640_v50 }
 0x4fb   : > { %v2651_v22 = vsel %vm828_vm11, %v2650_v1, %v2613_v39  ;;  %v2643_v7 = vsel %vm828_vm11, %v2642_v41, %v2601_v46  ;;  %v2668_v31 = vrot.slane %v2641_v61, 4  ;;  %v2666_v15 = vrot.slane %v2645_v9, 4  ;;  %v2942_v41 = vpop.f32.mrf.mxu0 }
 0x4fc   : > { %v2678_v5 = vrot.slane %v2651_v22, 4  ;;  %v2639_v20 = vsel %vm828_vm11, %v2638_v38, %v2597_v59  ;;  %v2654_v28 = vrot.slane %v2643_v7, 4  ;;  %v2680_v47 = vrot.slane %v2647_v56, 4 }
 0x4fd   : > { %v2656_v32 = vrot.slane %v2639_v20, 4  ;;  %v2669_v3 = vsel %vm828_vm11, %v2645_v9, %v2668_v31  ;;  %v2693_v13 = vsel %vm828_vm11, %v2653_v0, %v2692_v16  ;;  %v2667_v19 = vsel %vm828_vm11, %v2666_v15, %v2641_v61 }
 0x4fe   : > { %v2677_v34 = vperm.slane %v2669_v3, %v11262_v51  ;;  %v2701_v57 = vperm.slane %v2693_v13, %v11262_v51  ;;  %v2655_v14 = vsel %vm828_vm11, %v2654_v28, %v2639_v20  ;;  %v2681_v62 = vsel %vm828_vm11, %v2651_v22, %v2680_v47  ;;  %v10562_v13 = vld [vmem:[%s15990_s7 + $0x6] ss:$0 sm:$0xff] }
 0x4ff   : > { %v2657_v52 = vsel %vm828_vm11, %v2643_v7, %v2656_v32  ;;  %v2661_v59 = vperm.slane %v2655_v14, %v11262_v51  ;;  %v2689_v36 = vperm.slane %v2681_v62, %v11262_v51  ;;  %v2673_v45 = vperm.slane %v2667_v19, %v11262_v51 }
 0x500   : > { %v2665_v33 = vperm.slane %v2657_v52, %v11262_v51  ;;  %v2714_v23 = vrot.slane %v2677_v34, 4  ;;  %v2738_v63 = vrot.slane %v2701_v57, 4  ;;  %v2679_v30 = vsel %vm828_vm11, %v2678_v5, %v2647_v56 }
 0x501   : > { %v2691_v39 = vsel %vm828_vm11, %v2690_v43, %v2649_v27  ;;  %v2704_v2 = vrot.slane %v2661_v59, 4  ;;  %v2685_v10 = vperm.slane %v2679_v30, %v11262_v51  ;;  %v2740_v18 = vrot.slane %v2689_v36, 4 }
 0x502   : > { %v2715_v60 = vsel %vm828_vm11, %v2714_v23, %v2665_v33  ;;  %v2739_v25 = vsel %vm828_vm11, %v2738_v63, %v2689_v36  ;;  %v2697_v46 = vperm.slane %v2691_v39, %v11262_v51  ;;  %v2716_v29 = vrot.slane %v2665_v33, 4 }
 0x503   : > { %v2705_v35 = vsel %vm828_vm11, %v2673_v45, %v2704_v2  ;;  %v2721_v8 = vperm.slane %v2715_v60, %v11278_v11  ;;  %v2745_v42 = vperm.slane %v2739_v25, %v11278_v11  ;;  %v2728_v40 = vrot.slane %v2685_v10, 4  ;;  %v2945_v3 = vpop.f32.mrf.mxu0 }
 0x504   : > { %v2713_v48 = vperm.slane %v2705_v35, %v11278_v11  ;;  %v2702_v50 = vrot.slane %v2673_v45, 4  ;;  %v2741_v37 = vsel %vm828_vm11, %v2701_v57, %v2740_v18  ;;  %v2726_v21 = vrot.slane %v2697_v46, 4 }
 0x505   : > { %v2758_v53 = vrot.slane %v2745_v42, 4  ;;  %v2729_v26 = vsel %vm828_vm11, %v2697_v46, %v2728_v40  ;;  %v2749_v56 = vperm.slane %v2741_v37, %v11278_v11  ;;  %v2717_v61 = vsel %vm828_vm11, %v2677_v34, %v2716_v29 }
 0x506   : > { %v2756_v55 = vrot.slane %v2713_v48, 4  ;;  %v2737_v4 = vperm.slane %v2729_v26, %v11278_v11  ;;  %v2703_v27 = vsel %vm828_vm11, %v2702_v50, %v2661_v59  ;;  %v2727_v43 = vsel %vm828_vm11, %v2726_v21, %v2685_v10 }
 0x507   : > { %v2759_v1 = vsel %vm828_vm11, %v2758_v53, %v2721_v8  ;;  %v2709_v0 = vperm.slane %v2703_v27, %v11278_v11  ;;  %v2733_v22 = vperm.slane %v2727_v43, %v11278_v11  ;;  %v2725_v5 = vperm.slane %v2717_v61, %v11278_v11 }
 0x508   : > { %2779 = vrot.lane.b32.xlu1 %v2759_v1, %s16018_s24  ;;  %v2757_v16 = vsel %vm828_vm11, %v2737_v4, %v2756_v55  ;;  %v2754_v38 = vrot.slane %v2737_v4, 4  ;;  %v2762_v20 = vrot.slane %v2749_v56, 4  ;;  %v2760_v15 = vrot.slane %v2721_v8, 4  ;;  %s16026_s24 = smov 28  }
 0x509   : > { %2775 = vrot.lane.b32.xlu2 %v2757_v16, %s16020_s22  ;;  %v2750_v9 = vrot.slane %v2733_v22, 4  ;;  %v2752_v31 = vrot.slane %v2709_v0, 4  ;;  %v12344_v57 = vadd.f32 %v10562_v13, %v2945_v3  ;;  %v2764_v14 = vrot.slane %v2725_v5, 4  ;;  %s16090_s22 = smov 16  }
 0x50a   : > { %v2755_v7 = vsel %vm828_vm11, %v2754_v38, %v2713_v48  ;;  %v2763_v47 = vsel %vm828_vm11, %v2762_v20, %v2725_v5  ;;  %v2761_v34 = vsel %vm828_vm11, %v2745_v42, %v2760_v15  ;;  %v12347_v19 = vadd.f32 %v10562_v13, %v2942_v41 }
 0x50b   : > { %2771 = vrot.lane.b32.xlu0 %v2755_v7, %s16022_s18  ;;  %v12334_v28 = vsel %vm828_vm11, %v2750_v9, %v2709_v0  ;;  %v2753_v32 = vsel %vm828_vm11, %v2733_v22, %v2752_v31  ;;  %s16028_s18 = smov 24   ;;  %v2765_v62 = vsel %vm828_vm11, %v2749_v56, %v2764_v14  ;;  %v2972_v25 = vrot.slane %v12202_v54, 4 }
 0x50c   : > { %v12351_v52 = vpack.i.bf16 %v12347_v19, %v12344_v57  ;;  %v3240_v27 = vrot.slane %v12213_v6, 4 }
 0x510   : > { %2767 = vrot.lane.b32.xlu1 %v2753_v32, %s16030_s1  ;;  %s16088_s1 = smov 12  }
 0x511   : > { %2787 = vrot.lane.b32.xlu2 %v2763_v47, %s16028_s18  ;;  %v3352_v47 = vrot.slane %v12221_v49, 4  ;;  %s16100_s18 = sld [smem:[#allocation24_spill]] }
 0x513   : > { %2783 = vrot.lane.b32.xlu0 %v2761_v34, %s16024_s3  ;;  %s13474_s3 = scalar_lea.vmem [#allocation6], %s10115_s23 }
 0x514   : > { %16095 = sst [smem:[#allocation19_spill]] %s13474_s3 }
 0x518   : > { %2791 = vrot.lane.b32.xlu1 %v2765_v62, %s16026_s24  ;;  %s16089_s24 = smov 8  }
 0x519   : > { %10527 = vrot.lane.b32.xlu2 %v12351_v52, %s16083_s0 }
 0x51b   : > { %10522 = vrot.lane.b32.xlu0 %v12351_v52, %s16079_s27 }
 0x51c   : > { %v2956_v59 = vpop.permute.xlu2 %2955 }
 0x51d   : > { %v2982_v10 = vrot.slane %v2956_v59, 4 }
 0x520   : > { %10517 = vrot.lane.b32.xlu1 %v12351_v52, %s16082_s28 }
 0x523   : > { %10532 = vrot.lane.b32.xlu0 %v12351_v52, %s16081_s20 }
 0x524   : > { %v3197_v33 = vpop.permute.xlu2 %3196 }
 0x525   : > { %v3252_v1 = vrot.slane %v3197_v33, 4 }
 0x52c   : > { %v12363_v36 = vpop.permute.xlu2 %3210 }
 0x52d   : > { %v3362_v62 = vrot.slane %v12363_v36, 4 }
 0x534   : > { %v12365_v23 = vpop.permute.xlu1 %2964  ;;  %v2950_v63 = vpop.permute.xlu2 %2949 }
 0x535   : > { %v2953_v45 = vpop.permute.xlu0 %2952  ;;  %v2984_v39 = vrot.slane %v2950_v63, 4  ;;  %v2983_v46 = vsel %vm828_vm11, %v2982_v10, %v2950_v63  ;;  %v2994_v63 = vrot.slane %v12365_v23, 4 }
 0x536   : > { %v2970_v2 = vrot.slane %v2953_v45, 4  ;;  %v2973_v35 = vsel %vm828_vm11, %v2953_v45, %v2972_v25  ;;  %v2989_v42 = vperm.slane %v2983_v46, %v11262_v51 }
 0x537   : > { %v2985_v18 = vsel %vm828_vm11, %v2956_v59, %v2984_v39  ;;  %v2981_v48 = vperm.slane %v2973_v35, %v11262_v51 }
 0x538   : > { %v2971_v8 = vsel %vm828_vm11, %v2970_v2, %v12202_v54  ;;  %v2993_v40 = vperm.slane %v2985_v18, %v11262_v51  ;;  %v3018_v55 = vrot.slane %v2989_v42, 4 }
 0x539   : > { %v2977_v29 = vperm.slane %v2971_v8, %v11262_v51  ;;  %v3032_v37 = vrot.slane %v2981_v48, 4 }
 0x53a   : > { %v3030_v41 = vrot.slane %v2993_v40, 4 }
 0x53b   : > { %v3020_v4 = vrot.slane %v2977_v29, 4  ;;  %v3019_v16 = vsel %vm828_vm11, %v3018_v55, %v2977_v29  ;;  %v3033_v38 = vsel %vm828_vm11, %v2993_v40, %v3032_v37 }
 0x53c   : > { %v3227_v30 = vpop.permute.xlu1 %3226  ;;  %v12377_v50 = vpop.permute.xlu2 %3216  ;;  %v3031_v43 = vsel %vm828_vm11, %v3030_v41, %v2981_v48  ;;  %v12393_v20 = vperm.slane %v3019_v16, %v11278_v11  ;;  %v12396_v15 = vperm.slane %v3033_v38, %v11278_v11 }
 0x53d   : > { %v3203_v60 = vpop.permute.xlu0 %3202  ;;  %v3021_v56 = vsel %vm828_vm11, %v2989_v42, %v3020_v4  ;;  %v3262_v34 = vrot.slane %v3227_v30, 4  ;;  %v3376_v39 = vrot.slane %v12377_v50, 4 }
 0x53e   : > { %v3238_v21 = vrot.slane %v3203_v60, 4  ;;  %v3241_v0 = vsel %vm828_vm11, %v3203_v60, %v3240_v27  ;;  %v12402_v13 = vperm.slane %v3021_v56, %v11278_v11  ;;  %v3068_v10 = vrot.slane %v12393_v20, 4 }
 0x53f   : > { %v3249_v9 = vperm.slane %v3241_v0, %v11262_v51  ;;  %v3080_v25 = vrot.slane %v12396_v15, 4 }
 0x540   : > { %v3239_v7 = vsel %vm828_vm11, %v3238_v21, %v12213_v6  ;;  %v12405_v6 = vperm.slane %v3031_v43, %v11278_v11  ;;  %v3072_v18 = vrot.slane %v12402_v13, 4 }
 0x541   : > { %v3245_v59 = vperm.slane %v3239_v7, %v11262_v51  ;;  %v3300_v2 = vrot.slane %v3249_v9, 4 }
 0x542   : > { %v3076_v8 = vrot.slane %v12405_v6, 4 }
 0x543   : > { %v3288_v40 = vrot.slane %v3245_v59, 4 }
 0x544   : > { %v3215_v53 = vpop.permute.xlu1 %3214  ;;  %v12398_v3 = vpop.permute.xlu2 %3222 }
 0x545   : > { %v3209_v26 = vpop.permute.xlu0 %3208  ;;  %v3264_v32 = vrot.slane %v3215_v53, 4  ;;  %v3263_v60 = vsel %vm828_vm11, %v3262_v34, %v3215_v53 }
 0x546   : > { %v3250_v54 = vrot.slane %v3209_v26, 4  ;;  %v3253_v61 = vsel %vm828_vm11, %v3209_v26, %v3252_v1  ;;  %v12422_v29 = vperm.slane %v3263_v60, %v11262_v51 }
 0x547   : > { %v3261_v14 = vperm.slane %v3253_v61, %v11262_v51  ;;  %v3265_v46 = vsel %vm828_vm11, %v3227_v30, %v3264_v32 }
 0x548   : > { %v3251_v31 = vsel %vm828_vm11, %v3250_v54, %v3197_v33  ;;  %v12427_v30 = vperm.slane %v3265_v46, %v11262_v51  ;;  %v3312_v43 = vrot.slane %v12422_v29, 4 }
 0x549   : > { %v3257_v33 = vperm.slane %v3251_v31, %v11262_v51  ;;  %v3298_v42 = vrot.slane %v3261_v14, 4  ;;  %v3301_v48 = vsel %vm828_vm11, %v3261_v14, %v3300_v2 }
 0x54a   : > { %v12433_v54 = vperm.slane %v3301_v48, %v11278_v11 }
 0x54b   : > { %v3286_v53 = vrot.slane %v3257_v33, 4  ;;  %v3289_v21 = vsel %vm828_vm11, %v3257_v33, %v3288_v40  ;;  %v3299_v16 = vsel %vm828_vm11, %v3298_v42, %v3249_v9 }
 0x54c   : > { %v3205_v22 = vpop.permute.xlu1 %3204  ;;  %v12448_v32 = vperm.slane %v3289_v21, %v11278_v11  ;;  %v12455_v14 = vperm.slane %v3299_v16, %v11278_v11 }
 0x54d   : > { %v12390_v5 = vpop.permute.xlu0 %3232  ;;  %v3350_v45 = vrot.slane %v3205_v22, 4  ;;  %v3353_v35 = vsel %vm828_vm11, %v3205_v22, %v3352_v47  ;;  %v3287_v61 = vsel %vm828_vm11, %v3286_v53, %v3245_v59  ;;  %v12443_v22 = vpop.permute.xlu2 %2961 }
 0x54e   : > { %v3361_v37 = vperm.slane %v3353_v35, %v11262_v51  ;;  %v12459_v33 = vperm.slane %v3287_v61, %v11278_v11  ;;  %v3340_v48 = vrot.slane %v12448_v32, 4 }
 0x54f   : > { %v3351_v26 = vsel %vm828_vm11, %v3350_v45, %v12221_v49  ;;  %v3388_v49 = vrot.slane %v12398_v3, 4 }
 0x550   : > { %v3357_v38 = vperm.slane %v3351_v26, %v11262_v51  ;;  %v3412_v47 = vrot.slane %v3361_v37, 4 }
 0x552   : > { %v3400_v45 = vrot.slane %v3357_v38, 4 }
 0x554   : > { %v3199_v55 = vpop.permute.xlu1 %3198 }
 0x555   : > { %v3363_v41 = vsel %vm828_vm11, %v3362_v62, %v3199_v55  ;;  %v3364_v4 = vrot.slane %v3199_v55, 4  ;;  %v3229_v27 = vpop.permute.xlu0 %3228  ;;  %v3348_v62 = vrot.slane %v12433_v54, 4 }
 0x556   : > { %v3374_v1 = vrot.slane %v3229_v27, 4  ;;  %v3377_v0 = vsel %vm828_vm11, %v3229_v27, %v3376_v39  ;;  %v3369_v7 = vperm.slane %v3363_v41, %v11262_v51  ;;  %v3008_v39 = vrot.slane %v12443_v22, 4  ;;  %v10138_v41 = vld [vmem:[%s15989_s6 + $0x78] sm:$0xff] }
 0x557   : > { %v3365_v56 = vsel %vm828_vm11, %v12363_v36, %v3364_v4  ;;  %v3385_v34 = vperm.slane %v3377_v0, %v11262_v51  ;;  %v3324_v36 = vrot.slane %v12427_v30, 4  ;;  %v10137_v4 = vld [vmem:[%s15989_s6 + $0x70] sm:$0xff]  ;;  %2824 = vmatpush.msrb.mxu1 %v10138_v41 }
 0x558   : > { %v3373_v31 = vperm.slane %v3365_v56, %v11262_v51  ;;  %v3375_v9 = vsel %vm828_vm11, %v3374_v1, %v12377_v50  ;;  %v3274_v50 = vrot.slane %v12390_v5, 4  ;;  %v3398_v60 = vrot.slane %v3369_v7, 4 }
 0x559   : > { %v3381_v35 = vperm.slane %v3375_v9, %v11262_v51  ;;  %v3401_v40 = vsel %vm828_vm11, %v3369_v7, %v3400_v45  ;;  %v3436_v53 = vrot.slane %v3385_v34, 4  ;;  %v10136_v7 = vld [vmem:[%s15989_s6 + $0x68] sm:$0xff]  ;;  %2825 = vmatpush.msrb.mxu1 %v10137_v4 }
 0x55a   : > { %v3410_v59 = vrot.slane %v3373_v31, 4  ;;  %v3413_v2 = vsel %vm828_vm11, %v3373_v31, %v3412_v47  ;;  %v3399_v31 = vsel %vm828_vm11, %v3398_v60, %v3357_v38 }
 0x55b   : > { %v3424_v47 = vrot.slane %v3381_v35, 4  ;;  %2826 = vmatpush.msrb.mxu1 %v10136_v7  ;;  %v3336_v7 = vrot.slane %v12459_v33, 4 }
 0x55c   : > { %v3411_v46 = vsel %vm828_vm11, %v3410_v59, %v3361_v37  ;;  %v3235_v42 = vpop.permute.xlu1 %3234  ;;  %v3421_v37 = vperm.slane %v3413_v2, %v11278_v11 }
 0x55d   : > { %v3386_v26 = vrot.slane %v3235_v42, 4  ;;  %v3221_v55 = vpop.permute.xlu0 %3220  ;;  %v3389_v27 = vsel %vm828_vm11, %v3235_v42, %v3388_v49  ;;  %v3417_v0 = vperm.slane %v3411_v46, %v11278_v11  ;;  %v3409_v49 = vperm.slane %v3401_v40, %v11278_v11 }
 0x55e   : > { %v3275_v21 = vsel %vm828_vm11, %v3274_v50, %v3221_v55  ;;  %v3276_v1 = vrot.slane %v3221_v55, 4  ;;  %v3397_v56 = vperm.slane %v3389_v27, %v11262_v51  ;;  %v10135_v50 = vld [vmem:[%s15989_s6 + $0x60] sm:$0xff] }
 0x55f   : > { %v3387_v16 = vsel %vm828_vm11, %v3386_v26, %v12398_v3  ;;  %v3281_v61 = vperm.slane %v3275_v21, %v11262_v51  ;;  %v3456_v40 = vrot.slane %v3417_v0, 4  ;;  %v3460_v26 = vrot.slane %v3421_v37, 4  ;;  %2827 = vmatpush.msrb.mxu1 %v10135_v50 }
 0x560   : > { %v3393_v9 = vperm.slane %v3387_v16, %v11262_v51  ;;  %v3434_v59 = vrot.slane %v3397_v56, 4  ;;  %v3437_v45 = vsel %vm828_vm11, %v3397_v56, %v3436_v53  ;;  %v3277_v3 = vsel %vm828_vm11, %v12390_v5, %v3276_v1 }
 0x561   : > { %v3310_v2 = vrot.slane %v3281_v61, 4  ;;  %v3445_v60 = vperm.slane %v3437_v45, %v11278_v11  ;;  %v3313_v42 = vsel %vm828_vm11, %v3281_v61, %v3312_v43  ;;  %v3285_v27 = vperm.slane %v3277_v3, %v11262_v51 }
 0x562   : > { %v3422_v46 = vrot.slane %v3393_v9, 4  ;;  %v3425_v38 = vsel %vm828_vm11, %v3393_v9, %v3424_v47  ;;  %v3435_v55 = vsel %vm828_vm11, %v3434_v59, %v3385_v34  ;;  %v3344_v21 = vrot.slane %v12455_v14, 4 }
 0x563   : > { %v3433_v53 = vperm.slane %v3425_v38, %v11278_v11  ;;  %v3441_v41 = vperm.slane %v3435_v55, %v11278_v11  ;;  %v3458_v4 = vrot.slane %v3445_v60, 4  ;;  %v3452_v1 = vrot.slane %v3409_v49, 4 }
 0x564   : > { %v3423_v5 = vsel %vm828_vm11, %v3422_v46, %v3381_v35  ;;  %v3461_v43 = vsel %vm828_vm11, %v3445_v60, %v3460_v26  ;;  %v3321_v16 = vperm.slane %v3313_v42, %v11278_v11  ;;  %v3405_v56 = vperm.slane %v3399_v31, %v11278_v11  ;;  %v2959_v26 = vpop.permute.xlu1 %2958 }
 0x565   : > { %v3454_v61 = vrot.slane %v3441_v41, 4  ;;  %v3457_v34 = vsel %vm828_vm11, %v3441_v41, %v3456_v40  ;;  %v3311_v35 = vsel %vm828_vm11, %v3310_v2, %v12422_v29  ;;  %v3429_v47 = vperm.slane %v3423_v5, %v11278_v11  ;;  %v2968_v41 = vpop.permute.xlu0 %2967 }
 0x566   : > { %v3450_v9 = vrot.slane %v3433_v53, 4  ;;  %v12512_v59 = vsel %vm828_vm11, %v3433_v53, %v3452_v1  ;;  %v12515_v45 = vsel %vm828_vm11, %v3458_v4, %v3421_v37  ;;  %v3610_v3 = vrot.slane %v3461_v43, 4 }
 0x567   : > { %v3612_v50 = vrot.slane %v3457_v34, 4  ;;  %v3322_v31 = vrot.slane %v3285_v27, 4  ;;  %v12518_v46 = vsel %vm828_vm11, %v3454_v61, %v3417_v0  ;;  %v12521_v38 = vperm.slane %v3311_v35, %v11278_v11 }
 0x568   : > { %v3325_v29 = vsel %vm828_vm11, %v3285_v27, %v3324_v36  ;;  %v3338_v2 = vrot.slane %v3321_v16, 4  ;;  %v3448_v60 = vrot.slane %v3405_v56, 4  ;;  %v3586_v42 = vrot.slane %v12512_v59, 4 }
 0x569   : > { %v3613_v37 = vsel %vm828_vm11, %v3461_v43, %v3612_v50  ;;  %v3323_v40 = vsel %vm828_vm11, %v3322_v31, %v12427_v30  ;;  %v3446_v53 = vrot.slane %v3429_v47, 4  ;;  %v12531_v0 = vsel %vm828_vm11, %v3450_v9, %v3409_v49 }
 0x56a   : > { %v3598_v55 = vrot.slane %v12515_v45, 4  ;;  %v3333_v5 = vperm.slane %v3325_v29, %v11278_v11  ;;  %v3600_v36 = vrot.slane %v12518_v46, 4  ;;  %v12537_v4 = vsel %vm828_vm11, %v3610_v3, %v3457_v34 }
 0x56b   : > { %v12541_v27 = vsel %vm828_vm11, %v3338_v2, %v12448_v32  ;;  %v12546_v30 = vsel %vm828_vm11, %v3321_v16, %v3340_v48  ;;  %v12549_v49 = vperm.slane %v3613_v37, %v11262_v51  ;;  %v12552_v1 = vperm.slane %v3323_v40, %v11278_v11 }
 0x56c   : > { %v3334_v43 = vrot.slane %v12521_v38, 4  ;;  %v2995_v61 = vsel %vm828_vm11, %v2994_v63, %v2959_v26  ;;  %v12560_v34 = vsel %vm828_vm11, %v12521_v38, %v3336_v7  ;;  %v2996_v32 = vrot.slane %v2959_v26, 4 }
 0x56d   : > { %v3001_v48 = vperm.slane %v2995_v61, %v11262_v51  ;;  %v3006_v16 = vrot.slane %v2968_v41, 4  ;;  %v3346_v35 = vrot.slane %v3333_v5, 4  ;;  %v12566_v9 = vsel %vm828_vm11, %v3333_v5, %v3348_v62 }
 0x56e   : > { %v3462_v3 = vrot.slane %v12541_v27, 4  ;;  %v3009_v63 = vsel %vm828_vm11, %v2968_v41, %v3008_v39  ;;  %v2997_v7 = vsel %vm828_vm11, %v12365_v23, %v2996_v32  ;;  %v3449_v37 = vsel %vm828_vm11, %v3429_v47, %v3448_v60 }
 0x56f   : > { %v3044_v50 = vrot.slane %v3001_v48, 4  ;;  %v3007_v31 = vsel %vm828_vm11, %v3006_v16, %v12443_v22  ;;  %v3017_v29 = vperm.slane %v3009_v63, %v11262_v51  ;;  %v3005_v2 = vperm.slane %v2997_v7, %v11262_v51 }
 0x570   : > { %v3013_v62 = vperm.slane %v3007_v31, %v11262_v51  ;;  %v3574_v40 = vrot.slane %v12531_v0, 4  ;;  %v3342_v26 = vrot.slane %v12552_v1, 4  ;;  %v3474_v39 = vrot.slane %v12546_v30, 4 }
 0x571   : > { %v3054_v5 = vrot.slane %v3017_v29, 4  ;;  %v3447_v23 = vsel %vm828_vm11, %v3446_v53, %v3405_v56  ;;  %v3056_v22 = vrot.slane %v3005_v2, 4  ;;  %v3498_v16 = vrot.slane %v12566_v9, 4 }
 0x572   : > { %v3042_v61 = vrot.slane %v3013_v62, 4  ;;  %v3045_v32 = vsel %vm828_vm11, %v3013_v62, %v3044_v50  ;;  %v3587_v60 = vsel %vm828_vm11, %v3586_v42, %v3449_v37  ;;  %v3575_v53 = vsel %vm828_vm11, %v3574_v40, %v3447_v23 }
 0x573   : > { %v3053_v63 = vperm.slane %v3045_v32, %v11278_v11  ;;  %v3055_v47 = vsel %vm828_vm11, %v3054_v5, %v3005_v2  ;;  %v3057_v31 = vsel %vm828_vm11, %v3017_v29, %v3056_v22  ;;  %v3576_v5 = vrot.slane %v3447_v23, 4 }
 0x574   : > { %v3043_v7 = vsel %vm828_vm11, %v3042_v61, %v3001_v48  ;;  %v3061_v56 = vperm.slane %v3055_v47, %v11278_v11  ;;  %v3065_v50 = vperm.slane %v3057_v31, %v11278_v11  ;;  %v3588_v48 = vrot.slane %v3449_v37, 4 }
 0x575   : > { %v12595_v41 = vperm.slane %v3043_v7, %v11278_v11  ;;  %v3070_v62 = vrot.slane %v3053_v63, 4  ;;  %v12601_v2 = vsel %vm828_vm11, %v3053_v63, %v3072_v18  ;;  %v12604_v29 = vperm.slane %v3587_v60, %v11262_v51 }
 0x576   : > { %v3074_v42 = vrot.slane %v3061_v56, 4  ;;  %v3078_v61 = vrot.slane %v3065_v50, 4  ;;  %v3599_v18 = vsel %vm828_vm11, %v3598_v55, %v12518_v46  ;;  %v12620_v37 = vsel %vm828_vm11, %v3346_v35, %v12433_v54 }
 0x577   : > { %v12610_v40 = vsel %vm828_vm11, %v12595_v41, %v3068_v10  ;;  %v12614_v22 = vsel %vm828_vm11, %v3070_v62, %v12402_v13  ;;  %v12625_v23 = vsel %vm828_vm11, %v3061_v56, %v3076_v8  ;;  %v3094_v10 = vrot.slane %v12601_v2, 4 }
 0x578   : > { %v12629_v32 = vperm.slane %v3575_v53, %v11262_v51  ;;  %v3066_v13 = vrot.slane %v12595_v41, 4  ;;  %v12634_v63 = vsel %vm828_vm11, %v3074_v42, %v12405_v6  ;;  %v12639_v54 = vsel %vm828_vm11, %v3065_v50, %v3080_v25 }
 0x579   : > { %v3082_v55 = vrot.slane %v12614_v22, 4  ;;  %v12646_v35 = vsel %vm828_vm11, %v3078_v61, %v12396_v15  ;;  %v3096_v47 = vrot.slane %v12610_v40, 4  ;;  %v12650_v60 = vperm.slane %v3599_v18, %v11262_v51 }
 0x57a   : > { %v12642_v8 = vpop.permute.xlu1 %2779  ;;  %v12654_v6 = vperm.slane %v12537_v4, %v11262_v51  ;;  %v3120_v25 = vrot.slane %v12625_v23, 4  ;;  %v3622_v7 = vrot.slane %v12604_v29, 4  ;;  %v3577_v31 = vsel %vm828_vm11, %v12531_v0, %v3576_v5 }
 0x57b   : > { %v3589_v15 = vsel %vm828_vm11, %v12512_v59, %v3588_v48  ;;  %v12665_v50 = vperm.slane %v3577_v31, %v11262_v51  ;;  %v3118_v62 = vrot.slane %v12639_v54, 4  ;;  %v3601_v59 = vsel %vm828_vm11, %v12515_v45, %v3600_v36 }
 0x57c   : > { %v3646_v53 = vrot.slane %v12654_v6, 4  ;;  %v12668_v4 = vperm.slane %v3589_v15, %v11262_v51  ;;  %v3623_v42 = vsel %vm828_vm11, %v3622_v7, %v12629_v32  ;;  %v3658_v0 = vrot.slane %v12549_v49, 4 }
 0x57d   : > { %v3629_v5 = vperm.slane %v3623_v42, %v11278_v11  ;;  %v12682_v61 = vperm.slane %v3601_v59, %v11262_v51  ;;  %v3106_v31 = vrot.slane %v12646_v35, 4  ;;  %v3121_v46 = vsel %vm828_vm11, %v12639_v54, %v3120_v25 }
 0x57e   : > { %v3647_v48 = vsel %vm828_vm11, %v3646_v53, %v12650_v60  ;;  %v3634_v18 = vrot.slane %v12668_v4, 4  ;;  %v3335_v45 = vsel %vm828_vm11, %v3334_v43, %v12459_v33  ;;  %v3343_v42 = vsel %vm828_vm11, %v3342_v26, %v12455_v14 }
 0x57f   : > { %v3653_v7 = vperm.slane %v3647_v48, %v11278_v11  ;;  %v3672_v36 = vrot.slane %v3629_v5, 4  ;;  %v3659_v53 = vsel %vm828_vm11, %v3658_v0, %v12682_v61  ;;  %v3463_v33 = vsel %vm828_vm11, %v3462_v3, %v3335_v45 }
 0x580   : > { %v3635_v15 = vsel %vm828_vm11, %v3634_v18, %v12665_v50  ;;  %v3665_v48 = vperm.slane %v3659_v53, %v11278_v11  ;;  %v12707_v43 = vperm.slane %v3121_v46, %v11262_v51  ;;  %v3345_v26 = vsel %vm828_vm11, %v12552_v1, %v3344_v21 }
 0x581   : > { %v3670_v25 = vrot.slane %v3653_v7, 4  ;;  %v3641_v59 = vperm.slane %v3635_v15, %v11278_v11  ;;  %v3673_v0 = vsel %vm828_vm11, %v3653_v7, %v3672_v36  ;;  %v3464_v18 = vrot.slane %v3335_v45, 4 }
 0x582   : > { %v2768_v38 = vpop.permute.xlu1 %2767  ;;  %10206 = vmatpush.xpose.msk.msra.mxu2 %vm2036_vm12, %v3673_v0  ;;  %v3678_v53 = vrot.slane %v3665_v48, 4  ;;  %v3475_v3 = vsel %vm828_vm11, %v3474_v39, %v12560_v34  ;;  %v12726_v14 = vperm.slane %v3463_v33, %v11262_v51  ;;  %v3486_v1 = vrot.slane %v12620_v37, 4 }
 0x583   : > { %v3671_v15 = vsel %vm828_vm11, %v3670_v25, %v3629_v5  ;;  %v12718_v56 = vsel %vm2036_vm12, %v12334_v28, %v2768_v38  ;;  %v12729_v21 = vperm.slane %v3475_v3, %v11262_v51  ;;  %v3488_v5 = vrot.slane %v3343_v42, 4 }
 0x584   : > { %10203 = vmatpush.xpose.msk.msra.mxu1 %vm2036_vm12, %v3671_v15  ;;  %v3679_v46 = vsel %vm828_vm11, %v3678_v53, %v3641_v59  ;;  %v3499_v28 = vsel %vm828_vm11, %v3498_v16, %v3345_v26  ;;  %v3500_v7 = vrot.slane %v3345_v26, 4  ;;  %v3680_v45 = vrot.slane %v3641_v59, 4 }
 0x585   : > { %10215 = vmatpush.xpose.msk.msrb.mxu3 %vm2036_vm12, %v3679_v46  ;;  %v3487_v39 = vsel %vm828_vm11, %v3486_v1, %v3343_v42  ;;  %v12739_v36 = vperm.slane %v3499_v28, %v11262_v51  ;;  %v3510_v25 = vrot.slane %v12729_v21, 4  ;;  %v3465_v38 = vsel %vm828_vm11, %v12541_v27, %v3464_v18 }
 0x586   : > { %v12745_v33 = vperm.slane %v3487_v39, %v11262_v51  ;;  %v3681_v0 = vsel %vm828_vm11, %v3665_v48, %v3680_v45  ;;  %v12749_v16 = vperm.slane %v3465_v38, %v11262_v51  ;;  %v16085_v59 = vrot.slane %v12560_v34, 4 }
 0x587   : > { %v3511_v26 = vsel %vm828_vm11, %v3510_v25, %v12726_v14  ;;  %v3534_v15 = vrot.slane %v12739_v36, 4  ;;  %10218 = vmatpush.xpose.msk.msra.mxu0 %vm2036_vm12, %v3681_v0  ;;  %v3489_v48 = vsel %vm828_vm11, %v12620_v37, %v3488_v5  ;;  %v3624_v53 = vrot.slane %v12629_v32, 4 }
 0x588   : > { %v3477_v42 = vsel %vm828_vm11, %v12546_v30, %v16085_v59  ;;  %v3517_v18 = vperm.slane %v3511_v26, %v11278_v11  ;;  %v12766_v34 = vperm.slane %v3489_v48, %v11262_v51  ;;  %v3501_v30 = vsel %vm828_vm11, %v12566_v9, %v3500_v7 }
 0x589   : > { %v12760_v27 = vperm.slane %v3477_v42, %v11262_v51  ;;  %v3535_v3 = vsel %vm828_vm11, %v3534_v15, %v12745_v33  ;;  %v12774_v1 = vperm.slane %v3501_v30, %v11262_v51  ;;  %v3648_v37 = vrot.slane %v12650_v60, 4 }
 0x58a   : > { %v3541_v5 = vperm.slane %v3535_v3, %v11278_v11  ;;  %v3560_v28 = vrot.slane %v3517_v18, 4  ;;  %v3625_v45 = vsel %vm828_vm11, %v12604_v29, %v3624_v53  ;;  %v3067_v9 = vsel %vm828_vm11, %v3066_v13, %v12393_v20 }
 0x58b   : > { %v3522_v46 = vrot.slane %v12760_v27, 4  ;;  %v3546_v7 = vrot.slane %v12774_v1, 4  ;;  %v12789_v39 = vperm.slane %v3625_v45, %v11278_v11  ;;  %v3649_v60 = vsel %vm828_vm11, %v12654_v6, %v3648_v37 }
 0x58c   : > { %v3558_v25 = vrot.slane %v3541_v5, 4  ;;  %v3561_v29 = vsel %vm828_vm11, %v3541_v5, %v3560_v28  ;;  %v12796_v41 = vperm.slane %v3649_v60, %v11278_v11  ;;  %v3083_v6 = vsel %vm828_vm11, %v3082_v55, %v3067_v9 }
 0x58d   : > { %v3523_v32 = vsel %vm828_vm11, %v3522_v46, %v12749_v16  ;;  %10207 = vmatpush.xpose.msk.msra.mxu2 %vm2036_vm12, %v3561_v29  ;;  %v3547_v20 = vsel %vm828_vm11, %v3546_v7, %v12766_v34  ;;  %v3676_v13 = vrot.slane %v12789_v39, 4  ;;  %v3095_v0 = vsel %vm828_vm11, %v3094_v10, %v12610_v40 }
 0x58e   : > { %v3529_v38 = vperm.slane %v3523_v32, %v11278_v11  ;;  %v3559_v59 = vsel %vm828_vm11, %v3558_v25, %v3517_v18  ;;  %v3553_v42 = vperm.slane %v3547_v20, %v11278_v11  ;;  %v12812_v15 = vperm.slane %v3083_v6, %v11262_v51 }
 0x58f   : > { %10204 = vmatpush.xpose.msk.msra.mxu1 %vm2036_vm12, %v3559_v59  ;;  %v3677_v48 = vsel %vm828_vm11, %v12796_v41, %v3676_v13  ;;  %v12818_v55 = vperm.slane %v3095_v0, %v11262_v51  ;;  %v3107_v10 = vsel %vm828_vm11, %v3106_v31, %v12634_v63  ;;  %v3119_v18 = vsel %vm828_vm11, %v3118_v62, %v12625_v23 }
 0x590   : > { %v3568_v26 = vrot.slane %v3529_v38, 4  ;;  %v3566_v30 = vrot.slane %v3553_v42, 4  ;;  %v12831_v3 = vperm.slane %v3107_v10, %v11262_v51  ;;  %v12834_v46 = vperm.slane %v3119_v18, %v11262_v51 }
 0x591   : > { %10212 = vmatpush.xpose.msk.msrb.mxu2 %vm2036_vm12, %v3677_v48  ;;  %v3130_v31 = vrot.slane %v12818_v55, 4  ;;  %v3084_v37 = vrot.slane %v3067_v9, 4  ;;  %v3097_v23 = vsel %vm828_vm11, %v12601_v2, %v3096_v47  ;;  %v16086_v54 = vrot.slane %v12634_v63, 4  ;;  %v2772_v9 = vpop.permute.xlu0 %2771  ;;  %v2776_v47 = vpop.permute.xlu2 %2775 }
 0x592   : > { %v3569_v53 = vsel %vm828_vm11, %v3553_v42, %v3568_v26  ;;  %v3567_v5 = vsel %vm828_vm11, %v3566_v30, %v3529_v38  ;;  %v3154_v28 = vrot.slane %v12834_v46, 4  ;;  %v12849_v45 = vperm.slane %v3097_v23, %v11262_v51 }
 0x593   : > { %10219 = vmatpush.xpose.msk.msra.mxu0 %vm2036_vm12, %v3569_v53  ;;  %v3109_v62 = vsel %vm828_vm11, %v12646_v35, %v16086_v54  ;;  %10216 = vmatpush.xpose.msk.msrb.mxu3 %vm2036_vm12, %v3567_v5  ;;  %v3131_v2 = vsel %vm828_vm11, %v3130_v31, %v12812_v15  ;;  %v3085_v40 = vsel %vm828_vm11, %v12614_v22, %v3084_v37  ;;  %v3166_v63 = vrot.slane %v12707_v43, 4  ;;  %v2792_v31 = vpop.permute.xlu1 %2791 }
 0x594   : > { %v12852_v32 = vperm.slane %v3109_v62, %v11262_v51  ;;  %v3512_v35 = vrot.slane %v12726_v14, 4  ;;  %v12862_v7 = vperm.slane %v3131_v2, %v11278_v11  ;;  %v3155_v60 = vsel %vm828_vm11, %v3154_v28, %v12831_v3 }
 0x595   : > { %v12867_v25 = vperm.slane %v3085_v40, %v11262_v51  ;;  %v3142_v29 = vrot.slane %v12849_v45, 4  ;;  %v12871_v38 = vperm.slane %v3155_v60, %v11278_v11  ;;  %v3536_v20 = vrot.slane %v12745_v33, 4 }
 0x596   : > { %v3167_v22 = vsel %vm828_vm11, %v3166_v63, %v12852_v32  ;;  %v3513_v14 = vsel %vm828_vm11, %v12729_v21, %v3512_v35  ;;  %v3180_v13 = vrot.slane %v12862_v7, 4  ;;  %v2796_v42 = vsel %vm2795_vm5, %v12718_v56, %v2772_v9 }
 0x597   : > { %v3143_v6 = vsel %vm828_vm11, %v3142_v29, %v12867_v25  ;;  %v3173_v0 = vperm.slane %v3167_v22, %v11278_v11  ;;  %v3521_v59 = vperm.slane %v3513_v14, %v11278_v11  ;;  %v3537_v21 = vsel %vm828_vm11, %v12739_v36, %v3536_v20 }
 0x598   : > { %v3149_v26 = vperm.slane %v3143_v6, %v11278_v11  ;;  %v3181_v33 = vsel %vm828_vm11, %v12871_v38, %v3180_v13  ;;  %v3545_v10 = vperm.slane %v3537_v21, %v11278_v11  ;;  %v2798_v30 = vsel %vm2797_vm6, %v2796_v42, %v2776_v47 }
 0x599   : > { %v3186_v48 = vrot.slane %v3173_v0, 4  ;;  %v3564_v18 = vrot.slane %v3521_v59, 4  ;;  %10208 = vmatmul.msk.f32.vlgmr.msra.gmra.mxu2 %vm2036_vm12, %v3181_v33  ;;  %v2784_v36 = vpop.permute.xlu0 %2783  ;;  %v2799_v37 = vsel %vm2269_vm13, %v2798_v30, %v12642_v8  ;;  %v3636_v54 = vrot.slane %v12665_v50, 4  ;;  %v2788_v62 = vpop.permute.xlu2 %2787 }
 0x59a   : > { %v3188_v23 = vrot.slane %v3149_v26, 4  ;;  %v2801_v5 = vsel %vm2800_vm7, %v2799_v37, %v2784_v36  ;;  %v3660_v28 = vrot.slane %v12682_v61, 4  ;;  %v3674_v63 = vrot.slane %v12796_v41, 4 }
 0x59b   : > { %v3187_v53 = vsel %vm828_vm11, %v3186_v48, %v3149_v26  ;;  %v3565_v56 = vsel %vm828_vm11, %v3545_v10, %v3564_v18  ;;  %v2803_v9 = vsel %vm2802_vm8, %v2801_v5, %v2788_v62  ;;  %v3637_v40 = vsel %vm828_vm11, %v12668_v4, %v3636_v54 }
 0x59c   : > { %10217 = vmatmul.msk.f32.vlgmr.msrb.gmra.mxu3 %vm2036_vm12, %v3187_v53  ;;  %10213 = vmatpush.xpose.msk.msrb.mxu2 %vm2036_vm12, %v3565_v56  ;;  %v3189_v2 = vsel %vm828_vm11, %v3173_v0, %v3188_v23  ;;  %v2805_v35 = vsel %vm2804_vm9, %v2803_v9, %v2792_v31  ;;  %v3645_v8 = vperm.slane %v3637_v40, %v11278_v11  ;;  %v3524_v61 = vrot.slane %v12749_v16, 4 }
 0x59d   : > { %10220 = vmatmul.msk.f32.vlgmr.msra.gmra.mxu0 %vm2036_vm12, %v3189_v2  ;;  %v3661_v50 = vsel %vm828_vm11, %v12549_v49, %v3660_v28  ;;  %10177 = vmatmul.msk.f32.vlgmr.msrb.gmra.mxu1 %vm530_vm0, %v2805_v35  ;;  %v3675_v4 = vsel %vm828_vm11, %v3674_v63, %v12789_v39  ;;  %v3548_v41 = vrot.slane %v12766_v34, 4  ;;  %v3562_v60 = vrot.slane %v3545_v10, 4 }
 0x59e   : > { %v3669_v47 = vperm.slane %v3661_v50, %v11278_v11  ;;  %v3684_v29 = vrot.slane %v3645_v8, 4  ;;  %10209 = vmatpush.xpose.msk.msrb.mxu1 %vm2036_vm12, %v3675_v4  ;;  %v3525_v22 = vsel %vm828_vm11, %v12760_v27, %v3524_v61  ;;  %v3132_v49 = vrot.slane %v12812_v15, 4 }
 0x59f   : > { %v3156_v16 = vrot.slane %v12831_v3, 4  ;;  %v3533_v14 = vperm.slane %v3525_v22, %v11278_v11  ;;  %v3549_v20 = vsel %vm828_vm11, %v12774_v1, %v3548_v41  ;;  %v3563_v15 = vsel %vm828_vm11, %v3562_v60, %v3521_v59 }
 0x5a0   : > { %v3685_v39 = vsel %vm828_vm11, %v3669_v47, %v3684_v29  ;;  %v3557_v34 = vperm.slane %v3549_v20, %v11278_v11  ;;  %v3133_v13 = vsel %vm828_vm11, %v12818_v55, %v3132_v49  ;;  %v3682_v26 = vrot.slane %v3669_v47, 4 }
 0x5a1   : > { %v3157_v6 = vsel %vm828_vm11, %v12834_v46, %v3156_v16  ;;  %10224 = vmatpush.xpose.msk.msra.mxu2 %vm2036_vm12, %v3685_v39  ;;  %v3572_v27 = vrot.slane %v3533_v14, 4  ;;  %v3141_v3 = vperm.slane %v3133_v13, %v11278_v11  ;;  %v3178_v46 = vrot.slane %v12871_v38, 4  ;;  %v12979_v41 = vpop.permute.xlu2 %10527  ;;  %v12981_v60 = vpop.permute.xlu0 %10522 }
 0x5a2   : > { %v3165_v0 = vperm.slane %v3157_v6, %v11278_v11  ;;  %10210 = vmatpush.xpose.msk.msrb.mxu1 %vm2036_vm12, %v3563_v15  ;;  %v3144_v59 = vrot.slane %v12867_v25, 4  ;;  %v3168_v33 = vrot.slane %v12852_v32, 4  ;;  %v3683_v48 = vsel %vm828_vm11, %v3682_v26, %v3645_v8  ;;  %v12985_v16 = vpop.permute.xlu1 %10517 }
 0x5a3   : > { %v3184_v1 = vrot.slane %v3141_v3, 4  ;;  %v3573_v42 = vsel %vm828_vm11, %v3557_v34, %v3572_v27  ;;  %v3179_v21 = vsel %vm828_vm11, %v3178_v46, %v12862_v7  ;;  %v3570_v10 = vrot.slane %v3557_v34, 4 }
 0x5a4   : > { %v3145_v18 = vsel %vm828_vm11, %v12849_v45, %v3144_v59  ;;  %v3169_v25 = vsel %vm828_vm11, %v12707_v43, %v3168_v33  ;;  %v3182_v53 = vrot.slane %v3165_v0, 4 }
 0x5a5   : > { %10225 = vmatpush.xpose.msk.msra.mxu2 %vm2036_vm12, %v3573_v42  ;;  %v3185_v55 = vsel %vm828_vm11, %v3165_v0, %v3184_v1  ;;  %10205 = vmatmul.msk.f32.vlgmr.msra.gmra.mxu1 %vm2036_vm12, %v3179_v21  ;;  %v3153_v38 = vperm.slane %v3145_v18, %v11278_v11  ;;  %v3177_v30 = vperm.slane %v3169_v25, %v11278_v11 }
 0x5a6   : > { %10214 = vmatmul.msk.f32.vlgmr.msrb.gmra.mxu2 %vm2036_vm12, %v3185_v55  ;;  %10221 = vmatpush.xpose.msk.msra.mxu1 %vm2036_vm12, %v3683_v48  ;;  %v3571_v32 = vsel %vm828_vm11, %v3570_v10, %v3533_v14  ;;  %v3183_v45 = vsel %vm828_vm11, %v3182_v53, %v3141_v3 }
 0x5a7   : > { %v3192_v7 = vrot.slane %v3153_v38, 4  ;;  %v3190_v36 = vrot.slane %v3177_v30, 4 }
 0x5a9   : > { %v3193_v56 = vsel %vm828_vm11, %v3177_v30, %v3192_v7  ;;  %v3191_v31 = vsel %vm828_vm11, %v3190_v36, %v3153_v38  ;;  %v12983_v22 = vpop.permute.xlu0 %10532 }
 0x5aa   : > { %10222 = vmatpush.xpose.msk.msra.mxu1 %vm2036_vm12, %v3571_v32 }
 0x5ad   : > { %10211 = vmatmul.msk.f32.vlgmr.msrb.gmra.mxu1 %vm2036_vm12, %v3183_v45 }
 0x5ae   : > { %10226 = vmatmul.msk.f32.vlgmr.msra.gmra.mxu2 %vm2036_vm12, %v3193_v56 }
 0x5b5   : > { %10223 = vmatmul.msk.f32.vlgmr.msra.gmra.mxu1 %vm2036_vm12, %v3191_v31  ;;  %v10525_v31 = vunpack.i.h.bf16 %v12981_v60 }
 0x61a   : > { %v4349_v43 = vpop.f32.mrf.mxu0  ;;  %v12964_v23 = vpop.f32.mrf.mxu1 }
 0x61b   : > { %v4425_v37 = vsel %vm2269_vm13, %v4349_v43, -inf }
 0x61c   : > { %4426 = vmax.xlane.f32.xlu2 %v4425_v37  ;;  %v4233_v54 = vpop.f32.mrf.mxu2 }
 0x61d   : > { %v4413_v35 = vsel %vm2269_vm13, %v4233_v54, -inf }
 0x61f   : > { %v4320_v62 = vpop.f32.mrf.mxu3 }
 0x620   : > { %v4422_v5 = vsel %vm2269_vm13, %v4320_v62, -inf }
 0x622   : > { %v4204_v28 = vpop.f32.mrf.mxu1 }
 0x623   : > { %v4410_v9 = vsel %vm2269_vm13, %v4204_v28, -inf }
 0x624   : > { %4423 = vmax.xlane.f32.xlu2 %v4422_v5  ;;  %4411 = vmax.xlane.f32.xlu0 %v4410_v9  ;;  %v10530_v5 = vunpack.i.h.bf16 %v12979_v41  ;;  %v3844_v9 = vrot.slane %v12344_v57, 4 }
 0x629   : > { %v4291_v2 = vpop.f32.mrf.mxu2 }
 0x62a   : > { %v4419_v40 = vsel %vm2269_vm13, %v4291_v2, -inf  ;;  %v4262_v63 = vpop.f32.mrf.mxu1 }
 0x62b   : > { %v4416_v8 = vsel %vm2269_vm13, %v4262_v63, -inf }
 0x62c   : > { %4420 = vmax.xlane.f32.xlu2 %v4419_v40  ;;  %4414 = vmax.xlane.f32.xlu0 %v4413_v35  ;;  %v3730_v40 = vrot.slane %v10525_v31, 4 }
 0x62d   : > { %4417 = vmax.xlane.f32.xlu1 %v4416_v8  ;;  %v10534_v8 = vunpack.i.l.bf16 %v12983_v22 }
 0x631   : > { %v4407_v50 = vpop.f32.mrf.mxu2 }
 0x632   : > { %v4378_v61 = vpop.f32.mrf.mxu1  ;;  %v4431_v47 = vsel %vm2269_vm13, %v4407_v50, -inf }
 0x633   : > { %v4428_v4 = vsel %vm2269_vm13, %v4378_v61, -inf }
 0x634   : > { %4429 = vmax.xlane.f32.xlu0 %v4428_v4 }
 0x635   : > { %4432 = vmax.xlane.f32.xlu1 %v4431_v47 }
 0x644   : > { %10542 = vrot.lane.b32.xlu2 %v12351_v52, %s16084_s26 }
 0x648   : > { %10547 = vrot.lane.b32.xlu0 %v12351_v52, %s16078_s25 }
 0x64e   : > { %10537 = vrot.lane.b32.xlu1 %v12351_v52, %s16080_s19 }
 0x68f   : > { %v4427_v29 = vpop.xlane.xlu2 %4426 }
 0x690   : > { %v4439_v26 = vsub.f32 %v4349_v43, %v4427_v29  ;;  %v10524_v43 = vunpack.i.l.bf16 %v12981_v60  ;;  %v3756_v60 = vrot.slane %v10530_v5, 4 }
 0x692   : > { %v4452_v48 = vmul.f32 1.442695, %v4439_v26  ;;  %v3842_v35 = vrot.slane %v10524_v43, 4 }
 0x697   : > { %v4424_v49 = vpop.xlane.xlu2 %4423  ;;  %v4412_v14 = vpop.xlane.xlu0 %4411 }
 0x698   : > { %v4434_v20 = vsub.f32 %v4204_v28, %v4412_v14  ;;  %v4438_v13 = vsub.f32 %v4320_v62, %v4424_v49  ;;  %v10535_v62 = vunpack.i.h.bf16 %v12983_v22  ;;  %v10529_v28 = vunpack.i.l.bf16 %v12979_v41 }
 0x699   : > { %v3731_v22 = vsel %vm828_vm11, %v3730_v40, %v12347_v19 }
 0x69a   : > { %v4442_v39 = vmul.f32 1.442695, %v4434_v20  ;;  %v4450_v15 = vmul.f32 1.442695, %v4438_v13  ;;  %v3754_v4 = vrot.slane %v10535_v62, 4  ;;  %v3868_v29 = vrot.slane %v10529_v28, 4 }
 0x69b   : > { %v3866_v13 = vrot.slane %v10534_v8, 4 }
 0x69c   : > { %10627 = vpow2.f32 %v4442_v39  ;;  %v3843_v39 = vsel %vm828_vm11, %v3842_v35, %v12344_v57  ;;  %v13043_v57 = vperm.slane %v3731_v22, %v11262_v51 }
 0x69f   : > { %v4421_v34 = vpop.xlane.xlu2 %4420  ;;  %v4415_v52 = vpop.xlane.xlu0 %4414 }
 0x6a0   : > { %v4437_v6 = vsub.f32 %v4291_v2, %v4421_v34  ;;  %v4418_v3 = vpop.xlane.xlu1 %4417  ;;  %v4435_v0 = vsub.f32 %v4233_v54, %v4415_v52  ;;  %v3732_v54 = vrot.slane %v12347_v19, 4  ;;  %v3869_v52 = vsel %vm828_vm11, %v10534_v8, %v3868_v29 }
 0x6a1   : > { %v4436_v1 = vsub.f32 %v4262_v63, %v4418_v3 }
 0x6a2   : > { %v4448_v27 = vmul.f32 1.442695, %v4437_v6  ;;  %v12987_v42 = vpop.eup %10627  ;;  %v4444_v55 = vmul.f32 1.442695, %v4435_v0  ;;  %v3733_v63 = vsel %vm828_vm11, %v10525_v31, %v3732_v54  ;;  %v3757_v6 = vsel %vm828_vm11, %v10535_v62, %v3756_v60 }
 0x6a3   : > { %v4446_v46 = vmul.f32 1.442695, %v4436_v1  ;;  %v4458_v59 = vsel %vm2269_vm13, %v12987_v42, 0.0  ;;  %v13026_v49 = vperm.slane %v3733_v63, %v11262_v51  ;;  %v13046_v0 = vperm.slane %v3843_v39, %v11262_v51 }
 0x6a4   : > { %10629 = vpow2.f32 %v4448_v27  ;;  %4459 = vadd.xlane.f32.xlu1 %v4458_v59  ;;  %v3765_v59 = vperm.slane %v3757_v6, %v11262_v51  ;;  %v10519_v31 = vunpack.i.l.bf16 %v12985_v16 }
 0x6a5   : > { %10631 = vpow2.f32 %v4450_v15  ;;  %v3755_v15 = vsel %vm828_vm11, %v3754_v4, %v10530_v5  ;;  %v3792_v1 = vrot.slane %v13026_v49, 4 }
 0x6a6   : > { %10633 = vpow2.f32 %v4444_v55  ;;  %v3761_v26 = vperm.slane %v3755_v15, %v11262_v51  ;;  %v3816_v5 = vrot.slane %v3765_v59, 4 }
 0x6a7   : > { %10635 = vpow2.f32 %v4446_v46  ;;  %v4430_v18 = vpop.xlane.xlu0 %4429  ;;  %v10543_v14 = vpop.permute.xlu2 %10542  ;;  %v3867_v46 = vsel %vm828_vm11, %v3866_v13, %v10529_v28 }
 0x6a8   : > { %v4433_v10 = vpop.xlane.xlu1 %4432  ;;  %v4440_v25 = vsub.f32 %v4378_v61, %v4430_v18  ;;  %10637 = vpow2.f32 %v4452_v48  ;;  %v3845_v61 = vsel %vm828_vm11, %v10524_v43, %v3844_v9  ;;  %v10545_v3 = vunpack.i.h.bf16 %v10543_v14 }
 0x6a9   : > { %v4441_v38 = vsub.f32 %v4407_v50, %v4433_v10  ;;  %v13035_v34 = vperm.slane %v3845_v61, %v11262_v51  ;;  %v10544_v19 = vunpack.i.l.bf16 %v10543_v14  ;;  %v10520_v48 = vunpack.i.h.bf16 %v12985_v16 }
 0x6aa   : > { %v12991_v21 = vpop.eup %10629  ;;  %v4454_v32 = vmul.f32 1.442695, %v4440_v25  ;;  %v3768_v18 = vrot.slane %v10545_v3, 4  ;;  %v3804_v63 = vrot.slane %v3761_v26, 4 }
 0x6ab   : > { %v4467_v33 = vsel %vm2269_vm13, %v12991_v21, 0.0  ;;  %v12995_v30 = vpop.eup %10631  ;;  %v4456_v53 = vmul.f32 1.442695, %v4441_v38  ;;  %v3904_v55 = vrot.slane %v13035_v34, 4  ;;  %v3880_v38 = vrot.slane %v10544_v19, 4 }
 0x6ac   : > { %4468 = vadd.xlane.f32.xlu2 %v4467_v33  ;;  %v12997_v7 = vpop.eup %10633  ;;  %v4470_v37 = vsel %vm2269_vm13, %v12995_v30, 0.0  ;;  %v3877_v33 = vperm.slane %v3869_v52, %v11262_v51  ;;  %v3744_v28 = vrot.slane %v10520_v48, 4 }
 0x6ad   : > { %v12999_v56 = vpop.eup %10635  ;;  %v4461_v45 = vsel %vm2269_vm13, %v12997_v7, 0.0  ;;  %10639 = vpow2.f32 %v4456_v53 }
 0x6ae   : > { %4462 = vadd.xlane.f32.xlu1 %v4461_v45  ;;  %v4464_v36 = vsel %vm2269_vm13, %v12999_v56, 0.0  ;;  %10641 = vpow2.f32 %v4454_v32  ;;  %v13014_v2 = vpop.eup %10637  ;;  %v3780_v32 = vrot.slane %v13043_v57, 4  ;;  %v3892_v45 = vrot.slane %v13046_v0, 4 }
 0x6af   : > { %4465 = vadd.xlane.f32.xlu0 %v4464_v36  ;;  %v4473_v27 = vsel %vm2269_vm13, %v13014_v2, 0.0  ;;  %v3873_v36 = vperm.slane %v3867_v46, %v11262_v51  ;;  %v3928_v35 = vrot.slane %v3877_v33, 4 }
 0x6b1   : > { %v3916_v14 = vrot.slane %v3873_v36, 4 }
 0x6b3   : > { %v13018_v50 = vpop.eup %10639 }
 0x6b4   : > { %4471 = vadd.xlane.f32.xlu2 %v4470_v37  ;;  %v13021_v47 = vpop.eup %10641  ;;  %v4479_v41 = vsel %vm2269_vm13, %v13018_v50, 0.0 }
 0x6b5   : > { %v4476_v20 = vsel %vm2269_vm13, %v13021_v47, 0.0 }
 0x6b6   : > { %4477 = vadd.xlane.f32.xlu1 %v4476_v20 }
 0x6b7   : > { %4480 = vadd.xlane.f32.xlu0 %v4479_v41 }
 0x6ba   : > { %v10548_v10 = vpop.permute.xlu0 %10547 }
 0x6bb   : > { %v10550_v25 = vunpack.i.h.bf16 %v10548_v10  ;;  %v10549_v53 = vunpack.i.l.bf16 %v10548_v10 }
 0x6bc   : > { %4474 = vadd.xlane.f32.xlu2 %v4473_v27 }
 0x6bd   : > { %v3766_v43 = vrot.slane %v10550_v25, 4  ;;  %v3769_v37 = vsel %vm828_vm11, %v10550_v25, %v3768_v18  ;;  %v3878_v54 = vrot.slane %v10549_v53, 4  ;;  %v3881_v62 = vsel %vm828_vm11, %v10549_v53, %v3880_v38 }
 0x6be   : > { %v3777_v9 = vperm.slane %v3769_v37, %v11262_v51  ;;  %v3889_v40 = vperm.slane %v3881_v62, %v11262_v51 }
 0x6bf   : > { %v3767_v8 = vsel %vm828_vm11, %v3766_v43, %v10545_v3  ;;  %v3879_v61 = vsel %vm828_vm11, %v3878_v54, %v10544_v19 }
 0x6c0   : > { %v10538_v4 = vpop.permute.xlu1 %10537  ;;  %v3773_v16 = vperm.slane %v3767_v8, %v11262_v51  ;;  %v3814_v41 = vrot.slane %v3777_v9, 4  ;;  %v3817_v60 = vsel %vm828_vm11, %v3777_v9, %v3816_v5  ;;  %v3885_v29 = vperm.slane %v3879_v61, %v11262_v51 }
 0x6c1   : > { %v13069_v20 = vperm.slane %v3817_v60, %v11278_v11  ;;  %v3926_v22 = vrot.slane %v3889_v40, 4  ;;  %v10540_v39 = vunpack.i.h.bf16 %v10538_v4  ;;  %v3929_v46 = vsel %vm828_vm11, %v3889_v40, %v3928_v35 }
 0x6c2   : > { %v3802_v13 = vrot.slane %v3773_v16, 4  ;;  %v3805_v6 = vsel %vm828_vm11, %v3773_v16, %v3804_v63  ;;  %v3815_v27 = vsel %vm828_vm11, %v3814_v41, %v3765_v59  ;;  %v3914_v15 = vrot.slane %v3885_v29, 4 }
 0x6c3   : > { %v13074_v52 = vperm.slane %v3805_v6, %v11278_v11  ;;  %v13077_v3 = vperm.slane %v3815_v27, %v11278_v11  ;;  %v3917_v19 = vsel %vm828_vm11, %v3885_v29, %v3916_v14  ;;  %v3927_v25 = vsel %vm828_vm11, %v3926_v22, %v3877_v33 }
 0x6c4   : > { %v3803_v10 = vsel %vm828_vm11, %v3802_v13, %v3761_v26  ;;  %v3915_v18 = vsel %vm828_vm11, %v3914_v15, %v3873_v36  ;;  %v3925_v38 = vperm.slane %v3917_v19, %v11278_v11  ;;  %v3856_v59 = vrot.slane %v10519_v31, 4 }
 0x6c5   : > { %v13086_v53 = vperm.slane %v3803_v10, %v11278_v11  ;;  %v3838_v43 = vrot.slane %v13069_v20, 4  ;;  %v3921_v37 = vperm.slane %v3915_v18, %v11278_v11  ;;  %v3830_v54 = vrot.slane %v13074_v52, 4 }
 0x6c6   : > { %v3933_v62 = vperm.slane %v3927_v25, %v11278_v11  ;;  %v3937_v26 = vperm.slane %v3929_v46, %v11278_v11  ;;  %v3742_v5 = vrot.slane %v10540_v39, 4  ;;  %v3834_v36 = vrot.slane %v13077_v3, 4 }
 0x6c7   : > { %v3942_v9 = vrot.slane %v3925_v38, 4  ;;  %v3745_v33 = vsel %vm828_vm11, %v10540_v39, %v3744_v28  ;;  %v10539_v40 = vunpack.i.l.bf16 %v10538_v4  ;;  %v3826_v63 = vrot.slane %v13086_v53, 4 }
 0x6c8   : > { %v3938_v35 = vrot.slane %v3921_v37, 4  ;;  %v3743_v8 = vsel %vm828_vm11, %v3742_v5, %v10520_v48  ;;  %v3753_v61 = vperm.slane %v3745_v33, %v11262_v51  ;;  %v3946_v16 = vrot.slane %v3933_v62, 4 }
 0x6c9   : > { %v3749_v41 = vperm.slane %v3743_v8, %v11262_v51  ;;  %v3854_v60 = vrot.slane %v10539_v40, 4  ;;  %v3857_v29 = vsel %vm828_vm11, %v10539_v40, %v3856_v59  ;;  %v3950_v14 = vrot.slane %v3937_v26, 4 }
 0x6ca   : > { %v3790_v22 = vrot.slane %v3753_v61, 4  ;;  %v3793_v28 = vsel %vm828_vm11, %v3753_v61, %v3792_v1  ;;  %v3865_v4 = vperm.slane %v3857_v29, %v11262_v51 }
 0x6cb   : > { %v3778_v39 = vrot.slane %v3749_v41, 4  ;;  %v3781_v48 = vsel %vm828_vm11, %v3749_v41, %v3780_v32  ;;  %v13108_v13 = vperm.slane %v3793_v28, %v11278_v11  ;;  %v3855_v6 = vsel %vm828_vm11, %v3854_v60, %v10519_v31 }
 0x6cc   : > { %v3789_v27 = vperm.slane %v3781_v48, %v11278_v11  ;;  %v3791_v15 = vsel %vm828_vm11, %v3790_v22, %v13026_v49  ;;  %v3861_v19 = vperm.slane %v3855_v6, %v11262_v51  ;;  %v3902_v1 = vrot.slane %v3865_v4, 4 }
 0x6cd   : > { %v3779_v46 = vsel %vm828_vm11, %v3778_v39, %v13043_v57  ;;  %v3797_v10 = vperm.slane %v3791_v15, %v11278_v11  ;;  %v3840_v32 = vrot.slane %v13108_v13, 4  ;;  %v13121_v18 = vsel %vm828_vm11, %v3838_v43, %v13108_v13 }
 0x6ce   : > { %v3785_v31 = vperm.slane %v3779_v46, %v11278_v11  ;;  %v3832_v25 = vrot.slane %v3789_v27, 4  ;;  %v3890_v59 = vrot.slane %v3861_v19, 4  ;;  %v3893_v49 = vsel %vm828_vm11, %v3861_v19, %v3892_v45 }
 0x6cf   : > { %v3836_v5 = vrot.slane %v3797_v10, 4  ;;  %v3901_v33 = vperm.slane %v3893_v49, %v11278_v11  ;;  %v3903_v57 = vsel %vm828_vm11, %v3902_v1, %v13035_v34  ;;  %v3905_v40 = vsel %vm828_vm11, %v3865_v4, %v3904_v55 }
 0x6d0   : > { %v3891_v43 = vsel %vm828_vm11, %v3890_v59, %v13046_v0  ;;  %v3909_v8 = vperm.slane %v3903_v57, %v11278_v11  ;;  %v3913_v61 = vperm.slane %v3905_v40, %v11278_v11  ;;  %v3978_v41 = vrot.slane %v13121_v18, 4 }
 0x6d1   : > { %v3897_v45 = vperm.slane %v3891_v43, %v11278_v11  ;;  %v13140_v60 = vsel %vm828_vm11, %v3942_v9, %v3901_v33  ;;  %v3944_v29 = vrot.slane %v3901_v33, 4  ;;  %v13143_v22 = vsel %vm828_vm11, %v3826_v63, %v3785_v31 }
 0x6d2   : > { %v3948_v34 = vrot.slane %v3909_v8, 4  ;;  %v13146_v55 = vsel %vm828_vm11, %v3950_v14, %v3913_v61  ;;  %v3952_v0 = vrot.slane %v3913_v61, 4  ;;  %v13149_v28 = vsel %vm828_vm11, %v3946_v16, %v3909_v8 }
 0x6d3   : > { %v3940_v4 = vrot.slane %v3897_v45, 4  ;;  %v4090_v39 = vrot.slane %v13146_v55, 4  ;;  %v13153_v48 = vsel %vm828_vm11, %v3938_v35, %v3897_v45  ;;  %v13156_v9 = vsel %vm828_vm11, %v3925_v38, %v3944_v29 }
 0x6d4   : > { %v13159_v63 = vsel %vm828_vm11, %v3937_v26, %v3952_v0  ;;  %v13162_v13 = vsel %vm828_vm11, %v3933_v62, %v3948_v34  ;;  %v4066_v14 = vrot.slane %v13140_v60, 4  ;;  %v4068_v16 = vrot.slane %v13153_v48, 4 }
 0x6d5   : > { %v13167_v6 = vsel %vm828_vm11, %v3921_v37, %v3940_v4  ;;  %v4078_v15 = vrot.slane %v13156_v9, 4  ;;  %v4091_v35 = vsel %vm828_vm11, %v4090_v39, %v13149_v28  ;;  %v4092_v38 = vrot.slane %v13149_v28, 4 }
 0x6d6   : > { %v4067_v26 = vsel %vm828_vm11, %v4066_v14, %v13153_v48  ;;  %v4080_v62 = vrot.slane %v13167_v6, 4  ;;  %v4097_v19 = vperm.slane %v4091_v35, %v11262_v51  ;;  %v4102_v1 = vrot.slane %v13159_v63, 4 }
 0x6d7   : > { %v4073_v46 = vperm.slane %v4067_v26, %v11262_v51  ;;  %v4079_v37 = vsel %vm828_vm11, %v4078_v15, %v13167_v6  ;;  %v4104_v59 = vrot.slane %v13162_v13, 4  ;;  %v3828_v49 = vrot.slane %v3785_v31, 4 }
 0x6d8   : > { %v4085_v33 = vperm.slane %v4079_v37, %v11262_v51  ;;  %v4103_v57 = vsel %vm828_vm11, %v4102_v1, %v13162_v13  ;;  %v4140_v40 = vrot.slane %v4097_v19, 4  ;;  %v13188_v43 = vsel %vm828_vm11, %v3830_v54, %v3789_v27 }
 0x6d9   : > { %v4109_v8 = vperm.slane %v4103_v57, %v11262_v51  ;;  %v4116_v61 = vrot.slane %v4073_v46, 4  ;;  %v13193_v45 = vsel %vm828_vm11, %v13086_v53, %v3828_v49  ;;  %v13197_v31 = vsel %vm828_vm11, %v13074_v52, %v3832_v25 }
 0x6da   : > { %v4114_v29 = vrot.slane %v4085_v33, 4  ;;  %v13202_v34 = vsel %vm828_vm11, %v3834_v36, %v3797_v10  ;;  %v13206_v54 = vsel %vm828_vm11, %v13077_v3, %v3836_v5  ;;  %v13210_v27 = vsel %vm828_vm11, %v13069_v20, %v3840_v32 }
 0x6db   : > { %v4117_v53 = vsel %vm828_vm11, %v4085_v33, %v4116_v61  ;;  %v4141_v0 = vsel %vm828_vm11, %v4109_v8, %v4140_v40  ;;  %v4138_v52 = vrot.slane %v4109_v8, 4  ;;  %v3954_v25 = vrot.slane %v13188_v43, 4 }
 0x6dc   : > { %v4125_v4 = vperm.slane %v4117_v53, %v11278_v11  ;;  %v4149_v36 = vperm.slane %v4141_v0, %v11278_v11  ;;  %v4115_v10 = vsel %vm828_vm11, %v4114_v29, %v4073_v46  ;;  %v3956_v3 = vrot.slane %v13143_v22, 4 }
 0x6dd   : > { %v4121_v5 = vperm.slane %v4115_v10, %v11278_v11  ;;  %v4139_v20 = vsel %vm828_vm11, %v4138_v52, %v4097_v19  ;;  %v3955_v32 = vsel %vm828_vm11, %v3954_v25, %v13143_v22  ;;  %v3966_v39 = vrot.slane %v13197_v31, 4 }
 0x6de   : > { %v4166_v48 = vrot.slane %v4149_v36, 4  ;;  %v4145_v13 = vperm.slane %v4139_v20, %v11278_v11  ;;  %v3961_v14 = vperm.slane %v3955_v32, %v11262_v51  ;;  %v3968_v6 = vrot.slane %v13193_v45, 4 }
 0x6df   : > { %v3967_v15 = vsel %vm828_vm11, %v3966_v39, %v13193_v45  ;;  %v3979_v35 = vsel %vm828_vm11, %v3978_v41, %v13202_v34  ;;  %v3980_v26 = vrot.slane %v13202_v34, 4  ;;  %v3990_v19 = vrot.slane %v13210_v27, 4 }
 0x6e0   : > { %v4167_v1 = vsel %vm828_vm11, %v4166_v48, %v4125_v4  ;;  %v4162_v46 = vrot.slane %v4145_v13, 4  ;;  %v3973_v37 = vperm.slane %v3967_v15, %v11262_v51  ;;  %v3985_v49 = vperm.slane %v3979_v35, %v11262_v51 }
 0x6e1   : > { %4561 = vmatpush.msrb.mxu1 %v4167_v1  ;;  %v3991_v33 = vsel %vm828_vm11, %v3990_v19, %v13206_v54  ;;  %v3992_v57 = vrot.slane %v13206_v54, 4  ;;  %v4004_v40 = vrot.slane %v3961_v14, 4  ;;  %v4168_v8 = vrot.slane %v4125_v4, 4 }
 0x6e2   : > { %v4163_v41 = vsel %vm828_vm11, %v4162_v46, %v4121_v5  ;;  %v3997_v61 = vperm.slane %v3991_v33, %v11262_v51  ;;  %v4028_v45 = vrot.slane %v3985_v49, 4  ;;  %v4069_v29 = vsel %vm828_vm11, %v13140_v60, %v4068_v16 }
 0x6e3   : > { %4515 = vmatpush.msra.mxu3 %v4163_v41  ;;  %v4005_v34 = vsel %vm828_vm11, %v3973_v37, %v4004_v40  ;;  %v4169_v53 = vsel %vm828_vm11, %v4149_v36, %v4168_v8  ;;  %v4077_v0 = vperm.slane %v4069_v29, %v11262_v51  ;;  %v4081_v54 = vsel %vm828_vm11, %v13156_v9, %v4080_v62 }
 0x6e4   : > { %v4013_v52 = vperm.slane %v4005_v34, %v11278_v11  ;;  %v4029_v25 = vsel %vm828_vm11, %v3997_v61, %v4028_v45  ;;  %4584 = vmatpush.msrb.mxu2 %v4169_v53  ;;  %v4089_v4 = vperm.slane %v4081_v54, %v11262_v51  ;;  %v4093_v60 = vsel %vm828_vm11, %v13146_v55, %v4092_v38 }
 0x6e5   : > { %v4037_v16 = vperm.slane %v4029_v25, %v11278_v11  ;;  %v4101_v36 = vperm.slane %v4093_v60, %v11262_v51  ;;  %v4105_v10 = vsel %vm828_vm11, %v13159_v63, %v4104_v59  ;;  %v4128_v9 = vrot.slane %v4077_v0, 4 }
 0x6e6   : > { %v4113_v62 = vperm.slane %v4105_v10, %v11262_v51  ;;  %v4002_v20 = vrot.slane %v3973_v37, 4  ;;  %v4026_v32 = vrot.slane %v3997_v61, 4  ;;  %v4164_v39 = vrot.slane %v4121_v5, 4 }
 0x6e7   : > { %v4054_v48 = vrot.slane %v4037_v16, 4  ;;  %v4129_v15 = vsel %vm828_vm11, %v4089_v4, %v4128_v9  ;;  %v4152_v28 = vrot.slane %v4101_v36, 4  ;;  %v4056_v35 = vrot.slane %v4013_v52, 4 }
 0x6e8   : > { %v4137_v55 = vperm.slane %v4129_v15, %v11278_v11  ;;  %v4003_v38 = vsel %vm828_vm11, %v4002_v20, %v3961_v14  ;;  %v4027_v19 = vsel %vm828_vm11, %v4026_v32, %v3985_v49  ;;  %v4165_v1 = vsel %vm828_vm11, %v4145_v13, %v4164_v39 }
 0x6e9   : > { %v4055_v63 = vsel %vm828_vm11, %v4054_v48, %v4013_v52  ;;  %v4153_v59 = vsel %vm828_vm11, %v4113_v62, %v4152_v28  ;;  %v4009_v46 = vperm.slane %v4003_v38, %v11278_v11  ;;  %v4033_v5 = vperm.slane %v4027_v19, %v11278_v11  ;;  %4538 = vmatpush.msrb.mxu0 %v4165_v1 }
 0x6ea   : > { %4562 = vmatpush.msrb.mxu1 %v4055_v63  ;;  %v4161_v37 = vperm.slane %v4153_v59, %v11278_v11  ;;  %v4057_v33 = vsel %vm828_vm11, %v4037_v16, %v4056_v35  ;;  %v4126_v40 = vrot.slane %v4089_v4, 4  ;;  %v4150_v14 = vrot.slane %v4113_v62, 4 }
 0x6eb   : > { %v4050_v8 = vrot.slane %v4033_v5, 4  ;;  %4585 = vmatpush.msrb.mxu2 %v4057_v33  ;;  %v3957_v13 = vsel %vm828_vm11, %v13188_v43, %v3956_v3  ;;  %v3969_v49 = vsel %vm828_vm11, %v13197_v31, %v3968_v6  ;;  %v3981_v41 = vsel %vm828_vm11, %v13121_v18, %v3980_v26 }
 0x6ec   : > { %v4174_v61 = vrot.slane %v4161_v37, 4  ;;  %v4127_v45 = vsel %vm828_vm11, %v4126_v40, %v4077_v0  ;;  %v4151_v29 = vsel %vm828_vm11, %v4150_v14, %v4101_v36  ;;  %v3965_v34 = vperm.slane %v3957_v13, %v11262_v51 }
 0x6ed   : > { %v4051_v53 = vsel %vm828_vm11, %v4050_v8, %v4009_v46  ;;  %v4133_v22 = vperm.slane %v4127_v45, %v11278_v11  ;;  %v4157_v54 = vperm.slane %v4151_v29, %v11278_v11  ;;  %v3977_v43 = vperm.slane %v3969_v49, %v11262_v51 }
 0x6ee   : > { %v4175_v31 = vsel %vm828_vm11, %v4174_v61, %v4137_v55  ;;  %4516 = vmatpush.msra.mxu3 %v4051_v53  ;;  %v3989_v18 = vperm.slane %v3981_v41, %v11262_v51  ;;  %v3993_v3 = vsel %vm828_vm11, %v13210_v27, %v3992_v57  ;;  %v4016_v6 = vrot.slane %v3965_v34, 4 }
 0x6ef   : > { %4653 = vmatpush.msra.mxu1 %v4175_v31  ;;  %v4170_v26 = vrot.slane %v4157_v54, 4  ;;  %v4001_v0 = vperm.slane %v3993_v3, %v11262_v51  ;;  %v4176_v52 = vrot.slane %v4137_v55, 4  ;;  %v4052_v25 = vrot.slane %v4009_v46, 4 }
 0x6f0   : > { %v4017_v4 = vsel %vm828_vm11, %v3977_v43, %v4016_v6  ;;  %v4040_v60 = vrot.slane %v3989_v18, 4  ;;  %v4014_v16 = vrot.slane %v3977_v43, 4  ;;  %v4172_v36 = vrot.slane %v4133_v22, 4 }
 0x6f1   : > { %v4171_v10 = vsel %vm828_vm11, %v4170_v26, %v4133_v22  ;;  %v4025_v9 = vperm.slane %v4017_v4, %v11278_v11  ;;  %v4177_v62 = vsel %vm828_vm11, %v4161_v37, %v4176_v52  ;;  %v4053_v27 = vsel %vm828_vm11, %v4033_v5, %v4052_v25 }
 0x6f2   : > { %4607 = vmatpush.msrb.mxu3 %v4171_v10  ;;  %v4041_v57 = vsel %vm828_vm11, %v4001_v0, %v4040_v60  ;;  %4676 = vmatpush.msra.mxu2 %v4177_v62  ;;  %v4015_v20 = vsel %vm828_vm11, %v4014_v16, %v3965_v34  ;;  %v4038_v32 = vrot.slane %v4001_v0, 4  ;;  %v4173_v39 = vsel %vm828_vm11, %v4157_v54, %v4172_v36 }
 0x6f3   : > { %v4049_v48 = vperm.slane %v4041_v57, %v11278_v11  ;;  %4539 = vmatpush.msrb.mxu0 %v4053_v27  ;;  %v4021_v15 = vperm.slane %v4015_v20, %v11278_v11  ;;  %v4064_v28 = vrot.slane %v4025_v9, 4 }
 0x6f4   : > { %v4039_v35 = vsel %vm828_vm11, %v4038_v32, %v3989_v18  ;;  %v10238_v18 = vld [vmem:[%s15989_s6 + $0x100] sm:$0xff] }
 0x6f5   : > { %4630 = vmatpush.msra.mxu0 %v4173_v39  ;;  %v4062_v55 = vrot.slane %v4049_v48, 4  ;;  %v4045_v38 = vperm.slane %v4039_v35, %v11278_v11  ;;  %v4065_v19 = vsel %vm828_vm11, %v4049_v48, %v4064_v28  ;;  %v4060_v1 = vrot.slane %v4021_v15, 4 }
 0x6f6   : > { %4677 = vmatpush.msra.mxu2 %v4065_v19 }
 0x6f7   : > { %v4063_v63 = vsel %vm828_vm11, %v4062_v55, %v4025_v9  ;;  %v4058_v59 = vrot.slane %v4045_v38, 4  ;;  %v4061_v46 = vsel %vm828_vm11, %v4045_v38, %v4060_v1 }
 0x6f8   : > { %4654 = vmatpush.msra.mxu1 %v4063_v63  ;;  %4631 = vmatpush.msra.mxu0 %v4061_v46 }
 0x6f9   : > { %v4059_v5 = vsel %vm828_vm11, %v4058_v59, %v4021_v15 }
 0x6fa   : > { %4608 = vmatpush.msrb.mxu3 %v4059_v5 }
 0x717   : > { %v4460_v37 = vpop.xlane.xlu1 %4459 }
 0x718   : > { %10643 = vrcp.f32 %v4460_v37 }
 0x71e   : > { %v10644_v40 = vpop.eup %10643 }
 0x71f   : > { %v4469_v33 = vpop.xlane.xlu2 %4468  ;;  %v4490_v14 = vmul.f32 %v10644_v40, %v12987_v42  ;;  %v10241_v42 = vld [vmem:[%s15989_s6 + $0x118] sm:$0xff] }
 0x720   : > { %10645 = vrcp.f32 %v4469_v33 }
 0x721   : > { %v4463_v8 = vpop.xlane.xlu1 %4462  ;;  %10227 = vmatmul.msk.f32.vlgmr.msra.gmra.mxu3 %vm2269_vm13, %v4490_v14 }
 0x722   : > { %10647 = vrcp.f32 %v4463_v8  ;;  %v4466_v13 = vpop.xlane.xlu0 %4465 }
 0x723   : > { %10649 = vrcp.f32 %v4466_v13 }
 0x726   : > { %v10646_v49 = vpop.eup %10645 }
 0x727   : > { %v4493_v41 = vmul.f32 %v10646_v49, %v12991_v21  ;;  %v4472_v61 = vpop.xlane.xlu2 %4471  ;;  %v10240_v21 = vld [vmem:[%s15989_s6 + $0x110] sm:$0xff] }
 0x728   : > { %10651 = vrcp.f32 %v4472_v61  ;;  %v10648_v45 = vpop.eup %10647 }
 0x729   : > { %10230 = vmatmul.msk.f32.vlgmr.msrb.gmra.mxu2 %vm2269_vm13, %v4493_v41  ;;  %v10650_v29 = vpop.eup %10649  ;;  %v4491_v34 = vmul.f32 %v10648_v45, %v12997_v7  ;;  %v4478_v22 = vpop.xlane.xlu1 %4477 }
 0x72a   : > { %v4492_v53 = vmul.f32 %v10650_v29, %v12999_v56  ;;  %v4481_v54 = vpop.xlane.xlu0 %4480  ;;  %10653 = vrcp.f32 %v4478_v22  ;;  %v10239_v56 = vld [vmem:[%s15989_s6 + $0x108] sm:$0xff] }
 0x72b   : > { %10228 = vmatmul.msk.f32.vlgmr.msrb.gmra.mxu0 %vm2269_vm13, %v4491_v34  ;;  %10655 = vrcp.f32 %v4481_v54 }
 0x72c   : > { %10229 = vmatmul.msk.f32.vlgmr.msrb.gmra.mxu1 %vm2269_vm13, %v4492_v53  ;;  %5046 = vmatpush.msrb.mxu0 %v10241_v42 }
 0x72e   : > { %v10652_v43 = vpop.eup %10651  ;;  %5047 = vmatpush.msrb.mxu0 %v10240_v21 }
 0x72f   : > { %v4494_v31 = vmul.f32 %v10652_v43, %v12995_v30  ;;  %v4475_v7 = vpop.xlane.xlu2 %4474 }
 0x730   : > { %10657 = vrcp.f32 %v4475_v7  ;;  %5048 = vmatpush.msrb.mxu0 %v10239_v56  ;;  %v10654_v3 = vpop.eup %10653 }
 0x731   : > { %10231 = vmatmul.msk.f32.vlgmr.msrb.gmra.mxu3 %vm2269_vm13, %v4494_v31  ;;  %v10656_v30 = vpop.eup %10655  ;;  %v4496_v6 = vmul.f32 %v10654_v3, %v13021_v47 }
 0x732   : > { %5049 = vmatpush.msrb.mxu0 %v10238_v18  ;;  %v4497_v0 = vmul.f32 %v10656_v30, %v13018_v50 }
 0x734   : > { %10233 = vmatmul.msk.f32.vlgmr.msra.gmra.mxu1 %vm2269_vm13, %v4496_v6  ;;  %10234 = vmatmul.msk.f32.vlgmr.msra.gmra.mxu2 %vm2269_vm13, %v4497_v0 }
 0x736   : > { %v10658_v26 = vpop.eup %10657 }
 0x737   : > { %v4495_v52 = vmul.f32 %v10658_v26, %v13014_v2 }
 0x739   : > { %10232 = vmatmul.msk.f32.vlgmr.msra.gmra.mxu0 %vm2269_vm13, %v4495_v52 }
 0x741   : > { %10258 = vmatmul.msk.f32.vlgmr.msrb.gmra.mxu0 %vm530_vm0, %v11177_v17 }
 0x749   : > { %10259 = vmatmul.msk.f32.gmra.mxu0 %vm530_vm0, %v11187_v24 }
 0x7a4   : > { %v4518_v25 = vpop.f32.mrf.mxu3 }
 0x7a5   : > { %v4684_v4 = vrot.slane %v4518_v25, 4 }
 0x7a8   : > { %v4541_v47 = vpop.f32.mrf.mxu0 }
 0x7a9   : > { %v4564_v60 = vpop.f32.mrf.mxu1  ;;  %v4696_v2 = vrot.slane %v4541_v47, 4 }
 0x7aa   : > { %v4682_v50 = vrot.slane %v4564_v60, 4  ;;  %v4685_v10 = vsel %vm828_vm11, %v4564_v60, %v4684_v4 }
 0x7ab   : > { %v4693_v17 = vperm.slane %v4685_v10, %v11262_v51 }
 0x7ac   : > { %v4587_v16 = vpop.f32.mrf.mxu2  ;;  %v4683_v62 = vsel %vm828_vm11, %v4682_v50, %v4518_v25 }
 0x7ad   : > { %v4694_v36 = vrot.slane %v4587_v16, 4  ;;  %v4697_v9 = vsel %vm828_vm11, %v4587_v16, %v4696_v2  ;;  %v4689_v57 = vperm.slane %v4683_v62, %v11262_v51  ;;  %v4744_v35 = vrot.slane %v4693_v17, 4 }
 0x7ae   : > { %v4705_v24 = vperm.slane %v4697_v9, %v11262_v51 }
 0x7af   : > { %v4695_v27 = vsel %vm828_vm11, %v4694_v36, %v4541_v47  ;;  %v4732_v19 = vrot.slane %v4689_v57, 4 }
 0x7b0   : > { %v4701_v20 = vperm.slane %v4695_v27, %v11262_v51  ;;  %v4742_v55 = vrot.slane %v4705_v24, 4  ;;  %v4745_v46 = vsel %vm828_vm11, %v4705_v24, %v4744_v35 }
 0x7b1   : > { %v4656_v32 = vpop.f32.mrf.mxu1  ;;  %v4753_v49 = vperm.slane %v4745_v46, %v11278_v11 }
 0x7b2   : > { %v4706_v48 = vrot.slane %v4656_v32, 4  ;;  %v4730_v1 = vrot.slane %v4701_v20, 4  ;;  %v4733_v33 = vsel %vm828_vm11, %v4701_v20, %v4732_v19  ;;  %v4743_v40 = vsel %vm828_vm11, %v4742_v55, %v4693_v17 }
 0x7b3   : > { %v4741_v45 = vperm.slane %v4733_v33, %v11278_v11  ;;  %v4749_v42 = vperm.slane %v4743_v40, %v11278_v11  ;;  %v4792_v31 = vrot.slane %v4753_v49, 4 }
 0x7b4   : > { %v4610_v39 = vpop.f32.mrf.mxu3  ;;  %v4731_v13 = vsel %vm828_vm11, %v4730_v1, %v4689_v57 }
 0x7b5   : > { %v4708_v15 = vrot.slane %v4610_v39, 4  ;;  %v4707_v38 = vsel %vm828_vm11, %v4706_v48, %v4610_v39  ;;  %v4737_v22 = vperm.slane %v4731_v13, %v11278_v11  ;;  %v4784_v56 = vrot.slane %v4741_v45, 4 }
 0x7b6   : > { %v4633_v28 = vpop.f32.mrf.mxu0  ;;  %v4713_v5 = vperm.slane %v4707_v38, %v11262_v51  ;;  %v4788_v47 = vrot.slane %v4749_v42, 4 }
 0x7b7   : > { %v4709_v63 = vsel %vm828_vm11, %v4656_v32, %v4708_v15  ;;  %v4720_v59 = vrot.slane %v4633_v28, 4  ;;  %v4679_v8 = vpop.f32.mrf.mxu2  ;;  %v4780_v25 = vrot.slane %v4737_v22, 4 }
 0x7b8   : > { %v4717_v37 = vperm.slane %v4709_v63, %v11262_v51  ;;  %v4718_v41 = vrot.slane %v4679_v8, 4  ;;  %v4756_v29 = vrot.slane %v4713_v5, 4 }
 0x7b9   : > { %v4721_v61 = vsel %vm828_vm11, %v4679_v8, %v4720_v59 }
 0x7ba   : > { %v4768_v14 = vrot.slane %v4717_v37, 4  ;;  %v4729_v34 = vperm.slane %v4721_v61, %v11262_v51  ;;  %v4719_v53 = vsel %vm828_vm11, %v4718_v41, %v4633_v28 }
 0x7bb   : > { %v4725_v54 = vperm.slane %v4719_v53, %v11262_v51 }
 0x7bc   : > { %v4766_v43 = vrot.slane %v4729_v34, 4  ;;  %v4769_v21 = vsel %vm828_vm11, %v4729_v34, %v4768_v14 }
 0x7bd   : > { %v4777_v7 = vperm.slane %v4769_v21, %v11278_v11  ;;  %v4754_v18 = vrot.slane %v4725_v54, 4  ;;  %v4757_v3 = vsel %vm828_vm11, %v4725_v54, %v4756_v29 }
 0x7be   : > { %v4767_v30 = vsel %vm828_vm11, %v4766_v43, %v4717_v37  ;;  %v4765_v6 = vperm.slane %v4757_v3, %v11278_v11 }
 0x7bf   : > { %v4773_v26 = vperm.slane %v4767_v30, %v11278_v11  ;;  %v4790_v0 = vrot.slane %v4777_v7, 4  ;;  %v4793_v52 = vsel %vm828_vm11, %v4777_v7, %v4792_v31  ;;  %v4755_v4 = vsel %vm828_vm11, %v4754_v18, %v4713_v5 }
 0x7c0   : > { %v4761_v60 = vperm.slane %v4755_v4, %v11278_v11  ;;  %v4782_v16 = vrot.slane %v4765_v6, 4  ;;  %v4785_v50 = vsel %vm828_vm11, %v4765_v6, %v4784_v56  ;;  %v4830_v10 = vrot.slane %v4793_v52, 4 }
 0x7c1   : > { %v4786_v36 = vrot.slane %v4773_v26, 4  ;;  %v4806_v2 = vrot.slane %v4785_v50, 4  ;;  %v4789_v9 = vsel %vm828_vm11, %v4773_v26, %v4788_v47  ;;  %v4791_v62 = vsel %vm828_vm11, %v4790_v0, %v4753_v49 }
 0x7c2   : > { %v4778_v27 = vrot.slane %v4761_v60, 4  ;;  %v4781_v17 = vsel %vm828_vm11, %v4761_v60, %v4780_v25  ;;  %v4783_v24 = vsel %vm828_vm11, %v4782_v16, %v4741_v45  ;;  %v4818_v28 = vrot.slane %v4791_v62, 4 }
 0x7c3   : > { %v4787_v57 = vsel %vm828_vm11, %v4786_v36, %v4749_v42  ;;  %v4794_v20 = vrot.slane %v4783_v24, 4  ;;  %v4808_v32 = vrot.slane %v4781_v17, 4  ;;  %v4807_v39 = vsel %vm828_vm11, %v4806_v2, %v4781_v17 }
 0x7c4   : > { %v4779_v48 = vsel %vm828_vm11, %v4778_v27, %v4737_v22  ;;  %v4813_v15 = vperm.slane %v4807_v39, %v11262_v51  ;;  %v4820_v35 = vrot.slane %v4787_v57, 4  ;;  %v4831_v38 = vsel %vm828_vm11, %v4830_v10, %v4789_v9 }
 0x7c5   : > { %v4795_v55 = vsel %vm828_vm11, %v4794_v20, %v4779_v48  ;;  %v4832_v19 = vrot.slane %v4789_v9, 4  ;;  %v4819_v63 = vsel %vm828_vm11, %v4818_v28, %v4787_v57  ;;  %v4837_v59 = vperm.slane %v4831_v38, %v11262_v51 }
 0x7c6   : > { %v4801_v1 = vperm.slane %v4795_v55, %v11262_v51  ;;  %v4842_v46 = vrot.slane %v4813_v15, 4  ;;  %v4825_v5 = vperm.slane %v4819_v63, %v11262_v51  ;;  %v4796_v37 = vrot.slane %v4779_v48, 4  ;;  %v5051_v48 = vpop.f32.mrf.mxu0 }
 0x7c7   : > { %v4809_v33 = vsel %vm828_vm11, %v4785_v50, %v4808_v32  ;;  %v4821_v40 = vsel %vm828_vm11, %v4791_v62, %v4820_v35  ;;  %v4866_v8 = vrot.slane %v4837_v59, 4  ;;  %v4833_v22 = vsel %vm828_vm11, %v4793_v52, %v4832_v19  ;;  %v10564_v32 = vld [vmem:[%s15990_s7 + $0x8] ss:$0 sm:$0xff] }
 0x7c8   : > { %v4843_v14 = vsel %vm828_vm11, %v4842_v46, %v4801_v1  ;;  %v4844_v13 = vrot.slane %v4801_v1, 4  ;;  %v4817_v49 = vperm.slane %v4809_v33, %v11262_v51  ;;  %v4868_v61 = vrot.slane %v4825_v5, 4  ;;  %v10195_v46 = vld [vmem:[%s15989_s6 + $0xf0] sm:$0xff] }
 0x7c9   : > { %v4849_v41 = vperm.slane %v4843_v14, %v11278_v11  ;;  %v4797_v45 = vsel %vm828_vm11, %v4783_v24, %v4796_v37  ;;  %v4829_v29 = vperm.slane %v4821_v40, %v11262_v51  ;;  %v4867_v34 = vsel %vm828_vm11, %v4866_v8, %v4825_v5  ;;  %v10194_v5 = vld [vmem:[%s15989_s6 + $0xe8] sm:$0xff]  ;;  %v10193_v37 = vld [vmem:[%s15989_s6 + $0xe0] sm:$0xff] }
 0x7ca   : > { %v4845_v42 = vsel %vm828_vm11, %v4813_v15, %v4844_v13  ;;  %v4805_v53 = vperm.slane %v4797_v45, %v11262_v51  ;;  %v4873_v54 = vperm.slane %v4867_v34, %v11278_v11  ;;  %v4869_v31 = vsel %vm828_vm11, %v4837_v59, %v4868_v61  ;;  %v10196_v59 = vld [vmem:[%s15989_s6 + $0xf8] sm:$0xff] }
 0x7cb   : > { %v4892_v43 = vrot.slane %v4849_v41, 4  ;;  %v4853_v21 = vperm.slane %v4845_v42, %v11278_v11  ;;  %v4877_v7 = vperm.slane %v4869_v31, %v11278_v11  ;;  %v4841_v56 = vperm.slane %v4833_v22, %v11262_v51  ;;  %4959 = vmatpush.msra.mxu3 %v10196_v59 }
 0x7cc   : > { %v4854_v18 = vrot.slane %v4817_v49, 4  ;;  %v4856_v3 = vrot.slane %v4805_v53, 4  ;;  %v4890_v30 = vrot.slane %v4873_v54, 4  ;;  %v4880_v0 = vrot.slane %v4829_v29, 4 }
 0x7cd   : > { %v4893_v6 = vsel %vm828_vm11, %v4873_v54, %v4892_v43  ;;  %v4896_v26 = vrot.slane %v4853_v21, 4  ;;  %v4894_v52 = vrot.slane %v4877_v7, 4  ;;  %v4878_v25 = vrot.slane %v4841_v56, 4  ;;  %4960 = vmatpush.msra.mxu3 %v10195_v46  ;;  %v10563_v54 = vld [vmem:[%s15990_s7 + $0x3] ss:$0 sm:$0xff] }
 0x7ce   : > { %4907 = vrot.lane.b32.xlu0 %v4893_v6, %s16087_s29  ;;  %v4857_v47 = vsel %vm828_vm11, %v4817_v49, %v4856_v3  ;;  %v4855_v60 = vsel %vm828_vm11, %v4854_v18, %v4805_v53  ;;  %v4881_v50 = vsel %vm828_vm11, %v4841_v56, %v4880_v0  ;;  %v4891_v9 = vsel %vm828_vm11, %v4890_v30, %v4849_v41  ;;  %v5054_v19 = vpop.f32.mrf.mxu0  ;;  %v10569_v46 = vld [vmem:[%s15990_s7 + $0xa] ss:$0 sm:$0xff] }
 0x7cf   : > { %v4897_v4 = vsel %vm828_vm11, %v4877_v7, %v4896_v26  ;;  %v4865_v16 = vperm.slane %v4857_v47, %v11278_v11  ;;  %v4895_v36 = vsel %vm828_vm11, %v4894_v52, %v4853_v21  ;;  %v4879_v2 = vsel %vm828_vm11, %v4878_v25, %v4829_v29  ;;  %4961 = vmatpush.msra.mxu3 %v10194_v5  ;;  %v10565_v21 = vld [vmem:[%s15990_s7 + $0x7] ss:$0 sm:$0xff]  ;;  %v10246_v25 = vld [vmem:[%s15989_s6 + $0x138] sm:$0xff] }
 0x7d0   : > { %4915 = vrot.lane.b32.xlu2 %v4897_v4, %s16088_s1  ;;  %v4889_v10 = vperm.slane %v4881_v50, %v11278_v11  ;;  %4911 = vrot.lane.b32.xlu1 %v4895_v36, %s16089_s24  ;;  %v4885_v62 = vperm.slane %v4879_v2, %v11278_v11  ;;  %v4861_v27 = vperm.slane %v4855_v60, %v11278_v11  ;;  %v10800_v7 = vld [vmem:[%s11082_s21] sm:$0xff]  ;;  %v10251_v47 = vld [vmem:[%s15989_s6 + $0x158] sm:$0xff] }
 0x7d1   : > { %v4904_v57 = vrot.slane %v4865_v16, 4  ;;  %v5052_v35 = vadd.f32 %v10564_v32, %v5051_v48  ;;  %v5055_v1 = vadd.f32 %v10564_v32, %v5054_v19  ;;  %4962 = vmatpush.msra.mxu3 %v10193_v37  ;;  %v2830_v43 = vadd.f32 %v10563_v54, %v12964_v23  ;;  %v10245_v4 = vld [vmem:[%s15989_s6 + $0x130] sm:$0xff]  ;;  %5077 = vmatpush.msrb.mxu1 %v10246_v25  ;;  %v10249_v50 = vld [vmem:[%s15989_s6 + $0x148] sm:$0xff]  ;;  %v10243_v36 = vld [vmem:[%s15989_s6 + $0x120] sm:$0xff] }
 0x7d2   : > { %v4898_v17 = vrot.slane %v4885_v62, 4  ;;  %v4902_v24 = vrot.slane %v4889_v10, 4  ;;  %v4900_v28 = vrot.slane %v4861_v27, 4  ;;  %5100 = vmatpush.msrb.mxu2 %v10251_v47  ;;  %v10250_v60 = vld [vmem:[%s15989_s6 + $0x150] sm:$0xff]  ;;  %v10248_v2 = vld [vmem:[%s15989_s6 + $0x140] sm:$0xff] }
 0x7d3   : > { %v4905_v15 = vsel %vm828_vm11, %v4889_v10, %v4904_v57  ;;  %v13429_v38 = vmul.f32 0.5, %v5052_v35  ;;  %v13437_v63 = vmul.f32 0.5, %v5055_v1  ;;  %v4967_v56 = vadd.f32 %v10800_v7, %v2830_v43  ;;  %5078 = vmatpush.msrb.mxu1 %v10245_v4  ;;  %v10568_v19 = vld [vmem:[%s15990_s7 + $0x9] ss:$0 sm:$0xff] }
 0x7d4   : > { %v4899_v20 = vsel %vm828_vm11, %v4898_v17, %v4861_v27  ;;  %v4903_v39 = vsel %vm828_vm11, %v4902_v24, %v4865_v16  ;;  %v4901_v55 = vsel %vm828_vm11, %v4885_v62, %v4900_v28  ;;  %v10244_v16 = vld [vmem:[%s15989_s6 + $0x128] sm:$0xff]  ;;  %5101 = vmatpush.msrb.mxu2 %v10250_v60  ;;  %v10567_v28 = vld [vmem:[%s15988_s5 + $0x3] ss:$0 sm:$0xff] }
 0x7d5   : > { %5079 = vmatpush.msrb.mxu1 %v10244_v16 }
 0x7d6   : > { %4919 = vrot.lane.b32.xlu0 %v4899_v20, %s16090_s22  ;;  %5102 = vmatpush.msrb.mxu2 %v10249_v50 }
 0x7d7   : > { %5080 = vmatpush.msrb.mxu1 %v10243_v36 }
 0x7d8   : > { %4927 = vrot.lane.b32.xlu2 %v4903_v39, %s16091_s16  ;;  %4931 = vrot.lane.b32.xlu1 %v4905_v15, %s16092_s14  ;;  %v10566_v39 = vld [vmem:[%s15987_s4 + $0x3] ss:$0 sm:$0xff] }
 0x7d9   : > { %5103 = vmatpush.msrb.mxu2 %v10248_v2 }
 0x7de   : > { %4923 = vrot.lane.b32.xlu0 %v4901_v55, %s16093_s13 }
 0x7e0   : > { %5128 = vrot.lane.b32.xlu1 %v13429_v38, %s16083_s0 }
 0x7e8   : > { %5116 = vrot.lane.b32.xlu1 %v13429_v38, %s16079_s27 }
 0x7f0   : > { %5140 = vrot.lane.b32.xlu1 %v13429_v38, %s16081_s20 }
 0x7f8   : > { %5130 = vrot.lane.b32.xlu1 %v13437_v63, %s16083_s0 }
 0x82a   : > { %v4916_v40 = vpop.permute.xlu2 %4915 }
 0x832   : > { %v4928_v29 = vpop.permute.xlu2 %4927 }
 0x840   : > { %v4908_v33 = vpop.permute.xlu0 %4907 }
 0x841   : > { %v4934_v13 = vsel %vm2036_vm12, %v4891_v9, %v4908_v33 }
 0x842   : > { %v4912_v14 = vpop.permute.xlu1 %4911 }
 0x843   : > { %v4935_v49 = vsel %vm2795_vm5, %v4934_v13, %v4912_v14 }
 0x844   : > { %v4936_v41 = vsel %vm2797_vm6, %v4935_v49, %v4916_v40 }
 0x848   : > { %v4920_v8 = vpop.permute.xlu0 %4919 }
 0x849   : > { %v4937_v61 = vsel %vm2269_vm13, %v4936_v41, %v4920_v8 }
 0x84a   : > { %v4932_v42 = vpop.permute.xlu1 %4931 }
 0x850   : > { %v4924_v45 = vpop.permute.xlu0 %4923 }
 0x851   : > { %v4938_v34 = vsel %vm2800_vm7, %v4937_v61, %v4924_v45 }
 0x852   : > { %v4939_v53 = vsel %vm2802_vm8, %v4938_v34, %v4928_v29  ;;  %v5129_v33 = vpop.permute.xlu1 %5128  ;;  %v5154_v29 = vrot.slane %v13429_v38, 4 }
 0x853   : > { %v4940_v22 = vsel %vm2804_vm9, %v4939_v53, %v4932_v42  ;;  %v5178_v43 = vrot.slane %v5129_v33, 4 }
 0x854   : > { %10235 = vmatmul.msk.f32.vlgmr.msra.gmra.mxu3 %vm530_vm0, %v4940_v22 }
 0x85a   : > { %v5117_v14 = vpop.permute.xlu1 %5116 }
 0x85b   : > { %v5152_v41 = vrot.slane %v5117_v14, 4  ;;  %v5155_v22 = vsel %vm828_vm11, %v5117_v14, %v5154_v29 }
 0x85d   : > { %v5153_v53 = vsel %vm828_vm11, %v5152_v41, %v13429_v38 }
 0x862   : > { %v5141_v13 = vpop.permute.xlu1 %5140 }
 0x863   : > { %v5176_v45 = vrot.slane %v5141_v13, 4 }
 0x8d7   : > { %v4964_v31 = vpop.f32.mrf.mxu3 }
 0x8d8   : > { %v4965_v18 = vadd.f32 %v10565_v21, %v4964_v31  ;;  %v5177_v21 = vsel %vm828_vm11, %v5176_v45, %v5129_v33 }
 0x8da   : > { %v4968_v3 = vadd.f32 %v4967_v56, %v4965_v18  ;;  %v5159_v18 = vperm.slane %v5153_v53, %v11262_v51 }
 0x8dc   : > { %v4973_v30 = vsel %vm530_vm0, %v4968_v3, 0.0  ;;  %9902 = vst.msk [vmem:[%s13474_s3] sm:$0xff] %vm530_vm0, %v4968_v3  ;;  %v5202_v4 = vrot.slane %v5159_v18, 4 }
 0x8dd   : > { %4974 = vadd.xlane.f32.xlu0 %v4973_v30  ;;  %v5179_v30 = vsel %vm828_vm11, %v5141_v13, %v5178_v43 }
 0x8de   : > { %v5187_v25 = vperm.slane %v5179_v30, %v11262_v51 }
 0x8f1   : > { %5110 = vrot.lane.b32.xlu0 %v13429_v38, %s16082_s28 }
 0x8f9   : > { %5134 = vrot.lane.b32.xlu0 %v13429_v38, %s16084_s26 }
 0x901   : > { %5146 = vrot.lane.b32.xlu0 %v13429_v38, %s16078_s25 }
 0x909   : > { %5118 = vrot.lane.b32.xlu0 %v13437_v63, %s16079_s27 }
 0x911   : > { %5124 = vrot.lane.b32.xlu0 %v13437_v63, %s16080_s19 }
 0x950   : > { %v4975_v23 = vpop.xlane.xlu0 %4974 }
 0x951   : > { %v4976_v6 = vmul.f32 %v4975_v23, %v11097_v12 }
 0x953   : > { %v4977_v26 = vsub.f32 %v4968_v3, %v4976_v6  ;;  %v5163_v3 = vperm.slane %v5155_v22, %v11262_v51 }
 0x955   : > { %v4978_v0 = vmul.f32 %v4977_v26, %v4977_v26  ;;  %v5214_v60 = vrot.slane %v5163_v3, 4 }
 0x957   : > { %v4979_v52 = vsel %vm530_vm0, %v4978_v0, 0.0 }
 0x958   : > { %4980 = vadd.xlane.f32.xlu2 %v4979_v52 }
 0x963   : > { %v5111_v40 = vpop.permute.xlu0 %5110 }
 0x964   : > { %v5166_v54 = vrot.slane %v5111_v40, 4 }
 0x96b   : > { %v5135_v8 = vpop.permute.xlu0 %5134 }
 0x96c   : > { %v5190_v31 = vrot.slane %v5135_v8, 4 }
 0x970   : > { %5122 = vrot.lane.b32.xlu2 %v13429_v38, %s16080_s19  ;;  %v5183_v38 = vperm.slane %v5177_v21, %v11262_v51 }
 0x972   : > { %v5226_v50 = vrot.slane %v5183_v38, 4 }
 0x973   : > { %v5147_v61 = vpop.permute.xlu0 %5146 }
 0x974   : > { %v5188_v42 = vrot.slane %v5147_v61, 4  ;;  %v5191_v6 = vsel %vm828_vm11, %v5147_v61, %v5190_v31 }
 0x975   : > { %v5199_v16 = vperm.slane %v5191_v6, %v11262_v51  ;;  %v5266_v6 = vrot.slane %v13437_v63, 4 }
 0x976   : > { %v5189_v23 = vsel %vm828_vm11, %v5188_v42, %v5135_v8 }
 0x977   : > { %v5195_v47 = vperm.slane %v5189_v23, %v11262_v51 }
 0x9cb   : > { %v4981_v10 = vpop.xlane.xlu2 %4980 }
 0x9cc   : > { %v4982_v9 = vmul.f32 %v4981_v10, %v11097_v12 }
 0x9ce   : > { %v4983_v62 = vadd.f32 1e-05, %v4982_v9 }
 0x9d0   : > { %10659 = vrsqrt.f32 %v4983_v62  ;;  %vm4990_vm14 = vweird.f32 %v4983_v62 }
 0x9d3   : > { %v5123_v49 = vpop.permute.xlu2 %5122 }
 0x9d4   : > { %v5164_v34 = vrot.slane %v5123_v49, 4  ;;  %v5167_v56 = vsel %vm828_vm11, %v5123_v49, %v5166_v54 }
 0x9d5   : > { %v5175_v52 = vperm.slane %v5167_v56, %v11262_v51 }
 0x9d6   : > { %v10660_v27 = vpop.eup %10659  ;;  %v5165_v7 = vsel %vm828_vm11, %v5164_v34, %v5111_v40 }
 0x9d7   : > { %v4985_v17 = vmul.f32 %v10660_v27, %v4983_v62  ;;  %vm4991_vm10 = vweird.f32 %v10660_v27  ;;  %v5171_v0 = vperm.slane %v5165_v7, %v11262_v51  ;;  %v5212_v10 = vrot.slane %v5175_v52, 4  ;;  %v5119_v7 = vpop.permute.xlu0 %5118 }
 0x9d8   : > { %vm4992_vm15 = vmor %vm4990_vm14, %vm4991_vm10  ;;  %v5215_v9 = vsel %vm828_vm11, %v5175_v52, %v5214_v60  ;;  %v5238_v62 = vrot.slane %v5187_v25, 4  ;;  %v5267_v60 = vsel %vm828_vm11, %v5119_v7, %v5266_v6 }
 0x9d9   : > { %v4986_v24 = vmul.f32 %v10660_v27, %v4985_v17  ;;  %v5200_v36 = vrot.slane %v5171_v0, 4  ;;  %v5203_v2 = vsel %vm828_vm11, %v5171_v0, %v5202_v4  ;;  %v5224_v17 = vrot.slane %v5195_v47, 4 }
 0x9da   : > { %v5264_v4 = vrot.slane %v5119_v7, 4 }
 0x9db   : > { %v4987_v57 = vmul.f32 0.5, %v4986_v24  ;;  %v5236_v24 = vrot.slane %v5199_v16, 4 }
 0x9dd   : > { %v4988_v20 = vsub.f32 1.5, %v4987_v57  ;;  %v5239_v57 = vsel %vm828_vm11, %v5199_v16, %v5238_v62 }
 0x9df   : > { %v4989_v32 = vmul.f32 %v10660_v27, %v4988_v20  ;;  %v5211_v20 = vperm.slane %v5203_v2, %v11278_v11 }
 0x9e1   : > { %v4993_v48 = vsel %vm4992_vm15, %v10660_v27, %v4989_v32  ;;  %v5227_v27 = vsel %vm828_vm11, %v5195_v47, %v5226_v50  ;;  %v5223_v32 = vperm.slane %v5215_v9, %v11278_v11  ;;  %v5254_v33 = vrot.slane %v5211_v20, 4 }
 0x9e2   : > { %v4994_v15 = vmul.f32 %v4993_v48, %v4977_v26  ;;  %v13582_v26 = vpop.permute.xlu1 %5130  ;;  %v5201_v48 = vsel %vm828_vm11, %v5200_v36, %v5159_v18  ;;  %v13628_v9 = vperm.slane %v5267_v60, %v11262_v51 }
 0x9e3   : > { %v5262_v40 = vrot.slane %v5223_v32, 4 }
 0x9e4   : > { %v4998_v35 = vmul.f32 %v10566_v39, %v4994_v15  ;;  %v5235_v39 = vperm.slane %v5227_v27, %v11278_v11  ;;  %v5213_v15 = vsel %vm828_vm11, %v5212_v10, %v5163_v3  ;;  %v5265_v27 = vsel %vm828_vm11, %v5264_v4, %v13437_v63 }
 0x9e6   : > { %v13523_v55 = vadd.f32 %v10567_v28, %v4998_v35  ;;  %v5225_v35 = vsel %vm828_vm11, %v5224_v17, %v5183_v38  ;;  %v5252_v14 = vrot.slane %v5235_v39, 4  ;;  %v5255_v45 = vsel %vm828_vm11, %v5235_v39, %v5254_v33 }
 0x9e7   : > { %v5231_v8 = vperm.slane %v5225_v35, %v11278_v11  ;;  %v5388_v21 = vrot.slane %v5255_v45, 4  ;;  %v5290_v35 = vrot.slane %v13582_v26, 4 }
 0x9e8   : > { %10260 = vmatmul.msk.f32.vlgmr.msrb.gmra.mxu1 %vm530_vm0, %v13523_v55  ;;  %10261 = vmatmul.msk.f32.vlgmr.msrb.gmra.mxu2 %vm530_vm0, %v13523_v55  ;;  %v5253_v41 = vsel %vm828_vm11, %v5252_v14, %v5211_v20 }
 0x9e9   : > { %v5248_v22 = vrot.slane %v5231_v8, 4  ;;  %v5376_v43 = vrot.slane %v5253_v41, 4 }
 0xa65   : > { %v5082_v1 = vpop.f32.mrf.mxu1 }
 0xa66   : > { %v13532_v59 = vadd.f32 %v10568_v19, %v5082_v1  ;;  %v5237_v19 = vsel %vm828_vm11, %v5236_v24, %v5187_v25  ;;  %v5247_v1 = vperm.slane %v5239_v57, %v11278_v11  ;;  %v5125_v57 = vpop.permute.xlu0 %5124 }
 0xa67   : > { %v5243_v13 = vperm.slane %v5237_v19, %v11278_v11  ;;  %v13634_v19 = vperm.slane %v5265_v27, %v11262_v51  ;;  %v5276_v33 = vrot.slane %v5125_v57, 4 }
 0xa68   : > { %5607 = vrot.lane.b32.xlu2 %v13532_v59, %s16080_s19  ;;  %5610 = vrot.lane.b32.xlu1 %v13532_v59, %s16083_s0  ;;  %v5260_v49 = vrot.slane %v5247_v1, 4  ;;  %v5263_v34 = vsel %vm828_vm11, %v5247_v1, %v5262_v40  ;;  %v5326_v1 = vrot.slane %v13628_v9, 4 }
 0xa69   : > { %v5256_v54 = vrot.slane %v5243_v13, 4  ;;  %v5412_v31 = vrot.slane %v5263_v34, 4 }
 0xa6a   : > { %v5261_v42 = vsel %vm828_vm11, %v5260_v49, %v5223_v32 }
 0xa6b   : > { %v5105_v5 = vpop.f32.mrf.mxu2  ;;  %v5400_v18 = vrot.slane %v5261_v42, 4 }
 0xa6c   : > { %v13541_v37 = vadd.f32 %v10569_v46, %v5105_v5  ;;  %v5207_v46 = vperm.slane %v5201_v48, %v11278_v11  ;;  %v5219_v5 = vperm.slane %v5213_v15, %v11278_v11 }
 0xa6e   : > { %5856 = vrot.lane.b32.xlu0 %v13541_v37, %s16083_s0  ;;  %v5250_v61 = vrot.slane %v5207_v46, 4  ;;  %v5258_v29 = vrot.slane %v5219_v5, 4  ;;  %v5249_v3 = vsel %vm828_vm11, %v5248_v22, %v5207_v46  ;;  %v5257_v23 = vsel %vm828_vm11, %v5256_v54, %v5219_v5 }
 0xa6f   : > { %v5377_v0 = vsel %vm828_vm11, %v5376_v43, %v5249_v3  ;;  %v5401_v47 = vsel %vm828_vm11, %v5400_v18, %v5257_v23  ;;  %v5402_v62 = vrot.slane %v5257_v23, 4  ;;  %v5378_v48 = vrot.slane %v5249_v3, 4 }
 0xa70   : > { %5112 = vrot.lane.b32.xlu2 %v13437_v63, %s16082_s28  ;;  %5601 = vrot.lane.b32.xlu1 %v13532_v59, %s16082_s28  ;;  %v5259_v56 = vsel %vm828_vm11, %v5243_v13, %v5258_v29  ;;  %v5251_v30 = vsel %vm828_vm11, %v5231_v8, %v5250_v61  ;;  %v5383_v50 = vperm.slane %v5377_v0, %v11262_v51  ;;  %v5624_v13 = vrot.slane %v13532_v59, 4 }
 0xa71   : > { %v5389_v52 = vsel %vm828_vm11, %v5388_v21, %v5251_v30  ;;  %v5413_v25 = vsel %vm828_vm11, %v5412_v31, %v5259_v56  ;;  %v5407_v10 = vperm.slane %v5401_v47, %v11262_v51  ;;  %v5414_v17 = vrot.slane %v5259_v56, 4 }
 0xa72   : > { %v5395_v36 = vperm.slane %v5389_v52, %v11262_v51  ;;  %v5419_v2 = vperm.slane %v5413_v25, %v11262_v51  ;;  %v5390_v24 = vrot.slane %v5251_v30, 4  ;;  %v5426_v39 = vrot.slane %v5383_v50, 4 }
 0xa73   : > { %v5450_v15 = vrot.slane %v5407_v10, 4  ;;  %v5403_v46 = vsel %vm828_vm11, %v5261_v42, %v5402_v62  ;;  %v5379_v54 = vsel %vm828_vm11, %v5253_v41, %v5378_v48  ;;  %v5314_v3 = vrot.slane %v13634_v19, 4 }
 0xa74   : > { %v5424_v20 = vrot.slane %v5395_v36, 4  ;;  %v5448_v32 = vrot.slane %v5419_v2, 4  ;;  %v5391_v8 = vsel %vm828_vm11, %v5255_v45, %v5390_v24  ;;  %v5427_v29 = vsel %vm828_vm11, %v5395_v36, %v5426_v39 }
 0xa75   : > { %v5451_v42 = vsel %vm828_vm11, %v5419_v2, %v5450_v15  ;;  %v13655_v31 = vperm.slane %v5391_v8, %v11262_v51  ;;  %v5435_v41 = vperm.slane %v5427_v29, %v11278_v11  ;;  %v13665_v6 = vperm.slane %v5379_v54, %v11262_v51 }
 0xa76   : > { %5859 = vrot.lane.b32.xlu0 %v13541_v37, %s16084_s26  ;;  %v5425_v49 = vsel %vm828_vm11, %v5424_v20, %v5383_v50  ;;  %v5449_v61 = vsel %vm828_vm11, %v5448_v32, %v5407_v10  ;;  %v5459_v23 = vperm.slane %v5451_v42, %v11278_v11 }
 0xa77   : > { %v5431_v56 = vperm.slane %v5425_v49, %v11278_v11  ;;  %v5455_v18 = vperm.slane %v5449_v61, %v11278_v11  ;;  %v5478_v10 = vrot.slane %v5435_v41, 4  ;;  %v5436_v62 = vrot.slane %v13655_v31, 4 }
 0xa78   : > { %5142 = vrot.lane.b32.xlu2 %v13437_v63, %s16081_s20  ;;  %5604 = vrot.lane.b32.xlu1 %v13532_v59, %s16079_s27 }
 0xa79   : > { %v5472_v36 = vrot.slane %v5455_v18, 4  ;;  %v5474_v2 = vrot.slane %v5431_v56, 4 }
 0xa80   : > { %5847 = vrot.lane.b32.xlu2 %v13541_v37, %s16082_s28  ;;  %5613 = vrot.lane.b32.xlu1 %v13532_v59, %s16084_s26 }
 0xa88   : > { %5616 = vrot.lane.b32.xlu1 %v13532_v59, %s16081_s20 }
 0xa90   : > { %5619 = vrot.lane.b32.xlu1 %v13532_v59, %s16078_s25 }
 0xa98   : > { %5136 = vrot.lane.b32.xlu1 %v13437_v63, %s16084_s26 }
 0xaa0   : > { %5148 = vrot.lane.b32.xlu1 %v13437_v63, %s16078_s25  ;;  %v5415_v63 = vsel %vm828_vm11, %v5263_v34, %v5414_v17  ;;  %v13649_v34 = vperm.slane %v5403_v46, %v11262_v51  ;;  %v5438_v46 = vrot.slane %v13665_v6, 4 }
 0xaa1   : > { %v13671_v25 = vperm.slane %v5415_v63, %v11262_v51  ;;  %v13693_v63 = vsel %vm828_vm11, %v5459_v23, %v5478_v10 }
 0xaa8   : > { %5850 = vrot.lane.b32.xlu1 %v13541_v37, %s16079_s27 }
 0xac2   : > { %v5608_v38 = vpop.permute.xlu2 %5607 }
 0xac3   : > { %v5634_v30 = vrot.slane %v5608_v38, 4 }
 0xaca   : > { %v5113_v5 = vpop.permute.xlu2 %5112 }
 0xacb   : > { %v5278_v22 = vrot.slane %v5113_v5, 4  ;;  %v5277_v43 = vsel %vm828_vm11, %v5276_v33, %v5113_v5  ;;  %v13687_v5 = vsel %vm828_vm11, %v5472_v36, %v5431_v56  ;;  %v13690_v33 = vsel %vm828_vm11, %v5455_v18, %v5474_v2 }
 0xacc   : > { %v5283_v52 = vperm.slane %v5277_v43, %v11262_v51 }
 0xacd   : > { %v5279_v0 = vsel %vm828_vm11, %v5125_v57, %v5278_v22  ;;  %v5476_v57 = vrot.slane %v5459_v23, 4 }
 0xace   : > { %v5287_v27 = vperm.slane %v5279_v0, %v11262_v51  ;;  %v5312_v39 = vrot.slane %v5283_v52, 4 }
 0xacf   : > { %v13706_v61 = vsel %vm828_vm11, %v5476_v57, %v5435_v41 }
 0xad2   : > { %v5143_v29 = vpop.permute.xlu2 %5142 }
 0xada   : > { %v13598_v28 = vpop.permute.xlu1 %5610 }
 0xadb   : > { %v5648_v17 = vrot.slane %v13598_v28, 4 }
 0xae2   : > { %v13611_v53 = vpop.permute.xlu1 %5601 }
 0xae3   : > { %v5636_v45 = vrot.slane %v13611_v53, 4  ;;  %v5635_v47 = vsel %vm828_vm11, %v5634_v30, %v13611_v53  ;;  %v5315_v53 = vsel %vm828_vm11, %v5283_v52, %v5314_v3  ;;  %v5288_v30 = vrot.slane %v5143_v29, 4 }
 0xae4   : > { %v13700_v8 = vperm.slane %v5315_v53, %v11278_v11  ;;  %v5291_v52 = vsel %vm828_vm11, %v5143_v29, %v5290_v35 }
 0xae5   : > { %v5637_v4 = vsel %vm828_vm11, %v5608_v38, %v5636_v45  ;;  %v5641_v38 = vperm.slane %v5635_v47, %v11262_v51  ;;  %v5313_v45 = vsel %vm828_vm11, %v5312_v39, %v13634_v19 }
 0xae6   : > { %v5645_v20 = vperm.slane %v5637_v4, %v11262_v51 }
 0xae7   : > { %v5670_v22 = vrot.slane %v5641_v38, 4 }
 0xae8   : > { %v5682_v42 = vrot.slane %v5645_v20, 4 }
 0xaea   : > { %v5605_v16 = vpop.permute.xlu1 %5604 }
 0xaeb   : > { %v5622_v40 = vrot.slane %v5605_v16, 4  ;;  %v5625_v21 = vsel %vm828_vm11, %v5605_v16, %v5624_v13  ;;  %v5462_v16 = vrot.slane %v13649_v34, 4  ;;  %v5327_v13 = vsel %vm828_vm11, %v5287_v27, %v5326_v1 }
 0xaed   : > { %v5623_v7 = vsel %vm828_vm11, %v5622_v40, %v13532_v59  ;;  %v5633_v59 = vperm.slane %v5625_v21, %v11262_v51  ;;  %v13697_v40 = vsel %vm828_vm11, %v5436_v62, %v13665_v6  ;;  %v5324_v21 = vrot.slane %v5287_v27, 4 }
 0xaee   : > { %v5629_v60 = vperm.slane %v5623_v7, %v11262_v51 }
 0xaef   : > { %v5684_v32 = vrot.slane %v5633_v59, 4  ;;  %v5683_v18 = vsel %vm828_vm11, %v5682_v42, %v5633_v59  ;;  %v5325_v59 = vsel %vm828_vm11, %v5324_v21, %v13628_v9 }
 0xaf0   : > { %v5672_v48 = vrot.slane %v5629_v60, 4  ;;  %v5671_v56 = vsel %vm828_vm11, %v5670_v22, %v5629_v60  ;;  %v5689_v36 = vperm.slane %v5683_v18, %v11278_v11 }
 0xaf1   : > { %v5685_v54 = vsel %vm828_vm11, %v5645_v20, %v5684_v32 }
 0xaf2   : > { %v13639_v14 = vpop.permute.xlu1 %5613  ;;  %v5673_v7 = vsel %vm828_vm11, %v5641_v38, %v5672_v48  ;;  %v5693_v23 = vperm.slane %v5685_v54, %v11278_v11 }
 0xaf3   : > { %v5660_v1 = vrot.slane %v13639_v14, 4  ;;  %v5681_v47 = vperm.slane %v5673_v7, %v11278_v11 }
 0xaf4   : > { %v5732_v9 = vrot.slane %v5693_v23, 4 }
 0xaf5   : > { %v5724_v53 = vrot.slane %v5681_v47, 4 }
 0xafa   : > { %v5617_v50 = vpop.permute.xlu1 %5616 }
 0xafb   : > { %v5646_v24 = vrot.slane %v5617_v50, 4  ;;  %v5649_v15 = vsel %vm828_vm11, %v5617_v50, %v5648_v17  ;;  %v5677_v50 = vperm.slane %v5671_v56, %v11278_v11  ;;  %v5289_v17 = vsel %vm828_vm11, %v5288_v30, %v13582_v26 }
 0xafc   : > { %v5657_v43 = vperm.slane %v5649_v15, %v11262_v51  ;;  %v5295_v7 = vperm.slane %v5289_v17, %v11262_v51 }
 0xafd   : > { %v5647_v49 = vsel %vm828_vm11, %v5646_v24, %v13598_v28  ;;  %v13715_v28 = vperm.slane %v5327_v13, %v11278_v11  ;;  %v13738_v24 = vperm.slane %v5291_v52, %v11262_v51  ;;  %v5720_v26 = vrot.slane %v5677_v50, 4 }
 0xafe   : > { %v5653_v41 = vperm.slane %v5647_v49, %v11262_v51  ;;  %v5708_v4 = vrot.slane %v5657_v43, 4  ;;  %v5728_v13 = vrot.slane %v5689_v36, 4 }
 0xb00   : > { %v5696_v10 = vrot.slane %v5653_v41, 4 }
 0xb02   : > { %v5620_v3 = vpop.permute.xlu1 %5619 }
 0xb03   : > { %v5658_v0 = vrot.slane %v5620_v3, 4  ;;  %v5661_v19 = vsel %vm828_vm11, %v5620_v3, %v5660_v1  ;;  %v13756_v3 = vperm.slane %v5313_v45, %v11278_v11 }
 0xb04   : > { %v5669_v60 = vperm.slane %v5661_v19, %v11262_v51  ;;  %v13763_v19 = vperm.slane %v5325_v59, %v11278_v11 }
 0xb05   : > { %v5659_v2 = vsel %vm828_vm11, %v5658_v0, %v13639_v14 }
 0xb06   : > { %v5665_v62 = vperm.slane %v5659_v2, %v11262_v51  ;;  %v5706_v27 = vrot.slane %v5669_v60, 4  ;;  %v5709_v35 = vsel %vm828_vm11, %v5669_v60, %v5708_v4 }
 0xb07   : > { %v5717_v57 = vperm.slane %v5709_v35, %v11278_v11 }
 0xb08   : > { %v5694_v38 = vrot.slane %v5665_v62, 4  ;;  %v5697_v20 = vsel %vm828_vm11, %v5665_v62, %v5696_v10  ;;  %v5707_v14 = vsel %vm828_vm11, %v5706_v27, %v5657_v43  ;;  %v5338_v62 = vrot.slane %v5295_v7, 4 }
 0xb09   : > { %v5705_v32 = vperm.slane %v5697_v20, %v11278_v11  ;;  %v5713_v39 = vperm.slane %v5707_v14, %v11278_v11  ;;  %v5730_v48 = vrot.slane %v5717_v57, 4  ;;  %v5733_v15 = vsel %vm828_vm11, %v5717_v57, %v5732_v9 }
 0xb0a   : > { %v5695_v49 = vsel %vm828_vm11, %v5694_v38, %v5653_v41  ;;  %v5770_v29 = vrot.slane %v5733_v15, 4  ;;  %v5137_v22 = vpop.permute.xlu1 %5136  ;;  %v5350_v27 = vrot.slane %v13738_v24, 4 }
 0xb0b   : > { %v5701_v42 = vperm.slane %v5695_v49, %v11278_v11  ;;  %v5722_v54 = vrot.slane %v5705_v32, 4  ;;  %v13749_v21 = vsel %vm828_vm11, %v5705_v32, %v5724_v53  ;;  %v5726_v43 = vrot.slane %v5713_v39, 4 }
 0xb0c   : > { %v5729_v1 = vsel %vm828_vm11, %v5713_v39, %v5728_v13  ;;  %v5731_v56 = vsel %vm828_vm11, %v5730_v48, %v5693_v23  ;;  %v5746_v18 = vrot.slane %v13749_v21, 4  ;;  %v5374_v23 = vrot.slane %v13715_v28, 4 }
 0xb0d   : > { %v5718_v41 = vrot.slane %v5701_v42, 4  ;;  %v13759_v30 = vsel %vm828_vm11, %v5701_v42, %v5720_v26  ;;  %v5723_v0 = vsel %vm828_vm11, %v5722_v54, %v5681_v47  ;;  %v5727_v52 = vsel %vm828_vm11, %v5726_v43, %v5689_v36 }
 0xb0e   : > { %v5734_v4 = vrot.slane %v5723_v0, 4  ;;  %v5758_v60 = vrot.slane %v5731_v56, 4  ;;  %v5771_v2 = vsel %vm828_vm11, %v5770_v29, %v5729_v1  ;;  %v5747_v10 = vsel %vm828_vm11, %v5746_v18, %v13759_v30 }
 0xb0f   : > { %v5719_v45 = vsel %vm828_vm11, %v5718_v41, %v5677_v50  ;;  %v5777_v47 = vperm.slane %v5771_v2, %v11262_v51  ;;  %v5302_v35 = vrot.slane %v5137_v22, 4  ;;  %v5753_v17 = vperm.slane %v5747_v10, %v11262_v51 }
 0xb10   : > { %v5735_v59 = vsel %vm828_vm11, %v5734_v4, %v5719_v45  ;;  %v5759_v9 = vsel %vm828_vm11, %v5758_v60, %v5727_v52  ;;  %v5748_v57 = vrot.slane %v13759_v30, 4  ;;  %v5772_v50 = vrot.slane %v5729_v1, 4 }
 0xb11   : > { %v5741_v36 = vperm.slane %v5735_v59, %v11262_v51  ;;  %v5765_v38 = vperm.slane %v5759_v9, %v11262_v51  ;;  %v5806_v20 = vrot.slane %v5777_v47, 4  ;;  %v5736_v39 = vrot.slane %v5719_v45, 4 }
 0xb12   : > { %v5149_v53 = vpop.permute.xlu1 %5148  ;;  %v5782_v48 = vrot.slane %v5753_v17, 4  ;;  %v5760_v26 = vrot.slane %v5727_v52, 4  ;;  %v5773_v52 = vsel %vm828_vm11, %v5733_v15, %v5772_v50 }
 0xb13   : > { %v5300_v14 = vrot.slane %v5149_v53, 4  ;;  %v5303_v32 = vsel %vm828_vm11, %v5149_v53, %v5302_v35  ;;  %v5807_v49 = vsel %vm828_vm11, %v5806_v20, %v5765_v38  ;;  %v5784_v29 = vrot.slane %v5741_v36, 4 }
 0xb14   : > { %v5311_v13 = vperm.slane %v5303_v32, %v11262_v51  ;;  %v5783_v54 = vsel %vm828_vm11, %v5782_v48, %v5741_v36  ;;  %v5813_v43 = vperm.slane %v5807_v49, %v11278_v11  ;;  %v5808_v1 = vrot.slane %v5765_v38, 4 }
 0xb15   : > { %v5301_v42 = vsel %vm828_vm11, %v5300_v14, %v5137_v22  ;;  %v5789_v4 = vperm.slane %v5783_v54, %v11278_v11  ;;  %v5737_v45 = vsel %vm828_vm11, %v5723_v0, %v5736_v39  ;;  %v5785_v9 = vsel %vm828_vm11, %v5753_v17, %v5784_v29 }
 0xb16   : > { %v5307_v18 = vperm.slane %v5301_v42, %v11262_v51  ;;  %v5348_v41 = vrot.slane %v5311_v13, 4  ;;  %v5351_v30 = vsel %vm828_vm11, %v5311_v13, %v5350_v27  ;;  %v5830_v2 = vrot.slane %v5813_v43, 4 }
 0xb17   : > { %v5359_v60 = vperm.slane %v5351_v30, %v11278_v11  ;;  %v5832_v35 = vrot.slane %v5789_v4, 4  ;;  %v5809_v15 = vsel %vm828_vm11, %v5777_v47, %v5808_v1  ;;  %v5761_v38 = vsel %vm828_vm11, %v5731_v56, %v5760_v26 }
 0xb18   : > { %v5336_v22 = vrot.slane %v5307_v18, 4  ;;  %v5339_v10 = vsel %vm828_vm11, %v5307_v18, %v5338_v62  ;;  %v5349_v59 = vsel %vm828_vm11, %v5348_v41, %v13738_v24  ;;  %v5831_v0 = vsel %vm828_vm11, %v5830_v2, %v5789_v4 }
 0xb19   : > { %v5347_v36 = vperm.slane %v5339_v10, %v11278_v11  ;;  %v5355_v27 = vperm.slane %v5349_v59, %v11278_v11  ;;  %v13800_v53 = vsel %vm828_vm11, %v5359_v60, %v5374_v23  ;;  %v5833_v62 = vsel %vm828_vm11, %v5813_v43, %v5832_v35  ;;  %10262 = vmatpush.xpose.msk.msrb.mxu3 %vm2036_vm12, %v5831_v0 }
 0xb1a   : > { %v5337_v50 = vsel %vm828_vm11, %v5336_v22, %v5295_v7  ;;  %v5366_v24 = vrot.slane %v13700_v8, 4  ;;  %v5781_v20 = vperm.slane %v5773_v52, %v11262_v51  ;;  %v5372_v14 = vrot.slane %v5359_v60, 4  ;;  %10265 = vmatpush.xpose.msk.msra.mxu1 %vm2036_vm12, %v5833_v62 }
 0xb1b   : > { %v5343_v7 = vperm.slane %v5337_v50, %v11278_v11  ;;  %v5793_v23 = vperm.slane %v5785_v9, %v11278_v11  ;;  %v5817_v47 = vperm.slane %v5809_v15, %v11278_v11  ;;  %v5745_v17 = vperm.slane %v5737_v45, %v11262_v51 }
 0xb1c   : > { %v5362_v32 = vrot.slane %v13756_v3, 4  ;;  %v5370_v39 = vrot.slane %v13763_v19, 4  ;;  %v5368_v56 = vrot.slane %v5355_v27, 4  ;;  %v5524_v48 = vrot.slane %v13800_v53, 4  ;;  %10263 = vmatmul.msk.f32.vlgmr.msrb.gmra.mxu3 %vm2036_vm12, %v13687_v5 }
 0xb1d   : > { %v5364_v26 = vrot.slane %v5347_v36, 4  ;;  %v5834_v13 = vrot.slane %v5817_v47, 4  ;;  %v5749_v49 = vsel %vm828_vm11, %v13749_v21, %v5748_v57  ;;  %v5769_v29 = vperm.slane %v5761_v38, %v11262_v51  ;;  %10266 = vmatmul.msk.f32.vlgmr.msra.gmra.mxu1 %vm2036_vm12, %v13690_v33 }
 0xb1e   : > { %v13824_v42 = vsel %vm828_vm11, %v5347_v36, %v5366_v24  ;;  %v13828_v54 = vsel %vm828_vm11, %v5372_v14, %v13715_v28  ;;  %v5757_v43 = vperm.slane %v5749_v49, %v11262_v51  ;;  %v5818_v1 = vrot.slane %v5781_v20, 4 }
 0xb1f   : > { %v5360_v18 = vrot.slane %v5343_v7, 4  ;;  %v5835_v21 = vsel %vm828_vm11, %v5834_v13, %v5793_v23  ;;  %v5836_v57 = vrot.slane %v5793_v23, 4  ;;  %v5796_v41 = vrot.slane %v5745_v17, 4 }
 0xb20   : > { %v5369_v5 = vsel %vm828_vm11, %v5368_v56, %v13763_v19  ;;  %v5371_v33 = vsel %vm828_vm11, %v5355_v27, %v5370_v39  ;;  %10268 = vmatpush.xpose.msk.msra.mxu2 %vm2036_vm12, %v5835_v21  ;;  %v5794_v30 = vrot.slane %v5757_v43, 4  ;;  %v5819_v4 = vsel %vm828_vm11, %v5818_v1, %v5769_v29 }
 0xb21   : > { %v5500_v28 = vrot.slane %v13824_v42, 4  ;;  %v5825_v52 = vperm.slane %v5819_v4, %v11278_v11  ;;  %v5837_v60 = vsel %vm828_vm11, %v5817_v47, %v5836_v57  ;;  %v5797_v2 = vsel %vm828_vm11, %v5757_v43, %v5796_v41 }
 0xb22   : > { %v5512_v45 = vrot.slane %v13828_v54, 4  ;;  %v5795_v22 = vsel %vm828_vm11, %v5794_v30, %v5745_v17  ;;  %10271 = vmatpush.xpose.msk.msra.mxu0 %vm2036_vm12, %v5837_v60  ;;  %v5805_v19 = vperm.slane %v5797_v2, %v11278_v11  ;;  %v5820_v10 = vrot.slane %v5769_v29, 4 }
 0xb23   : > { %v5514_v59 = vrot.slane %v5369_v5, 4  ;;  %v5801_v35 = vperm.slane %v5795_v22, %v11278_v11  ;;  %v5838_v36 = vrot.slane %v5825_v52, 4  ;;  %10269 = vmatmul.msk.f32.vlgmr.msra.gmra.mxu2 %vm2036_vm12, %v13706_v61  ;;  %v5361_v27 = vsel %vm828_vm11, %v5360_v18, %v13756_v3 }
 0xb24   : > { %v5821_v9 = vsel %vm828_vm11, %v5781_v20, %v5820_v10  ;;  %v5844_v15 = vrot.slane %v5805_v19, 4  ;;  %v5363_v50 = vsel %vm828_vm11, %v5343_v7, %v5362_v32  ;;  %v5365_v0 = vsel %vm828_vm11, %v5364_v26, %v13700_v8 }
 0xb25   : > { %v5839_v62 = vsel %vm828_vm11, %v5838_v36, %v5801_v35  ;;  %v5840_v24 = vrot.slane %v5801_v35, 4  ;;  %v5829_v38 = vperm.slane %v5821_v9, %v11278_v11  ;;  %10272 = vmatmul.msk.f32.vlgmr.msra.gmra.mxu0 %vm2036_vm12, %v13693_v63  ;;  %v5488_v61 = vrot.slane %v5365_v0, 4 }
 0xb26   : > { %10274 = vmatpush.xpose.msk.msra.mxu3 %vm2036_vm12, %v5839_v62  ;;  %v5490_v3 = vrot.slane %v5361_v27, 4  ;;  %v5501_v20 = vsel %vm828_vm11, %v5500_v28, %v5363_v50  ;;  %v5502_v14 = vrot.slane %v5363_v50, 4  ;;  %v5513_v7 = vsel %vm828_vm11, %v5512_v45, %v5369_v5 }
 0xb27   : > { %v5841_v23 = vsel %vm828_vm11, %v5825_v52, %v5840_v24  ;;  %v5842_v8 = vrot.slane %v5829_v38, 4  ;;  %v5845_v47 = vsel %vm828_vm11, %v5829_v38, %v5844_v15  ;;  %v5489_v17 = vsel %vm828_vm11, %v5488_v61, %v5361_v27 }
 0xb28   : > { %10277 = vmatpush.xpose.msk.msrb.mxu1 %vm2036_vm12, %v5841_v23  ;;  %10283 = vmatpush.xpose.msk.msrb.mxu0 %vm2036_vm12, %v5845_v47  ;;  %v5495_v63 = vperm.slane %v5489_v17, %v11262_v51  ;;  %v5507_v32 = vperm.slane %v5501_v20, %v11262_v51  ;;  %v5519_v39 = vperm.slane %v5513_v7, %v11262_v51  ;;  %v5460_v56 = vrot.slane %v13671_v25, 4 }
 0xb29   : > { %v5526_v26 = vrot.slane %v5371_v33, 4  ;;  %v5843_v13 = vsel %vm828_vm11, %v5842_v8, %v5805_v19  ;;  %v5525_v49 = vsel %vm828_vm11, %v5524_v48, %v5371_v33  ;;  %v5463_v29 = vsel %vm828_vm11, %v13671_v25, %v5462_v16 }
 0xb2a   : > { %10280 = vmatpush.xpose.msk.msrb.mxu2 %vm2036_vm12, %v5843_v13  ;;  %v5531_v43 = vperm.slane %v5525_v49, %v11262_v51  ;;  %v5536_v1 = vrot.slane %v5507_v32, 4  ;;  %v5538_v18 = vrot.slane %v5495_v63, 4  ;;  %v5562_v21 = vrot.slane %v5519_v39, 4 }
 0xb2b   : > { %v5439_v57 = vsel %vm828_vm11, %v13655_v31, %v5438_v46  ;;  %v5491_v41 = vsel %vm828_vm11, %v5365_v0, %v5490_v3  ;;  %v5503_v48 = vsel %vm828_vm11, %v13824_v42, %v5502_v14  ;;  %v5515_v25 = vsel %vm828_vm11, %v13828_v54, %v5514_v59 }
 0xb2c   : > { %v5537_v16 = vsel %vm828_vm11, %v5536_v1, %v5495_v63  ;;  %v5560_v5 = vrot.slane %v5531_v43, 4  ;;  %v5539_v33 = vsel %vm828_vm11, %v5507_v32, %v5538_v18  ;;  %v5563_v30 = vsel %vm828_vm11, %v5531_v43, %v5562_v21 }
 0xb2d   : > { %v5527_v6 = vsel %vm828_vm11, %v13800_v53, %v5526_v26  ;;  %v5543_v31 = vperm.slane %v5537_v16, %v11278_v11  ;;  %v5547_v46 = vperm.slane %v5539_v33, %v11278_v11  ;;  %v5571_v4 = vperm.slane %v5563_v30, %v11278_v11 }
 0xb2e   : > { %v5561_v42 = vsel %vm828_vm11, %v5560_v5, %v5519_v39  ;;  %v5499_v54 = vperm.slane %v5491_v41, %v11262_v51  ;;  %v5511_v28 = vperm.slane %v5503_v48, %v11262_v51  ;;  %v5523_v52 = vperm.slane %v5515_v25, %v11262_v51 }
 0xb2f   : > { %v5567_v60 = vperm.slane %v5561_v42, %v11278_v11  ;;  %v5586_v2 = vrot.slane %v5543_v31, 4  ;;  %v5588_v45 = vrot.slane %v5571_v4, 4  ;;  %v5590_v22 = vrot.slane %v5547_v46, 4 }
 0xb30   : > { %v5443_v53 = vperm.slane %v13697_v40, %v11278_v11  ;;  %v5461_v19 = vsel %vm828_vm11, %v5460_v56, %v13649_v34  ;;  %v5471_v10 = vperm.slane %v5463_v29, %v11278_v11  ;;  %v5535_v59 = vperm.slane %v5527_v6, %v11262_v51 }
 0xb31   : > { %v5584_v35 = vrot.slane %v5567_v60, 4  ;;  %v5587_v36 = vsel %vm828_vm11, %v5567_v60, %v5586_v2  ;;  %v5589_v27 = vsel %vm828_vm11, %v5588_v45, %v5547_v46  ;;  %v5591_v9 = vsel %vm828_vm11, %v5571_v4, %v5590_v22 }
 0xb32   : > { %10267 = vmatmul.msk.f32.gmra.mxu1 %vm2036_vm12, %v5587_v36  ;;  %10270 = vmatmul.msk.f32.gmra.mxu2 %vm2036_vm12, %v5589_v27  ;;  %v5447_v40 = vperm.slane %v5439_v57, %v11278_v11  ;;  %v5548_v15 = vrot.slane %v5511_v28, 4  ;;  %v5574_v50 = vrot.slane %v5523_v52, 4  ;;  %v5467_v0 = vperm.slane %v5461_v19, %v11278_v11 }
 0xb33   : > { %v5585_v34 = vsel %vm828_vm11, %v5584_v35, %v5543_v31  ;;  %10273 = vmatmul.msk.f32.gmra.mxu0 %vm2036_vm12, %v5591_v9  ;;  %v5550_v62 = vrot.slane %v5499_v54, 4  ;;  %v5572_v24 = vrot.slane %v5535_v59, 4  ;;  %v5482_v38 = vrot.slane %v5443_v53, 4 }
 0xb34   : > { %10264 = vmatmul.msk.f32.gmra.mxu3 %vm2036_vm12, %v5585_v34  ;;  %v5484_v61 = vrot.slane %v5471_v10, 4  ;;  %v5486_v3 = vrot.slane %v5447_v40, 4  ;;  %v5549_v20 = vsel %vm828_vm11, %v5548_v15, %v5499_v54  ;;  %v5575_v14 = vsel %vm828_vm11, %v5535_v59, %v5574_v50 }
 0xb35   : > { %v5480_v7 = vrot.slane %v5467_v0, 4  ;;  %v5551_v23 = vsel %vm828_vm11, %v5511_v28, %v5550_v62  ;;  %v5573_v8 = vsel %vm828_vm11, %v5572_v24, %v5523_v52  ;;  %v5483_v47 = vsel %vm828_vm11, %v5467_v0, %v5482_v38  ;;  %v14001_v24 = vpop.permute.xlu2 %5847  ;;  %v14003_v38 = vpop.permute.xlu0 %5856 }
 0xb36   : > { %v5485_v17 = vsel %vm828_vm11, %v5484_v61, %v5447_v40  ;;  %v5555_v63 = vperm.slane %v5549_v20, %v11278_v11  ;;  %v5583_v32 = vperm.slane %v5575_v14, %v11278_v11  ;;  %v5487_v39 = vsel %vm828_vm11, %v5471_v10, %v5486_v3 }
 0xb37   : > { %v5559_v56 = vperm.slane %v5551_v23, %v11278_v11  ;;  %v5481_v26 = vsel %vm828_vm11, %v5480_v7, %v5443_v53  ;;  %v5579_v13 = vperm.slane %v5573_v8, %v11278_v11  ;;  %v14007_v8 = vpop.permute.xlu1 %5850 }
 0xb38   : > { %v5594_v49 = vrot.slane %v5555_v63, 4  ;;  %v5596_v29 = vrot.slane %v5583_v32, 4 }
 0xb39   : > { %v5598_v43 = vrot.slane %v5559_v56, 4  ;;  %v5592_v1 = vrot.slane %v5579_v13, 4 }
 0xb3a   : > { %10278 = vmatmul.msk.f32.vlgmr.msrb.gmra.mxu1 %vm2036_vm12, %v5483_v47  ;;  %10281 = vmatmul.msk.f32.vlgmr.msrb.gmra.mxu2 %vm2036_vm12, %v5485_v17  ;;  %v5595_v18 = vsel %vm828_vm11, %v5579_v13, %v5594_v49  ;;  %v5597_v21 = vsel %vm828_vm11, %v5596_v29, %v5559_v56 }
 0xb3b   : > { %10284 = vmatmul.msk.f32.vlgmr.msrb.gmra.mxu0 %vm2036_vm12, %v5487_v39  ;;  %v5599_v57 = vsel %vm828_vm11, %v5583_v32, %v5598_v43  ;;  %v5593_v41 = vsel %vm828_vm11, %v5592_v1, %v5555_v63 }
 0xb3c   : > { %10275 = vmatmul.msk.f32.vlgmr.msra.gmra.mxu3 %vm2036_vm12, %v5481_v26 }
 0xb3d   : > { %v14005_v3 = vpop.permute.xlu0 %5859 }
 0xb42   : > { %10279 = vmatmul.msk.f32.gmra.mxu1 %vm2036_vm12, %v5595_v18  ;;  %10282 = vmatmul.msk.f32.gmra.mxu2 %vm2036_vm12, %v5597_v21 }
 0xb43   : > { %10285 = vmatmul.msk.f32.gmra.mxu0 %vm2036_vm12, %v5599_v57 }
 0xb44   : > { %10276 = vmatmul.msk.f32.gmra.mxu3 %vm2036_vm12, %v5593_v41 }
 0xb9a   : > { %v13940_v48 = vpop.f32.mrf.mxu1 }
 0xb9b   : > { %v6354_v25 = vsel %vm2795_vm5, %v13940_v48, -inf }
 0xb9c   : > { %6355 = vmax.xlane.f32.xlu2 %v6354_v25 }
 0xb9f   : > { %v6118_v6 = vpop.f32.mrf.mxu3 }
 0xba0   : > { %v6348_v31 = vsel %vm2795_vm5, %v6118_v6, -inf }
 0xba2   : > { %v6214_v16 = vpop.f32.mrf.mxu0 }
 0xba3   : > { %v6366_v5 = vsel %vm2795_vm5, %v6214_v16, -inf }
 0xba4   : > { %6367 = vmax.xlane.f32.xlu2 %v6366_v5 }
 0xba6   : > { %v6182_v33 = vpop.f32.mrf.mxu2 }
 0xba7   : > { %v6360_v30 = vsel %vm2795_vm5, %v6182_v33, -inf }
 0xba8   : > { %6361 = vmax.xlane.f32.xlu0 %v6360_v30 }
 0xbac   : > { %6349 = vmax.xlane.f32.xlu2 %v6348_v31 }
 0xbaf   : > { %v13947_v46 = vpop.f32.mrf.mxu1 }
 0xbb0   : > { %v13949_v4 = vpop.f32.mrf.mxu0  ;;  %v6357_v42 = vsel %vm2795_vm5, %v13947_v46, -inf }
 0xbb1   : > { %6358 = vmax.xlane.f32.xlu1 %v6357_v42  ;;  %v6369_v54 = vsel %vm2795_vm5, %v13949_v4, -inf }
 0xbb4   : > { %6370 = vmax.xlane.f32.xlu2 %v6369_v54 }
 0xbb5   : > { %v13955_v28 = vpop.f32.mrf.mxu2 }
 0xbb6   : > { %v6363_v52 = vsel %vm2795_vm5, %v13955_v28, -inf }
 0xbb7   : > { %v13959_v60 = vpop.f32.mrf.mxu3  ;;  %6364 = vmax.xlane.f32.xlu0 %v6363_v52  ;;  %v13961_v2 = vpop.f32.mrf.mxu1 }
 0xbb8   : > { %v6351_v45 = vsel %vm2795_vm5, %v13959_v60, -inf  ;;  %v13965_v22 = vpop.f32.mrf.mxu0  ;;  %v6378_v53 = vsel %vm2795_vm5, %v13961_v2, -inf }
 0xbb9   : > { %6352 = vmax.xlane.f32.xlu1 %v6351_v45  ;;  %v6390_v10 = vsel %vm2795_vm5, %v13965_v22, -inf }
 0xbbc   : > { %6379 = vmax.xlane.f32.xlu2 %v6378_v53 }
 0xbbd   : > { %v13969_v19 = vpop.f32.mrf.mxu2 }
 0xbbe   : > { %v6384_v35 = vsel %vm2795_vm5, %v13969_v19, -inf }
 0xbbf   : > { %6391 = vmax.xlane.f32.xlu0 %v6390_v10  ;;  %v13973_v59 = vpop.f32.mrf.mxu1  ;;  %v13977_v36 = vpop.f32.mrf.mxu3 }
 0xbc0   : > { %v6381_v27 = vsel %vm2795_vm5, %v13973_v59, -inf  ;;  %v13981_v9 = vpop.f32.mrf.mxu0  ;;  %v6372_v40 = vsel %vm2795_vm5, %v13977_v36, -inf }
 0xbc1   : > { %6385 = vmax.xlane.f32.xlu1 %v6384_v35  ;;  %v6393_v15 = vsel %vm2795_vm5, %v13981_v9, -inf }
 0xbc4   : > { %6382 = vmax.xlane.f32.xlu2 %v6381_v27 }
 0xbc5   : > { %v13989_v34 = vpop.f32.mrf.mxu2 }
 0xbc6   : > { %v6387_v62 = vsel %vm2795_vm5, %v13989_v34, -inf }
 0xbc7   : > { %6373 = vmax.xlane.f32.xlu0 %v6372_v40  ;;  %v13987_v50 = vpop.f32.mrf.mxu3 }
 0xbc8   : > { %v6375_v0 = vsel %vm2795_vm5, %v13987_v50, -inf }
 0xbc9   : > { %6394 = vmax.xlane.f32.xlu1 %v6393_v15 }
 0xbcf   : > { %6376 = vmax.xlane.f32.xlu0 %v6375_v0 }
 0xbd1   : > { %6388 = vmax.xlane.f32.xlu1 %v6387_v62 }
 0xbdc   : > { %5862 = vrot.lane.b32.xlu2 %v13541_v37, %s16081_s20 }
 0xbe3   : > { %5853 = vrot.lane.b32.xlu0 %v13541_v37, %s16080_s19 }
 0xbea   : > { %5865 = vrot.lane.b32.xlu1 %v13541_v37, %s16078_s25 }
 0xc0f   : > { %v6356_v61 = vpop.xlane.xlu2 %6355 }
 0xc10   : > { %v6398_v56 = vsub.f32 %v13940_v48, %v6356_v61 }
 0xc12   : > { %v6416_v43 = vmul.f32 1.442695, %v6398_v56 }
 0xc17   : > { %v6368_v20 = vpop.xlane.xlu2 %6367 }
 0xc18   : > { %v6402_v14 = vsub.f32 %v6214_v16, %v6368_v20 }
 0xc1a   : > { %v6424_v7 = vmul.f32 1.442695, %v6402_v14 }
 0xc1b   : > { %v6362_v23 = vpop.xlane.xlu0 %6361 }
 0xc1c   : > { %v6400_v47 = vsub.f32 %v6182_v33, %v6362_v23  ;;  %10661 = vpow2.f32 %v6424_v7 }
 0xc1e   : > { %v6420_v17 = vmul.f32 1.442695, %v6400_v47 }
 0xc1f   : > { %v6350_v63 = vpop.xlane.xlu2 %6349 }
 0xc20   : > { %10663 = vpow2.f32 %v6420_v17  ;;  %v6396_v32 = vsub.f32 %v6118_v6, %v6350_v63 }
 0xc22   : > { %v14009_v39 = vpop.eup %10661  ;;  %v6412_v26 = vmul.f32 1.442695, %v6396_v32 }
 0xc23   : > { %v6462_v13 = vsel %vm2795_vm5, %v14009_v39, 0.0 }
 0xc24   : > { %v6359_v49 = vpop.xlane.xlu1 %6358  ;;  %10665 = vpow2.f32 %v6412_v26  ;;  %6463 = vadd.xlane.f32.xlu1 %v6462_v13 }
 0xc25   : > { %10667 = vpow2.f32 %v6416_v43  ;;  %v6399_v57 = vsub.f32 %v13947_v46, %v6359_v49 }
 0xc26   : > { %v14014_v29 = vpop.eup %10663 }
 0xc27   : > { %v6456_v1 = vsel %vm2795_vm5, %v14014_v29, 0.0  ;;  %v6371_v18 = vpop.xlane.xlu2 %6370  ;;  %v6418_v30 = vmul.f32 1.442695, %v6399_v57 }
 0xc28   : > { %6457 = vadd.xlane.f32.xlu0 %v6456_v1  ;;  %v6403_v31 = vsub.f32 %v13949_v4, %v6371_v18 }
 0xc2a   : > { %v14018_v21 = vpop.eup %10665  ;;  %v6365_v41 = vpop.xlane.xlu0 %6364 }
 0xc2b   : > { %v6401_v48 = vsub.f32 %v13955_v28, %v6365_v41  ;;  %v6444_v25 = vsel %vm2795_vm5, %v14018_v21, 0.0  ;;  %v14026_v42 = vpop.eup %10667  ;;  %v6426_v28 = vmul.f32 1.442695, %v6403_v31 }
 0xc2c   : > { %v6353_v16 = vpop.xlane.xlu1 %6352  ;;  %6445 = vadd.xlane.f32.xlu2 %v6444_v25  ;;  %v6450_v52 = vsel %vm2795_vm5, %v14026_v42, 0.0 }
 0xc2d   : > { %v6422_v5 = vmul.f32 1.442695, %v6401_v48  ;;  %v6397_v33 = vsub.f32 %v13959_v60, %v6353_v16 }
 0xc2f   : > { %10669 = vpow2.f32 %v6422_v5  ;;  %v6414_v6 = vmul.f32 1.442695, %v6397_v33  ;;  %v6380_v46 = vpop.xlane.xlu2 %6379  ;;  %v5870_v33 = vrot.slane %v13541_v37, 4 }
 0xc30   : > { %v6406_v10 = vsub.f32 %v13961_v2, %v6380_v46 }
 0xc31   : > { %10671 = vpow2.f32 %v6414_v6  ;;  %v5871_v31 = vsel %vm828_vm11, %v14007_v8, %v5870_v33 }
 0xc32   : > { %10673 = vpow2.f32 %v6418_v30  ;;  %v6392_v54 = vpop.xlane.xlu0 %6391  ;;  %v6432_v0 = vmul.f32 1.442695, %v6406_v10 }
 0xc33   : > { %10675 = vpow2.f32 %v6426_v28 }
 0xc34   : > { %v6386_v45 = vpop.xlane.xlu1 %6385  ;;  %6451 = vadd.xlane.f32.xlu2 %v6450_v52  ;;  %v5882_v52 = vrot.slane %v14001_v24, 4 }
 0xc35   : > { %v14030_v53 = vpop.eup %10669  ;;  %v6408_v60 = vsub.f32 %v13969_v19, %v6386_v45  ;;  %v5879_v45 = vperm.slane %v5871_v31, %v11262_v51 }
 0xc36   : > { %v6459_v4 = vsel %vm2795_vm5, %v14030_v53, 0.0 }
 0xc37   : > { %v14036_v35 = vpop.eup %10671  ;;  %v6436_v27 = vmul.f32 1.442695, %v6408_v60  ;;  %6460 = vadd.xlane.f32.xlu0 %v6459_v4  ;;  %v6383_v2 = vpop.xlane.xlu2 %6382  ;;  %v5894_v4 = vrot.slane %v14003_v38, 4 }
 0xc38   : > { %v14038_v40 = vpop.eup %10673  ;;  %v6447_v15 = vsel %vm2795_vm5, %v14036_v35, 0.0  ;;  %v6407_v23 = vsub.f32 %v13973_v59, %v6383_v2  ;;  %v6410_v59 = vsub.f32 %v13965_v22, %v6392_v54  ;;  %v5930_v2 = vrot.slane %v5879_v45, 4 }
 0xc39   : > { %6448 = vadd.xlane.f32.xlu1 %v6447_v15  ;;  %10677 = vpow2.f32 %v6436_v27  ;;  %v6453_v61 = vsel %vm2795_vm5, %v14038_v40, 0.0  ;;  %v14045_v14 = vpop.eup %10675 }
 0xc3a   : > { %v6374_v62 = vpop.xlane.xlu0 %6373  ;;  %10679 = vpow2.f32 %v6432_v0  ;;  %v6465_v17 = vsel %vm2795_vm5, %v14045_v14, 0.0  ;;  %v6440_v48 = vmul.f32 1.442695, %v6410_v59 }
 0xc3b   : > { %v6404_v19 = vsub.f32 %v13977_v36, %v6374_v62  ;;  %v6434_v36 = vmul.f32 1.442695, %v6407_v23 }
 0xc3c   : > { %v6395_v20 = vpop.xlane.xlu1 %6394  ;;  %6454 = vadd.xlane.f32.xlu2 %v6453_v61 }
 0xc3d   : > { %v6428_v7 = vmul.f32 1.442695, %v6404_v19 }
 0xc3f   : > { %10681 = vpow2.f32 %v6428_v7  ;;  %v14048_v47 = vpop.eup %10677  ;;  %v5863_v46 = vpop.permute.xlu2 %5862 }
 0xc40   : > { %v6480_v56 = vsel %vm2795_vm5, %v14048_v47, 0.0  ;;  %v14055_v26 = vpop.eup %10679  ;;  %10683 = vpow2.f32 %v6434_v36  ;;  %v5892_v60 = vrot.slane %v5863_v46, 4  ;;  %v5895_v62 = vsel %vm828_vm11, %v5863_v46, %v5894_v4 }
 0xc41   : > { %6466 = vadd.xlane.f32.xlu1 %v6465_v17  ;;  %v6474_v41 = vsel %vm2795_vm5, %v14055_v26, 0.0 }
 0xc42   : > { %v6377_v63 = vpop.xlane.xlu0 %6376  ;;  %v5893_v61 = vsel %vm828_vm11, %v5892_v60, %v14003_v38 }
 0xc43   : > { %v6405_v32 = vsub.f32 %v13987_v50, %v6377_v63  ;;  %v6411_v50 = vsub.f32 %v13981_v9, %v6395_v20  ;;  %v5903_v63 = vperm.slane %v5895_v62, %v11262_v51 }
 0xc44   : > { %v6389_v13 = vpop.xlane.xlu1 %6388  ;;  %6481 = vadd.xlane.f32.xlu2 %v6480_v56  ;;  %v5906_v56 = vrot.slane %v14005_v3, 4 }
 0xc45   : > { %v14057_v49 = vpop.eup %10681  ;;  %v6430_v43 = vmul.f32 1.442695, %v6405_v32  ;;  %v6409_v1 = vsub.f32 %v13989_v34, %v6389_v13  ;;  %v6442_v25 = vmul.f32 1.442695, %v6411_v50  ;;  %v5868_v34 = vrot.slane %v14007_v8, 4 }
 0xc46   : > { %v6468_v18 = vsel %vm2795_vm5, %v14057_v49, 0.0  ;;  %v14066_v22 = vpop.eup %10683  ;;  %v5899_v13 = vperm.slane %v5893_v61, %v11262_v51 }
 0xc47   : > { %10685 = vpow2.f32 %v6430_v43  ;;  %v6438_v57 = vmul.f32 1.442695, %v6409_v1  ;;  %6469 = vadd.xlane.f32.xlu0 %v6468_v18  ;;  %v6477_v30 = vsel %vm2795_vm5, %v14066_v22, 0.0  ;;  %v5869_v54 = vsel %vm828_vm11, %v5868_v34, %v13541_v37 }
 0xc48   : > { %v5875_v27 = vperm.slane %v5869_v54, %v11262_v51  ;;  %v5942_v34 = vrot.slane %v5899_v13, 4 }
 0xc49   : > { %10687 = vpow2.f32 %v6438_v57  ;;  %6475 = vadd.xlane.f32.xlu1 %v6474_v41  ;;  %v5954_v57 = vrot.slane %v5903_v63, 4 }
 0xc4a   : > { %10689 = vpow2.f32 %v6440_v48  ;;  %v5918_v23 = vrot.slane %v5875_v27, 4 }
 0xc4b   : > { %10691 = vpow2.f32 %v6442_v25 }
 0xc4d   : > { %v14068_v16 = vpop.eup %10685 }
 0xc4e   : > { %v6471_v9 = vsel %vm2795_vm5, %v14068_v16, 0.0 }
 0xc4f   : > { %v14073_v5 = vpop.eup %10687  ;;  %6472 = vadd.xlane.f32.xlu0 %v6471_v9 }
 0xc50   : > { %v6483_v6 = vsel %vm2795_vm5, %v14073_v5, 0.0  ;;  %v14084_v28 = vpop.eup %10689 }
 0xc51   : > { %6478 = vadd.xlane.f32.xlu1 %v6477_v30  ;;  %6484 = vadd.xlane.f32.xlu2 %v6483_v6  ;;  %v14088_v10 = vpop.eup %10691  ;;  %v6486_v37 = vsel %vm2795_vm5, %v14084_v28, 0.0 }
 0xc52   : > { %v6489_v7 = vsel %vm2795_vm5, %v14088_v10, 0.0 }
 0xc55   : > { %v5854_v8 = vpop.permute.xlu0 %5853 }
 0xc56   : > { %v5880_v15 = vrot.slane %v5854_v8, 4  ;;  %v5883_v0 = vsel %vm828_vm11, %v5854_v8, %v5882_v52 }
 0xc57   : > { %v5891_v19 = vperm.slane %v5883_v0, %v11262_v51  ;;  %6487 = vadd.xlane.f32.xlu0 %v6486_v37 }
 0xc58   : > { %v5881_v20 = vsel %vm828_vm11, %v5880_v15, %v14001_v24 }
 0xc59   : > { %v5887_v17 = vperm.slane %v5881_v20, %v11262_v51  ;;  %v5928_v36 = vrot.slane %v5891_v19, 4  ;;  %6490 = vadd.xlane.f32.xlu2 %v6489_v7  ;;  %v5931_v32 = vsel %vm828_vm11, %v5891_v19, %v5930_v2 }
 0xc5a   : > { %v5939_v1 = vperm.slane %v5931_v32, %v11278_v11 }
 0xc5b   : > { %v5916_v38 = vrot.slane %v5887_v17, 4  ;;  %v5919_v59 = vsel %vm828_vm11, %v5887_v17, %v5918_v23  ;;  %v5929_v43 = vsel %vm828_vm11, %v5928_v36, %v5879_v45 }
 0xc5c   : > { %v5866_v24 = vpop.permute.xlu1 %5865  ;;  %v5927_v48 = vperm.slane %v5919_v59, %v11278_v11  ;;  %v5935_v33 = vperm.slane %v5929_v43, %v11278_v11  ;;  %v5978_v54 = vrot.slane %v5939_v1, 4 }
 0xc5d   : > { %v5904_v18 = vrot.slane %v5866_v24, 4  ;;  %v5907_v50 = vsel %vm828_vm11, %v5866_v24, %v5906_v56  ;;  %v5917_v41 = vsel %vm828_vm11, %v5916_v38, %v5875_v27 }
 0xc5e   : > { %v5915_v25 = vperm.slane %v5907_v50, %v11262_v51  ;;  %v5923_v46 = vperm.slane %v5917_v41, %v11278_v11  ;;  %v5970_v45 = vrot.slane %v5927_v48, 4  ;;  %v5974_v37 = vrot.slane %v5935_v33, 4 }
 0xc5f   : > { %v5905_v9 = vsel %vm828_vm11, %v5904_v18, %v14005_v3 }
 0xc60   : > { %v5911_v30 = vperm.slane %v5905_v9, %v11262_v51  ;;  %v5952_v6 = vrot.slane %v5915_v25, 4  ;;  %v5955_v31 = vsel %vm828_vm11, %v5915_v25, %v5954_v57  ;;  %v5966_v23 = vrot.slane %v5923_v46, 4 }
 0xc61   : > { %v5963_v52 = vperm.slane %v5955_v31, %v11278_v11 }
 0xc62   : > { %v5940_v60 = vrot.slane %v5911_v30, 4  ;;  %v5943_v4 = vsel %vm828_vm11, %v5911_v30, %v5942_v34  ;;  %v5953_v27 = vsel %vm828_vm11, %v5952_v6, %v5903_v63 }
 0xc63   : > { %v5951_v3 = vperm.slane %v5943_v4, %v11278_v11  ;;  %v5959_v8 = vperm.slane %v5953_v27, %v11278_v11  ;;  %v5976_v15 = vrot.slane %v5963_v52, 4  ;;  %v5979_v0 = vsel %vm828_vm11, %v5963_v52, %v5978_v54 }
 0xc64   : > { %v5941_v62 = vsel %vm828_vm11, %v5940_v60, %v5899_v13  ;;  %v6016_v19 = vrot.slane %v5979_v0, 4 }
 0xc65   : > { %v5947_v2 = vperm.slane %v5941_v62, %v11278_v11  ;;  %v5968_v61 = vrot.slane %v5951_v3, 4  ;;  %v5971_v20 = vsel %vm828_vm11, %v5951_v3, %v5970_v45  ;;  %v5972_v7 = vrot.slane %v5959_v8, 4 }
 0xc66   : > { %v5975_v17 = vsel %vm828_vm11, %v5959_v8, %v5974_v37  ;;  %v5977_v36 = vsel %vm828_vm11, %v5976_v15, %v5939_v1  ;;  %v5992_v63 = vrot.slane %v5971_v20, 4 }
 0xc67   : > { %v5964_v32 = vrot.slane %v5947_v2, 4  ;;  %v5969_v56 = vsel %vm828_vm11, %v5968_v61, %v5927_v48  ;;  %v5973_v38 = vsel %vm828_vm11, %v5972_v7, %v5935_v33  ;;  %v6004_v59 = vrot.slane %v5977_v36, 4 }
 0xc68   : > { %v6006_v13 = vrot.slane %v5973_v38, 4  ;;  %v6017_v24 = vsel %vm828_vm11, %v6016_v19, %v5975_v17  ;;  %v6018_v43 = vrot.slane %v5975_v17, 4  ;;  %v5967_v18 = vsel %vm828_vm11, %v5947_v2, %v5966_v23 }
 0xc69   : > { %v5965_v50 = vsel %vm828_vm11, %v5964_v32, %v5923_v46  ;;  %v5980_v57 = vrot.slane %v5969_v56, 4  ;;  %v5993_v41 = vsel %vm828_vm11, %v5992_v63, %v5967_v18  ;;  %v5994_v25 = vrot.slane %v5967_v18, 4 }
 0xc6a   : > { %v6019_v1 = vsel %vm828_vm11, %v5979_v0, %v6018_v43  ;;  %v5982_v34 = vrot.slane %v5965_v50, 4  ;;  %v5999_v48 = vperm.slane %v5993_v41, %v11262_v51  ;;  %v6005_v9 = vsel %vm828_vm11, %v6004_v59, %v5973_v38 }
 0xc6b   : > { %v6027_v33 = vperm.slane %v6019_v1, %v11262_v51  ;;  %v5981_v30 = vsel %vm828_vm11, %v5980_v57, %v5965_v50  ;;  %v6011_v6 = vperm.slane %v6005_v9, %v11262_v51  ;;  %v6023_v31 = vperm.slane %v6017_v24, %v11262_v51 }
 0xc6c   : > { %v5987_v46 = vperm.slane %v5981_v30, %v11262_v51  ;;  %v6028_v54 = vrot.slane %v5999_v48, 4  ;;  %v5983_v52 = vsel %vm828_vm11, %v5969_v56, %v5982_v34  ;;  %v5995_v45 = vsel %vm828_vm11, %v5971_v20, %v5994_v25 }
 0xc6d   : > { %v6052_v60 = vrot.slane %v6023_v31, 4  ;;  %v6054_v4 = vrot.slane %v6011_v6, 4  ;;  %v5991_v27 = vperm.slane %v5983_v52, %v11262_v51  ;;  %v6003_v3 = vperm.slane %v5995_v45, %v11262_v51 }
 0xc6e   : > { %v6029_v8 = vsel %vm828_vm11, %v6028_v54, %v5987_v46  ;;  %v6030_v15 = vrot.slane %v5987_v46, 4  ;;  %v6007_v0 = vsel %vm828_vm11, %v5977_v36, %v6006_v13  ;;  %v6064_v37 = vrot.slane %v6027_v33, 4 }
 0xc6f   : > { %v6035_v62 = vperm.slane %v6029_v8, %v11278_v11  ;;  %v6053_v19 = vsel %vm828_vm11, %v6052_v60, %v6011_v6  ;;  %v6055_v2 = vsel %vm828_vm11, %v6023_v31, %v6054_v4  ;;  %v6015_v61 = vperm.slane %v6007_v0, %v11262_v51 }
 0xc70   : > { %v6059_v20 = vperm.slane %v6053_v19, %v11278_v11  ;;  %v6031_v7 = vsel %vm828_vm11, %v5999_v48, %v6030_v15  ;;  %v6063_v23 = vperm.slane %v6055_v2, %v11278_v11  ;;  %v6040_v17 = vrot.slane %v6003_v3, 4 }
 0xc71   : > { %v6078_v63 = vrot.slane %v6035_v62, 4  ;;  %v6039_v32 = vperm.slane %v6031_v7, %v11278_v11  ;;  %v6065_v36 = vsel %vm828_vm11, %v6064_v37, %v6015_v61  ;;  %v6042_v56 = vrot.slane %v5991_v27, 4 }
 0xc72   : > { %v6076_v38 = vrot.slane %v6059_v20, 4  ;;  %v6080_v59 = vrot.slane %v6063_v23, 4  ;;  %v6041_v13 = vsel %vm828_vm11, %v6040_v17, %v5991_v27  ;;  %v6071_v24 = vperm.slane %v6065_v36, %v11278_v11 }
 0xc73   : > { %v6079_v43 = vsel %vm828_vm11, %v6059_v20, %v6078_v63  ;;  %v6047_v18 = vperm.slane %v6041_v13, %v11278_v11  ;;  %v6082_v50 = vrot.slane %v6039_v32, 4  ;;  %v6043_v57 = vsel %vm828_vm11, %v6003_v3, %v6042_v56  ;;  %v10312_v63 = vld [vmem:[%s15989_s6 + $0x1b8] sm:$0xff]  ;;  %v10311_v56 = vld [vmem:[%s15989_s6 + $0x1b0] sm:$0xff]  ;;  %v10309_v13 = vld [vmem:[%s15989_s6 + $0x1a0] sm:$0xff] }
 0xc74   : > { %v6077_v41 = vsel %vm828_vm11, %v6076_v38, %v6035_v62  ;;  %6574 = vmatpush.msra.mxu1 %v6079_v43  ;;  %v6081_v25 = vsel %vm828_vm11, %v6080_v59, %v6039_v32  ;;  %v6084_v1 = vrot.slane %v6071_v24, 4  ;;  %v6051_v34 = vperm.slane %v6043_v57, %v11278_v11  ;;  %v10305_v38 = vld [vmem:[%s15989_s6 + $0x188] sm:$0xff] }
 0xc75   : > { %6545 = vmatpush.msrb.mxu3 %v6077_v41  ;;  %6603 = vmatpush.msra.mxu2 %v6081_v25  ;;  %v6083_v48 = vsel %vm828_vm11, %v6063_v23, %v6082_v50  ;;  %v6086_v9 = vrot.slane %v6047_v18, 4  ;;  %v6066_v30 = vrot.slane %v6015_v61, 4  ;;  %v10310_v59 = vld [vmem:[%s15989_s6 + $0x1a8] sm:$0xff] }
 0xc76   : > { %v6085_v6 = vsel %vm828_vm11, %v6084_v1, %v6047_v18  ;;  %6632 = vmatpush.msra.mxu0 %v6083_v48  ;;  %v6090_v31 = vrot.slane %v6051_v34, 4  ;;  %v10304_v18 = vld [vmem:[%s15989_s6 + $0x180] sm:$0xff]  ;;  %v10316_v1 = vld [vmem:[%s15989_s6 + $0x1d0] sm:$0xff]  ;;  %v10315_v48 = vld [vmem:[%s15989_s6 + $0x1c8] sm:$0xff] }
 0xc77   : > { %6661 = vmatpush.msra.mxu3 %v6085_v6  ;;  %v6087_v46 = vsel %vm828_vm11, %v6071_v24, %v6086_v9  ;;  %v6067_v54 = vsel %vm828_vm11, %v6027_v33, %v6066_v30 }
 0xc78   : > { %6690 = vmatpush.msrb.mxu1 %v6087_v46  ;;  %v6075_v52 = vperm.slane %v6067_v54, %v11278_v11 }
 0xc7a   : > { %v6088_v45 = vrot.slane %v6075_v52, 4  ;;  %v6091_v60 = vsel %vm828_vm11, %v6075_v52, %v6090_v31 }
 0xc7b   : > { %6748 = vmatpush.msrb.mxu0 %v6091_v60 }
 0xc7c   : > { %v6089_v4 = vsel %vm828_vm11, %v6088_v45, %v6051_v34 }
 0xc7d   : > { %6719 = vmatpush.msrb.mxu2 %v6089_v4 }
 0xc97   : > { %v6464_v27 = vpop.xlane.xlu1 %6463 }
 0xc98   : > { %10693 = vrcp.f32 %v6464_v27 }
 0xc9b   : > { %v6458_v3 = vpop.xlane.xlu0 %6457 }
 0xc9c   : > { %10695 = vrcp.f32 %v6458_v3 }
 0xc9e   : > { %v10694_v8 = vpop.eup %10693 }
 0xc9f   : > { %v6514_v15 = vmul.f32 %v10694_v8, %v14009_v39  ;;  %v6446_v0 = vpop.xlane.xlu2 %6445 }
 0xca0   : > { %10697 = vrcp.f32 %v6446_v0 }
 0xca1   : > { %10292 = vmatmul.msk.f32.vlgmr.msra.gmra.mxu0 %vm2795_vm5, %v6514_v15 }
 0xca2   : > { %v10696_v33 = vpop.eup %10695 }
 0xca3   : > { %v6512_v37 = vmul.f32 %v10696_v33, %v14014_v29 }
 0xca5   : > { %10290 = vmatmul.msk.f32.vlgmr.msra.gmra.mxu2 %vm2795_vm5, %v6512_v37 }
 0xca6   : > { %v10698_v62 = vpop.eup %10697  ;;  %7379 = vmatpush.msra.mxu2 %v10312_v63 }
 0xca7   : > { %v6508_v19 = vmul.f32 %v10698_v62, %v14018_v21  ;;  %v6452_v2 = vpop.xlane.xlu2 %6451  ;;  %v10307_v21 = vld [vmem:[%s15989_s6 + $0x198] sm:$0xff] }
 0xca8   : > { %10699 = vrcp.f32 %v6452_v2  ;;  %7380 = vmatpush.msra.mxu2 %v10311_v56  ;;  %v14262_v56 = vld [vmem:[%s15990_s7 + $0xc] ss:$0 sm:$0xff] }
 0xca9   : > { %10286 = vmatmul.msk.f32.vlgmr.msrb.gmra.mxu3 %vm2795_vm5, %v6508_v19 }
 0xcaa   : > { %v6461_v61 = vpop.xlane.xlu0 %6460  ;;  %7381 = vmatpush.msra.mxu2 %v10310_v59 }
 0xcab   : > { %10701 = vrcp.f32 %v6461_v61 }
 0xcac   : > { %v6449_v20 = vpop.xlane.xlu1 %6448  ;;  %7382 = vmatpush.msra.mxu2 %v10309_v13 }
 0xcad   : > { %10703 = vrcp.f32 %v6449_v20 }
 0xcae   : > { %v10700_v39 = vpop.eup %10699 }
 0xcaf   : > { %v6510_v7 = vmul.f32 %v10700_v39, %v14026_v42  ;;  %v6455_v23 = vpop.xlane.xlu2 %6454 }
 0xcb0   : > { %10705 = vrcp.f32 %v6455_v23 }
 0xcb1   : > { %v10702_v17 = vpop.eup %10701  ;;  %10288 = vmatmul.msk.f32.vlgmr.msra.gmra.mxu1 %vm2795_vm5, %v6510_v7 }
 0xcb2   : > { %v6513_v29 = vmul.f32 %v10702_v17, %v14030_v53  ;;  %7351 = vmatpush.msra.mxu1 %v10307_v21  ;;  %v10306_v53 = vld [vmem:[%s15989_s6 + $0x190] sm:$0xff] }
 0xcb3   : > { %v10704_v32 = vpop.eup %10703 }
 0xcb4   : > { %v6467_v36 = vpop.xlane.xlu1 %6466  ;;  %10291 = vmatmul.msk.f32.gmra.mxu2 %vm2795_vm5, %v6513_v29  ;;  %v6509_v42 = vmul.f32 %v10704_v32, %v14036_v35  ;;  %7352 = vmatpush.msra.mxu1 %v10306_v53 }
 0xcb5   : > { %10707 = vrcp.f32 %v6467_v36 }
 0xcb6   : > { %v10706_v35 = vpop.eup %10705  ;;  %10287 = vmatmul.msk.f32.gmra.mxu3 %vm2795_vm5, %v6509_v42  ;;  %7353 = vmatpush.msra.mxu1 %v10305_v38 }
 0xcb7   : > { %v6482_v24 = vpop.xlane.xlu2 %6481  ;;  %v6511_v43 = vmul.f32 %v10706_v35, %v14038_v40  ;;  %v10317_v40 = vld [vmem:[%s15989_s6 + $0x1d8] sm:$0xff] }
 0xcb8   : > { %10709 = vrcp.f32 %v6482_v24  ;;  %7354 = vmatpush.msra.mxu1 %v10304_v18  ;;  %7402 = vmatpush.msra.mxu0 %v10317_v40 }
 0xcb9   : > { %10289 = vmatmul.msk.f32.gmra.mxu1 %vm2795_vm5, %v6511_v43 }
 0xcba   : > { %v6470_v50 = vpop.xlane.xlu0 %6469  ;;  %7403 = vmatpush.msra.mxu0 %v10316_v1 }
 0xcbb   : > { %v10708_v57 = vpop.eup %10707  ;;  %10711 = vrcp.f32 %v6470_v50 }
 0xcbc   : > { %v6476_v41 = vpop.xlane.xlu1 %6475  ;;  %v6515_v25 = vmul.f32 %v10708_v57, %v14045_v14  ;;  %v10314_v14 = vld [vmem:[%s15989_s6 + $0x1c0] sm:$0xff]  ;;  %7404 = vmatpush.msra.mxu0 %v10315_v48 }
 0xcbd   : > { %10713 = vrcp.f32 %v6476_v41 }
 0xcbe   : > { %v10710_v34 = vpop.eup %10709  ;;  %10293 = vmatmul.msk.f32.gmra.mxu0 %vm2795_vm5, %v6515_v25 }
 0xcbf   : > { %v6520_v9 = vmul.f32 %v10710_v34, %v14048_v47  ;;  %7405 = vmatpush.msra.mxu0 %v10314_v14 }
 0xcc1   : > { %v10712_v30 = vpop.eup %10711  ;;  %10298 = vmatmul.msk.f32.vlgmr.msrb.gmra.mxu2 %vm2795_vm5, %v6520_v9 }
 0xcc2   : > { %v6516_v6 = vmul.f32 %v10712_v30, %v14057_v49  ;;  %v6473_v31 = vpop.xlane.xlu0 %6472 }
 0xcc3   : > { %v10714_v46 = vpop.eup %10713  ;;  %10715 = vrcp.f32 %v6473_v31 }
 0xcc4   : > { %v6518_v54 = vmul.f32 %v10714_v46, %v14055_v26  ;;  %v6479_v52 = vpop.xlane.xlu1 %6478  ;;  %10294 = vmatmul.msk.f32.vlgmr.msra.gmra.mxu3 %vm2795_vm5, %v6516_v6  ;;  %v6485_v47 = vpop.xlane.xlu2 %6484 }
 0xcc5   : > { %10717 = vrcp.f32 %v6479_v52 }
 0xcc6   : > { %10719 = vrcp.f32 %v6485_v47  ;;  %10296 = vmatmul.msk.f32.vlgmr.msrb.gmra.mxu1 %vm2795_vm5, %v6518_v54 }
 0xcc9   : > { %v10716_v45 = vpop.eup %10715 }
 0xcca   : > { %v6488_v60 = vpop.xlane.xlu0 %6487  ;;  %v6517_v4 = vmul.f32 %v10716_v45, %v14068_v16 }
 0xccb   : > { %v10718_v27 = vpop.eup %10717  ;;  %10721 = vrcp.f32 %v6488_v60 }
 0xccc   : > { %v10720_v49 = vpop.eup %10719  ;;  %10295 = vmatmul.msk.f32.gmra.mxu3 %vm2795_vm5, %v6517_v4  ;;  %v6519_v3 = vmul.f32 %v10718_v27, %v14066_v22  ;;  %v6491_v8 = vpop.xlane.xlu2 %6490 }
 0xccd   : > { %v6521_v26 = vmul.f32 %v10720_v49, %v14073_v5  ;;  %10723 = vrcp.f32 %v6491_v8 }
 0xcce   : > { %10297 = vmatmul.msk.f32.gmra.mxu1 %vm2795_vm5, %v6519_v3 }
 0xccf   : > { %10299 = vmatmul.msk.f32.gmra.mxu2 %vm2795_vm5, %v6521_v26 }
 0xcd1   : > { %v10722_v15 = vpop.eup %10721 }
 0xcd2   : > { %v6522_v0 = vmul.f32 %v10722_v15, %v14084_v28 }
 0xcd3   : > { %v10724_v16 = vpop.eup %10723 }
 0xcd4   : > { %10300 = vmatmul.msk.f32.vlgmr.msrb.gmra.mxu0 %vm2795_vm5, %v6522_v0  ;;  %v6523_v22 = vmul.f32 %v10724_v16, %v14088_v10 }
 0xcd6   : > { %10324 = vmatmul.msk.f32.vlgmr.msra.gmra.mxu1 %vm530_vm0, %v12148_v44 }
 0xcd7   : > { %10326 = vmatmul.msk.f32.vlgmr.msra.gmra.mxu2 %vm530_vm0, %v13523_v55 }
 0xcdc   : > { %10301 = vmatmul.msk.f32.gmra.mxu0 %vm2795_vm5, %v6523_v22 }
 0xcde   : > { %10325 = vmatmul.msk.f32.gmra.mxu1 %vm530_vm0, %v12173_v58 }
 0xce4   : > { %10327 = vmatmul.msk.f32.vlgmr.msra.gmra.mxu0 %vm530_vm0, %v13523_v55 }
 0xd1e   : > { %v6634_v62 = vpop.f32.mrf.mxu0 }
 0xd1f   : > { %v6768_v10 = vrot.slane %v6634_v62, 4 }
 0xd28   : > { %v6605_v37 = vpop.f32.mrf.mxu2 }
 0xd29   : > { %v6756_v61 = vrot.slane %v6605_v37, 4 }
 0xd2c   : > { %v6547_v28 = vpop.f32.mrf.mxu3 }
 0xd2d   : > { %v6757_v20 = vsel %vm828_vm11, %v6756_v61, %v6547_v28  ;;  %v6758_v39 = vrot.slane %v6547_v28, 4 }
 0xd2e   : > { %v6576_v5 = vpop.f32.mrf.mxu1  ;;  %v6763_v23 = vperm.slane %v6757_v20, %v11262_v51 }
 0xd2f   : > { %v6769_v58 = vsel %vm828_vm11, %v6768_v10, %v6576_v5  ;;  %v6770_v55 = vrot.slane %v6576_v5, 4  ;;  %v6759_v63 = vsel %vm828_vm11, %v6605_v37, %v6758_v39 }
 0xd30   : > { %v6775_v32 = vperm.slane %v6769_v58, %v11262_v51  ;;  %v6806_v36 = vrot.slane %v6763_v23, 4  ;;  %v6767_v42 = vperm.slane %v6759_v63, %v11262_v51 }
 0xd31   : > { %v6771_v53 = vsel %vm828_vm11, %v6634_v62, %v6770_v55 }
 0xd32   : > { %v6804_v38 = vrot.slane %v6775_v32, 4  ;;  %v6779_v13 = vperm.slane %v6771_v53, %v11262_v51  ;;  %v6807_v24 = vsel %vm828_vm11, %v6775_v32, %v6806_v36  ;;  %v6818_v43 = vrot.slane %v6767_v42, 4 }
 0xd33   : > { %v14270_v9 = vperm.slane %v6807_v24, %v11278_v11 }
 0xd34   : > { %v6805_v48 = vsel %vm828_vm11, %v6804_v38, %v6763_v23  ;;  %v6816_v6 = vrot.slane %v6779_v13, 4  ;;  %v6819_v52 = vsel %vm828_vm11, %v6779_v13, %v6818_v43 }
 0xd35   : > { %v14285_v26 = vperm.slane %v6805_v48, %v11278_v11  ;;  %v14302_v39 = vperm.slane %v6819_v52, %v11278_v11 }
 0xd36   : > { %v6579_v33 = vpop.f32.mrf.mxu1 }
 0xd37   : > { %v6608_v44 = vpop.f32.mrf.mxu2  ;;  %v6882_v40 = vrot.slane %v6579_v33, 4 }
 0xd38   : > { %v6868_v41 = vrot.slane %v6608_v44, 4 }
 0xd39   : > { %v6550_v19 = vpop.f32.mrf.mxu3 }
 0xd3a   : > { %v6870_v25 = vrot.slane %v6550_v19, 4  ;;  %v6869_v31 = vsel %vm828_vm11, %v6868_v41, %v6550_v19 }
 0xd3b   : > { %v6637_v7 = vpop.f32.mrf.mxu0  ;;  %v6875_v8 = vperm.slane %v6869_v31, %v11262_v51 }
 0xd3c   : > { %v6880_v14 = vrot.slane %v6637_v7, 4  ;;  %v6871_v4 = vsel %vm828_vm11, %v6608_v44, %v6870_v25  ;;  %v6883_v27 = vsel %vm828_vm11, %v6637_v7, %v6882_v40 }
 0xd3d   : > { %v6879_v62 = vperm.slane %v6871_v4, %v11262_v51  ;;  %v6891_v44 = vperm.slane %v6883_v27, %v11262_v51  ;;  %v6918_v7 = vrot.slane %v6875_v8, 4 }
 0xd3e   : > { %v6881_v15 = vsel %vm828_vm11, %v6880_v14, %v6579_v33 }
 0xd3f   : > { %v6887_v33 = vperm.slane %v6881_v15, %v11262_v51  ;;  %v6928_v36 = vrot.slane %v6891_v44, 4 }
 0xd41   : > { %v6916_v13 = vrot.slane %v6887_v33, 4  ;;  %v6919_v43 = vsel %vm828_vm11, %v6887_v33, %v6918_v7 }
 0xd43   : > { %v6692_v2 = vpop.f32.mrf.mxu1 }
 0xd44   : > { %v6721_v17 = vpop.f32.mrf.mxu2  ;;  %v6794_v59 = vrot.slane %v6692_v2, 4 }
 0xd45   : > { %v6780_v49 = vrot.slane %v6721_v17, 4 }
 0xd47   : > { %v6663_v29 = vpop.f32.mrf.mxu3 }
 0xd48   : > { %v6782_v47 = vrot.slane %v6663_v29, 4  ;;  %v6781_v61 = vsel %vm828_vm11, %v6780_v49, %v6663_v29  ;;  %v6930_v29 = vrot.slane %v6879_v62, 4 }
 0xd49   : > { %v6787_v53 = vperm.slane %v6781_v61, %v11262_v51 }
 0xd4a   : > { %v6783_v0 = vsel %vm828_vm11, %v6721_v17, %v6782_v47  ;;  %v6817_v17 = vsel %vm828_vm11, %v6816_v6, %v6767_v42 }
 0xd4b   : > { %v6695_v21 = vpop.f32.mrf.mxu1  ;;  %v6791_v20 = vperm.slane %v6783_v0, %v11262_v51  ;;  %v6823_v42 = vperm.slane %v6817_v17, %v11278_v11  ;;  %v6830_v48 = vrot.slane %v6787_v53, 4 }
 0xd4c   : > { %v6906_v22 = vrot.slane %v6695_v21, 4 }
 0xd4d   : > { %v6842_v24 = vrot.slane %v6791_v20, 4 }
 0xd4f   : > { %v6666_v30 = vpop.f32.mrf.mxu3 }
 0xd50   : > { %v6894_v3 = vrot.slane %v6666_v30, 4 }
 0xd51   : > { %v6750_v35 = vpop.f32.mrf.mxu0 }
 0xd52   : > { %v6792_v18 = vrot.slane %v6750_v35, 4  ;;  %v6795_v50 = vsel %vm828_vm11, %v6750_v35, %v6794_v59  ;;  %v6724_v1 = vpop.f32.mrf.mxu2  ;;  %v6858_v35 = vrot.slane %v14270_v9, 4 }
 0xd53   : > { %v7356_v57 = vpop.f32.mrf.mxu1  ;;  %v6803_v46 = vperm.slane %v6795_v50, %v11262_v51  ;;  %v6892_v60 = vrot.slane %v6724_v1, 4  ;;  %v6895_v37 = vsel %vm828_vm11, %v6724_v1, %v6894_v3  ;;  %v6929_v1 = vsel %vm828_vm11, %v6928_v36, %v6879_v62 }
 0xd54   : > { %v7357_v34 = vadd.f32 %v14262_v56, %v7356_v57  ;;  %v6793_v45 = vsel %vm828_vm11, %v6792_v18, %v6692_v2  ;;  %v6903_v23 = vperm.slane %v6895_v37, %v11262_v51  ;;  %v14335_v4 = vperm.slane %v6929_v1, %v11278_v11 }
 0xd55   : > { %v6799_v5 = vperm.slane %v6793_v45, %v11262_v51  ;;  %v6840_v28 = vrot.slane %v6803_v46, 4  ;;  %v6893_v19 = vsel %vm828_vm11, %v6892_v60, %v6666_v30  ;;  %v6843_v41 = vsel %vm828_vm11, %v6803_v46, %v6842_v24 }
 0xd56   : > { %v14274_v54 = vmul.f32 0.5, %v7357_v34  ;;  %v6899_v32 = vperm.slane %v6893_v19, %v11262_v51  ;;  %v6954_v50 = vrot.slane %v6903_v23, 4  ;;  %v6931_v34 = vsel %vm828_vm11, %v6891_v44, %v6930_v29 }
 0xd57   : > { %v6828_v55 = vrot.slane %v6799_v5, 4  ;;  %v6841_v63 = vsel %vm828_vm11, %v6840_v28, %v6791_v20  ;;  %v6917_v30 = vsel %vm828_vm11, %v6916_v13, %v6875_v8  ;;  %v6831_v47 = vsel %vm828_vm11, %v6799_v5, %v6830_v48 }
 0xd58   : > { %7430 = vrot.lane.b32.xlu0 %v14274_v54, %s16083_s0  ;;  %7418 = vrot.lane.b32.xlu1 %v14274_v54, %s16079_s27  ;;  %v6847_v18 = vperm.slane %v6841_v63, %v11278_v11  ;;  %v6942_v25 = vrot.slane %v6899_v32, 4  ;;  %v6851_v45 = vperm.slane %v6843_v41, %v11278_v11  ;;  %v6927_v60 = vperm.slane %v6919_v43, %v11278_v11 }
 0xd59   : > { %v6753_v16 = vpop.f32.mrf.mxu0  ;;  %7412 = vrot.lane.b32.xlu2 %v14274_v54, %s16082_s28  ;;  %v6829_v57 = vsel %vm828_vm11, %v6828_v55, %v6787_v53  ;;  %v6854_v3 = vrot.slane %v14285_v26, 4  ;;  %v6923_v8 = vperm.slane %v6917_v30, %v11278_v11  ;;  %v6939_v15 = vperm.slane %v6931_v34, %v11278_v11 }
 0xd5a   : > { %v6904_v2 = vrot.slane %v6753_v16, 4  ;;  %v6907_v10 = vsel %vm828_vm11, %v6753_v16, %v6906_v22  ;;  %v6835_v46 = vperm.slane %v6829_v57, %v11278_v11  ;;  %v6866_v16 = vrot.slane %v14302_v39, 4  ;;  %v7384_v34 = vpop.f32.mrf.mxu2 }
 0xd5b   : > { %v6915_v38 = vperm.slane %v6907_v10, %v11262_v51  ;;  %v7359_v59 = vpop.f32.mrf.mxu1  ;;  %v6839_v22 = vperm.slane %v6831_v47, %v11278_v11  ;;  %v6862_v37 = vrot.slane %v6823_v42, 4  ;;  %v6864_v19 = vrot.slane %v6851_v45, 4 }
 0xd5c   : > { %v6905_v58 = vsel %vm828_vm11, %v6904_v2, %v6695_v21  ;;  %v7360_v40 = vadd.f32 %v14262_v56, %v7359_v59  ;;  %v6860_v56 = vrot.slane %v6847_v18, 4  ;;  %v6852_v62 = vrot.slane %v6835_v46, 4 }
 0xd5d   : > { %v6911_v21 = vperm.slane %v6905_v58, %v11262_v51  ;;  %v6955_v14 = vsel %vm828_vm11, %v6915_v38, %v6954_v50  ;;  %v6952_v52 = vrot.slane %v6915_v38, 4  ;;  %v6970_v2 = vrot.slane %v6927_v60, 4  ;;  %v10571_v50 = vld [vmem:[%s15990_s7 + $0xd] ss:$0 sm:$0xff] }
 0xd5e   : > { %v6963_v27 = vperm.slane %v6955_v14, %v11278_v11  ;;  %v14338_v49 = vmul.f32 0.5, %v7360_v40  ;;  %v6861_v44 = vsel %vm828_vm11, %v6860_v56, %v6823_v42  ;;  %v6974_v33 = vrot.slane %v14335_v4, 4 }
 0xd5f   : > { %v6940_v6 = vrot.slane %v6911_v21, 4  ;;  %v6943_v31 = vsel %vm828_vm11, %v6911_v21, %v6942_v25  ;;  %v6953_v28 = vsel %vm828_vm11, %v6952_v52, %v6903_v23  ;;  %v6867_v61 = vsel %vm828_vm11, %v6851_v45, %v6866_v16 }
 0xd60   : > { %7436 = vrot.lane.b32.xlu0 %v14274_v54, %s16084_s26  ;;  %7424 = vrot.lane.b32.xlu1 %v14274_v54, %s16080_s19  ;;  %v6951_v0 = vperm.slane %v6943_v31, %v11278_v11  ;;  %v6976_v20 = vrot.slane %v6963_v27, 4  ;;  %v6978_v10 = vrot.slane %v6939_v15, 4  ;;  %v6959_v23 = vperm.slane %v6953_v28, %v11278_v11 }
 0xd61   : > { %7442 = vrot.lane.b32.xlu2 %v14274_v54, %s16081_s20  ;;  %v6941_v5 = vsel %vm828_vm11, %v6940_v6, %v6899_v32  ;;  %v6966_v17 = vrot.slane %v6923_v8, 4  ;;  %v6856_v55 = vrot.slane %v6839_v22, 4  ;;  %v7006_v63 = vrot.slane %v6861_v44, 4 }
 0xd62   : > { %v6947_v7 = vperm.slane %v6941_v5, %v11278_v11  ;;  %v6968_v58 = vrot.slane %v6951_v0, 4  ;;  %v6859_v32 = vsel %vm828_vm11, %v6839_v22, %v6858_v35  ;;  %v6853_v29 = vsel %vm828_vm11, %v6852_v62, %v14285_v26 }
 0xd63   : > { %v6863_v36 = vsel %vm828_vm11, %v6847_v18, %v6862_v37  ;;  %v6865_v53 = vsel %vm828_vm11, %v6864_v19, %v14302_v39  ;;  %v7016_v38 = vrot.slane %v6867_v61, 4  ;;  %v6855_v59 = vsel %vm828_vm11, %v6835_v46, %v6854_v3 }
 0xd64   : > { %v14367_v13 = vsel %vm828_vm11, %v6951_v0, %v6970_v2  ;;  %v14370_v24 = vsel %vm828_vm11, %v6976_v20, %v6939_v15  ;;  %v14373_v21 = vsel %vm828_vm11, %v6963_v27, %v6978_v10  ;;  %v6964_v35 = vrot.slane %v6947_v7, 4 }
 0xd65   : > { %v14376_v26 = vsel %vm828_vm11, %v6968_v58, %v6927_v60  ;;  %v6972_v42 = vrot.slane %v6959_v23, 4  ;;  %v6992_v43 = vrot.slane %v6859_v32, 4  ;;  %v7004_v18 = vrot.slane %v6865_v53, 4 }
 0xd66   : > { %v7007_v39 = vsel %vm828_vm11, %v6865_v53, %v7006_v63  ;;  %v6857_v57 = vsel %vm828_vm11, %v6856_v55, %v14270_v9  ;;  %v6982_v41 = vrot.slane %v6853_v29, 4  ;;  %v7104_v25 = vrot.slane %v14367_v13, 4 }
 0xd67   : > { %v7116_v40 = vrot.slane %v14370_v24, 4  ;;  %v7128_v1 = vrot.slane %v14373_v21, 4  ;;  %v7017_v48 = vsel %vm828_vm11, %v7016_v38, %v6863_v36  ;;  %v7018_v14 = vrot.slane %v6863_v36, 4 }
 0xd68   : > { %7414 = vrot.lane.b32.xlu0 %v14338_v49, %s16082_s28  ;;  %7432 = vrot.lane.b32.xlu1 %v14338_v49, %s16083_s0  ;;  %v14395_v30 = vsel %vm828_vm11, %v6947_v7, %v6966_v17  ;;  %v14398_v6 = vsel %vm828_vm11, %v6959_v23, %v6974_v33  ;;  %v7092_v9 = vrot.slane %v14376_v26, 4  ;;  %v6980_v31 = vrot.slane %v6857_v57, 4 }
 0xd69   : > { %7448 = vrot.lane.b32.xlu2 %v14274_v54, %s16078_s25  ;;  %v6993_v52 = vsel %vm828_vm11, %v6992_v43, %v6855_v59  ;;  %v14403_v47 = vsel %vm828_vm11, %v6964_v35, %v6923_v8  ;;  %v14407_v46 = vsel %vm828_vm11, %v6972_v42, %v14335_v4  ;;  %v14409_v45 = vadd.f32 %v10571_v50, %v7384_v34 }
 0xd6a   : > { %v6983_v56 = vsel %vm828_vm11, %v6857_v57, %v6982_v41  ;;  %v14413_v60 = vperm.slane %v7007_v39, %v11262_v51  ;;  %v14416_v27 = vperm.slane %v7017_v48, %v11262_v51  ;;  %v7005_v3 = vsel %vm828_vm11, %v7004_v18, %v6861_v44 }
 0xd6b   : > { %v7105_v8 = vsel %vm828_vm11, %v7104_v25, %v14395_v30  ;;  %v7117_v15 = vsel %vm828_vm11, %v7116_v40, %v14407_v46  ;;  %v7129_v4 = vsel %vm828_vm11, %v7128_v1, %v14398_v6  ;;  %v6994_v0 = vrot.slane %v6855_v59, 4 }
 0xd6c   : > { %v6999_v16 = vperm.slane %v6993_v52, %v11262_v51  ;;  %v7093_v22 = vsel %vm828_vm11, %v7092_v9, %v14403_v47  ;;  %v14429_v5 = vperm.slane %v7105_v8, %v11262_v51  ;;  %v7019_v28 = vsel %vm828_vm11, %v6867_v61, %v7018_v14 }
 0xd6d   : > { %v6981_v37 = vsel %vm828_vm11, %v6980_v31, %v6853_v29  ;;  %v14434_v62 = vperm.slane %v7117_v15, %v11262_v51  ;;  %v14437_v44 = vperm.slane %v7129_v4, %v11262_v51  ;;  %v6991_v19 = vperm.slane %v6983_v56, %v11262_v51 }
 0xd6e   : > { %v7066_v2 = vrot.slane %v14413_v60, 4  ;;  %v14446_v33 = vperm.slane %v7005_v3, %v11262_v51  ;;  %v7052_v61 = vrot.slane %v14416_v27, 4  ;;  %v14452_v20 = vperm.slane %v7093_v22, %v11262_v51 }
 0xd6f   : > { %v7140_v10 = vrot.slane %v14429_v5, 4  ;;  %v7164_v7 = vrot.slane %v14437_v44, 4  ;;  %v6995_v23 = vsel %vm828_vm11, %v6859_v32, %v6994_v0  ;;  %v7027_v58 = vperm.slane %v7019_v28, %v11262_v51 }
 0xd70   : > { %7444 = vrot.lane.b32.xlu0 %v14338_v49, %s16081_s20  ;;  %7438 = vrot.lane.b32.xlu1 %v14338_v49, %s16084_s26  ;;  %v6987_v17 = vperm.slane %v6981_v37, %v11262_v51  ;;  %v7028_v55 = vrot.slane %v6999_v16, 4  ;;  %v7042_v29 = vrot.slane %v6991_v19, 4  ;;  %v7053_v53 = vsel %vm828_vm11, %v7052_v61, %v14446_v33 }
 0xd71   : > { %7420 = vrot.lane.b32.xlu2 %v14338_v49, %s16079_s27  ;;  %v7165_v63 = vsel %vm828_vm11, %v7164_v7, %v14434_v62  ;;  %v7067_v36 = vsel %vm828_vm11, %v7027_v58, %v7066_v2  ;;  %v7003_v38 = vperm.slane %v6995_v23, %v11262_v51  ;;  %v7141_v59 = vsel %vm828_vm11, %v7140_v10, %v14452_v20 }
 0xd72   : > { %v7029_v32 = vsel %vm828_vm11, %v7028_v55, %v6987_v17  ;;  %v14469_v35 = vperm.slane %v7165_v63, %v11278_v11  ;;  %v14472_v42 = vperm.slane %v7067_v36, %v11278_v11  ;;  %v7059_v43 = vperm.slane %v7053_v53, %v11278_v11 }
 0xd73   : > { %v7043_v18 = vsel %vm828_vm11, %v7003_v38, %v7042_v29  ;;  %v7147_v39 = vperm.slane %v7141_v59, %v11278_v11  ;;  %v7040_v50 = vrot.slane %v7003_v38, 4  ;;  %v7035_v57 = vperm.slane %v7029_v32, %v11278_v11 }
 0xd74   : > { %v7188_v41 = vrot.slane %v14469_v35, 4  ;;  %v14486_v25 = vperm.slane %v7043_v18, %v11278_v11  ;;  %v7088_v40 = vrot.slane %v14472_v42, 4  ;;  %v7076_v1 = vrot.slane %v7059_v43, 4 }
 0xd75   : > { %v7130_v48 = vrot.slane %v14398_v6, 4  ;;  %v7041_v14 = vsel %vm828_vm11, %v7040_v50, %v6991_v19  ;;  %v7064_v52 = vrot.slane %v7027_v58, 4  ;;  %v7030_v3 = vrot.slane %v6987_v17, 4 }
 0xd76   : > { %v14490_v34 = vsel %vm828_vm11, %v7188_v41, %v7147_v39  ;;  %v14495_v9 = vsel %vm828_vm11, %v7076_v1, %v7035_v57  ;;  %v7089_v31 = vsel %vm828_vm11, %v7088_v40, %v14486_v25  ;;  %v7047_v56 = vperm.slane %v7041_v14, %v11278_v11 }
 0xd77   : > { %v7106_v8 = vrot.slane %v14395_v30, 4  ;;  %v7131_v6 = vsel %vm828_vm11, %v14373_v21, %v7130_v48  ;;  %v7118_v15 = vrot.slane %v14407_v46, 4  ;;  %v7065_v4 = vsel %vm828_vm11, %v7064_v52, %v14413_v60 }
 0xd78   : > { %7450 = vrot.lane.b32.xlu0 %v14338_v49, %s16078_s25  ;;  %7906 = vrot.lane.b32.xlu1 %v14409_v45, %s16079_s27  ;;  %v7078_v0 = vrot.slane %v7035_v57, 4  ;;  %v7139_v22 = vperm.slane %v7131_v6, %v11262_v51  ;;  %v7086_v28 = vrot.slane %v7047_v56, 4  ;;  %v7031_v37 = vsel %vm828_vm11, %v6999_v16, %v7030_v3 }
 0xd79   : > { %7426 = vrot.lane.b32.xlu2 %v14338_v49, %s16080_s19  ;;  %v7094_v19 = vrot.slane %v14403_v47, 4  ;;  %v7107_v30 = vsel %vm828_vm11, %v14367_v13, %v7106_v8  ;;  %v7119_v21 = vsel %vm828_vm11, %v14370_v24, %v7118_v15  ;;  %v7071_v2 = vperm.slane %v7065_v4, %v11278_v11 }
 0xd7a   : > { %v7054_v46 = vrot.slane %v14446_v33, 4  ;;  %v7079_v60 = vsel %vm828_vm11, %v7059_v43, %v7078_v0  ;;  %v7039_v61 = vperm.slane %v7031_v37, %v11278_v11  ;;  %v7115_v13 = vperm.slane %v7107_v30, %v11262_v51 }
 0xd7b   : > { %v7087_v16 = vsel %vm828_vm11, %v7071_v2, %v7086_v28  ;;  %v7127_v47 = vperm.slane %v7119_v21, %v11262_v51  ;;  %v7176_v24 = vrot.slane %v7139_v22, 4  ;;  %v7095_v33 = vsel %vm828_vm11, %v14376_v26, %v7094_v19  ;;  %v7407_v28 = vpop.f32.mrf.mxu0 }
 0xd7c   : > { %v7142_v10 = vrot.slane %v14452_v20, 4  ;;  %v7055_v7 = vsel %vm828_vm11, %v14416_v27, %v7054_v46  ;;  %v7084_v23 = vrot.slane %v7071_v2, 4  ;;  %v7082_v58 = vrot.slane %v7039_v61, 4 }
 0xd7d   : > { %v7190_v17 = vrot.slane %v7147_v39, 4  ;;  %v7103_v55 = vperm.slane %v7095_v33, %v11262_v51  ;;  %v7152_v63 = vrot.slane %v7115_v13, 4  ;;  %v7177_v29 = vsel %vm828_vm11, %v7176_v24, %v7127_v47 }
 0xd7e   : > { %v7063_v36 = vperm.slane %v7055_v7, %v11278_v11  ;;  %v7143_v53 = vsel %vm828_vm11, %v14429_v5, %v7142_v10  ;;  %v7085_v26 = vsel %vm828_vm11, %v7084_v23, %v7047_v56  ;;  %v7183_v38 = vperm.slane %v7177_v29, %v11278_v11 }
 0xd7f   : > { %v7166_v27 = vrot.slane %v14434_v62, 4  ;;  %v7191_v59 = vsel %vm828_vm11, %v14469_v35, %v7190_v17  ;;  %v7153_v32 = vsel %vm828_vm11, %v7152_v63, %v7103_v55  ;;  %v7151_v43 = vperm.slane %v7143_v53, %v11278_v11 }
 0xd80   : > { %7915 = vrot.lane.b32.xlu1 %v14409_v45, %s16084_s26  ;;  %7903 = vrot.lane.b32.xlu0 %v14409_v45, %s16082_s28  ;;  %v7083_v20 = vsel %vm828_vm11, %v7063_v36, %v7082_v58  ;;  %v7178_v5 = vrot.slane %v7127_v47, 4  ;;  %v7080_v18 = vrot.slane %v7063_v36, 4  ;;  %v7159_v39 = vperm.slane %v7153_v32, %v11278_v11 }
 0xd81   : > { %7912 = vrot.lane.b32.xlu2 %v14409_v45, %s16083_s0  ;;  %v7196_v50 = vrot.slane %v7183_v38, 4  ;;  %v7167_v62 = vsel %vm828_vm11, %v14437_v44, %v7166_v27  ;;  %v7194_v57 = vrot.slane %v7151_v43, 4  ;;  %v7154_v41 = vrot.slane %v7103_v55, 4 }
 0xd82   : > { %v7179_v40 = vsel %vm828_vm11, %v7139_v22, %v7178_v5  ;;  %v7175_v35 = vperm.slane %v7167_v62, %v11278_v11  ;;  %v7081_v1 = vsel %vm828_vm11, %v7080_v18, %v7039_v61  ;;  %v7090_v52 = vrot.slane %v14486_v25, 4  ;;  %v10572_v25 = vld [vmem:[%s15990_s7 + $0xe] ss:$0 sm:$0xff] }
 0xd83   : > { %v7197_v48 = vsel %vm828_vm11, %v7196_v50, %v7159_v39  ;;  %v7155_v44 = vsel %vm828_vm11, %v7115_v13, %v7154_v41  ;;  %v7198_v0 = vrot.slane %v7159_v39, 4  ;;  %v14575_v37 = vadd.f32 %v10572_v25, %v7407_v28 }
 0xd84   : > { %v7195_v14 = vsel %vm828_vm11, %v7175_v35, %v7194_v57  ;;  %v7192_v56 = vrot.slane %v7175_v35, 4  ;;  %v7163_v3 = vperm.slane %v7155_v44, %v11278_v11  ;;  %v7091_v6 = vsel %vm828_vm11, %v14472_v42, %v7090_v52 }
 0xd85   : > { %v7199_v42 = vsel %vm828_vm11, %v7183_v38, %v7198_v0  ;;  %v7568_v10 = vrot.slane %v14338_v49, 4 }
 0xd86   : > { %v7193_v15 = vsel %vm828_vm11, %v7192_v56, %v7151_v43  ;;  %v7202_v22 = vrot.slane %v7163_v3, 4 }
 0xd88   : > { %7909 = vrot.lane.b32.xlu0 %v14409_v45, %s16080_s19  ;;  %7246 = vrot.lane.b32.xlu1 %v7089_v31, %s16091_s16  ;;  %v7187_v31 = vperm.slane %v7179_v40, %v11278_v11 }
 0xd89   : > { %7921 = vrot.lane.b32.xlu2 %v14409_v45, %s16078_s25 }
 0xd8a   : > { %v7200_v8 = vrot.slane %v7187_v31, 4  ;;  %v7203_v19 = vsel %vm828_vm11, %v7187_v31, %v7202_v22 }
 0xd8c   : > { %v7201_v4 = vsel %vm828_vm11, %v7200_v8, %v7163_v3 }
 0xd90   : > { %7918 = vrot.lane.b32.xlu0 %v14409_v45, %s16081_s20  ;;  %7206 = vrot.lane.b32.xlu1 %v7079_v60, %s16087_s29 }
 0xd91   : > { %7238 = vrot.lane.b32.xlu2 %v7087_v16, %s16093_s13  ;;  %v7456_v16 = vrot.slane %v14274_v54, 4 }
 0xd98   : > { %7230 = vrot.lane.b32.xlu0 %v7085_v26, %s16090_s22  ;;  %7222 = vrot.lane.b32.xlu1 %v7083_v20, %s16088_s1 }
 0xd99   : > { %7208 = vrot.lane.b32.xlu2 %v7191_v59, %s16087_s29 }
 0xda0   : > { %7214 = vrot.lane.b32.xlu0 %v7081_v1, %s16089_s24  ;;  %7232 = vrot.lane.b32.xlu1 %v7197_v48, %s16090_s22 }
 0xda1   : > { %7224 = vrot.lane.b32.xlu2 %v7195_v14, %s16088_s1 }
 0xda8   : > { %7254 = vrot.lane.b32.xlu0 %v7091_v6, %s16092_s14  ;;  %7216 = vrot.lane.b32.xlu1 %v7193_v15, %s16089_s24 }
 0xda9   : > { %7248 = vrot.lane.b32.xlu2 %v7201_v4, %s16091_s16 }
 0xdb0   : > { %7240 = vrot.lane.b32.xlu0 %v7199_v42, %s16093_s13  ;;  %7256 = vrot.lane.b32.xlu1 %v7203_v19, %s16092_s14 }
 0xdb1   : > { %8149 = vrot.lane.b32.xlu2 %v14575_v37, %s16082_s28 }
 0xdb3   : > { %v7413_v30 = vpop.permute.xlu2 %7412 }
 0xdb4   : > { %v7468_v29 = vrot.slane %v7413_v30, 4 }
 0xdb8   : > { %8158 = vrot.lane.b32.xlu0 %v14575_v37, %s16083_s0  ;;  %8152 = vrot.lane.b32.xlu1 %v14575_v37, %s16079_s27 }
 0xdb9   : > { %8155 = vrot.lane.b32.xlu2 %v14575_v37, %s16080_s19 }
 0xdbb   : > { %v7443_v21 = vpop.permute.xlu2 %7442 }
 0xdbc   : > { %v7478_v24 = vrot.slane %v7443_v21, 4 }
 0xdc3   : > { %v7449_v2 = vpop.permute.xlu2 %7448 }
 0xdc4   : > { %v7490_v36 = vrot.slane %v7449_v2, 4 }
 0xdca   : > { %v7419_v46 = vpop.permute.xlu1 %7418  ;;  %v7431_v60 = vpop.permute.xlu0 %7430 }
 0xdcb   : > { %v7454_v61 = vrot.slane %v7419_v46, 4  ;;  %v7421_v13 = vpop.permute.xlu2 %7420  ;;  %v7480_v47 = vrot.slane %v7431_v60, 4  ;;  %v7457_v33 = vsel %vm828_vm11, %v7419_v46, %v7456_v16  ;;  %v7479_v23 = vsel %vm828_vm11, %v7478_v24, %v7431_v60 }
 0xdcc   : > { %v7569_v58 = vsel %vm828_vm11, %v7421_v13, %v7568_v10  ;;  %v7465_v55 = vperm.slane %v7457_v33, %v11262_v51  ;;  %v7566_v63 = vrot.slane %v7421_v13, 4  ;;  %v7485_v26 = vperm.slane %v7479_v23, %v11262_v51 }
 0xdcd   : > { %v7455_v7 = vsel %vm828_vm11, %v7454_v61, %v14274_v54  ;;  %v7481_v17 = vsel %vm828_vm11, %v7443_v21, %v7480_v47  ;;  %v14601_v20 = vperm.slane %v7569_v58, %v11262_v51 }
 0xdce   : > { %v7461_v53 = vperm.slane %v7455_v7, %v11262_v51  ;;  %v7489_v54 = vperm.slane %v7481_v17, %v11262_v51  ;;  %v7516_v39 = vrot.slane %v7465_v55, 4  ;;  %v7567_v50 = vsel %vm828_vm11, %v7566_v63, %v14338_v49 }
 0xdcf   : > { %v7528_v40 = vrot.slane %v7485_v26, 4  ;;  %v7573_v25 = vperm.slane %v7567_v50, %v11262_v51  ;;  %v7926_v63 = vrot.slane %v14409_v45, 4 }
 0xdd0   : > { %v7504_v41 = vrot.slane %v7461_v53, 4  ;;  %v7540_v52 = vrot.slane %v7489_v54, 4 }
 0xdd2   : > { %v7425_v38 = vpop.permute.xlu1 %7424  ;;  %v7437_v27 = vpop.permute.xlu0 %7436 }
 0xdd3   : > { %v7466_v59 = vrot.slane %v7425_v38, 4  ;;  %v7469_v32 = vsel %vm828_vm11, %v7425_v38, %v7468_v29  ;;  %v14605_v43 = vpop.permute.xlu2 %7426  ;;  %v7491_v5 = vsel %vm828_vm11, %v7490_v36, %v7437_v27  ;;  %v7492_v18 = vrot.slane %v7437_v27, 4 }
 0xdd4   : > { %v7477_v62 = vperm.slane %v7469_v32, %v11262_v51  ;;  %v7497_v57 = vperm.slane %v7491_v5, %v11262_v51  ;;  %v7628_v36 = vrot.slane %v14601_v20, 4  ;;  %v7616_v38 = vrot.slane %v7573_v25, 4 }
 0xdd5   : > { %v7467_v35 = vsel %vm828_vm11, %v7466_v59, %v7413_v30  ;;  %v7493_v1 = vsel %vm828_vm11, %v7449_v2, %v7492_v18  ;;  %v7578_v27 = vrot.slane %v14605_v43, 4 }
 0xdd6   : > { %v7473_v48 = vperm.slane %v7467_v35, %v11262_v51  ;;  %v7514_v14 = vrot.slane %v7477_v62, 4  ;;  %v7517_v31 = vsel %vm828_vm11, %v7477_v62, %v7516_v39  ;;  %v7501_v44 = vperm.slane %v7493_v1, %v11262_v51 }
 0xdd7   : > { %v7525_v49 = vperm.slane %v7517_v31, %v11278_v11  ;;  %v7526_v56 = vrot.slane %v7497_v57, 4  ;;  %v7529_v3 = vsel %vm828_vm11, %v7497_v57, %v7528_v40 }
 0xdd8   : > { %v7502_v8 = vrot.slane %v7473_v48, 4  ;;  %v7505_v6 = vsel %vm828_vm11, %v7473_v48, %v7504_v41  ;;  %v7515_v15 = vsel %vm828_vm11, %v7514_v14, %v7465_v55  ;;  %v7537_v4 = vperm.slane %v7529_v3, %v11278_v11 }
 0xdd9   : > { %v7513_v0 = vperm.slane %v7505_v6, %v11278_v11  ;;  %v14625_v22 = vperm.slane %v7515_v15, %v11278_v11  ;;  %v7527_v28 = vsel %vm828_vm11, %v7526_v56, %v7485_v26  ;;  %v7538_v30 = vrot.slane %v7501_v44, 4 }
 0xdda   : > { %v7503_v42 = vsel %vm828_vm11, %v7502_v8, %v7461_v53  ;;  %v7533_v19 = vperm.slane %v7527_v28, %v11278_v11  ;;  %v7541_v21 = vsel %vm828_vm11, %v7501_v44, %v7540_v52  ;;  %v7433_v2 = vpop.permute.xlu1 %7432  ;;  %v7415_v46 = vpop.permute.xlu0 %7414  ;;  %v7564_v16 = vrot.slane %v7525_v49, 4 }
 0xddb   : > { %v7509_v60 = vperm.slane %v7503_v42, %v11278_v11  ;;  %v7556_v61 = vrot.slane %v7513_v0, 4  ;;  %v7549_v13 = vperm.slane %v7541_v21, %v11278_v11  ;;  %v14633_v47 = vpop.permute.xlu2 %7912  ;;  %v7560_v24 = vrot.slane %v14625_v22, 4 }
 0xddc   : > { %v7539_v33 = vsel %vm828_vm11, %v7538_v30, %v7489_v54  ;;  %v7550_v10 = vrot.slane %v7533_v19, 4  ;;  %v7554_v7 = vrot.slane %v7537_v4, 4  ;;  %v7592_v50 = vrot.slane %v7433_v2, 4 }
 0xddd   : > { %v7552_v23 = vrot.slane %v7509_v60, 4  ;;  %v7545_v58 = vperm.slane %v7539_v33, %v11278_v11  ;;  %v7557_v17 = vsel %vm828_vm11, %v7537_v4, %v7556_v61  ;;  %v7562_v55 = vrot.slane %v7549_v13, 4 }
 0xdde   : > { %v14644_v26 = vsel %vm828_vm11, %v7554_v7, %v7513_v0  ;;  %v7690_v54 = vrot.slane %v7557_v17, 4  ;;  %v14648_v59 = vsel %vm828_vm11, %v7550_v10, %v7509_v60  ;;  %v7565_v18 = vsel %vm828_vm11, %v7549_v13, %v7564_v16 }
 0xddf   : > { %v7553_v53 = vsel %vm828_vm11, %v7533_v19, %v7552_v23  ;;  %v14651_v32 = vsel %vm828_vm11, %v7562_v55, %v7525_v49  ;;  %v7561_v5 = vsel %vm828_vm11, %v7545_v58, %v7560_v24  ;;  %v7558_v62 = vrot.slane %v7545_v58, 4 }
 0xde0   : > { %v7692_v39 = vrot.slane %v7553_v53, 4  ;;  %v7678_v57 = vrot.slane %v14644_v26, 4  ;;  %v7579_v41 = vsel %vm828_vm11, %v7578_v27, %v7415_v46  ;;  %v7580_v40 = vrot.slane %v7415_v46, 4 }
 0xde1   : > { %v7680_v48 = vrot.slane %v14648_v59, 4  ;;  %v7691_v14 = vsel %vm828_vm11, %v7690_v54, %v7553_v53  ;;  %v7702_v31 = vrot.slane %v14651_v32, 4  ;;  %v7585_v44 = vperm.slane %v7579_v41, %v11262_v51 }
 0xde2   : > { %v7439_v35 = vpop.permute.xlu1 %7438  ;;  %v7445_v1 = vpop.permute.xlu0 %7444  ;;  %v7716_v49 = vrot.slane %v7561_v5, 4  ;;  %v7581_v56 = vsel %vm828_vm11, %v14605_v43, %v7580_v40  ;;  %v7693_v6 = vsel %vm828_vm11, %v7557_v17, %v7692_v39  ;;  %v7714_v28 = vrot.slane %v7565_v18, 4 }
 0xde3   : > { %v14661_v52 = vpop.permute.xlu2 %7921  ;;  %v7590_v3 = vrot.slane %v7445_v1, 4  ;;  %v7593_v8 = vsel %vm828_vm11, %v7445_v1, %v7592_v50  ;;  %v7589_v15 = vperm.slane %v7581_v56, %v11262_v51  ;;  %v7614_v4 = vrot.slane %v7585_v44, 4 }
 0xde4   : > { %v7617_v0 = vsel %vm828_vm11, %v7585_v44, %v7616_v38  ;;  %v7601_v30 = vperm.slane %v7593_v8, %v11262_v51  ;;  %v7950_v43 = vrot.slane %v14633_v47, 4  ;;  %v14678_v61 = vperm.slane %v7693_v6, %v11262_v51 }
 0xde5   : > { %v14670_v42 = vperm.slane %v7617_v0, %v11278_v11  ;;  %v7591_v19 = vsel %vm828_vm11, %v7590_v3, %v7433_v2  ;;  %v7615_v21 = vsel %vm828_vm11, %v7614_v4, %v7573_v25  ;;  %v7626_v46 = vrot.slane %v7589_v15, 4 }
 0xde6   : > { %v7629_v60 = vsel %vm828_vm11, %v7589_v15, %v7628_v36  ;;  %v14681_v16 = vsel %vm828_vm11, %v7565_v18, %v7716_v49  ;;  %v7604_v13 = vrot.slane %v7439_v35, 4  ;;  %v7597_v24 = vperm.slane %v7591_v19, %v11262_v51 }
 0xde7   : > { %v14685_v2 = vperm.slane %v7615_v21, %v11278_v11  ;;  %v7960_v33 = vrot.slane %v14661_v52, 4  ;;  %v14690_v25 = vsel %vm828_vm11, %v7558_v62, %v14625_v22  ;;  %v7679_v10 = vsel %vm828_vm11, %v7678_v57, %v14648_v59 }
 0xde8   : > { %v7627_v7 = vsel %vm828_vm11, %v7626_v46, %v14601_v20  ;;  %v7637_v23 = vperm.slane %v7629_v60, %v11278_v11  ;;  %v7668_v58 = vrot.slane %v14670_v42, 4  ;;  %v7652_v17 = vrot.slane %v7601_v30, 4 }
 0xde9   : > { %v7697_v27 = vperm.slane %v7691_v14, %v11262_v51  ;;  %v7640_v18 = vrot.slane %v7597_v24, 4  ;;  %v7685_v50 = vperm.slane %v7679_v10, %v11262_v51  ;;  %v7633_v62 = vperm.slane %v7627_v7, %v11278_v11 }
 0xdea   : > { %v7907_v55 = vpop.permute.xlu1 %7906  ;;  %v7451_v36 = vpop.permute.xlu0 %7450  ;;  %v7715_v40 = vsel %vm828_vm11, %v7714_v28, %v7561_v5  ;;  %v7664_v1 = vrot.slane %v14685_v2, 4  ;;  %v7676_v19 = vrot.slane %v7637_v23, 4 }
 0xdeb   : > { %v7924_v53 = vrot.slane %v7907_v55, 4  ;;  %v14698_v54 = vpop.permute.xlu2 %7238  ;;  %v7602_v38 = vrot.slane %v7451_v36, 4  ;;  %v7605_v22 = vsel %vm828_vm11, %v7451_v36, %v7604_v13  ;;  %v7927_v39 = vsel %vm828_vm11, %v7907_v55, %v7926_v63 }
 0xdec   : > { %v7613_v20 = vperm.slane %v7605_v22, %v11262_v51  ;;  %v7703_v63 = vsel %vm828_vm11, %v7702_v31, %v14690_v25  ;;  %v14715_v49 = vperm.slane %v7927_v39, %v11262_v51  ;;  %v14719_v3 = vperm.slane %v7715_v40, %v11262_v51 }
 0xded   : > { %v7925_v57 = vsel %vm828_vm11, %v7924_v53, %v14409_v45  ;;  %v7603_v41 = vsel %vm828_vm11, %v7602_v38, %v7439_v35  ;;  %v7726_v45 = vrot.slane %v7697_v27, 4  ;;  %v7728_v0 = vrot.slane %v7685_v50, 4 }
 0xdee   : > { %v7609_v14 = vperm.slane %v7603_v41, %v11262_v51  ;;  %v7650_v44 = vrot.slane %v7613_v20, 4  ;;  %v7653_v56 = vsel %vm828_vm11, %v7613_v20, %v7652_v17  ;;  %v14722_v35 = vperm.slane %v7925_v57, %v11262_v51 }
 0xdef   : > { %v7661_v4 = vperm.slane %v7653_v56, %v11278_v11  ;;  %v7672_v28 = vrot.slane %v7633_v62, 4  ;;  %v7727_v13 = vsel %vm828_vm11, %v7726_v45, %v7685_v50  ;;  %v7986_v10 = vrot.slane %v14715_v49, 4 }
 0xdf0   : > { %v7638_v5 = vrot.slane %v7609_v14, 4  ;;  %v7641_v8 = vsel %vm828_vm11, %v7609_v14, %v7640_v18  ;;  %v7651_v6 = vsel %vm828_vm11, %v7650_v44, %v7601_v30  ;;  %v7704_v30 = vrot.slane %v14690_v25, 4 }
 0xdf1   : > { %v7649_v15 = vperm.slane %v7641_v8, %v11278_v11  ;;  %v7657_v31 = vperm.slane %v7651_v6, %v11278_v11  ;;  %v7709_v17 = vperm.slane %v7703_v63, %v11262_v51  ;;  %v7750_v55 = vrot.slane %v14719_v3, 4  ;;  %v10256_v8 = vld [vmem:[%s15989_s6 + $0x178] sm:$0xff]  ;;  %v10255_v6 = vld [vmem:[%s15989_s6 + $0x170] sm:$0xff] }
 0xdf2   : > { %v7639_v21 = vsel %vm828_vm11, %v7638_v5, %v7597_v24  ;;  %v7916_v46 = vpop.permute.xlu1 %7915  ;;  %v7904_v60 = vpop.permute.xlu0 %7903  ;;  %v7674_v38 = vrot.slane %v7661_v4, 4  ;;  %v7974_v22 = vrot.slane %v14722_v35, 4  ;;  %v14742_v39 = vperm.slane %v7727_v13, %v11278_v11  ;;  %7295 = vmatpush.msrb.mxu3 %v10256_v8 }
 0xdf3   : > { %v7209_v7 = vpop.permute.xlu2 %7208  ;;  %v7645_v36 = vperm.slane %v7639_v21, %v11278_v11  ;;  %v14737_v53 = vsel %vm828_vm11, %v7649_v15, %v7668_v58  ;;  %v7673_v24 = vsel %vm828_vm11, %v7657_v31, %v7672_v28  ;;  %v7670_v18 = vrot.slane %v7657_v31, 4 }
 0xdf4   : > { %v7729_v20 = vsel %vm828_vm11, %v7697_v27, %v7728_v0  ;;  %v7666_v50 = vrot.slane %v7649_v15, 4  ;;  %v7828_v57 = vrot.slane %v7673_v24, 4  ;;  %v7961_v41 = vsel %vm828_vm11, %v7960_v33, %v7916_v46  ;;  %7296 = vmatpush.msrb.mxu3 %v10255_v6 }
 0xdf5   : > { %v7962_v40 = vrot.slane %v7916_v46, 4  ;;  %v14747_v14 = vsel %vm828_vm11, %v7674_v38, %v7637_v23  ;;  %v7677_v58 = vsel %vm828_vm11, %v7661_v4, %v7676_v19  ;;  %v7802_v44 = vrot.slane %v14737_v53, 4  ;;  %v10254_v38 = vld [vmem:[%s15989_s6 + $0x168] sm:$0xff] }
 0xdf6   : > { %v14752_v63 = vperm.slane %v7961_v41, %v11262_v51  ;;  %v7662_v56 = vrot.slane %v7645_v36, 4  ;;  %v7751_v27 = vsel %vm828_vm11, %v7750_v55, %v7709_v17  ;;  %v14758_v5 = vperm.slane %v7729_v20, %v11278_v11  ;;  %v10253_v41 = vld [vmem:[%s15989_s6 + $0x160] sm:$0xff]  ;;  %7297 = vmatpush.msrb.mxu3 %v10254_v38 }
 0xdf7   : > { %v7963_v45 = vsel %vm828_vm11, %v14661_v52, %v7962_v40  ;;  %v14761_v33 = vsel %vm828_vm11, %v7670_v18, %v7633_v62  ;;  %v7938_v23 = vrot.slane %v7904_v60, 4  ;;  %v14770_v15 = vperm.slane %v7751_v27, %v11278_v11 }
 0xdf8   : > { %v7752_v52 = vrot.slane %v7709_v17, 4  ;;  %v7814_v31 = vrot.slane %v14747_v14, 4  ;;  %v7826_v4 = vrot.slane %v7677_v58, 4  ;;  %v14774_v0 = vsel %vm828_vm11, %v7677_v58, %v7828_v57  ;;  %7298 = vmatpush.msrb.mxu3 %v10253_v41 }
 0xdf9   : > { %v14778_v62 = vsel %vm2036_vm12, %v14490_v34, %v7209_v7  ;;  %v14783_v21 = vperm.slane %v7963_v45, %v11262_v51  ;;  %v7996_v46 = vrot.slane %v14752_v63, 4  ;;  %v7780_v18 = vrot.slane %v14758_v5, 4 }
 0xdfa   : > { %v14780_v28 = vpop.permute.xlu1 %7246  ;;  %v7910_v19 = vpop.permute.xlu0 %7909  ;;  %v7753_v7 = vsel %vm828_vm11, %v14719_v3, %v7752_v52  ;;  %v14798_v20 = vsel %vm828_vm11, %v7666_v50, %v14670_v42  ;;  %v7774_v40 = vrot.slane %v14770_v15, 4  ;;  %v14810_v3 = vsel %vm828_vm11, %v7662_v56, %v14685_v2 }
 0xdfb   : > { %v14786_v13 = vpop.permute.xlu2 %7224  ;;  %v7936_v17 = vrot.slane %v7910_v19, 4  ;;  %v7939_v55 = vsel %vm828_vm11, %v7910_v19, %v7938_v23  ;;  %v14806_v58 = vperm.slane %v7753_v7, %v11278_v11  ;;  %v14821_v23 = vsel %vm828_vm11, %v7645_v36, %v7664_v1 }
 0xdfc   : > { %v7947_v34 = vperm.slane %v7939_v55, %v11262_v51  ;;  %v7827_v8 = vsel %vm828_vm11, %v7826_v4, %v7673_v24  ;;  %v7681_v56 = vsel %vm828_vm11, %v14644_v26, %v7680_v48  ;;  %v8008_v1 = vrot.slane %v14783_v21, 4 }
 0xdfd   : > { %v7937_v57 = vsel %vm828_vm11, %v7936_v17, %v7904_v60  ;;  %v7790_v60 = vrot.slane %v14798_v20, 4  ;;  %v14839_v59 = vsel %vm828_vm11, %v7774_v40, %v14742_v39  ;;  %v14845_v26 = vsel %vm828_vm11, %v14651_v32, %v7704_v30 }
 0xdfe   : > { %v7943_v45 = vperm.slane %v7937_v57, %v11262_v51  ;;  %v7984_v27 = vrot.slane %v7947_v34, 4  ;;  %v7987_v42 = vsel %vm828_vm11, %v7947_v34, %v7986_v10  ;;  %v7778_v4 = vrot.slane %v14806_v58, 4 }
 0xdff   : > { %v14816_v50 = vperm.slane %v7987_v42, %v11278_v11  ;;  %v7791_v2 = vsel %vm828_vm11, %v7790_v60, %v14810_v3  ;;  %v7803_v19 = vsel %vm828_vm11, %v7802_v44, %v14821_v23  ;;  %v14858_v32 = vsel %vm828_vm11, %v14806_v58, %v7780_v18 }
 0xe00   : > { %v7972_v6 = vrot.slane %v7943_v45, 4  ;;  %v7975_v10 = vsel %vm828_vm11, %v7943_v45, %v7974_v22  ;;  %v7985_v52 = vsel %vm828_vm11, %v7984_v27, %v14715_v49  ;;  %v7809_v44 = vperm.slane %v7803_v19, %v11262_v51 }
 0xe01   : > { %v14835_v36 = vperm.slane %v7975_v10, %v11278_v11  ;;  %v7991_v49 = vperm.slane %v7985_v52, %v11278_v11  ;;  %v8034_v17 = vrot.slane %v14816_v50, 4  ;;  %v7815_v41 = vsel %vm828_vm11, %v7814_v31, %v14761_v33 }
 0xe02   : > { %v7973_v48 = vsel %vm828_vm11, %v7972_v6, %v14722_v35  ;;  %v7207_v24 = vpop.permute.xlu1 %7206  ;;  %v7919_v22 = vpop.permute.xlu0 %7918  ;;  %v7797_v35 = vperm.slane %v7791_v2, %v11262_v51  ;;  %v14875_v27 = vperm.slane %v7827_v8, %v11262_v51  ;;  %v7838_v42 = vrot.slane %v7809_v44, 4 }
 0xe03   : > { %v14854_v55 = vpop.permute.xlu2 %7248  ;;  %v7979_v30 = vperm.slane %v7973_v48, %v11278_v11  ;;  %v7948_v38 = vrot.slane %v7919_v22, 4  ;;  %v7951_v34 = vsel %vm828_vm11, %v7919_v22, %v7950_v43  ;;  %v8026_v7 = vrot.slane %v14835_v36, 4 }
 0xe04   : > { %v7959_v57 = vperm.slane %v7951_v34, %v11262_v51  ;;  %v8030_v40 = vrot.slane %v7991_v49, 4  ;;  %v7840_v10 = vrot.slane %v7797_v35, 4  ;;  %v7260_v2 = vsel %vm2036_vm12, %v14495_v9, %v7207_v24 }
 0xe05   : > { %v7949_v45 = vsel %vm828_vm11, %v7948_v38, %v14633_v47  ;;  %v8022_v52 = vrot.slane %v7979_v30, 4  ;;  %v14883_v48 = vperm.slane %v7815_v41, %v11262_v51 }
 0xe06   : > { %v7955_v43 = vperm.slane %v7949_v45, %v11262_v51  ;;  %v8009_v60 = vsel %vm828_vm11, %v8008_v1, %v7959_v57  ;;  %v8010_v6 = vrot.slane %v7959_v57, 4  ;;  %v14891_v1 = vperm.slane %v7681_v56, %v11262_v51 }
 0xe07   : > { %v8015_v31 = vperm.slane %v8009_v60, %v11278_v11  ;;  %v7839_v45 = vsel %vm828_vm11, %v7838_v42, %v7797_v35  ;;  %v7841_v56 = vsel %vm828_vm11, %v7809_v44, %v7840_v10 }
 0xe08   : > { %v7997_v47 = vsel %vm828_vm11, %v7996_v46, %v7955_v43  ;;  %v7998_v8 = vrot.slane %v7955_v43, 4  ;;  %v8011_v22 = vsel %vm828_vm11, %v14783_v21, %v8010_v6  ;;  %v7862_v21 = vrot.slane %v14875_v27, 4 }
 0xe09   : > { %v8003_v19 = vperm.slane %v7997_v47, %v11278_v11  ;;  %v8019_v9 = vperm.slane %v8011_v22, %v11278_v11  ;;  %v8028_v24 = vrot.slane %v8015_v31, 4  ;;  %v8031_v38 = vsel %vm828_vm11, %v8015_v31, %v8030_v40 }
 0xe0a   : > { %v7223_v34 = vpop.permute.xlu1 %7222  ;;  %v7231_v57 = vpop.permute.xlu0 %7230  ;;  %v7999_v41 = vsel %vm828_vm11, %v14752_v63, %v7998_v8  ;;  %v8074_v22 = vrot.slane %v8031_v38, 4  ;;  %v7864_v63 = vrot.slane %v14883_v48, 4 }
 0xe0b   : > { %v14898_v46 = vpop.permute.xlu2 %8149  ;;  %v8007_v43 = vperm.slane %v7999_v41, %v11278_v11  ;;  %v8020_v60 = vrot.slane %v8003_v19, 4  ;;  %v8023_v6 = vsel %vm828_vm11, %v8003_v19, %v8022_v52  ;;  %v8029_v40 = vsel %vm828_vm11, %v8028_v24, %v7991_v49 }
 0xe0c   : > { %v8032_v31 = vrot.slane %v8019_v9, 4  ;;  %v8035_v47 = vsel %vm828_vm11, %v8019_v9, %v8034_v17  ;;  %v8050_v42 = vrot.slane %v8023_v6, 4  ;;  %v8062_v41 = vrot.slane %v8029_v40, 4 }
 0xe0d   : > { %v8024_v8 = vrot.slane %v8007_v43, 4  ;;  %v8027_v35 = vsel %vm828_vm11, %v8007_v43, %v8026_v7  ;;  %v8072_v29 = vrot.slane %v8035_v47, 4  ;;  %v14912_v52 = vperm.slane %v7839_v45, %v11278_v11 }
 0xe0e   : > { %v8033_v44 = vsel %vm828_vm11, %v8032_v31, %v14816_v50  ;;  %v8048_v10 = vrot.slane %v8027_v35, 4  ;;  %v8021_v9 = vsel %vm828_vm11, %v8020_v60, %v7979_v30  ;;  %v8075_v7 = vsel %vm828_vm11, %v8035_v47, %v8074_v22 }
 0xe0f   : > { %v8025_v49 = vsel %vm828_vm11, %v8024_v8, %v14835_v36  ;;  %v8060_v17 = vrot.slane %v8033_v44, 4  ;;  %v8073_v19 = vsel %vm828_vm11, %v8072_v29, %v8031_v38  ;;  %v8038_v18 = vrot.slane %v8021_v9, 4 }
 0xe10   : > { %v14920_v24 = vperm.slane %v8073_v19, %v11262_v51  ;;  %v8036_v43 = vrot.slane %v8025_v49, 4  ;;  %v8049_v50 = vsel %vm828_vm11, %v8048_v10, %v8023_v6  ;;  %v8051_v29 = vsel %vm828_vm11, %v8027_v35, %v8050_v42 }
 0xe11   : > { %v8061_v31 = vsel %vm828_vm11, %v8060_v17, %v8029_v40  ;;  %v8055_v36 = vperm.slane %v8049_v50, %v11262_v51  ;;  %v7863_v8 = vsel %vm828_vm11, %v7862_v21, %v14883_v48  ;;  %v14937_v10 = vperm.slane %v7841_v56, %v11278_v11 }
 0xe12   : > { %v14924_v45 = vpop.permute.xlu1 %7232  ;;  %v7215_v25 = vpop.permute.xlu0 %7214  ;;  %v8037_v38 = vsel %vm828_vm11, %v8036_v43, %v8021_v9  ;;  %v8067_v60 = vperm.slane %v8061_v31, %v11262_v51  ;;  %v8108_v47 = vrot.slane %v14920_v24, 4  ;;  %v8083_v35 = vperm.slane %v8075_v7, %v11262_v51 }
 0xe13   : > { %v7262_v30 = vsel %vm2795_vm5, %v7260_v2, %v7215_v25  ;;  %v8156_v22 = vpop.permute.xlu2 %8155  ;;  %v8043_v40 = vperm.slane %v8037_v38, %v11262_v51  ;;  %v8084_v25 = vrot.slane %v8055_v36, 4  ;;  %v8063_v42 = vsel %vm828_vm11, %v8033_v44, %v8062_v41 }
 0xe14   : > { %v7264_v6 = vsel %vm2797_vm6, %v7262_v30, %v7223_v34  ;;  %v8109_v2 = vsel %vm828_vm11, %v8108_v47, %v8067_v60  ;;  %v8039_v34 = vsel %vm828_vm11, %v8025_v49, %v8038_v18  ;;  %v8059_v9 = vperm.slane %v8051_v29, %v11262_v51 }
 0xe15   : > { %v7266_v17 = vsel %vm2269_vm13, %v7264_v6, %v7231_v57  ;;  %v8115_v19 = vperm.slane %v8109_v2, %v11278_v11  ;;  %v8184_v21 = vrot.slane %v14898_v46, 4  ;;  %v8182_v43 = vrot.slane %v8156_v22, 4 }
 0xe16   : > { %v8085_v56 = vsel %vm828_vm11, %v8084_v25, %v8043_v40  ;;  %v8047_v7 = vperm.slane %v8039_v34, %v11262_v51  ;;  %v8071_v44 = vperm.slane %v8063_v42, %v11262_v51  ;;  %v8096_v41 = vrot.slane %v8059_v9, 4 }
 0xe17   : > { %v8091_v50 = vperm.slane %v8085_v56, %v11278_v11  ;;  %v8132_v31 = vrot.slane %v8115_v19, 4  ;;  %v8185_v57 = vsel %vm828_vm11, %v8156_v22, %v8184_v21  ;;  %v8120_v30 = vrot.slane %v8083_v35, 4 }
 0xe18   : > { %v7268_v18 = vsel %vm2800_vm7, %v7266_v17, %v14698_v54  ;;  %v8086_v49 = vrot.slane %v8043_v40, 4  ;;  %v8097_v47 = vsel %vm828_vm11, %v8096_v41, %v8047_v7  ;;  %v8183_v17 = vsel %vm828_vm11, %v8182_v43, %v14898_v46 }
 0xe19   : > { %v8133_v29 = vsel %vm828_vm11, %v8132_v31, %v8091_v50  ;;  %v7270_v6 = vsel %vm2802_vm8, %v7268_v18, %v14780_v28  ;;  %v8134_v2 = vrot.slane %v8091_v50, 4  ;;  %v8103_v42 = vperm.slane %v8097_v47, %v11278_v11 }
 0xe1a   : > { %v7217_v38 = vpop.permute.xlu1 %7216  ;;  %v7255_v25 = vpop.permute.xlu0 %7254  ;;  %10328 = vmatpush.xpose.msk.msrb.mxu2 %vm2036_vm12, %v8133_v29  ;;  %v8121_v54 = vsel %vm828_vm11, %v8120_v30, %v8071_v44  ;;  %v8087_v21 = vsel %vm828_vm11, %v8055_v36, %v8086_v49  ;;  %v8110_v56 = vrot.slane %v8067_v60, 4  ;;  %v8098_v31 = vrot.slane %v8047_v7, 4 }
 0xe1b   : > { %v7263_v22 = vsel %vm2795_vm5, %v14778_v62, %v7217_v38  ;;  %v7272_v40 = vsel %vm2804_vm9, %v7270_v6, %v7255_v25  ;;  %v8127_v34 = vperm.slane %v8121_v54, %v11278_v11  ;;  %v8135_v28 = vsel %vm828_vm11, %v8115_v19, %v8134_v2 }
 0xe1c   : > { %10302 = vmatmul.msk.f32.vlgmr.msrb.gmra.mxu3 %vm530_vm0, %v7272_v40  ;;  %v8095_v62 = vperm.slane %v8087_v21, %v11278_v11  ;;  %v8142_v50 = vrot.slane %v8103_v42, 4  ;;  %v7265_v41 = vsel %vm2797_vm6, %v7263_v22, %v14786_v13  ;;  %v8122_v46 = vrot.slane %v8071_v44, 4 }
 0xe1d   : > { %10331 = vmatpush.xpose.msk.msra.mxu3 %vm2036_vm12, %v8135_v28  ;;  %v8140_v30 = vrot.slane %v8127_v34, 4  ;;  %10329 = vmatmul.msk.f32.vlgmr.msrb.gmra.mxu2 %vm2036_vm12, %v14839_v59  ;;  %v14977_v19 = vperm.slane %v7863_v8, %v11278_v11  ;;  %v8111_v36 = vsel %vm828_vm11, %v14920_v24, %v8110_v56  ;;  %v8099_v60 = vsel %vm828_vm11, %v8059_v9, %v8098_v31 }
 0xe1e   : > { %v8143_v43 = vsel %vm828_vm11, %v8127_v34, %v8142_v50  ;;  %v8138_v18 = vrot.slane %v8095_v62, 4  ;;  %v8119_v13 = vperm.slane %v8111_v36, %v11278_v11  ;;  %v8107_v59 = vperm.slane %v8099_v60, %v11278_v11 }
 0xe1f   : > { %v8141_v7 = vsel %vm828_vm11, %v8140_v30, %v8103_v42  ;;  %v8123_v44 = vsel %vm828_vm11, %v8083_v35, %v8122_v46  ;;  %v14989_v8 = vperm.slane %v8185_v57, %v11262_v51  ;;  %v7267_v9 = vsel %vm2269_vm13, %v7265_v41, %v14924_v45 }
 0xe20   : > { %10340 = vmatpush.xpose.msk.msra.mxu2 %vm2036_vm12, %v8141_v7  ;;  %v8131_v24 = vperm.slane %v8123_v44, %v11278_v11  ;;  %v7886_v49 = vrot.slane %v14977_v19, 4  ;;  %v8136_v29 = vrot.slane %v8119_v13, 4  ;;  %v8139_v38 = vsel %vm828_vm11, %v8119_v13, %v8138_v18 }
 0xe21   : > { %10343 = vmatpush.xpose.msk.msrb.mxu3 %vm2036_vm12, %v8143_v43  ;;  %v8146_v47 = vrot.slane %v8107_v59, 4  ;;  %v7865_v35 = vsel %vm828_vm11, %v14875_v27, %v7864_v63  ;;  %v15002_v57 = vperm.slane %v8183_v17, %v11262_v51  ;;  %10337 = vmatpush.xpose.msk.msrb.mxu1 %vm2036_vm12, %v8139_v38  ;;  %v7892_v22 = vrot.slane %v14937_v10, 4 }
 0xe22   : > { %v7257_v6 = vpop.permute.xlu1 %7256  ;;  %v7241_v25 = vpop.permute.xlu0 %7240  ;;  %v8144_v2 = vrot.slane %v8131_v24, 4  ;;  %v8137_v42 = vsel %vm828_vm11, %v8136_v29, %v8095_v62  ;;  %v7713_v27 = vperm.slane %v14845_v26, %v11262_v51  ;;  %v7873_v17 = vperm.slane %v7865_v35, %v11278_v11 }
 0xe23   : > { %v7269_v45 = vsel %vm2800_vm7, %v7267_v9, %v7241_v25  ;;  %v8147_v54 = vsel %vm828_vm11, %v8131_v24, %v8146_v47  ;;  %10334 = vmatpush.xpose.msk.msrb.mxu0 %vm2036_vm12, %v8137_v42  ;;  %v7738_v34 = vrot.slane %v14678_v61, 4  ;;  %v7887_v26 = vsel %vm828_vm11, %v7886_v49, %v14912_v52 }
 0xe24   : > { %v7271_v48 = vsel %vm2802_vm8, %v7269_v45, %v14854_v55  ;;  %v8145_v63 = vsel %vm828_vm11, %v8144_v2, %v8107_v59  ;;  %10338 = vmatmul.msk.f32.vlgmr.msrb.gmra.mxu1 %vm2036_vm12, %v14858_v32  ;;  %v7725_v55 = vperm.slane %v14681_v16, %v11262_v51  ;;  %v7776_v28 = vrot.slane %v14742_v39, 4 }
 0xe25   : > { %10349 = vmatpush.xpose.msk.msra.mxu1 %vm2036_vm12, %v8147_v54  ;;  %v7273_v40 = vsel %vm2804_vm9, %v7271_v48, %v7257_v6  ;;  %v7740_v21 = vrot.slane %v14891_v1, 4  ;;  %v7816_v62 = vrot.slane %v14761_v33, 4  ;;  %v7779_v56 = vsel %vm828_vm11, %v7778_v4, %v14758_v5  ;;  %10330 = vmatmul.msk.f32.gmra.mxu2 %vm2036_vm12, %v7887_v26 }
 0xe26   : > { %10303 = vmatmul.msk.f32.gmra.mxu3 %vm530_vm0, %v7273_v40  ;;  %v7739_v32 = vsel %vm828_vm11, %v7738_v34, %v14891_v1  ;;  %v16096_v16 = vrot.slane %v14821_v23, 4  ;;  %v8218_v50 = vrot.slane %v15002_v57, 4  ;;  %v8230_v33 = vrot.slane %v14989_v8, 4  ;;  %10335 = vmatmul.msk.f32.vlgmr.msrb.gmra.mxu0 %vm2036_vm12, %v7779_v56 }
 0xe27   : > { %10346 = vmatpush.xpose.msk.msra.mxu0 %vm2036_vm12, %v8145_v63  ;;  %v7762_v58 = vrot.slane %v7725_v55, 4  ;;  %v7764_v5 = vrot.slane %v7713_v27, 4  ;;  %v7890_v4 = vrot.slane %v7873_v17, 4  ;;  %v7741_v31 = vsel %vm828_vm11, %v14678_v61, %v7740_v21 }
 0xe28   : > { %v7805_v39 = vsel %vm828_vm11, %v14737_v53, %v16096_v16  ;;  %v16097_v41 = vrot.slane %v14810_v3, 4  ;;  %v7893_v53 = vsel %vm828_vm11, %v7873_v17, %v7892_v22  ;;  %v7745_v46 = vperm.slane %v7739_v32, %v11278_v11 }
 0xe29   : > { %v7813_v1 = vperm.slane %v7805_v39, %v11262_v51  ;;  %v7763_v36 = vsel %vm828_vm11, %v7762_v58, %v7713_v27  ;;  %v7777_v43 = vsel %vm828_vm11, %v14770_v15, %v7776_v28  ;;  %v16098_v61 = vrot.slane %v14575_v37, 4 }
 0xe2a   : > { %v7793_v23 = vsel %vm828_vm11, %v14798_v20, %v16097_v41  ;;  %v8153_v30 = vpop.permute.xlu1 %8152  ;;  %v7769_v18 = vperm.slane %v7763_v36, %v11278_v11  ;;  %v7817_v20 = vsel %vm828_vm11, %v14747_v14, %v7816_v62  ;;  %v7749_v13 = vperm.slane %v7741_v31, %v11278_v11  ;;  %v10573_v36 = vld [vmem:[%s15990_s7 + $0xb] ss:$0 sm:$0xff] }
 0xe2b   : > { %v8170_v60 = vrot.slane %v8153_v30, 4  ;;  %v8173_v3 = vsel %vm828_vm11, %v8153_v30, %v16098_v61  ;;  %v7765_v59 = vsel %vm828_vm11, %v7725_v55, %v7764_v5  ;;  %v7801_v44 = vperm.slane %v7793_v23, %v11262_v51 }
 0xe2c   : > { %v8181_v7 = vperm.slane %v8173_v3, %v11262_v51  ;;  %v7782_v24 = vrot.slane %v7769_v18, 4  ;;  %v7837_v9 = vperm.slane %v14774_v0, %v11262_v51  ;;  %v7850_v49 = vrot.slane %v7813_v1, 4  ;;  %10339 = vmatmul.msk.f32.gmra.mxu1 %vm2036_vm12, %v7893_v53 }
 0xe2d   : > { %v8171_v15 = vsel %vm828_vm11, %v8170_v60, %v14575_v37  ;;  %v7825_v47 = vperm.slane %v7817_v20, %v11262_v51  ;;  %v7891_v6 = vsel %vm828_vm11, %v7890_v4, %v14937_v10  ;;  %v7773_v0 = vperm.slane %v7765_v59, %v11278_v11 }
 0xe2e   : > { %v8177_v14 = vperm.slane %v8171_v15, %v11262_v51  ;;  %v15073_v29 = vsel %vm828_vm11, %v8230_v33, %v8181_v7  ;;  %v8232_v38 = vrot.slane %v8181_v7, 4  ;;  %v7783_v25 = vsel %vm828_vm11, %v7782_v24, %v7745_v46  ;;  %10332 = vmatmul.msk.f32.vlgmr.msra.gmra.mxu3 %vm2036_vm12, %v7777_v43  ;;  %10336 = vmatmul.msk.f32.gmra.mxu0 %vm2036_vm12, %v7891_v6 }
 0xe2f   : > { %10341 = vmatmul.msk.f32.vlgmr.msra.gmra.mxu2 %vm2036_vm12, %v7783_v25  ;;  %v7788_v22 = vrot.slane %v7749_v13, 4  ;;  %v7851_v10 = vsel %vm828_vm11, %v7850_v49, %v7801_v44  ;;  %v7874_v42 = vrot.slane %v7837_v9, 4  ;;  %v7888_v48 = vrot.slane %v14912_v52, 4 }
 0xe30   : > { %v15083_v35 = vsel %vm828_vm11, %v8218_v50, %v8177_v14  ;;  %v8220_v2 = vrot.slane %v8177_v14, 4  ;;  %v15087_v45 = vsel %vm828_vm11, %v14989_v8, %v8232_v38  ;;  %v7852_v27 = vrot.slane %v7801_v44, 4 }
 0xe31   : > { %v7876_v63 = vrot.slane %v7825_v47, 4  ;;  %v7786_v40 = vrot.slane %v7773_v0, 4  ;;  %v7875_v17 = vsel %vm828_vm11, %v7874_v42, %v7825_v47  ;;  %v7857_v8 = vperm.slane %v7851_v10, %v11278_v11 }
 0xe32   : > { %v15093_v54 = vsel %vm828_vm11, %v15002_v57, %v8220_v2  ;;  %v7881_v34 = vperm.slane %v7875_v17, %v11278_v11  ;;  %v7853_v26 = vsel %vm828_vm11, %v7813_v1, %v7852_v27  ;;  %v7789_v28 = vsel %vm828_vm11, %v7773_v0, %v7788_v22  ;;  %v15188_v17 = vpop.permute.xlu0 %8158 }
 0xe33   : > { %v7877_v55 = vsel %vm828_vm11, %v7837_v9, %v7876_v63  ;;  %v7861_v57 = vperm.slane %v7853_v26, %v11278_v11  ;;  %v7889_v21 = vsel %vm828_vm11, %v14977_v19, %v7888_v48  ;;  %v7787_v62 = vsel %vm828_vm11, %v7786_v40, %v7749_v13 }
 0xe34   : > { %10350 = vmatmul.msk.f32.vlgmr.msra.gmra.mxu1 %vm2036_vm12, %v7789_v28  ;;  %v7894_v52 = vrot.slane %v7881_v34, 4  ;;  %v7885_v56 = vperm.slane %v7877_v55, %v11278_v11  ;;  %v7784_v39 = vrot.slane %v7745_v46, 4  ;;  %v7896_v5 = vrot.slane %v7857_v8, 4 }
 0xe35   : > { %v7900_v16 = vrot.slane %v7861_v57, 4 }
 0xe36   : > { %10333 = vmatmul.msk.f32.gmra.mxu3 %vm2036_vm12, %v7889_v21  ;;  %10347 = vmatmul.msk.f32.vlgmr.msra.gmra.mxu0 %vm2036_vm12, %v7787_v62  ;;  %v7895_v32 = vsel %vm828_vm11, %v7894_v52, %v7857_v8  ;;  %v7898_v50 = vrot.slane %v7885_v56, 4  ;;  %v7785_v19 = vsel %vm828_vm11, %v7769_v18, %v7784_v39  ;;  %v7897_v4 = vsel %vm828_vm11, %v7881_v34, %v7896_v5 }
 0xe37   : > { %10342 = vmatmul.msk.f32.gmra.mxu2 %vm2036_vm12, %v7895_v32  ;;  %v7901_v33 = vsel %vm828_vm11, %v7885_v56, %v7900_v16 }
 0xe38   : > { %v7899_v58 = vsel %vm828_vm11, %v7898_v50, %v7861_v57 }
 0xe3c   : > { %10351 = vmatmul.msk.f32.gmra.mxu1 %vm2036_vm12, %v7901_v33 }
 0xe3e   : > { %10344 = vmatmul.msk.f32.vlgmr.msrb.gmra.mxu3 %vm2036_vm12, %v7785_v19  ;;  %10348 = vmatmul.msk.f32.gmra.mxu0 %vm2036_vm12, %v7899_v58 }
 0xe46   : > { %10345 = vmatmul.msk.f32.gmra.mxu3 %vm2036_vm12, %v7897_v4 }
 0xe9f   : > { %v15120_v41 = vpop.f32.mrf.mxu3 }
 0xea0   : > { %v8420_v31 = vpop.f32.mrf.mxu2 }
 0xea1   : > { %v8650_v23 = vsel %vm2795_vm5, %v8420_v31, -inf  ;;  %v8516_v1 = vpop.f32.mrf.mxu1 }
 0xea2   : > { %8651 = vmax.xlane.f32.xlu0 %v8650_v23  ;;  %v8668_v53 = vsel %vm2795_vm5, %v8516_v1, -inf }
 0xea3   : > { %v8484_v30 = vpop.f32.mrf.mxu0  ;;  %8669 = vmax.xlane.f32.xlu2 %v8668_v53 }
 0xea4   : > { %v8662_v46 = vsel %vm2795_vm5, %v8484_v30, -inf }
 0xea5   : > { %8663 = vmax.xlane.f32.xlu1 %v8662_v46 }
 0xea8   : > { %v15140_v13 = vpop.f32.mrf.mxu2 }
 0xea9   : > { %v7303_v43 = vpop.f32.mrf.mxu3  ;;  %v15128_v60 = vpop.f32.mrf.mxu1  ;;  %v8653_v15 = vsel %vm2795_vm5, %v15140_v13, -inf }
 0xeaa   : > { %v15130_v61 = vadd.f32 %v10573_v36, %v7303_v43  ;;  %v8671_v3 = vsel %vm2795_vm5, %v15128_v60, -inf }
 0xeab   : > { %v15134_v18 = vpop.f32.mrf.mxu0 }
 0xeac   : > { %v8665_v20 = vsel %vm2795_vm5, %v15134_v18, -inf }
 0xead   : > { %8672 = vmax.xlane.f32.xlu1 %v8671_v3  ;;  %8666 = vmax.xlane.f32.xlu0 %v8665_v20 }
 0xeb1   : > { %v15138_v7 = vpop.f32.mrf.mxu3  ;;  %v15150_v9 = vpop.f32.mrf.mxu1 }
 0xeb2   : > { %v8656_v59 = vsel %vm2795_vm5, %v15138_v7, -inf  ;;  %v15156_v38 = vpop.f32.mrf.mxu2  ;;  %v8692_v47 = vsel %vm2795_vm5, %v15150_v9, -inf }
 0xeb3   : > { %8657 = vmax.xlane.f32.xlu2 %v8656_v59  ;;  %v15144_v44 = vpop.f32.mrf.mxu0  ;;  %v8674_v0 = vsel %vm2795_vm5, %v15156_v38, -inf }
 0xeb4   : > { %v8686_v49 = vsel %vm2795_vm5, %v15144_v44, -inf }
 0xeb5   : > { %8654 = vmax.xlane.f32.xlu0 %v8653_v15 }
 0xeb9   : > { %v15148_v24 = vpop.f32.mrf.mxu3  ;;  %v15174_v48 = vpop.f32.mrf.mxu1 }
 0xeba   : > { %v8659_v14 = vsel %vm2795_vm5, %v15148_v24, -inf  ;;  %v15170_v10 = vpop.f32.mrf.mxu2  ;;  %v8695_v40 = vsel %vm2795_vm5, %v15174_v48, -inf }
 0xebb   : > { %8687 = vmax.xlane.f32.xlu2 %v8686_v49  ;;  %8660 = vmax.xlane.f32.xlu1 %v8659_v14  ;;  %v15160_v6 = vpop.f32.mrf.mxu0  ;;  %v8677_v27 = vsel %vm2795_vm5, %v15170_v10, -inf }
 0xebc   : > { %v8689_v2 = vsel %vm2795_vm5, %v15160_v6, -inf }
 0xebd   : > { %8693 = vmax.xlane.f32.xlu0 %v8692_v47 }
 0xec1   : > { %v15162_v25 = vpop.f32.mrf.mxu3 }
 0xec2   : > { %v8680_v22 = vsel %vm2795_vm5, %v15162_v25, -inf }
 0xec3   : > { %8675 = vmax.xlane.f32.xlu2 %v8674_v0  ;;  %8690 = vmax.xlane.f32.xlu1 %v8689_v2 }
 0xec5   : > { %8681 = vmax.xlane.f32.xlu0 %v8680_v22 }
 0xec9   : > { %v15172_v42 = vpop.f32.mrf.mxu3 }
 0xeca   : > { %v8683_v63 = vsel %vm2795_vm5, %v15172_v42, -inf }
 0xecb   : > { %8678 = vmax.xlane.f32.xlu1 %v8677_v27  ;;  %8684 = vmax.xlane.f32.xlu2 %v8683_v63 }
 0xecd   : > { %8696 = vmax.xlane.f32.xlu0 %v8695_v40 }
 0xee1   : > { %8161 = vrot.lane.b32.xlu0 %v14575_v37, %s16084_s26  ;;  %s16102_s26 = sld [smem:[#allocation26_spill]] }
 0xee3   : > { %8167 = vrot.lane.b32.xlu2 %v14575_v37, %s16078_s25  ;;  %s16104_s25 = sld [smem:[#allocation27_spill]] }
 0xee4   : > { %8164 = vrot.lane.b32.xlu1 %v14575_v37, %s16081_s20  ;;  %s16099_s20 = sld [smem:[#allocation25_spill]] }
 0xee9   : > { %s10826_s3 = scalar_lea.hbm %s16104_s25, 32 }
 0xf15   : > { %v8652_v8 = vpop.xlane.xlu0 %8651 }
 0xf16   : > { %v8698_v34 = vsub.f32 %v8420_v31, %v8652_v8  ;;  %v8670_v26 = vpop.xlane.xlu2 %8669 }
 0xf17   : > { %v8704_v55 = vsub.f32 %v8516_v1, %v8670_v26 }
 0xf18   : > { %v8714_v28 = vmul.f32 1.442695, %v8698_v34  ;;  %v8664_v57 = vpop.xlane.xlu1 %8663 }
 0xf19   : > { %v8702_v52 = vsub.f32 %v8484_v30, %v8664_v57  ;;  %v8726_v21 = vmul.f32 1.442695, %v8704_v55 }
 0xf1a   : > { %10725 = vpow2.f32 %v8714_v28 }
 0xf1b   : > { %v8722_v62 = vmul.f32 1.442695, %v8702_v52  ;;  %10727 = vpow2.f32 %v8726_v21 }
 0xf1d   : > { %10729 = vpow2.f32 %v8722_v62 }
 0xf20   : > { %v15190_v56 = vpop.eup %10725  ;;  %v8667_v32 = vpop.xlane.xlu0 %8666 }
 0xf21   : > { %v8746_v37 = vsel %vm2795_vm5, %v15190_v56, 0.0  ;;  %v15194_v16 = vpop.eup %10727  ;;  %v8673_v19 = vpop.xlane.xlu1 %8672  ;;  %v8703_v1 = vsub.f32 %v15134_v18, %v8667_v32 }
 0xf22   : > { %8747 = vadd.xlane.f32.xlu0 %v8746_v37  ;;  %v8764_v39 = vsel %vm2795_vm5, %v15194_v16, 0.0 }
 0xf23   : > { %v15198_v50 = vpop.eup %10729  ;;  %8765 = vadd.xlane.f32.xlu1 %v8764_v39  ;;  %v8724_v36 = vmul.f32 1.442695, %v8703_v1 }
 0xf24   : > { %v8758_v33 = vsel %vm2795_vm5, %v15198_v50, 0.0 }
 0xf25   : > { %8759 = vadd.xlane.f32.xlu2 %v8758_v33 }
 0xf26   : > { %v8658_v58 = vpop.xlane.xlu2 %8657 }
 0xf27   : > { %v8700_v5 = vsub.f32 %v15138_v7, %v8658_v58  ;;  %v8705_v7 = vsub.f32 %v15128_v60, %v8673_v19 }
 0xf28   : > { %v8655_v4 = vpop.xlane.xlu0 %8654 }
 0xf29   : > { %v8718_v31 = vmul.f32 1.442695, %v8700_v5  ;;  %v8699_v23 = vsub.f32 %v15140_v13, %v8655_v4  ;;  %v8728_v49 = vmul.f32 1.442695, %v8705_v7 }
 0xf2b   : > { %10731 = vpow2.f32 %v8718_v31  ;;  %v8716_v53 = vmul.f32 1.442695, %v8699_v23 }
 0xf2d   : > { %10733 = vpow2.f32 %v8716_v53 }
 0xf2e   : > { %v8688_v30 = vpop.xlane.xlu2 %8687  ;;  %v8661_v46 = vpop.xlane.xlu1 %8660  ;;  %10735 = vpow2.f32 %v8724_v36 }
 0xf2f   : > { %v8701_v43 = vsub.f32 %v15148_v24, %v8661_v46  ;;  %v8710_v60 = vsub.f32 %v15144_v44, %v8688_v30 }
 0xf30   : > { %v8694_v20 = vpop.xlane.xlu0 %8693 }
 0xf31   : > { %v15206_v3 = vpop.eup %10731  ;;  %v8720_v59 = vmul.f32 1.442695, %v8701_v43  ;;  %v8712_v8 = vsub.f32 %v15150_v9, %v8694_v20 }
 0xf32   : > { %v8752_v15 = vsel %vm2795_vm5, %v15206_v3, 0.0 }
 0xf33   : > { %8753 = vadd.xlane.f32.xlu1 %v8752_v15  ;;  %v15211_v18 = vpop.eup %10733  ;;  %10737 = vpow2.f32 %v8720_v59  ;;  %v8196_v15 = vrot.slane %v15188_v17, 4 }
 0xf34   : > { %v8749_v13 = vsel %vm2795_vm5, %v15211_v18, 0.0  ;;  %v15216_v0 = vpop.eup %10735  ;;  %10739 = vpow2.f32 %v8728_v49 }
 0xf35   : > { %8750 = vadd.xlane.f32.xlu0 %v8749_v13  ;;  %v8761_v26 = vsel %vm2795_vm5, %v15216_v0, 0.0 }
 0xf36   : > { %v8676_v24 = vpop.xlane.xlu2 %8675  ;;  %v8691_v14 = vpop.xlane.xlu1 %8690 }
 0xf37   : > { %v8706_v47 = vsub.f32 %v15156_v38, %v8676_v24  ;;  %v8738_v38 = vmul.f32 1.442695, %v8710_v60  ;;  %v8711_v32 = vsub.f32 %v15160_v6, %v8691_v14 }
 0xf38   : > { %v8682_v22 = vpop.xlane.xlu0 %8681 }
 0xf39   : > { %v8730_v2 = vmul.f32 1.442695, %v8706_v47  ;;  %v15219_v27 = vpop.eup %10737  ;;  %v8708_v63 = vsub.f32 %v15162_v25, %v8682_v22  ;;  %v8742_v25 = vmul.f32 1.442695, %v8712_v8  ;;  %v8740_v58 = vmul.f32 1.442695, %v8711_v32 }
 0xf3a   : > { %v8755_v40 = vsel %vm2795_vm5, %v15219_v27, 0.0  ;;  %v15228_v57 = vpop.eup %10739 }
 0xf3b   : > { %10741 = vpow2.f32 %v8730_v2  ;;  %v8734_v34 = vmul.f32 1.442695, %v8708_v63  ;;  %8756 = vadd.xlane.f32.xlu2 %v8755_v40  ;;  %v8237_v63 = vperm.slane %v15073_v29, %v11278_v11 }
 0xf3d   : > { %10743 = vpow2.f32 %v8734_v34  ;;  %8762 = vadd.xlane.f32.xlu0 %v8761_v26  ;;  %v8225_v34 = vperm.slane %v15083_v35, %v11278_v11  ;;  %v8241_v26 = vperm.slane %v15087_v45, %v11278_v11 }
 0xf3e   : > { %v8679_v44 = vpop.xlane.xlu1 %8678  ;;  %v8685_v55 = vpop.xlane.xlu2 %8684  ;;  %10745 = vpow2.f32 %v8738_v38  ;;  %v8229_v38 = vperm.slane %v15093_v54, %v11278_v11 }
 0xf3f   : > { %v8707_v28 = vsub.f32 %v15170_v10, %v8679_v44  ;;  %v8709_v9 = vsub.f32 %v15172_v42, %v8685_v55  ;;  %v8767_v10 = vsel %vm2795_vm5, %v15228_v57, 0.0  ;;  %v8268_v32 = vrot.slane %v8225_v34, 4 }
 0xf40   : > { %v8697_v62 = vpop.xlane.xlu0 %8696 }
 0xf41   : > { %v15230_v52 = vpop.eup %10741  ;;  %v8732_v21 = vmul.f32 1.442695, %v8707_v28  ;;  %v8713_v33 = vsub.f32 %v15174_v48, %v8697_v62  ;;  %v8736_v19 = vmul.f32 1.442695, %v8709_v9 }
 0xf42   : > { %v8770_v37 = vsel %vm2795_vm5, %v15230_v52, 0.0 }
 0xf43   : > { %10747 = vpow2.f32 %v8732_v21  ;;  %8771 = vadd.xlane.f32.xlu1 %v8770_v37  ;;  %v15238_v39 = vpop.eup %10743  ;;  %8768 = vadd.xlane.f32.xlu2 %v8767_v10  ;;  %v8744_v5 = vmul.f32 1.442695, %v8713_v33  ;;  %v8276_v10 = vrot.slane %v8237_v63, 4  ;;  %v8280_v33 = vrot.slane %v8241_v26, 4 }
 0xf44   : > { %10749 = vpow2.f32 %v8742_v25  ;;  %v8776_v42 = vsel %vm2795_vm5, %v15238_v39, 0.0  ;;  %v15243_v6 = vpop.eup %10745 }
 0xf45   : > { %8777 = vadd.xlane.f32.xlu0 %v8776_v42  ;;  %10751 = vpow2.f32 %v8736_v19  ;;  %v8782_v23 = vsel %vm2795_vm5, %v15243_v6, 0.0 }
 0xf46   : > { %10753 = vpow2.f32 %v8740_v58  ;;  %v8168_v46 = vpop.permute.xlu2 %8167 }
 0xf47   : > { %10755 = vpow2.f32 %v8744_v5  ;;  %v8206_v20 = vrot.slane %v8168_v46, 4 }
 0xf49   : > { %v15245_v4 = vpop.eup %10747 }
 0xf4a   : > { %v15247_v31 = vpop.eup %10749  ;;  %v8773_v48 = vsel %vm2795_vm5, %v15245_v4, 0.0 }
 0xf4b   : > { %8783 = vadd.xlane.f32.xlu1 %v8782_v23  ;;  %8774 = vadd.xlane.f32.xlu2 %v8773_v48  ;;  %v8788_v1 = vsel %vm2795_vm5, %v15247_v31, 0.0  ;;  %v15255_v53 = vpop.eup %10751 }
 0xf4c   : > { %v15257_v30 = vpop.eup %10753  ;;  %v8779_v43 = vsel %vm2795_vm5, %v15255_v53, 0.0 }
 0xf4d   : > { %8789 = vadd.xlane.f32.xlu0 %v8788_v1  ;;  %v15259_v36 = vpop.eup %10755  ;;  %v8785_v59 = vsel %vm2795_vm5, %v15257_v30, 0.0 }
 0xf4e   : > { %v8791_v24 = vsel %vm2795_vm5, %v15259_v36, 0.0 }
 0xf53   : > { %8780 = vadd.xlane.f32.xlu1 %v8779_v43  ;;  %v8162_v7 = vpop.permute.xlu0 %8161  ;;  %8786 = vadd.xlane.f32.xlu2 %v8785_v59 }
 0xf54   : > { %v8207_v13 = vsel %vm828_vm11, %v8206_v20, %v8162_v7  ;;  %v8208_v49 = vrot.slane %v8162_v7, 4 }
 0xf55   : > { %v8213_v14 = vperm.slane %v8207_v13, %v11262_v51  ;;  %8792 = vadd.xlane.f32.xlu0 %v8791_v24 }
 0xf56   : > { %v8165_v47 = vpop.permute.xlu1 %8164  ;;  %v8209_v60 = vsel %vm828_vm11, %v8168_v46, %v8208_v49 }
 0xf57   : > { %v8194_v2 = vrot.slane %v8165_v47, 4  ;;  %v8197_v22 = vsel %vm828_vm11, %v8165_v47, %v8196_v15  ;;  %v8217_v40 = vperm.slane %v8209_v60, %v11262_v51  ;;  %v8242_v55 = vrot.slane %v8213_v14, 4 }
 0xf58   : > { %v8205_v8 = vperm.slane %v8197_v22, %v11262_v51 }
 0xf59   : > { %v8195_v44 = vsel %vm828_vm11, %v8194_v2, %v15188_v17  ;;  %v8254_v28 = vrot.slane %v8217_v40, 4  ;;  %v8272_v17 = vrot.slane %v8229_v38, 4 }
 0xf5a   : > { %v8201_v29 = vperm.slane %v8195_v44, %v11262_v51  ;;  %v8256_v25 = vrot.slane %v8205_v8, 4 }
 0xf5b   : > { %v8255_v62 = vsel %vm828_vm11, %v8254_v28, %v8205_v8 }
 0xf5c   : > { %v8243_v21 = vsel %vm828_vm11, %v8242_v55, %v8201_v29  ;;  %v8244_v9 = vrot.slane %v8201_v29, 4  ;;  %v8257_v35 = vsel %vm828_vm11, %v8217_v40, %v8256_v25  ;;  %v8261_v45 = vperm.slane %v8255_v62, %v11278_v11 }
 0xf5d   : > { %v8249_v54 = vperm.slane %v8243_v21, %v11278_v11  ;;  %v8265_v37 = vperm.slane %v8257_v35, %v11278_v11 }
 0xf5e   : > { %v8245_v19 = vsel %vm828_vm11, %v8213_v14, %v8244_v9  ;;  %v8274_v23 = vrot.slane %v8261_v45, 4  ;;  %v8277_v48 = vsel %vm828_vm11, %v8261_v45, %v8276_v10 }
 0xf5f   : > { %v8253_v42 = vperm.slane %v8245_v19, %v11278_v11  ;;  %v8266_v58 = vrot.slane %v8249_v54, 4  ;;  %v8269_v5 = vsel %vm828_vm11, %v8249_v54, %v8268_v32  ;;  %v8278_v1 = vrot.slane %v8265_v37, 4 }
 0xf60   : > { %v8281_v46 = vsel %vm828_vm11, %v8265_v37, %v8280_v33  ;;  %v8296_v43 = vrot.slane %v8269_v5, 4  ;;  %v8275_v7 = vsel %vm828_vm11, %v8274_v23, %v8237_v63  ;;  %v8320_v14 = vrot.slane %v8277_v48, 4 }
 0xf61   : > { %v8270_v20 = vrot.slane %v8253_v42, 4  ;;  %v8273_v59 = vsel %vm828_vm11, %v8253_v42, %v8272_v17  ;;  %v8318_v15 = vrot.slane %v8281_v46, 4  ;;  %v8279_v13 = vsel %vm828_vm11, %v8278_v1, %v8241_v26 }
 0xf62   : > { %v8294_v49 = vrot.slane %v8273_v59, 4  ;;  %v8308_v24 = vrot.slane %v8275_v7, 4  ;;  %v8306_v47 = vrot.slane %v8279_v13, 4  ;;  %v8267_v2 = vsel %vm828_vm11, %v8266_v58, %v8225_v34 }
 0xf63   : > { %v8319_v60 = vsel %vm828_vm11, %v8318_v15, %v8277_v48  ;;  %v8271_v22 = vsel %vm828_vm11, %v8270_v20, %v8229_v38  ;;  %v8321_v40 = vsel %vm828_vm11, %v8281_v46, %v8320_v14  ;;  %v8284_v55 = vrot.slane %v8267_v2, 4 }
 0xf64   : > { %v8325_v8 = vperm.slane %v8319_v60, %v11262_v51  ;;  %v8282_v44 = vrot.slane %v8271_v22, 4  ;;  %v8295_v63 = vsel %vm828_vm11, %v8294_v49, %v8269_v5  ;;  %v8307_v26 = vsel %vm828_vm11, %v8306_v47, %v8275_v7 }
 0xf65   : > { %v8297_v28 = vsel %vm828_vm11, %v8273_v59, %v8296_v43  ;;  %v8309_v29 = vsel %vm828_vm11, %v8279_v13, %v8308_v24  ;;  %v8301_v34 = vperm.slane %v8295_v63, %v11262_v51  ;;  %v8313_v38 = vperm.slane %v8307_v26, %v11262_v51 }
 0xf66   : > { %v8283_v25 = vsel %vm828_vm11, %v8282_v44, %v8267_v2  ;;  %v8354_v21 = vrot.slane %v8325_v8, 4  ;;  %v8285_v62 = vsel %vm828_vm11, %v8271_v22, %v8284_v55  ;;  %v8305_v35 = vperm.slane %v8297_v28, %v11262_v51 }
 0xf67   : > { %v8289_v9 = vperm.slane %v8283_v25, %v11262_v51  ;;  %v8317_v32 = vperm.slane %v8309_v29, %v11262_v51  ;;  %v8330_v54 = vrot.slane %v8301_v34, 4  ;;  %v8293_v37 = vperm.slane %v8285_v62, %v11262_v51 }
 0xf68   : > { %v8355_v45 = vsel %vm828_vm11, %v8354_v21, %v8313_v38  ;;  %v8329_v17 = vperm.slane %v8321_v40, %v11262_v51  ;;  %v8342_v33 = vrot.slane %v8305_v35, 4  ;;  %v8356_v42 = vrot.slane %v8313_v38, 4 }
 0xf69   : > { %v8361_v10 = vperm.slane %v8355_v45, %v11278_v11  ;;  %v8332_v19 = vrot.slane %v8289_v9, 4  ;;  %v8331_v58 = vsel %vm828_vm11, %v8330_v54, %v8289_v9  ;;  %v8344_v23 = vrot.slane %v8293_v37, 4 }
 0xf6a   : > { %v8366_v5 = vrot.slane %v8329_v17, 4  ;;  %v8368_v48 = vrot.slane %v8317_v32, 4  ;;  %v8337_v1 = vperm.slane %v8331_v58, %v11278_v11  ;;  %v8343_v43 = vsel %vm828_vm11, %v8342_v33, %v8293_v37 }
 0xf6b   : > { %v8378_v46 = vrot.slane %v8361_v10, 4  ;;  %v8333_v20 = vsel %vm828_vm11, %v8301_v34, %v8332_v19  ;;  %v8349_v59 = vperm.slane %v8343_v43, %v11278_v11  ;;  %v8357_v13 = vsel %vm828_vm11, %v8325_v8, %v8356_v42 }
 0xf6c   : > { %v8367_v7 = vsel %vm828_vm11, %v8366_v5, %v8317_v32  ;;  %v8341_v15 = vperm.slane %v8333_v20, %v11278_v11  ;;  %v8380_v14 = vrot.slane %v8337_v1, 4  ;;  %v8365_v47 = vperm.slane %v8357_v13, %v11278_v11 }
 0xf6d   : > { %v8379_v49 = vsel %vm828_vm11, %v8378_v46, %v8337_v1  ;;  %v8373_v24 = vperm.slane %v8367_v7, %v11278_v11  ;;  %v8388_v60 = vrot.slane %v8349_v59, 4  ;;  %v8345_v2 = vsel %vm828_vm11, %v8305_v35, %v8344_v23 }
 0xf6e   : > { %8847 = vmatpush.msrb.mxu2 %v8379_v49  ;;  %v8369_v22 = vsel %vm828_vm11, %v8329_v17, %v8368_v48  ;;  %v8384_v40 = vrot.slane %v8341_v15, 4  ;;  %v8381_v55 = vsel %vm828_vm11, %v8361_v10, %v8380_v14  ;;  %v8382_v63 = vrot.slane %v8365_v47, 4 }
 0xf6f   : > { %v8386_v44 = vrot.slane %v8373_v24, 4  ;;  %v8353_v8 = vperm.slane %v8345_v2, %v11278_v11  ;;  %8876 = vmatpush.msra.mxu3 %v8381_v55  ;;  %v8389_v26 = vsel %vm828_vm11, %v8373_v24, %v8388_v60  ;;  %v8377_v28 = vperm.slane %v8369_v22, %v11278_v11 }
 0xf70   : > { %v8385_v29 = vsel %vm828_vm11, %v8365_v47, %v8384_v40  ;;  %v8383_v34 = vsel %vm828_vm11, %v8382_v63, %v8341_v15 }
 0xf71   : > { %v8387_v25 = vsel %vm828_vm11, %v8386_v44, %v8349_v59  ;;  %8992 = vmatpush.msrb.mxu3 %v8389_v26  ;;  %8934 = vmatpush.msrb.mxu1 %v8385_v29  ;;  %v8392_v38 = vrot.slane %v8353_v8, 4  ;;  %v8390_v21 = vrot.slane %v8377_v28, 4 }
 0xf72   : > { %8963 = vmatpush.msra.mxu2 %v8387_v25  ;;  %8905 = vmatpush.msrb.mxu0 %v8383_v34 }
 0xf73   : > { %v8393_v9 = vsel %vm828_vm11, %v8377_v28, %v8392_v38  ;;  %v8391_v62 = vsel %vm828_vm11, %v8390_v21, %v8353_v8 }
 0xf74   : > { %9050 = vmatpush.msra.mxu1 %v8393_v9  ;;  %9021 = vmatpush.msra.mxu0 %v8391_v62 }
 0xf95   : > { %v8748_v35 = vpop.xlane.xlu0 %8747 }
 0xf96   : > { %10757 = vrcp.f32 %v8748_v35  ;;  %v8766_v32 = vpop.xlane.xlu1 %8765 }
 0xf97   : > { %10759 = vrcp.f32 %v8766_v32 }
 0xf98   : > { %v8760_v54 = vpop.xlane.xlu2 %8759 }
 0xf99   : > { %10761 = vrcp.f32 %v8760_v54 }
 0xf9c   : > { %v10758_v45 = vpop.eup %10757 }
 0xf9d   : > { %v8810_v37 = vmul.f32 %v10758_v45, %v15190_v56  ;;  %v10760_v17 = vpop.eup %10759 }
 0xf9e   : > { %v8816_v10 = vmul.f32 %v10760_v17, %v15194_v16 }
 0xf9f   : > { %10352 = vmatmul.msk.f32.vlgmr.msrb.gmra.mxu2 %vm2795_vm5, %v8810_v37  ;;  %v10762_v33 = vpop.eup %10761 }
 0xfa0   : > { %v8814_v19 = vmul.f32 %v10762_v33, %v15198_v50  ;;  %10358 = vmatmul.msk.f32.vlgmr.msrb.gmra.mxu1 %vm2795_vm5, %v8816_v10 }
 0xfa2   : > { %10356 = vmatmul.msk.f32.vlgmr.msrb.gmra.mxu0 %vm2795_vm5, %v8814_v19 }
 0xfa6   : > { %v8754_v42 = vpop.xlane.xlu1 %8753 }
 0xfa7   : > { %10763 = vrcp.f32 %v8754_v42 }
 0xfa8   : > { %v8751_v58 = vpop.xlane.xlu0 %8750 }
 0xfa9   : > { %10765 = vrcp.f32 %v8751_v58 }
 0xfad   : > { %v10764_v5 = vpop.eup %10763 }
 0xfae   : > { %v8812_v23 = vmul.f32 %v10764_v5, %v15206_v3  ;;  %v8757_v56 = vpop.xlane.xlu2 %8756 }
 0xfaf   : > { %v10766_v48 = vpop.eup %10765  ;;  %10767 = vrcp.f32 %v8757_v56 }
 0xfb0   : > { %10354 = vmatmul.msk.f32.vlgmr.msra.gmra.mxu3 %vm2795_vm5, %v8812_v23  ;;  %v8763_v16 = vpop.xlane.xlu0 %8762  ;;  %v8811_v1 = vmul.f32 %v10766_v48, %v15211_v18 }
 0xfb1   : > { %10769 = vrcp.f32 %v8763_v16 }
 0xfb2   : > { %10353 = vmatmul.msk.f32.gmra.mxu2 %vm2795_vm5, %v8811_v1 }
 0xfb5   : > { %v10768_v50 = vpop.eup %10767 }
 0xfb6   : > { %v8772_v46 = vpop.xlane.xlu1 %8771  ;;  %v8769_v43 = vpop.xlane.xlu2 %8768  ;;  %v8813_v20 = vmul.f32 %v10768_v50, %v15219_v27 }
 0xfb7   : > { %10771 = vrcp.f32 %v8772_v46  ;;  %v10770_v59 = vpop.eup %10769 }
 0xfb8   : > { %10773 = vrcp.f32 %v8769_v43  ;;  %v8815_v3 = vmul.f32 %v10770_v59, %v15216_v0  ;;  %v8778_v7 = vpop.xlane.xlu0 %8777  ;;  %10355 = vmatmul.msk.f32.gmra.mxu3 %vm2795_vm5, %v8813_v20 }
 0xfb9   : > { %10775 = vrcp.f32 %v8778_v7 }
 0xfba   : > { %10357 = vmatmul.msk.f32.gmra.mxu0 %vm2795_vm5, %v8815_v3 }
 0xfbd   : > { %v10772_v18 = vpop.eup %10771 }
 0xfbe   : > { %v10774_v15 = vpop.eup %10773  ;;  %v8818_v13 = vmul.f32 %v10772_v18, %v15230_v52  ;;  %v8784_v49 = vpop.xlane.xlu1 %8783 }
 0xfbf   : > { %10777 = vrcp.f32 %v8784_v49  ;;  %v8775_v24 = vpop.xlane.xlu2 %8774  ;;  %v8817_v14 = vmul.f32 %v10774_v15, %v15228_v57  ;;  %v10776_v27 = vpop.eup %10775 }
 0xfc0   : > { %10779 = vrcp.f32 %v8775_v24  ;;  %10360 = vmatmul.msk.f32.vlgmr.msra.gmra.mxu2 %vm2795_vm5, %v8818_v13  ;;  %v8820_v0 = vmul.f32 %v10776_v27, %v15238_v39  ;;  %v8790_v47 = vpop.xlane.xlu0 %8789 }
 0xfc1   : > { %10359 = vmatmul.msk.f32.gmra.mxu1 %vm2795_vm5, %v8817_v14  ;;  %10781 = vrcp.f32 %v8790_v47 }
 0xfc2   : > { %10362 = vmatmul.msk.f32.vlgmr.msrb.gmra.mxu3 %vm2795_vm5, %v8820_v0 }
 0xfc5   : > { %v10778_v60 = vpop.eup %10777 }
 0xfc6   : > { %v10780_v2 = vpop.eup %10779  ;;  %v8822_v52 = vmul.f32 %v10778_v60, %v15243_v6  ;;  %v8781_v22 = vpop.xlane.xlu1 %8780 }
 0xfc7   : > { %10783 = vrcp.f32 %v8781_v22  ;;  %v8787_v40 = vpop.xlane.xlu2 %8786  ;;  %v8819_v57 = vmul.f32 %v10780_v2, %v15245_v4  ;;  %v10782_v44 = vpop.eup %10781 }
 0xfc8   : > { %10785 = vrcp.f32 %v8787_v40  ;;  %10364 = vmatmul.msk.f32.vlgmr.msra.gmra.mxu0 %vm2795_vm5, %v8822_v52  ;;  %v8824_v39 = vmul.f32 %v10782_v44, %v15247_v31  ;;  %v8793_v55 = vpop.xlane.xlu0 %8792 }
 0xfc9   : > { %10361 = vmatmul.msk.f32.gmra.mxu2 %vm2795_vm5, %v8819_v57  ;;  %10787 = vrcp.f32 %v8793_v55 }
 0xfca   : > { %10366 = vmatmul.msk.f32.vlgmr.msra.gmra.mxu1 %vm2795_vm5, %v8824_v39 }
 0xfcd   : > { %v10784_v63 = vpop.eup %10783 }
 0xfce   : > { %v10786_v8 = vpop.eup %10785  ;;  %v8821_v6 = vmul.f32 %v10784_v63, %v15255_v53 }
 0xfcf   : > { %v8823_v26 = vmul.f32 %v10786_v8, %v15257_v30  ;;  %v10788_v28 = vpop.eup %10787 }
 0xfd0   : > { %10363 = vmatmul.msk.f32.gmra.mxu3 %vm2795_vm5, %v8821_v6  ;;  %v8825_v4 = vmul.f32 %v10788_v28, %v15259_v36 }
 0xfd1   : > { %10365 = vmatmul.msk.f32.gmra.mxu0 %vm2795_vm5, %v8823_v26 }
 0xfd2   : > { %10367 = vmatmul.msk.f32.gmra.mxu1 %vm2795_vm5, %v8825_v4 }
0x101d   : > { %v8936_v25 = vpop.f32.mrf.mxu1 }
0x101e   : > { %v9070_v21 = vrot.slane %v8936_v25, 4 }
0x101f   : > { %v8907_v29 = vpop.f32.mrf.mxu0 }
0x1020   : > { %v9058_v38 = vrot.slane %v8907_v29, 4 }
0x1022   : > { %v8849_v31 = vpop.f32.mrf.mxu2 }
0x1023   : > { %v9060_v62 = vrot.slane %v8849_v31, 4  ;;  %v9059_v53 = vsel %vm828_vm11, %v9058_v38, %v8849_v31 }
0x1024   : > { %v9065_v45 = vperm.slane %v9059_v53, %v11262_v51 }
0x1025   : > { %v9061_v36 = vsel %vm828_vm11, %v8907_v29, %v9060_v62 }
0x1026   : > { %v9069_v42 = vperm.slane %v9061_v36, %v11262_v51  ;;  %v9108_v5 = vrot.slane %v9065_v45, 4 }
0x1028   : > { %v9120_v20 = vrot.slane %v9069_v42, 4 }
0x1033   : > { %v8878_v34 = vpop.f32.mrf.mxu3 }
0x1034   : > { %v9072_v9 = vrot.slane %v8878_v34, 4  ;;  %v9071_v35 = vsel %vm828_vm11, %v9070_v21, %v8878_v34 }
0x1035   : > { %v8852_v30 = vpop.f32.mrf.mxu2  ;;  %v9077_v17 = vperm.slane %v9071_v35, %v11262_v51 }
0x1036   : > { %v9073_v54 = vsel %vm828_vm11, %v8936_v25, %v9072_v9  ;;  %v9172_v37 = vrot.slane %v8852_v30, 4 }
0x1037   : > { %v8910_v32 = vpop.f32.mrf.mxu0  ;;  %v9081_v33 = vperm.slane %v9073_v54, %v11262_v51  ;;  %v9106_v23 = vrot.slane %v9077_v17, 4  ;;  %v9109_v46 = vsel %vm828_vm11, %v9077_v17, %v9108_v5 }
0x1038   : > { %v9170_v10 = vrot.slane %v8910_v32, 4  ;;  %v9173_v56 = vsel %vm828_vm11, %v8910_v32, %v9172_v37  ;;  %v15392_v49 = vperm.slane %v9109_v46, %v11278_v11 }
0x1039   : > { %v9118_v43 = vrot.slane %v9081_v33, 4  ;;  %v9181_v59 = vperm.slane %v9173_v56, %v11262_v51  ;;  %v9107_v7 = vsel %vm828_vm11, %v9106_v23, %v9065_v45  ;;  %v9121_v27 = vsel %vm828_vm11, %v9081_v33, %v9120_v20 }
0x103a   : > { %v9171_v16 = vsel %vm828_vm11, %v9170_v10, %v8852_v30  ;;  %v15397_v47 = vperm.slane %v9107_v7, %v11278_v11  ;;  %v15402_v63 = vperm.slane %v9121_v27, %v11278_v11  ;;  %v9160_v8 = vrot.slane %v15392_v49, 4 }
0x103b   : > { %v8881_v19 = vpop.f32.mrf.mxu3  ;;  %v9177_v18 = vperm.slane %v9171_v16, %v11262_v51  ;;  %v9119_v14 = vsel %vm828_vm11, %v9118_v43, %v9069_v42  ;;  %v9232_v60 = vrot.slane %v9181_v59, 4 }
0x103c   : > { %v9184_v58 = vrot.slane %v8881_v19, 4  ;;  %v9125_v55 = vperm.slane %v9119_v14, %v11278_v11  ;;  %v9156_v9 = vrot.slane %v15397_v47, 4  ;;  %v9168_v42 = vrot.slane %v15402_v63, 4 }
0x103d   : > { %v9220_v22 = vrot.slane %v9177_v18, 4 }
0x103e   : > { %v8939_v48 = vpop.f32.mrf.mxu1 }
0x103f   : > { %v9182_v1 = vrot.slane %v8939_v48, 4  ;;  %v9185_v50 = vsel %vm828_vm11, %v8939_v48, %v9184_v58 }
0x1040   : > { %v9193_v13 = vperm.slane %v9185_v50, %v11262_v51 }
0x1041   : > { %v9183_v3 = vsel %vm828_vm11, %v9182_v1, %v8881_v19  ;;  %v9164_v19 = vrot.slane %v9125_v55, 4 }
0x1042   : > { %v9189_v15 = vperm.slane %v9183_v3, %v11262_v51  ;;  %v9230_v40 = vrot.slane %v9193_v13, 4  ;;  %v9233_v28 = vsel %vm828_vm11, %v9193_v13, %v9232_v60 }
0x1043   : > { %v8965_v24 = vpop.f32.mrf.mxu2  ;;  %v15419_v32 = vperm.slane %v9233_v28, %v11278_v11 }
0x1044   : > { %v9084_v0 = vrot.slane %v8965_v24, 4  ;;  %v9218_v2 = vrot.slane %v9189_v15, 4  ;;  %v9221_v26 = vsel %vm828_vm11, %v9189_v15, %v9220_v22  ;;  %v9231_v62 = vsel %vm828_vm11, %v9230_v40, %v9181_v59 }
0x1045   : > { %v9023_v52 = vpop.f32.mrf.mxu0  ;;  %v8994_v57 = vpop.f32.mrf.mxu3  ;;  %v15416_v35 = vperm.slane %v9221_v26, %v11278_v11  ;;  %v15429_v58 = vperm.slane %v9231_v62, %v11278_v11  ;;  %v9280_v50 = vrot.slane %v15419_v32, 4 }
0x1046   : > { %v9082_v44 = vrot.slane %v9023_v52, 4  ;;  %v9085_v39 = vsel %vm828_vm11, %v9023_v52, %v9084_v0  ;;  %v9096_v6 = vrot.slane %v8994_v57, 4  ;;  %v9219_v25 = vsel %vm828_vm11, %v9218_v2, %v9177_v18 }
0x1047   : > { %v9093_v31 = vperm.slane %v9085_v39, %v11262_v51  ;;  %v9052_v29 = vpop.f32.mrf.mxu1  ;;  %v15423_v45 = vperm.slane %v9219_v25, %v11278_v11  ;;  %v9272_v3 = vrot.slane %v15416_v35, 4 }
0x1048   : > { %v9083_v4 = vsel %vm828_vm11, %v9082_v44, %v8965_v24  ;;  %v9094_v38 = vrot.slane %v9052_v29, 4  ;;  %v9097_v21 = vsel %vm828_vm11, %v9052_v29, %v9096_v6 }
0x1049   : > { %v9089_v34 = vperm.slane %v9083_v4, %v11262_v51  ;;  %v9144_v53 = vrot.slane %v9093_v31, 4  ;;  %v9105_v30 = vperm.slane %v9097_v21, %v11262_v51  ;;  %v9268_v59 = vrot.slane %v15423_v45, 4 }
0x104a   : > { %v9095_v36 = vsel %vm828_vm11, %v9094_v38, %v8994_v57 }
0x104b   : > { %v9132_v54 = vrot.slane %v9089_v34, 4  ;;  %v9101_v37 = vperm.slane %v9095_v36, %v11262_v51  ;;  %v9142_v17 = vrot.slane %v9105_v30, 4  ;;  %v9145_v10 = vsel %vm828_vm11, %v9105_v30, %v9144_v53 }
0x104c   : > { %v8968_v33 = vpop.f32.mrf.mxu2  ;;  %v9153_v5 = vperm.slane %v9145_v10, %v11278_v11 }
0x104d   : > { %v9130_v23 = vrot.slane %v9101_v37, 4  ;;  %v9133_v56 = vsel %vm828_vm11, %v9101_v37, %v9132_v54  ;;  %v9143_v48 = vsel %vm828_vm11, %v9142_v17, %v9093_v31  ;;  %v9196_v16 = vrot.slane %v8968_v33, 4 }
0x104e   : > { %v9026_v1 = vpop.f32.mrf.mxu0  ;;  %v9141_v46 = vperm.slane %v9133_v56, %v11278_v11  ;;  %v9149_v43 = vperm.slane %v9143_v48, %v11278_v11  ;;  %v15438_v20 = vsel %vm828_vm11, %v9153_v5, %v9168_v42  ;;  %v9166_v24 = vrot.slane %v9153_v5, 4 }
0x104f   : > { %v9131_v7 = vsel %vm828_vm11, %v9130_v23, %v9089_v34  ;;  %v9194_v18 = vrot.slane %v9026_v1, 4  ;;  %v9318_v14 = vrot.slane %v15438_v20, 4  ;;  %v9197_v2 = vsel %vm828_vm11, %v9026_v1, %v9196_v16  ;;  %v9055_v52 = vpop.f32.mrf.mxu1 }
0x1050   : > { %v9137_v15 = vperm.slane %v9131_v7, %v11278_v11  ;;  %v9162_v13 = vrot.slane %v9149_v43, 4  ;;  %v9158_v27 = vrot.slane %v9141_v46, 4  ;;  %v15446_v0 = vsel %vm828_vm11, %v9149_v43, %v9164_v19 }
0x1051   : > { %v9195_v60 = vsel %vm828_vm11, %v9194_v18, %v8968_v33  ;;  %v15454_v57 = vsel %vm828_vm11, %v9141_v46, %v9160_v8  ;;  %v9320_v28 = vrot.slane %v15446_v0, 4  ;;  %v9205_v29 = vperm.slane %v9197_v2, %v11262_v51 }
0x1052   : > { %v9154_v22 = vrot.slane %v9137_v15, 4  ;;  %v15451_v40 = vsel %vm828_vm11, %v9137_v15, %v9156_v9  ;;  %v15457_v44 = vsel %vm828_vm11, %v9162_v13, %v9125_v55  ;;  %v9201_v4 = vperm.slane %v9195_v60, %v11262_v51 }
0x1053   : > { %v8997_v39 = vpop.f32.mrf.mxu3  ;;  %v9296_v6 = vrot.slane %v15451_v40, 4  ;;  %v9308_v26 = vrot.slane %v15457_v44, 4  ;;  %v9206_v25 = vrot.slane %v9055_v52, 4  ;;  %v9167_v55 = vsel %vm828_vm11, %v9166_v24, %v15402_v63 }
0x1054   : > { %v9155_v31 = vsel %vm828_vm11, %v9154_v22, %v15397_v47  ;;  %v9208_v8 = vrot.slane %v8997_v39, 4  ;;  %v9321_v34 = vsel %vm828_vm11, %v15438_v20, %v9320_v28  ;;  %v9244_v38 = vrot.slane %v9201_v4, 4 }
0x1055   : > { %v9284_v21 = vrot.slane %v9155_v31, 4  ;;  %v9256_v9 = vrot.slane %v9205_v29, 4  ;;  %v9207_v62 = vsel %vm828_vm11, %v9206_v25, %v8997_v39  ;;  %v9159_v47 = vsel %vm828_vm11, %v9158_v27, %v15392_v49 }
0x1056   : > { %v9209_v53 = vsel %vm828_vm11, %v9055_v52, %v9208_v8  ;;  %v9213_v30 = vperm.slane %v9207_v62, %v11262_v51  ;;  %v9297_v63 = vsel %vm828_vm11, %v15454_v57, %v9296_v6  ;;  %v9309_v10 = vsel %vm828_vm11, %v9167_v55, %v9308_v26 }
0x1057   : > { %v9217_v54 = vperm.slane %v9209_v53, %v11262_v51  ;;  %v9285_v36 = vsel %vm828_vm11, %v9159_v47, %v9284_v21  ;;  %v15483_v17 = vperm.slane %v9297_v63, %v11262_v51  ;;  %v9329_v33 = vperm.slane %v9321_v34, %v11262_v51 }
0x1058   : > { %v15480_v37 = vperm.slane %v9285_v36, %v11262_v51  ;;  %v9242_v49 = vrot.slane %v9213_v30, 4  ;;  %v9245_v19 = vsel %vm828_vm11, %v9213_v30, %v9244_v38  ;;  %v9282_v48 = vrot.slane %v9159_v47, 4 }
0x1059   : > { %v9254_v42 = vrot.slane %v9217_v54, 4  ;;  %v9257_v5 = vsel %vm828_vm11, %v9217_v54, %v9256_v9  ;;  %v9253_v23 = vperm.slane %v9245_v19, %v11278_v11  ;;  %v9342_v16 = vrot.slane %v15483_v17, 4 }
0x105a   : > { %v9265_v56 = vperm.slane %v9257_v5, %v11278_v11  ;;  %v9243_v1 = vsel %vm828_vm11, %v9242_v49, %v9201_v4  ;;  %v9317_v43 = vperm.slane %v9309_v10, %v11262_v51  ;;  %v9366_v7 = vrot.slane %v9329_v33, 4 }
0x105b   : > { %v9255_v46 = vsel %vm828_vm11, %v9254_v42, %v9205_v29  ;;  %v9249_v18 = vperm.slane %v9243_v1, %v11278_v11  ;;  %v9270_v13 = vrot.slane %v9253_v23, 4  ;;  %v9273_v24 = vsel %vm828_vm11, %v9253_v23, %v9272_v3 }
0x105c   : > { %v9261_v15 = vperm.slane %v9255_v46, %v11278_v11  ;;  %v9294_v27 = vrot.slane %v15454_v57, 4  ;;  %v9306_v60 = vrot.slane %v9167_v55, 4  ;;  %v9278_v2 = vrot.slane %v9265_v56, 4 }
0x105d   : > { %v9343_v52 = vsel %vm828_vm11, %v9342_v16, %v15480_v37  ;;  %v9266_v22 = vrot.slane %v9249_v18, 4  ;;  %v9269_v39 = vsel %vm828_vm11, %v9249_v18, %v9268_v59  ;;  %v15506_v6 = vsel %vm828_vm11, %v9270_v13, %v15416_v35 }
0x105e   : > { %v9283_v26 = vsel %vm828_vm11, %v9282_v48, %v9155_v31  ;;  %v9276_v3 = vrot.slane %v15429_v58, 4  ;;  %v9274_v28 = vrot.slane %v9261_v15, 4  ;;  %v15513_v57 = vsel %vm828_vm11, %v9265_v56, %v9280_v50 }
0x105f   : > { %v9406_v4 = vrot.slane %v9273_v24, 4  ;;  %v15517_v29 = vsel %vm828_vm11, %v9278_v2, %v15419_v32  ;;  %v9394_v59 = vrot.slane %v15506_v6, 4  ;;  %v15521_v35 = vperm.slane %v9343_v52, %v11278_v11 }
0x1060   : > { %v9367_v31 = vsel %vm828_vm11, %v9366_v7, %v9317_v43  ;;  %v9267_v25 = vsel %vm828_vm11, %v9266_v22, %v15423_v45  ;;  %v9408_v8 = vrot.slane %v9269_v39, 4  ;;  %v9289_v50 = vperm.slane %v9283_v26, %v11262_v51 }
0x1061   : > { %v15527_v55 = vperm.slane %v9367_v31, %v11278_v11  ;;  %v9388_v34 = vrot.slane %v15521_v35, 4  ;;  %v9295_v32 = vsel %vm828_vm11, %v9294_v27, %v15451_v40  ;;  %v9307_v38 = vsel %vm828_vm11, %v9306_v60, %v15457_v44 }
0x1062   : > { %v9319_v21 = vsel %vm828_vm11, %v9318_v14, %v15446_v0  ;;  %v9301_v45 = vperm.slane %v9295_v32, %v11262_v51  ;;  %v9313_v9 = vperm.slane %v9307_v38, %v11262_v51  ;;  %v9332_v53 = vrot.slane %v9289_v50, 4 }
0x1063   : > { %v9325_v62 = vperm.slane %v9319_v21, %v11262_v51  ;;  %v9407_v47 = vsel %vm828_vm11, %v9406_v4, %v9269_v39  ;;  %v9389_v40 = vsel %vm828_vm11, %v15527_v55, %v9388_v34  ;;  %v9344_v30 = vrot.slane %v15480_v37, 4 }
0x1064   : > { %v9368_v44 = vrot.slane %v9317_v43, 4  ;;  %9540 = vrot.lane.b32.xlu2 %v9389_v40, %s16093_s13  ;;  %v9330_v20 = vrot.slane %v9301_v45, 4  ;;  %v9333_v14 = vsel %vm828_vm11, %v9301_v45, %v9332_v53  ;;  %v9356_v0 = vrot.slane %v9313_v9, 4 }
0x1065   : > { %v9354_v54 = vrot.slane %v9325_v62, 4  ;;  %v9396_v36 = vrot.slane %v9267_v25, 4  ;;  %v9430_v63 = vrot.slane %v15513_v57, 4  ;;  %v9341_v10 = vperm.slane %v9333_v14, %v11278_v11 }
0x1066   : > { %v9369_v49 = vsel %vm828_vm11, %v9329_v33, %v9368_v44  ;;  %v9409_v19 = vsel %vm828_vm11, %v9273_v24, %v9408_v8  ;;  %v9331_v42 = vsel %vm828_vm11, %v9330_v20, %v9289_v50  ;;  %v9357_v5 = vsel %vm828_vm11, %v9325_v62, %v9356_v0 }
0x1067   : > { %v9355_v37 = vsel %vm828_vm11, %v9354_v54, %v9313_v9  ;;  %v15556_v23 = vperm.slane %v9331_v42, %v11278_v11  ;;  %v9365_v56 = vperm.slane %v9357_v5, %v11278_v11  ;;  %v9384_v48 = vrot.slane %v9341_v10, 4 }
0x1068   : > { %v9345_v16 = vsel %vm828_vm11, %v15483_v17, %v9344_v30  ;;  %v15562_v1 = vperm.slane %v9355_v37, %v11278_v11  ;;  %v15565_v33 = vperm.slane %v9369_v49, %v11278_v11  ;;  %v9275_v46 = vsel %vm828_vm11, %v9274_v28, %v15429_v58 }
0x1069   : > { %v9277_v43 = vsel %vm828_vm11, %v9261_v15, %v9276_v3  ;;  %v9380_v7 = vrot.slane %v15556_v23, 4  ;;  %v9385_v18 = vsel %vm828_vm11, %v9365_v56, %v9384_v48  ;;  %v9382_v13 = vrot.slane %v9365_v56, 4 }
0x106a   : > { %v9395_v24 = vsel %vm828_vm11, %v9394_v59, %v9267_v25  ;;  %9524 = vrot.lane.b32.xlu0 %v9385_v18, %s16088_s1  ;;  %v9353_v17 = vperm.slane %v9345_v16, %v11278_v11  ;;  %v9390_v27 = vrot.slane %v15565_v33, 4  ;;  %v9413_v2 = vperm.slane %v9407_v47, %v11262_v51 }
0x106b   : > { %v9401_v60 = vperm.slane %v9395_v24, %v11262_v51  ;;  %v9381_v58 = vsel %vm828_vm11, %v15562_v1, %v9380_v7  ;;  %v9383_v15 = vsel %vm828_vm11, %v9382_v13, %v9341_v10  ;;  %v9418_v52 = vrot.slane %v15517_v29, 4 }
0x106c   : > { %v9420_v22 = vrot.slane %v9275_v46, 4  ;;  %9508 = vrot.lane.b32.xlu1 %v9381_v58, %s16087_s29  ;;  %9516 = vrot.lane.b32.xlu2 %v9383_v15, %s16089_s24  ;;  %v9431_v39 = vsel %vm828_vm11, %v9430_v63, %v9277_v43  ;;  %v9432_v26 = vrot.slane %v9277_v43, 4  ;;  %v9442_v3 = vrot.slane %v9413_v2, 4 }
0x106d   : > { %v9419_v28 = vsel %vm828_vm11, %v9418_v52, %v9275_v46  ;;  %v9437_v4 = vperm.slane %v9431_v39, %v11262_v51  ;;  %v9397_v59 = vsel %vm828_vm11, %v15506_v6, %v9396_v36  ;;  %v9386_v31 = vrot.slane %v15527_v55, 4  ;;  %v10802_v39 = vld [vmem:[%s11089_s15] sm:$0xff] }
0x106e   : > { %v9425_v25 = vperm.slane %v9419_v28, %v11262_v51  ;;  %v9443_v8 = vsel %vm828_vm11, %v9442_v3, %v9401_v60  ;;  %v9417_v50 = vperm.slane %v9409_v19, %v11262_v51  ;;  %v9391_v34 = vsel %vm828_vm11, %v9390_v27, %v9353_v17  ;;  %v10322_v28 = vld [vmem:[%s15989_s6 + $0x1f8] sm:$0xff] }
0x106f   : > { %v9449_v32 = vperm.slane %v9443_v8, %v11278_v11  ;;  %v9466_v38 = vrot.slane %v9437_v4, 4  ;;  %v9421_v21 = vsel %vm828_vm11, %v15517_v29, %v9420_v22  ;;  %v9444_v45 = vrot.slane %v9401_v60, 4  ;;  %9597 = vmatpush.msrb.mxu2 %v10322_v28 }
0x1070   : > { %v9468_v9 = vrot.slane %v9425_v25, 4  ;;  %v9405_v6 = vperm.slane %v9397_v59, %v11262_v51  ;;  %v9433_v55 = vsel %vm828_vm11, %v15513_v57, %v9432_v26  ;;  %v9429_v47 = vperm.slane %v9421_v21, %v11262_v51  ;;  %v10319_v59 = vld [vmem:[%s15989_s6 + $0x1e0] sm:$0xff] }
0x1071   : > { %v9467_v62 = vsel %vm828_vm11, %v9466_v38, %v9425_v25  ;;  %v9492_v53 = vrot.slane %v9449_v32, 4  ;;  %v9441_v40 = vperm.slane %v9433_v55, %v11262_v51  ;;  %v9454_v44 = vrot.slane %v9417_v50, 4 }
0x1072   : > { %9548 = vrot.lane.b32.xlu0 %v9391_v34, %s16091_s16  ;;  %v9473_v30 = vperm.slane %v9467_v62, %v11278_v11  ;;  %v9469_v29 = vsel %vm828_vm11, %v9437_v4, %v9468_v9  ;;  %v9387_v20 = vsel %vm828_vm11, %v9386_v31, %v15521_v35  ;;  %v9445_v0 = vsel %vm828_vm11, %v9413_v2, %v9444_v45  ;;  %v10321_v4 = vld [vmem:[%s15989_s6 + $0x1f0] sm:$0xff] }
0x1073   : > { %v9477_v54 = vperm.slane %v9469_v29, %v11278_v11  ;;  %v9478_v57 = vrot.slane %v9441_v40, 4  ;;  %v9456_v63 = vrot.slane %v9405_v6, 4  ;;  %v9455_v10 = vsel %vm828_vm11, %v9454_v44, %v9405_v6  ;;  %9598 = vmatpush.msrb.mxu2 %v10321_v4 }
0x1074   : > { %9532 = vrot.lane.b32.xlu1 %v9387_v20, %s16090_s22  ;;  %v9493_v14 = vsel %vm828_vm11, %v9473_v30, %v9492_v53  ;;  %v9392_v35 = vrot.slane %v9353_v17, 4  ;;  %v9453_v19 = vperm.slane %v9445_v0, %v11278_v11  ;;  %v9461_v5 = vperm.slane %v9455_v10, %v11278_v11 }
0x1075   : > { %9510 = vrot.lane.b32.xlu2 %v9493_v14, %s16087_s29  ;;  %v9494_v51 = vrot.slane %v9477_v54, 4  ;;  %v9479_v36 = vsel %vm828_vm11, %v9478_v57, %v9429_v47  ;;  %v9457_v56 = vsel %vm828_vm11, %v9417_v50, %v9456_v63  ;;  %v9480_v48 = vrot.slane %v9429_v47, 4 }
0x1076   : > { %v9485_v49 = vperm.slane %v9479_v36, %v11278_v11  ;;  %v9393_v16 = vsel %vm828_vm11, %v15565_v33, %v9392_v35  ;;  %v9465_v43 = vperm.slane %v9457_v56, %v11278_v11  ;;  %v9500_v7 = vrot.slane %v9461_v5, 4 }
0x1077   : > { %v9495_v37 = vsel %vm828_vm11, %v9494_v51, %v9453_v19  ;;  %v9481_v18 = vsel %vm828_vm11, %v9441_v40, %v9480_v48  ;;  %v9496_v13 = vrot.slane %v9453_v19, 4  ;;  %v9378_v24 = vrot.slane %v15562_v1, 4 }
0x1078   : > { %v9498_v42 = vrot.slane %v9485_v49, 4  ;;  %v9489_v17 = vperm.slane %v9481_v18, %v11278_v11  ;;  %v9504_v27 = vrot.slane %v9465_v43, 4  ;;  %v9501_v33 = vsel %vm828_vm11, %v9485_v49, %v9500_v7  ;;  %v10804_v7 = vld [vmem:[%s11089_s15 + $0x8] sm:$0xff]  ;;  %s16101_s15 = sld [smem:[#allocation18_spill]] }
0x1079   : > { %v9379_v60 = vsel %vm828_vm11, %v9378_v24, %v15556_v23  ;;  %v9497_v2 = vsel %vm828_vm11, %v9477_v54, %v9496_v13  ;;  %v9490_v15 = vrot.slane %v9473_v30, 4  ;;  %v10801_v23 = vld [vmem:[%s15990_s7 + $0xb] ss:$0 sm:$0xff]  ;;  %v15691_v18 = vadd.f32 %v10804_v7, %v15130_v61  ;;  %v9670_v61 = vld [vmem:[%s15991_s8 + $0x10] sm:$0xff] }
0x107a   : > { %9518 = vrot.lane.b32.xlu0 %v9495_v37, %s16089_s24  ;;  %v9499_v46 = vsel %vm828_vm11, %v9498_v42, %v9461_v5  ;;  %v9505_v58 = vsel %vm828_vm11, %v9489_v17, %v9504_v27  ;;  %v9502_v1 = vrot.slane %v9489_v17, 4  ;;  %v7301_v22 = vadd.f32 %v10801_v23, %v15120_v41  ;;  %v10320_v41 = vld [vmem:[%s15989_s6 + $0x1e8] sm:$0xff] }
0x107b   : > { %v9491_v52 = vsel %vm828_vm11, %v9490_v15, %v9449_v32  ;;  %9599 = vmatpush.msrb.mxu2 %v10320_v41  ;;  %v10574_v5 = vld [vmem:[%s15990_s7 + $0xf] ss:$0 sm:$0xff]  ;;  %v9617_v13 = vsel %vm530_vm0, %v15691_v18, 0.0  ;;  %v15716_v41 = vld [vmem:[%s15987_s4 + $0x4] ss:$0 sm:$0xff] }
0x107c   : > { %9556 = vrot.lane.b32.xlu1 %v9393_v16, %s16092_s14  ;;  %v9503_v11 = vsel %vm828_vm11, %v9502_v1, %v9465_v43  ;;  %v15646_v26 = vadd.f32 %v10802_v39, %v7301_v22  ;;  %v10803_v16 = vld [vmem:[%s11241_s2] sm:$0xff]  ;;  %v10805_v27 = vld [vmem:[%s11241_s2 + $0x8] sm:$0xff]  ;;  %s16103_s2 = sld [smem:[#allocation13_spill]] }
0x107d   : > { %9534 = vrot.lane.b32.xlu2 %v9499_v46, %s16090_s22  ;;  %9600 = vmatpush.msrb.mxu2 %v10319_v59  ;;  %v9668_v1 = vld [vmem:[%s15991_s8] sm:$0xff] }
0x107e   : > { %v9614_v3 = vsel %vm530_vm0, %v15646_v26, 0.0  ;;  %s10113_s29 = sshll.u32 %s16101_s15, 4  ;;  %s9904_s19 = scalar_lea.sflag [#allocation3], %s16101_s15 }
0x107f   : > { %s15896_s11 = scalar_lea.vmem [#allocation4], %s10113_s29 }
0x1082   : > { %9542 = vrot.lane.b32.xlu0 %v9501_v33, %s16093_s13  ;;  %s10412_s30 = sshll.u32 %s16103_s2, 4  ;;  %s10407_s21 = sshll.u32 %s16103_s2, 3 }
0x1083   : > { %s9925_s13 = scalar_lea.hbm %s16104_s25, %s10412_s30  ;;  %s9942_s27 = scalar_lea.hbm %s16106_s10, %s10412_s30 }
0x1084   : > { %9526 = vrot.lane.b32.xlu1 %v9497_v2, %s16088_s1  ;;  %v9671_v2 = vld [vmem:[%s15991_s8 + $0x18] sm:$0xff]  ;;  %s15874_s1 = scalar_lea.vmem [#allocation2], %s10113_s29  ;;  %s9928_s22 = sshll.u32 %s9925_s13, 4  ;;  %s9929_s22 = int_to_ptr.hbm [resolvable:$true] %s9928_s22 }
0x1085   : > { %9558 = vrot.lane.b32.xlu2 %v9505_v58, %s16092_s14  ;;  %9711 = vmatpush.msra.mxu3 %v9671_v2  ;;  %v9669_v58 = vld [vmem:[%s15991_s8 + $0x8] sm:$0xff]  ;;  %v10378_v2 = vld [vmem:[%s15991_s8 + $0x30] sm:$0xff]  ;;  %s10820_s28 = sshra.s32 %s9929_s22, 4  ;;  %s10821_s28 = int_to_ptr.hbm [resolvable:$true] %s10820_s28 }
0x1086   : > { %s10822_s0 = scalar_lea.hbm %s10821_s28, 16  ;;  %p10827_p0 = scmp.lt.s32.totalorder %s10821_s28, %s16104_s25 }
0x1087   : > { %9712 = vmatpush.msra.mxu3 %v9670_v61  ;;  %p10823_p11 = scmp.ne.s32.totalorder %s10821_s28, %s10822_s0  ;;  %p10828_p1 = scmp.lt.s32.totalorder %s10826_s3, %s10822_s0 }
0x1089   : > { %9713 = vmatpush.msra.mxu3 %v9669_v58  ;;  %v10377_v58 = vld [vmem:[%s15991_s8 + $0x28] sm:$0xff]  ;;  %p10824_p12 = pnand %p10823_p11, %p11063_p5  ;;  %p10829_p2 = por %p10828_p1, %p10827_p0 }
0x108b   : > { %9714 = vmatpush.msra.mxu3 %v9668_v1  ;;  %p10825_p13 = pneg %p10824_p12 }
0x108c   : > { %9550 = vrot.lane.b32.xlu1 %v9503_v11, %s16091_s16  ;;  %s9926_s16 = sshll.u32 %s15874_s1, 4  ;;  %s9927_s16 = int_to_ptr.vmem [resolvable:$true] %s9926_s16 }
0x108d   : > { %p10830_p3 = pnand %p10829_p2, %p10825_p13 }
0x10b6   : > { %9615 = vadd.xlane.f32.xlu1 %v9614_v3 }
0x10be   : > { %v9541_v31 = vpop.permute.xlu2 %9540 }
0x10c6   : > { %v9517_v50 = vpop.permute.xlu2 %9516 }
0x10cf   : > { %v9511_v6 = vpop.permute.xlu2 %9510 }
0x10d0   : > { %v9563_v29 = vsel %vm2036_vm12, %v9491_v52, %v9511_v6 }
0x10d7   : > { %v9535_v30 = vpop.permute.xlu2 %9534 }
0x10dc   : > { %v9525_v25 = vpop.permute.xlu0 %9524 }
0x10de   : > { %v9509_v8 = vpop.permute.xlu1 %9508 }
0x10df   : > { %v9562_v34 = vsel %vm2036_vm12, %v9379_v60, %v9509_v8  ;;  %v9559_v36 = vpop.permute.xlu2 %9558 }
0x10e0   : > { %v9564_v32 = vsel %vm2795_vm5, %v9562_v34, %v9517_v50  ;;  %v9688_v34 = vld [vmem:[%s16099_s20 + $0x78] sm:$0xff] }
0x10e1   : > { %v9566_v21 = vsel %vm2797_vm6, %v9564_v32, %v9525_v25  ;;  %v9687_v32 = vld [vmem:[%s16099_s20 + $0x70] sm:$0xff]  ;;  %9727 = vmatpush.msrb.mxu0 %v9688_v34 }
0x10e3   : > { %9728 = vmatpush.msrb.mxu0 %v9687_v32 }
0x10e4   : > { %v9549_v45 = vpop.permute.xlu0 %9548 }
0x10e6   : > { %v9533_v38 = vpop.permute.xlu1 %9532 }
0x10e7   : > { %v9568_v9 = vsel %vm2269_vm13, %v9566_v21, %v9533_v38  ;;  %v9686_v38 = vld [vmem:[%s16099_s20 + $0x68] sm:$0xff]  ;;  %v9685_v21 = vld [vmem:[%s16099_s20 + $0x60] sm:$0xff] }
0x10e8   : > { %v9570_v55 = vsel %vm2800_vm7, %v9568_v9, %v9541_v31  ;;  %v15721_v31 = vld [vmem:[%s15988_s5 + $0x4] ss:$0 sm:$0xff]  ;;  %9729 = vmatpush.msrb.mxu0 %v9686_v38  ;;  %v10579_v38 = vld [vmem:[%s15988_s5 + $0x5] ss:$0 sm:$0xff] }
0x10e9   : > { %v9572_v62 = vsel %vm2802_vm8, %v9570_v55, %v9549_v45  ;;  %v9684_v45 = vld [vmem:[%s16099_s20 + $0x58] sm:$0xff]  ;;  %v9683_v55 = vld [vmem:[%s16099_s20 + $0x50] sm:$0xff] }
0x10ea   : > { %9730 = vmatpush.msrb.mxu0 %v9685_v21 }
0x10ec   : > { %v9519_v40 = vpop.permute.xlu0 %9518  ;;  %9731 = vmatpush.msrb.mxu0 %v9684_v45 }
0x10ed   : > { %v9565_v20 = vsel %vm2795_vm5, %v9563_v29, %v9519_v40  ;;  %v9681_v40 = vld [vmem:[%s16099_s20 + $0x40] sm:$0xff]  ;;  %v9680_v29 = vld [vmem:[%s16099_s20 + $0x38] sm:$0xff] }
0x10ee   : > { %v9557_v53 = vpop.permute.xlu1 %9556  ;;  %9732 = vmatpush.msrb.mxu0 %v9683_v55 }
0x10ef   : > { %v9574_v47 = vsel %vm2804_vm9, %v9572_v62, %v9557_v53  ;;  %v9682_v53 = vld [vmem:[%s16099_s20 + $0x48] sm:$0xff] }
0x10f0   : > { %10368 = vmatmul.msk.f32.vlgmr.msrb.gmra.mxu2 %vm530_vm0, %v9574_v47  ;;  %9733 = vmatpush.msrb.mxu0 %v9682_v53 }
0x10f2   : > { %9734 = vmatpush.msrb.mxu0 %v9681_v40 }
0x10f4   : > { %v9543_v14 = vpop.permute.xlu0 %9542  ;;  %9735 = vmatpush.msrb.mxu0 %v9680_v29 }
0x10f6   : > { %v9527_v44 = vpop.permute.xlu1 %9526 }
0x10f7   : > { %v9567_v54 = vsel %vm2797_vm6, %v9565_v20, %v9527_v44 }
0x10f8   : > { %v9569_v57 = vsel %vm2269_vm13, %v9567_v54, %v9535_v30  ;;  %v9679_v54 = vld [vmem:[%s16099_s20 + $0x30] sm:$0xff] }
0x10f9   : > { %v9571_v0 = vsel %vm2800_vm7, %v9569_v57, %v9543_v14  ;;  %v9678_v14 = vld [vmem:[%s16099_s20 + $0x28] sm:$0xff]  ;;  %9736 = vmatpush.msrb.mxu0 %v9679_v54 }
0x10fb   : > { %9737 = vmatpush.msrb.mxu0 %v9678_v14 }
0x10fe   : > { %v9551_v51 = vpop.permute.xlu1 %9550 }
0x10ff   : > { %v9573_v63 = vsel %vm2802_vm8, %v9571_v0, %v9551_v51  ;;  %v9677_v51 = vld [vmem:[%s16099_s20 + $0x20] sm:$0xff] }
0x1100   : > { %v9575_v10 = vsel %vm2804_vm9, %v9573_v63, %v9559_v36  ;;  %v9676_v63 = vld [vmem:[%s16099_s20 + $0x18] sm:$0xff]  ;;  %9738 = vmatpush.msrb.mxu0 %v9677_v51 }
0x1101   : > { %10369 = vmatmul.msk.f32.gmra.mxu2 %vm530_vm0, %v9575_v10 }
0x1102   : > { %9739 = vmatpush.msrb.mxu0 %v9676_v63 }
0x1129   : > { %v9616_v49 = vpop.xlane.xlu1 %9615 }
0x112a   : > { %v9620_v35 = vmul.f32 %v9616_v49, %v11097_v12 }
0x112c   : > { %v9622_v19 = vsub.f32 %v15646_v26, %v9620_v35 }
0x112e   : > { %v9624_v42 = vmul.f32 %v9622_v19, %v9622_v19 }
0x1130   : > { %v9626_v37 = vsel %vm530_vm0, %v9624_v42, 0.0 }
0x1131   : > { %9627 = vadd.xlane.f32.xlu1 %v9626_v37  ;;  %v9675_v37 = vld [vmem:[%s16099_s20 + $0x10] sm:$0xff] }
0x1132   : > { %9740 = vmatpush.msrb.mxu0 %v9675_v37  ;;  %v10388_v37 = vld [vmem:[%s16099_s20 + $0xb8] sm:$0xff] }
0x1173   : > { %v9602_v56 = vpop.f32.mrf.mxu2 }
0x1174   : > { %v9603_v48 = vadd.f32 %v10574_v5, %v9602_v56  ;;  %v9673_v56 = vld [vmem:[%s16099_s20] sm:$0xff] }
0x1176   : > { %v15685_v46 = vadd.f32 %v10803_v16, %v9603_v48  ;;  %v15798_v48 = vld [vmem:[%s16100_s18] ss:$0 sm:$0xff] }
0x1178   : > { %v9756_v43 = vsel %vm530_vm0, %v15685_v46, 0.0 }
0x1179   : > { %9757 = vadd.xlane.f32.xlu0 %v9756_v43 }
0x1181   : > { %9618 = vadd.xlane.f32.xlu0 %v9617_v13 }
0x1184   : > { %v9605_v24 = vpop.f32.mrf.mxu2 }
0x1185   : > { %v9606_v17 = vadd.f32 %v10574_v5, %v9605_v24  ;;  %v9674_v5 = vld [vmem:[%s16099_s20 + $0x8] sm:$0xff] }
0x1186   : > { %9741 = vmatpush.msrb.mxu0 %v9674_v5  ;;  %v10387_v5 = vld [vmem:[%s16099_s20 + $0xb0] sm:$0xff] }
0x1187   : > { %v15696_v33 = vadd.f32 %v10805_v27, %v9606_v17 }
0x1188   : > { %9742 = vmatpush.msrb.mxu0 %v9673_v56  ;;  %v10386_v56 = vld [vmem:[%s16099_s20 + $0xa8] sm:$0xff] }
0x1189   : > { %v9759_v60 = vsel %vm530_vm0, %v15696_v33, 0.0 }
0x118a   : > { %9760 = vadd.xlane.f32.xlu2 %v9759_v60  ;;  %v10379_v60 = vld [vmem:[%s15991_s8 + $0x38] sm:$0xff] }
0x118b   : > { %9857 = vmatpush.msrb.mxu1 %v10379_v60  ;;  %v10382_v60 = vld [vmem:[%s16099_s20 + $0x88] sm:$0xff] }
0x118d   : > { %9858 = vmatpush.msrb.mxu1 %v10378_v2  ;;  %v10381_v2 = vld [vmem:[%s16099_s20 + $0x80] sm:$0xff] }
0x118f   : > { %9859 = vmatpush.msrb.mxu1 %v10377_v58 }
0x11a4   : > { %v9628_v11 = vpop.xlane.xlu1 %9627 }
0x11a5   : > { %v9632_v15 = vmul.f32 %v9628_v11, %v11097_v12 }
0x11a7   : > { %v9634_v52 = vadd.f32 1e-05, %v9632_v15 }
0x11a9   : > { %10789 = vrsqrt.f32 %v9634_v52  ;;  %vm9642_vm12 = vweird.f32 %v9634_v52 }
0x11af   : > { %v10790_v23 = vpop.eup %10789 }
0x11b0   : > { %v9637_v22 = vmul.f32 %v10790_v23, %v9634_v52  ;;  %vm9643_vm11 = vweird.f32 %v10790_v23  ;;  %v10376_v52 = vld [vmem:[%s15991_s8 + $0x20] sm:$0xff] }
0x11b1   : > { %vm9644_vm13 = vmor %vm9642_vm12, %vm9643_vm11  ;;  %9860 = vmatpush.msrb.mxu1 %v10376_v52 }
0x11b2   : > { %v9638_v39 = vmul.f32 %v10790_v23, %v9637_v22 }
0x11b4   : > { %v9639_v3 = vmul.f32 0.5, %v9638_v39 }
0x11b6   : > { %v9640_v28 = vsub.f32 1.5, %v9639_v3 }
0x11b8   : > { %v9641_v4 = vmul.f32 %v10790_v23, %v9640_v28 }
0x11ba   : > { %v9645_v59 = vsel %vm9644_vm13, %v10790_v23, %v9641_v4 }
0x11bb   : > { %v9656_v25 = vmul.f32 %v9645_v59, %v9622_v19 }
0x11bd   : > { %v9661_v8 = vmul.f32 %v15716_v41, %v9656_v25 }
0x11bf   : > { %v9666_v50 = vadd.f32 %v15721_v31, %v9661_v8 }
0x11c1   : > { %10372 = vmatmul.msk.f32.vlgmr.msra.gmra.mxu3 %vm530_vm0, %v9666_v50  ;;  %v10578_v50 = vld [vmem:[%s15987_s4 + $0x5] ss:$0 sm:$0xff] }
0x11ec   : > { %v9758_v9 = vpop.xlane.xlu0 %9757 }
0x11ed   : > { %v9762_v6 = vmul.f32 %v9758_v9, %v11097_v12 }
0x11ef   : > { %v15746_v62 = vsub.f32 %v15685_v46, %v9762_v6 }
0x11f1   : > { %v9766_v47 = vmul.f32 %v15746_v62, %v15746_v62 }
0x11f3   : > { %v9768_v30 = vsel %vm530_vm0, %v9766_v47, 0.0 }
0x11f4   : > { %9769 = vadd.xlane.f32.xlu2 %v9768_v30  ;;  %v9619_v44 = vpop.xlane.xlu0 %9618 }
0x11f5   : > { %v9621_v20 = vmul.f32 %v9619_v44, %v11097_v12 }
0x11f7   : > { %v15765_v57 = vsub.f32 %v15691_v18, %v9621_v20 }
0x11f9   : > { %v9625_v0 = vmul.f32 %v15765_v57, %v15765_v57 }
0x11fb   : > { %v9629_v36 = vsel %vm530_vm0, %v9625_v0, 0.0 }
0x11fc   : > { %9630 = vadd.xlane.f32.xlu2 %v9629_v36 }
0x11fd   : > { %v9761_v10 = vpop.xlane.xlu2 %9760 }
0x11fe   : > { %v9763_v49 = vmul.f32 %v9761_v10, %v11097_v12  ;;  %v10393_v10 = vld [vmem:[%s16099_s20 + $0xe0] sm:$0xff] }
0x1200   : > { %v15781_v35 = vsub.f32 %v15696_v33, %v9763_v49  ;;  %v10392_v49 = vld [vmem:[%s16099_s20 + $0xd8] sm:$0xff] }
0x1202   : > { %v9767_v19 = vmul.f32 %v15781_v35, %v15781_v35 }
0x1204   : > { %v9771_v42 = vsel %vm530_vm0, %v9767_v19, 0.0  ;;  %v10390_v19 = vld [vmem:[%s16099_s20 + $0xc8] sm:$0xff] }
0x1205   : > { %9772 = vadd.xlane.f32.xlu0 %v9771_v42  ;;  %v10389_v42 = vld [vmem:[%s16099_s20 + $0xc0] sm:$0xff] }
0x1244   : > { %v9716_v16 = vpop.f32.mrf.mxu3 }
0x1245   : > { %v9717_v43 = vadd.f32 %v15798_v48, %v9716_v16  ;;  %v10385_v16 = vld [vmem:[%s16099_s20 + $0xa0] sm:$0xff] }
0x1247   : > { %v9722_v7 = vmax.f32 %v9717_v43, 0.0  ;;  %v10384_v43 = vld [vmem:[%s16099_s20 + $0x98] sm:$0xff] }
0x1249   : > { %9743 = vmatmul.f32.vlgmr.msrb.gmra.mxu0 %v9722_v7  ;;  %v10580_v7 = vld [vmem:[%s16102_s26] ss:$0 sm:$0xff] }
0x1267   : > { %v9770_v13 = vpop.xlane.xlu2 %9769 }
0x1268   : > { %v9774_v24 = vmul.f32 %v9770_v13, %v11097_v12 }
0x126a   : > { %v9776_v17 = vadd.f32 1e-05, %v9774_v24 }
0x126c   : > { %10791 = vrsqrt.f32 %v9776_v17  ;;  %vm9784_vm2 = vweird.f32 %v9776_v17 }
0x126f   : > { %v9631_v27 = vpop.xlane.xlu2 %9630 }
0x1270   : > { %v9633_v61 = vmul.f32 %v9631_v27, %v11097_v12  ;;  %v10383_v27 = vld [vmem:[%s16099_s20 + $0x90] sm:$0xff] }
0x1272   : > { %v10792_v1 = vpop.eup %10791  ;;  %v9635_v11 = vadd.f32 1e-05, %v9633_v61 }
0x1273   : > { %v9779_v15 = vmul.f32 %v10792_v1, %v9776_v17  ;;  %vm9785_vm1 = vweird.f32 %v10792_v1 }
0x1274   : > { %10793 = vrsqrt.f32 %v9635_v11  ;;  %vm9786_vm3 = vmor %vm9784_vm2, %vm9785_vm1  ;;  %vm9652_vm5 = vweird.f32 %v9635_v11 }
0x1275   : > { %v9780_v23 = vmul.f32 %v10792_v1, %v9779_v15 }
0x1277   : > { %v9781_v22 = vmul.f32 0.5, %v9780_v23 }
0x1278   : > { %v9773_v39 = vpop.xlane.xlu0 %9772 }
0x1279   : > { %v9782_v3 = vsub.f32 1.5, %v9781_v22  ;;  %v9775_v28 = vmul.f32 %v9773_v39, %v11097_v12 }
0x127a   : > { %v10794_v4 = vpop.eup %10793 }
0x127b   : > { %v9783_v59 = vmul.f32 %v10792_v1, %v9782_v3  ;;  %v9647_v25 = vmul.f32 %v10794_v4, %v9635_v11  ;;  %v9777_v8 = vadd.f32 1e-05, %v9775_v28  ;;  %vm9653_vm4 = vweird.f32 %v10794_v4  ;;  %v10582_v3 = vld [vmem:[%s16102_s26 + $0x1] ss:$0 sm:$0xff] }
0x127c   : > { %vm9654_vm6 = vmor %vm9652_vm5, %vm9653_vm4 }
0x127d   : > { %v9787_v34 = vsel %vm9786_vm3, %v10792_v1, %v9783_v59  ;;  %v9648_v32 = vmul.f32 %v10794_v4, %v9647_v25  ;;  %10795 = vrsqrt.f32 %v9777_v8  ;;  %vm9794_vm8 = vweird.f32 %v9777_v8 }
0x127e   : > { %v9798_v21 = vmul.f32 %v9787_v34, %v15746_v62 }
0x127f   : > { %v9649_v12 = vmul.f32 0.5, %v9648_v32 }
0x1280   : > { %v9803_v45 = vmul.f32 %v10578_v50, %v9798_v21 }
0x1281   : > { %v9650_v9 = vsub.f32 1.5, %v9649_v12 }
0x1282   : > { %v9808_v6 = vadd.f32 %v10579_v38, %v9803_v45 }
0x1283   : > { %v10796_v55 = vpop.eup %10795  ;;  %v9651_v53 = vmul.f32 %v10794_v4, %v9650_v9 }
0x1284   : > { %v9789_v47 = vmul.f32 %v10796_v55, %v9777_v8  ;;  %10398 = vmatmul.msk.f32.vlgmr.msrb.gmra.mxu1 %vm530_vm0, %v9808_v6  ;;  %vm9795_vm7 = vweird.f32 %v10796_v55 }
0x1285   : > { %v9655_v40 = vsel %vm9654_vm6, %v10794_v4, %v9651_v53  ;;  %vm9796_vm9 = vmor %vm9794_vm8, %vm9795_vm7 }
0x1286   : > { %v9657_v30 = vmul.f32 %v9655_v40, %v15765_v57  ;;  %v9790_v29 = vmul.f32 %v10796_v55, %v9789_v47  ;;  %v10394_v57 = vld [vmem:[%s16099_s20 + $0xe8] sm:$0xff] }
0x1288   : > { %v9791_v44 = vmul.f32 0.5, %v9790_v29  ;;  %v9662_v20 = vmul.f32 %v15716_v41, %v9657_v30  ;;  %v10396_v41 = vld [vmem:[%s16099_s20 + $0xf8] sm:$0xff] }
0x1289   : > { %9873 = vmatpush.msra.mxu2 %v10396_v41 }
0x128a   : > { %v9792_v62 = vsub.f32 1.5, %v9791_v44  ;;  %v9667_v54 = vadd.f32 %v15721_v31, %v9662_v20  ;;  %v10395_v31 = vld [vmem:[%s16099_s20 + $0xf0] sm:$0xff] }
0x128b   : > { %9874 = vmatpush.msra.mxu2 %v10395_v31 }
0x128c   : > { %v9793_v14 = vmul.f32 %v10796_v55, %v9792_v62  ;;  %10373 = vmatmul.msk.f32.gmra.mxu3 %vm530_vm0, %v9667_v54 }
0x128d   : > { %9875 = vmatpush.msra.mxu2 %v10394_v57 }
0x128e   : > { %v9797_v0 = vsel %vm9796_vm9, %v10796_v55, %v9793_v14 }
0x128f   : > { %v9799_v51 = vmul.f32 %v9797_v0, %v15781_v35  ;;  %9876 = vmatpush.msra.mxu2 %v10393_v10  ;;  %v10391_v35 = vld [vmem:[%s16099_s20 + $0xd0] sm:$0xff] }
0x1291   : > { %v9804_v36 = vmul.f32 %v10578_v50, %v9799_v51  ;;  %9877 = vmatpush.msra.mxu2 %v10392_v49 }
0x1293   : > { %v9809_v63 = vadd.f32 %v10579_v38, %v9804_v36  ;;  %9878 = vmatpush.msra.mxu2 %v10391_v35 }
0x1295   : > { %10399 = vmatmul.msk.f32.gmra.mxu1 %vm530_vm0, %v9809_v63  ;;  %9879 = vmatpush.msra.mxu2 %v10390_v19 }
0x1297   : > { %9880 = vmatpush.msra.mxu2 %v10389_v42 }
0x1299   : > { %9881 = vmatpush.msra.mxu2 %v10388_v37 }
0x129b   : > { %9882 = vmatpush.msra.mxu2 %v10387_v5 }
0x129d   : > { %9883 = vmatpush.msra.mxu2 %v10386_v56 }
0x129f   : > { %9884 = vmatpush.msra.mxu2 %v10385_v16 }
0x12a1   : > { %9885 = vmatpush.msra.mxu2 %v10384_v43 }
0x12a3   : > { %9886 = vmatpush.msra.mxu2 %v10383_v27 }
0x12a5   : > { %9887 = vmatpush.msra.mxu2 %v10382_v60 }
0x12a7   : > { %9888 = vmatpush.msra.mxu2 %v10381_v2 }
0x12c6   : > { %v9744_v13 = vpop.f32.mrf.mxu0 }
0x12c7   : > { %v9745_v24 = vadd.f32 %v10580_v7, %v9744_v13 }
0x12c9   : > { %v9750_v17 = vadd.f32 %v9745_v24, %v15646_v26  ;;  %v10581_v26 = vld [vmem:[%s16100_s18 + $0x1] ss:$0 sm:$0xff] }
0x12cb   : > { %9898 = vst.msk [vmem:[%s15874_s1] sm:$0xff] %vm530_vm0, %v9750_v17 }
0x1301   : > { %v9862_v61 = vpop.f32.mrf.mxu1 }
0x1302   : > { %v9863_v58 = vadd.f32 %v10581_v26, %v9862_v61 }
0x1304   : > { %v9868_v1 = vmax.f32 %v9863_v58, 0.0 }
0x1306   : > { %9889 = vmatmul.f32.vlgmr.msra.gmra.mxu2 %v9868_v1 }
0x130f   : > { %v9719_v11 = vpop.f32.mrf.mxu3 }
0x1310   : > { %v9720_v15 = vadd.f32 %v15798_v48, %v9719_v11 }
0x1312   : > { %v9723_v52 = vmax.f32 %v9720_v15, 0.0  ;;  %v9865_v23 = vpop.f32.mrf.mxu1 }
0x1313   : > { %v9866_v22 = vadd.f32 %v10581_v26, %v9865_v23 }
0x1314   : > { %9746 = vmatmul.f32.gmra.mxu0 %v9723_v52 }
0x1315   : > { %v9869_v39 = vmax.f32 %v9866_v22, 0.0 }
0x1317   : > { %9892 = vmatmul.f32.gmra.mxu2 %v9869_v39 }
0x1389   : > { %v9890_v28 = vpop.f32.mrf.mxu2 }
0x138a   : > { %v9891_v4 = vadd.f32 %v10582_v3, %v9890_v28 }
0x138c   : > { %v9896_v59 = vadd.f32 %v9891_v4, %v15685_v46 }
0x138e   : > { %9900 = vst.msk [vmem:[%s15896_s11] sm:$0xff] %vm530_vm0, %v9896_v59 }
0x1391   : > { %v9747_v48 = vpop.f32.mrf.mxu0 }
0x1392   : > { %v9748_v25 = vadd.f32 %v10580_v7, %v9747_v48 }
0x1394   : > { %v9751_v8 = vadd.f32 %v9748_v25, %v15691_v18 }
0x1396   : > { %9899 = vst.msk [vmem:[%s15874_s1 + $0x8] sm:$0xff] %vm530_vm0, %v9751_v8 }
0x1397   : > { %10833 = shalt.err (!%p10830_p3)
}
0x1398   : > { %s10947_s15 = smov 128   ;;  %s16107_s1 = sld [smem:[#allocation19_spill]] }
0x1399   : > { %10414 = dma.vmem_to_hbm [thread:$0]  (%p11063_p5), %s9927_s16, 256, %s9929_s22, %s9904_s19, %s10947_s15, %s10947_s15, %s16089_s24  }
0x139a   : > { %s16108_s9 = sld [smem:[#allocation29_spill]]  ;;  %s9908_s28 = sand.u32 1, %s16103_s2   ;;  %v9893_v46 = vpop.f32.mrf.mxu2 }
0x139b   : > { %s9943_s0 = sshll.u32 %s15896_s11, 4  ;;  %s9945_s17 = sshll.u32 %s9942_s27, 4  ;;  %v9894_v18 = vadd.f32 %v10582_v3, %v9893_v46  ;;  %s9944_s0 = int_to_ptr.vmem [resolvable:$true] %s9943_s0  ;;  %s9946_s17 = int_to_ptr.hbm [resolvable:$true] %s9945_s17 }
0x139c   : > { %s9909_s16 = scalar_lea.sflag [#allocation5], %s9908_s28  ;;  %s10848_s22 = sshra.s32 %s9946_s17, 4  ;;  %s10849_s22 = int_to_ptr.hbm [resolvable:$true] %s10848_s22 }
0x139d   : > { %v9897_v50 = vadd.f32 %v9894_v18, %v15696_v33  ;;  %s10850_s2 = scalar_lea.hbm %s10849_s22, 16  ;;  %s10854_s19 = scalar_lea.hbm %s16106_s10, 32 }
0x139e   : > { %s9960_s3 = sshll.u32 %s16107_s1, 4  ;;  %p10851_p4 = scmp.ne.s32.totalorder %s10849_s22, %s10850_s2  ;;  %s15932_s3 = int_to_ptr.vmem [resolvable:$true] %s9960_s3 }
0x139f   : > { %9901 = vst.msk [vmem:[%s15896_s11 + $0x8] sm:$0xff] %vm530_vm0, %v9897_v50  ;;  %p10855_p9 = scmp.lt.s32.totalorder %s10849_s22, %s16106_s10  ;;  %p10856_p10 = scmp.lt.s32.totalorder %s10854_s19, %s10850_s2 }
0x13a0   : > { %s9958_s12 = scalar_lea.hbm %s16108_s9, %s10407_s21  ;;  %p10852_p7 = pnand %p10851_p4, %p11063_p5 }
0x13a1   : > { %s9962_s23 = sshll.u32 %s9958_s12, 4  ;;  %p10857_p11 = por %p10856_p10, %p10855_p9  ;;  %s15934_s23 = int_to_ptr.hbm [resolvable:$true] %s9962_s23 }
0x13a2   : > { %p10853_p8 = pneg %p10852_p7 }
0x13a4   : > { %p10858_p12 = pnand %p10857_p11, %p10853_p8 }
0x13a6   : > { %10861 = shalt.err (!%p10858_p12)
}
0x13a7   : > { %10415 = dma.vmem_to_hbm [thread:$0]  (%p11063_p5), %s9944_s0, 256, %s9946_s17, %s9909_s16, %s10947_s15, %s10947_s15, %s16089_s24  }
0x13a8   : > { %s10876_s11 = sshra.s32 %s15934_s23, 4  ;;  %s10882_s28 = scalar_lea.hbm %s16108_s9, 16  ;;  %s10877_s11 = int_to_ptr.hbm [resolvable:$true] %s10876_s11 }
0x13a9   : > { %s10878_s30 = scalar_lea.hbm %s10877_s11, 8  ;;  %p10883_p2 = scmp.lt.s32.totalorder %s10877_s11, %s16108_s9 }
0x13aa   : > { %p10879_p13 = scmp.ne.s32.totalorder %s10877_s11, %s10878_s30  ;;  %p10884_p3 = scmp.lt.s32.totalorder %s10882_s28, %s10878_s30 }
0x13ac   : > { %p10880_p0 = pnand %p10879_p13, %p11063_p5  ;;  %p10885_p4 = por %p10884_p3, %p10883_p2 }
0x13ae   : > { %p10881_p1 = pneg %p10880_p0 }
0x13b0   : > { %p10886_p7 = pnand %p10885_p4, %p10881_p1 }
0x13b2   : > { %10889 = shalt.err (!%p10886_p7)
}
0x13b3   : > { %10416 = dma.vmem_to_hbm [thread:$0]  (%p11063_p5), %s15932_s3, 128, %s15934_s23, %s9909_s16  }
0x13b4 PF: > { %s16109_s24 = sld [smem:[#allocation12_spill]] }
0x13b5   : > { %s16110_s15 = sld [smem:[#allocation9_spill]] }
0x13ba   : > { %p10430_p8 = scmp.ge.s32.totalorder %s16109_s24, 2 }
0x13bb   : > { %s9974_s17 = sand.u32 1, %s16110_s15  }
0x13bc   : > { %p10421_p9 = pnand %p10430_p8, %p11067_p6  ;;  %s9975_s21 = scalar_lea.sflag [#allocation3], %s9974_s17 }
0x13be   : > { %p10422_p10 = pneg %p10421_p9 }
0x13c0   : > { %10907 = dma.done.wait (%p10422_p10), %s9975_s21, 256  }
0x13c1   : > { %10909 = vsyncadd (%p10422_p10), %s9975_s21, 4294967040  ;;  %s16112_s27 = sadd.s32 4294967294, %s16109_s24  }
0x13c2   : > { %s9984_s19 = sand.u32 1, %s16112_s27  }
0x13c3   : > { %s9985_s13 = scalar_lea.sflag [#allocation5], %s9984_s19 }
0x13c4   : > { %10911 = dma.done.wait (%p10422_p10), %s9985_s13, 384  }
0x13c5   : > { %10913 = vsyncadd (%p10422_p10), %s9985_s13, 4294966912  ;;  %s16113_s16 = sld [smem:[#allocation14_spill]] }
0x13c6   : > { %s16114_s29 = sld [smem:[#allocation10_spill]] }
0x13c7   : > { %s16115_s30 = sld [smem:[#allocation11_spill]] }
0x13c8   : > { %s16116_s15 = sld [smem:[#allocation15_spill]] }
0x13cb   : > { %p28_p5 = scmp.ge.s32.totalorder %s16113_s16, 4  }
0x13cd   :  { %30 = sbr.rel (!%p28_p5) target bundleno = 16 (0x10), region = 185 }
0x13d2   :  { %10001 = vsyncpa [#allocation3], 1 }
0x13d3   :  { %10003 = vsyncpa [#allocation3 + $0x1], 1 }
0x13d4   :  { %10004 = vsyncpa [#allocation5], 1 }
0x13d5   :  { %10006 = vsyncpa [#allocation5 + $0x1], 1 }

</bundles_post_ra>
